<compile_context>
chip_gen: v7x
topology: tpu7x:2x2x1
jax: 0.10.0
libtpu: 0.0.40
codegen_flags: <defaults>
</compile_context>

<pallas_src>
import functools
import math

import jax
import jax.numpy as jnp
from jax import lax
from jax.experimental import pallas as pl
from jax.experimental.pallas import tpu as pltpu


# ---- fixed spatial configuration (16x16 input, stride-2 encoder) -----------
IMG = 16                      # input H = W
KPAD = 2                      # conv padding (5x5, "same"-style)
VH = VW = IMG // 2            # valid spatial extent of every intermediate (8x8)
GRID_H = VH + 2 * KPAD        # 12: zero-bordered grid the activations live on
GRID_W = VW + 2 * KPAD        # 12
GRID_L = GRID_H * GRID_W      # 144 flat grid positions per image (lane axis)
PAD = 2 * GRID_W + 2          # 26: flat guard so every (kh,kw) shift stays in range
WBUF = GRID_L + 2 * PAD       # 196: activation buffer width
SUB = 8                       # sublane granularity


# ------------------------------ fused kernel --------------------------------

def _sae3_kernel(
    x_ref, mask_ref,
    w1_ref, b1_ref, g1_ref, be1_ref,
    w2_ref, b2_ref, g2_ref, be2_ref,
    w3_ref, b3_ref,
    w4_ref, b4_ref, g3_ref, be3_ref,
    w5_ref, b5_ref, g4_ref, be4_ref,
    w6_ref, b6_ref,
    z_ref, xhat_ref,
    buf0, buf1,
):
    """One image per grid step: conv1+GDN1 -> conv2+GDN2 -> conv3 (=z) ->
    deconv1+IGDN1 -> deconv2+IGDN2 -> deconv3 (=xhat phases), all in VMEM."""
    f32 = jnp.float32
    mask = mask_ref[...] > 0.5                       # (1, GRID_L) valid-region mask

    # Deterministic contents for the guard columns the shifted reads may touch.
    buf0[...] = jnp.zeros(buf0.shape, f32)
    buf1[...] = jnp.zeros(buf1.shape, f32)

    def gdn(y, g_ref, be_ref, inverse):
        n2 = jnp.dot(g_ref[...], y * y, preferred_element_type=f32) + be_ref[...]
        n2 = jnp.maximum(n2, 1e-9)                   # guard raw checkpoints
        return y * (jnp.sqrt(n2) if inverse else lax.rsqrt(n2))

    def conv5x5(src, cin, w_ref, b_ref):
        """Stride-1 5x5 conv on the zero-bordered grid via 25 shifted taps."""
        cout = w_ref.shape[1]
        acc = jnp.zeros((cout, GRID_L), f32)
        for kh in range(5):
            for kw in range(5):
                off = (kh - KPAD) * GRID_W + (kw - KPAD)
                xs = src[pl.ds(0, cin), pl.ds(PAD + off, GRID_L)]
                acc = acc + jnp.dot(w_ref[kh * 5 + kw], xs,
                                    preferred_element_type=f32)
        return jnp.where(mask, acc + b_ref[...], 0.0)

    # ---- conv1 (stride 2, polyphase over 4 input phase planes) + GDN1 ------
    cin_p = x_ref.shape[0] // 4
    c1 = w1_ref.shape[1]
    acc = jnp.zeros((c1, GRID_L), f32)
    for p in range(4):
        ph, pw = p // 2, p % 2
        for a in range(3 - ph):                      # kh = 2a + ph <= 4
            for b in range(3 - pw):                  # kw = 2b + pw <= 4
                off = (a - KPAD) * GRID_W + (b - KPAD)
                xs = x_ref[pl.ds(p * cin_p, cin_p), pl.ds(PAD + off, GRID_L)]
                acc = acc + jnp.dot(w1_ref[p * 9 + a * 3 + b], xs,
                                    preferred_element_type=f32)
    y = jnp.where(mask, acc + b1_ref[...], 0.0)
    y = gdn(y, g1_ref, be1_ref, inverse=False)
    buf0[pl.ds(0, c1), pl.ds(PAD, GRID_L)] = y

    # ---- conv2 + GDN2 -------------------------------------------------------
    c2 = w2_ref.shape[1]
    y = gdn(conv5x5(buf0, c1, w2_ref, b2_ref), g2_ref, be2_ref, inverse=False)
    buf1[pl.ds(0, c2), pl.ds(PAD, GRID_L)] = y

    # ---- conv3: latent z ----------------------------------------------------
    y = conv5x5(buf1, c2, w3_ref, b3_ref)
    z_ref[...] = y
    buf0[pl.ds(0, c2), pl.ds(PAD, GRID_L)] = y

    # ---- deconv1 (stride-1 ConvTranspose expressed as a conv) + IGDN1 ------
    y = gdn(conv5x5(buf0, c2, w4_ref, b4_ref), g3_ref, be3_ref, inverse=True)
    buf1[pl.ds(0, c2), pl.ds(PAD, GRID_L)] = y

    # ---- deconv2 + IGDN2 ----------------------------------------------------
    y = gdn(conv5x5(buf1, c2, w5_ref, b5_ref), g4_ref, be4_ref, inverse=True)
    buf0[pl.ds(0, c1), pl.ds(PAD, GRID_L)] = y

    # ---- deconv3 (stride-2 ConvTranspose, sub-pixel: 4 output phases) -------
    co = b6_ref.shape[0]
    for rh in range(2):
        for rw in range(2):
            acc = jnp.zeros((co, GRID_L), f32)
            for a in range(3 - rh):                  # kh = 2a + rh <= 4
                for b in range(3 - rw):
                    off = (1 - a) * GRID_W + (1 - b)
                    xs = buf0[pl.ds(0, c1), pl.ds(PAD + off, GRID_L)]
                    acc = acc + jnp.dot(
                        w6_ref[(rh * 2 + rw) * 9 + a * 3 + b], xs,
                        preferred_element_type=f32)
            xhat_ref[pl.ds((rh * 2 + rw) * co, co), :] = acc + b6_ref[...]


# ------------------- weight-layout converters (PyTorch -> taps) -------------

def _conv_taps(w):
    """Conv2d weight (Cout, Cin, 5, 5) -> (25, Cout, Cin), tap index kh*5 + kw."""
    return jnp.transpose(w, (2, 3, 0, 1)).reshape(25, w.shape[0], w.shape[1])


def _convT_s1_taps(w):
    """ConvTranspose2d (stride 1, pad 2) weight (Cin, Cout, 5, 5) as the
    equivalent stride-1 conv taps (25, Cout, Cin): spatially flipped, channels
    swapped."""
    wf = w[:, :, ::-1, ::-1]
    return jnp.transpose(wf, (2, 3, 1, 0)).reshape(25, w.shape[1], w.shape[0])


def _conv_s2_poly_taps(w, cin_pad):
    """Stride-2 Conv2d weight (Cout, Cin, 5, 5) -> polyphase taps
    (36, Cout, cin_pad).  Tap ((ph*2+pw)*3 + a)*3 + b holds W[:, :, 2a+ph, 2b+pw]."""
    cout, cin = w.shape[0], w.shape[1]
    taps = jnp.zeros((4, 3, 3, cout, cin_pad), w.dtype)
    for ph in range(2):
        for pw in range(2):
            for a in range(3 - ph):
                for b in range(3 - pw):
                    taps = taps.at[ph * 2 + pw, a, b, :, :cin].set(
                        w[:, :, 2 * a + ph, 2 * b + pw])
    return taps.reshape(36, cout, cin_pad)


def _convT_s2_poly_taps(w):
    """Stride-2 ConvTranspose2d weight (Cin, Cout, 5, 5) -> sub-pixel taps
    (36, Cout, Cin).  Output phase (rh, rw), tap (a, b) holds
    W[:, :, 2a+rh, 2b+rw]^T and reads the input shifted by (1-a, 1-b)."""
    cin, cout = w.shape[0], w.shape[1]
    taps = jnp.zeros((4, 3, 3, cout, cin), w.dtype)
    for rh in range(2):
        for rw in range(2):
            for a in range(3 - rh):
                for b in range(3 - rw):
                    taps = taps.at[rh * 2 + rw, a, b].set(
                        w[:, :, 2 * a + rh, 2 * b + rw].T)
    return taps.reshape(36, cout, cin)


# ------------------------------ parameters ----------------------------------

def init_params(key, input_channels=4, num_filters=8):
    """PyTorch-default-style init, converted to the kernel's tap layouts."""
    C1, C2 = num_filters, 2 * num_filters
    ks = jax.random.split(key, 12)

    def uni(k, shape, fan_in):
        bound = 1.0 / math.sqrt(fan_in)
        return jax.random.uniform(k, shape, jnp.float32, -bound, bound)

    conv1_w = uni(ks[0], (C1, input_channels, 5, 5), input_channels * 25)
    conv1_b = uni(ks[1], (C1,), input_channels * 25)
    conv2_w = uni(ks[2], (C2, C1, 5, 5), C1 * 25)
    conv2_b = uni(ks[3], (C2,), C1 * 25)
    conv3_w = uni(ks[4], (C2, C2, 5, 5), C2 * 25)
    conv3_b = uni(ks[5], (C2,), C2 * 25)
    deconv1_w = uni(ks[6], (C2, C2, 5, 5), C2 * 25)      # ConvTranspose2d layout
    deconv1_b = uni(ks[7], (C2,), C2 * 25)
    deconv2_w = uni(ks[8], (C2, C1, 5, 5), C1 * 25)
    deconv2_b = uni(ks[9], (C1,), C1 * 25)
    deconv3_w = uni(ks[10], (C1, input_channels, 5, 5), input_channels * 25)
    deconv3_b = uni(ks[11], (input_channels,), input_channels * 25)

    cin_pad = ((input_channels + SUB - 1) // SUB) * SUB   # align conv1's K

    params = {
        "w1": _conv_s2_poly_taps(conv1_w, cin_pad), "b1": conv1_b.reshape(-1, 1),
        "w2": _conv_taps(conv2_w),                  "b2": conv2_b.reshape(-1, 1),
        "w3": _conv_taps(conv3_w),                  "b3": conv3_b.reshape(-1, 1),
        "w4": _convT_s1_taps(deconv1_w),            "b4": deconv1_b.reshape(-1, 1),
        "w5": _convT_s1_taps(deconv2_w),            "b5": deconv2_b.reshape(-1, 1),
        "w6": _convT_s2_poly_taps(deconv3_w),       "b6": deconv3_b.reshape(-1, 1),
    }
    # GDN/IGDN: standard init beta = 1, gamma = 0.1 * I.
    for gname, bname, C in (("g1", "be1", C1), ("g2", "be2", C2),
                            ("g3", "be3", C2), ("g4", "be4", C1)):
        params[gname] = 0.1 * jnp.eye(C, dtype=jnp.float32)
        params[bname] = jnp.ones((C, 1), jnp.float32)
    return params


# -------------------------------- forward -----------------------------------

def sparse_autoencoder3_forward(params, x_nchw):
    """x: (N, Cin, 16, 16) -> (z: (N, 2F, 8, 8), xhat: (N, Cin, 16, 16))."""
    N, Cin, H, W = x_nchw.shape
    assert H == IMG and W == IMG, (H, W)
    C2 = params["w3"].shape[1]
    cin_p = params["w1"].shape[2]            # conv1 Cin padded to a multiple of 8

    # conv1 input: zero-pad by 2, split into the 4 stride-2 phase planes, embed
    # each 10x10 plane into the shared zero-bordered 12x12 grid, flatten spatial
    # onto the lane axis and add the flat guard padding the shifted reads need.
    x_cf = jnp.transpose(x_nchw, (1, 0, 2, 3)).astype(jnp.float32)    # (Cin,N,H,W)
    xpad = jnp.pad(x_cf, ((0, 0), (0, 0), (KPAD, KPAD), (KPAD, KPAD)))
    planes = []
    for ph in range(2):
        for pw in range(2):
            pp = xpad[:, :, ph::2, pw::2]                             # (Cin,N,10,10)
            pp = jnp.pad(pp, ((0, cin_p - Cin), (0, 0),
                              (0, GRID_H - pp.shape[2]),
                              (0, GRID_W - pp.shape[3])))
            planes.append(pp)
    xph = jnp.stack(planes, axis=0)                                   # (4,cp,N,12,12)
    xph = jnp.transpose(xph, (2, 0, 1, 3, 4)).reshape(N, 4 * cin_p, GRID_L)
    xph = jnp.pad(xph, ((0, 0), (0, 0), (PAD, PAD)))                  # (N,4cp,WBUF)

    # 1.0 inside the valid 8x8 window of the 12x12 grid, 0.0 on the zero border.
    rows = (jnp.arange(GRID_H) >= KPAD) & (jnp.arange(GRID_H) < KPAD + VH)
    cols = (jnp.arange(GRID_W) >= KPAD) & (jnp.arange(GRID_W) < KPAD + VW)
    mask = (rows[:, None] & cols[None, :]).reshape(1, GRID_L).astype(jnp.float32)

    def full_spec(arr):
        zero = (0,) * arr.ndim
        return pl.BlockSpec(arr.shape, lambda n, _z=zero: _z)

    param_names = ("w1", "b1", "g1", "be1",
                   "w2", "b2", "g2", "be2",
                   "w3", "b3",
                   "w4", "b4", "g3", "be3",
                   "w5", "b5", "g4", "be4",
                   "w6", "b6")
    weight_args = [params[k] for k in param_names]

    in_specs = ([pl.BlockSpec((None, 4 * cin_p, WBUF), lambda n: (n, 0, 0)),
                 full_spec(mask)]
                + [full_spec(a) for a in weight_args])

    out_shape = (jax.ShapeDtypeStruct((N, C2, GRID_L), jnp.float32),
                 jax.ShapeDtypeStruct((N, 4 * Cin, GRID_L), jnp.float32))
    out_specs = (pl.BlockSpec((None, C2, GRID_L), lambda n: (n, 0, 0)),
                 pl.BlockSpec((None, 4 * Cin, GRID_L), lambda n: (n, 0, 0)))

    z_flat, xh_flat = pl.pallas_call(
        _sae3_kernel,
        out_shape=out_shape,
        grid_spec=pltpu.PrefetchScalarGridSpec(
            num_scalar_prefetch=0,
            grid=(N,),                                   # one image per grid step
            in_specs=in_specs,
            out_specs=out_specs,
            scratch_shapes=[pltpu.VMEM((C2, WBUF), jnp.float32),
                            pltpu.VMEM((C2, WBUF), jnp.float32)],
        ),
        compiler_params=pltpu.CompilerParams(
            dimension_semantics=("parallel",),           # batch across TCs (v7x)
            vmem_limit_bytes=32 * 1024 * 1024,
        ),
    )(xph, mask, *weight_args)

    # extract the valid 8x8 window of z; pixel-shuffle the deconv3 output phases.
    z = z_flat.reshape(N, C2, GRID_H, GRID_W)[:, :, KPAD:KPAD + VH, KPAD:KPAD + VW]
    xh = xh_flat.reshape(N, 2, 2, Cin, GRID_H, GRID_W)[
        :, :, :, :, KPAD:KPAD + VH, KPAD:KPAD + VW]
    xhat = jnp.transpose(xh, (0, 3, 4, 1, 5, 2)).reshape(N, Cin, 2 * VH, 2 * VW)
    return z, xhat


# ---------------------------------- main -------------------------------------

if __name__ == "__main__":
    key = jax.random.PRNGKey(0)
    kx, kp = jax.random.split(key)

    input_channels, num_filters = 4, 8           # small synthetic config
    batch, H, W = 2, 16, 16
    x = jax.random.normal(kx, (batch, input_channels, H, W), jnp.float32)

    params = init_params(kp, input_channels, num_filters)
    fwd = jax.jit(functools.partial(sparse_autoencoder3_forward, params))

    z, xhat = fwd(x)
    jax.block_until_ready((z, xhat))

    assert z.shape == (batch, 2 * num_filters, H // 2, W // 2), z.shape
    assert xhat.shape == (batch, input_channels, H, W), xhat.shape
    assert jnp.all(jnp.isfinite(z)) and jnp.all(jnp.isfinite(xhat))
    print("KERNEL_OK")
</pallas_src>

<mosaic_0001>
module attributes {stable_mosaic.version = 11 : i64} {
  func.func @_sae3_kernel(%arg0: i32, %arg1: memref<1x32x196xf32, #tpu.memory_space<vmem>>, %arg2: memref<1x144xf32, #tpu.memory_space<vmem>>, %arg3: memref<36x8x8xf32, #tpu.memory_space<vmem>>, %arg4: memref<8x1xf32, #tpu.memory_space<vmem>>, %arg5: memref<8x8xf32, #tpu.memory_space<vmem>>, %arg6: memref<8x1xf32, #tpu.memory_space<vmem>>, %arg7: memref<25x16x8xf32, #tpu.memory_space<vmem>>, %arg8: memref<16x1xf32, #tpu.memory_space<vmem>>, %arg9: memref<16x16xf32, #tpu.memory_space<vmem>>, %arg10: memref<16x1xf32, #tpu.memory_space<vmem>>, %arg11: memref<25x16x16xf32, #tpu.memory_space<vmem>>, %arg12: memref<16x1xf32, #tpu.memory_space<vmem>>, %arg13: memref<25x16x16xf32, #tpu.memory_space<vmem>>, %arg14: memref<16x1xf32, #tpu.memory_space<vmem>>, %arg15: memref<16x16xf32, #tpu.memory_space<vmem>>, %arg16: memref<16x1xf32, #tpu.memory_space<vmem>>, %arg17: memref<25x8x16xf32, #tpu.memory_space<vmem>>, %arg18: memref<8x1xf32, #tpu.memory_space<vmem>>, %arg19: memref<8x8xf32, #tpu.memory_space<vmem>>, %arg20: memref<8x1xf32, #tpu.memory_space<vmem>>, %arg21: memref<36x4x8xf32, #tpu.memory_space<vmem>>, %arg22: memref<4x1xf32, #tpu.memory_space<vmem>>, %arg23: memref<1x16x144xf32, #tpu.memory_space<vmem>>, %arg24: memref<1x16x144xf32, #tpu.memory_space<vmem>>, %arg25: memref<16x196xf32, #tpu.memory_space<vmem>>, %arg26: memref<16x196xf32, #tpu.memory_space<vmem>>) attributes {dimension_semantics = [#tpu.dimension_semantics<parallel>], iteration_bounds = array<i64: 2>, scalar_prefetch = 0 : i64, scratch_operands = 2 : i64, tpu.core_type = #tpu.core_type<tc>, window_params = [{transform_indices = @transform_0, window_bounds = array<i64: 1, 32, 196>}, {pipeline_mode = #tpu.pipeline_mode<synchronous>, transform_indices = @transform_1, window_bounds = array<i64: 1, 144>}, {pipeline_mode = #tpu.pipeline_mode<synchronous>, transform_indices = @transform_2, window_bounds = array<i64: 36, 8, 8>}, {pipeline_mode = #tpu.pipeline_mode<synchronous>, transform_indices = @transform_3, window_bounds = array<i64: 8, 1>}, {pipeline_mode = #tpu.pipeline_mode<synchronous>, transform_indices = @transform_4, window_bounds = array<i64: 8, 8>}, {pipeline_mode = #tpu.pipeline_mode<synchronous>, transform_indices = @transform_5, window_bounds = array<i64: 8, 1>}, {pipeline_mode = #tpu.pipeline_mode<synchronous>, transform_indices = @transform_6, window_bounds = array<i64: 25, 16, 8>}, {pipeline_mode = #tpu.pipeline_mode<synchronous>, transform_indices = @transform_7, window_bounds = array<i64: 16, 1>}, {pipeline_mode = #tpu.pipeline_mode<synchronous>, transform_indices = @transform_8, window_bounds = array<i64: 16, 16>}, {pipeline_mode = #tpu.pipeline_mode<synchronous>, transform_indices = @transform_9, window_bounds = array<i64: 16, 1>}, {pipeline_mode = #tpu.pipeline_mode<synchronous>, transform_indices = @transform_10, window_bounds = array<i64: 25, 16, 16>}, {pipeline_mode = #tpu.pipeline_mode<synchronous>, transform_indices = @transform_11, window_bounds = array<i64: 16, 1>}, {pipeline_mode = #tpu.pipeline_mode<synchronous>, transform_indices = @transform_12, window_bounds = array<i64: 25, 16, 16>}, {pipeline_mode = #tpu.pipeline_mode<synchronous>, transform_indices = @transform_13, window_bounds = array<i64: 16, 1>}, {pipeline_mode = #tpu.pipeline_mode<synchronous>, transform_indices = @transform_14, window_bounds = array<i64: 16, 16>}, {pipeline_mode = #tpu.pipeline_mode<synchronous>, transform_indices = @transform_15, window_bounds = array<i64: 16, 1>}, {pipeline_mode = #tpu.pipeline_mode<synchronous>, transform_indices = @transform_16, window_bounds = array<i64: 25, 8, 16>}, {pipeline_mode = #tpu.pipeline_mode<synchronous>, transform_indices = @transform_17, window_bounds = array<i64: 8, 1>}, {pipeline_mode = #tpu.pipeline_mode<synchronous>, transform_indices = @transform_18, window_bounds = array<i64: 8, 8>}, {pipeline_mode = #tpu.pipeline_mode<synchronous>, transform_indices = @transform_19, window_bounds = array<i64: 8, 1>}, {pipeline_mode = #tpu.pipeline_mode<synchronous>, transform_indices = @transform_20, window_bounds = array<i64: 36, 4, 8>}, {pipeline_mode = #tpu.pipeline_mode<synchronous>, transform_indices = @transform_21, window_bounds = array<i64: 4, 1>}, {transform_indices = @transform_22, window_bounds = array<i64: 1, 16, 144>}, {transform_indices = @transform_23, window_bounds = array<i64: 1, 16, 144>}]} {
    %c0 = arith.constant 0 : index
    %c0_0 = arith.constant 0 : index
    %0 = vector.load %arg2[%c0, %c0_0] : memref<1x144xf32, #tpu.memory_space<vmem>>, vector<1x144xf32>
    %cst = arith.constant 5.000000e-01 : f32
    %1 = vector.broadcast %cst : f32 to vector<1x144xf32>
    %2 = arith.cmpf ogt, %0, %1 : vector<1x144xf32>
    %cst_1 = arith.constant 0.000000e+00 : f32
    %3 = vector.broadcast %cst_1 : f32 to vector<16x196xf32>
    %c0_2 = arith.constant 0 : index
    %c0_3 = arith.constant 0 : index
    %4 = vector.load %arg25[%c0_2, %c0_3] : memref<16x196xf32, #tpu.memory_space<vmem>>, vector<16x196xf32>
    tpu.vector_store %arg25[%c0_2, %c0_3], %3 {strides = array<i32>} : memref<16x196xf32, #tpu.memory_space<vmem>>, vector<16x196xf32>,
    %cst_4 = arith.constant 0.000000e+00 : f32
    %5 = vector.broadcast %cst_4 : f32 to vector<16x196xf32>
    %c0_5 = arith.constant 0 : index
    %c0_6 = arith.constant 0 : index
    %6 = vector.load %arg26[%c0_5, %c0_6] : memref<16x196xf32, #tpu.memory_space<vmem>>, vector<16x196xf32>
    tpu.vector_store %arg26[%c0_5, %c0_6], %5 {strides = array<i32>} : memref<16x196xf32, #tpu.memory_space<vmem>>, vector<16x196xf32>,
    %cst_7 = arith.constant 0.000000e+00 : f32
    %7 = vector.broadcast %cst_7 : f32 to vector<8x144xf32>
    %c0_8 = arith.constant 0 : index
    %c0_9 = arith.constant 0 : index
    %c0_10 = arith.constant 0 : index
    %8 = vector.load %arg1[%c0_8, %c0_9, %c0_10] : memref<1x32x196xf32, #tpu.memory_space<vmem>>, vector<1x8x144xf32>
    %9 = vector.shape_cast %8 : vector<1x8x144xf32> to vector<8x144xf32>
    %c0_11 = arith.constant 0 : index
    %c0_12 = arith.constant 0 : index
    %c0_13 = arith.constant 0 : index
    %10 = vector.load %arg3[%c0_11, %c0_12, %c0_13] : memref<36x8x8xf32, #tpu.memory_space<vmem>>, vector<1x8x8xf32>
    %11 = vector.shape_cast %10 : vector<1x8x8xf32> to vector<8x8xf32>
    %cst_14 = arith.constant dense<0.000000e+00> : vector<8x144xf32>
    %12 = tpu.matmul %11, %9, %cst_14 {dimension_numbers = #tpu.dot_dimension_numbers<[1], [0], [0], [1], [0, 0, 1, 1], [], []>} : vector<8x8xf32>, vector<8x144xf32>, vector<8x144xf32> -> vector<8x144xf32>
    %13 = arith.addf %7, %12 : vector<8x144xf32>
    %c0_15 = arith.constant 0 : index
    %c0_16 = arith.constant 0 : index
    %c1 = arith.constant 1 : index
    %14 = vector.load %arg1[%c0_15, %c0_16, %c1] : memref<1x32x196xf32, #tpu.memory_space<vmem>>, vector<1x8x144xf32>
    %15 = vector.shape_cast %14 : vector<1x8x144xf32> to vector<8x144xf32>
    %c1_17 = arith.constant 1 : index
    %c0_18 = arith.constant 0 : index
    %c0_19 = arith.constant 0 : index
    %16 = vector.load %arg3[%c1_17, %c0_18, %c0_19] : memref<36x8x8xf32, #tpu.memory_space<vmem>>, vector<1x8x8xf32>
    %17 = vector.shape_cast %16 : vector<1x8x8xf32> to vector<8x8xf32>
    %cst_20 = arith.constant dense<0.000000e+00> : vector<8x144xf32>
    %18 = tpu.matmul %17, %15, %cst_20 {dimension_numbers = #tpu.dot_dimension_numbers<[1], [0], [0], [1], [0, 0, 1, 1], [], []>} : vector<8x8xf32>, vector<8x144xf32>, vector<8x144xf32> -> vector<8x144xf32>
    %19 = arith.addf %13, %18 : vector<8x144xf32>
    %c0_21 = arith.constant 0 : index
    %c0_22 = arith.constant 0 : index
    %c2 = arith.constant 2 : index
    %20 = vector.load %arg1[%c0_21, %c0_22, %c2] : memref<1x32x196xf32, #tpu.memory_space<vmem>>, vector<1x8x144xf32>
    %21 = vector.shape_cast %20 : vector<1x8x144xf32> to vector<8x144xf32>
    %c2_23 = arith.constant 2 : index
    %c0_24 = arith.constant 0 : index
    %c0_25 = arith.constant 0 : index
    %22 = vector.load %arg3[%c2_23, %c0_24, %c0_25] : memref<36x8x8xf32, #tpu.memory_space<vmem>>, vector<1x8x8xf32>
    %23 = vector.shape_cast %22 : vector<1x8x8xf32> to vector<8x8xf32>
    %cst_26 = arith.constant dense<0.000000e+00> : vector<8x144xf32>
    %24 = tpu.matmul %23, %21, %cst_26 {dimension_numbers = #tpu.dot_dimension_numbers<[1], [0], [0], [1], [0, 0, 1, 1], [], []>} : vector<8x8xf32>, vector<8x144xf32>, vector<8x144xf32> -> vector<8x144xf32>
    %25 = arith.addf %19, %24 : vector<8x144xf32>
    %c0_27 = arith.constant 0 : index
    %c0_28 = arith.constant 0 : index
    %c12 = arith.constant 12 : index
    %26 = vector.load %arg1[%c0_27, %c0_28, %c12] : memref<1x32x196xf32, #tpu.memory_space<vmem>>, vector<1x8x144xf32>
    %27 = vector.shape_cast %26 : vector<1x8x144xf32> to vector<8x144xf32>
    %c3 = arith.constant 3 : index
    %c0_29 = arith.constant 0 : index
    %c0_30 = arith.constant 0 : index
    %28 = vector.load %arg3[%c3, %c0_29, %c0_30] : memref<36x8x8xf32, #tpu.memory_space<vmem>>, vector<1x8x8xf32>
    %29 = vector.shape_cast %28 : vector<1x8x8xf32> to vector<8x8xf32>
    %cst_31 = arith.constant dense<0.000000e+00> : vector<8x144xf32>
    %30 = tpu.matmul %29, %27, %cst_31 {dimension_numbers = #tpu.dot_dimension_numbers<[1], [0], [0], [1], [0, 0, 1, 1], [], []>} : vector<8x8xf32>, vector<8x144xf32>, vector<8x144xf32> -> vector<8x144xf32>
    %31 = arith.addf %25, %30 : vector<8x144xf32>
    %c0_32 = arith.constant 0 : index
    %c0_33 = arith.constant 0 : index
    %c13 = arith.constant 13 : index
    %32 = vector.load %arg1[%c0_32, %c0_33, %c13] : memref<1x32x196xf32, #tpu.memory_space<vmem>>, vector<1x8x144xf32>
    %33 = vector.shape_cast %32 : vector<1x8x144xf32> to vector<8x144xf32>
    %c4 = arith.constant 4 : index
    %c0_34 = arith.constant 0 : index
    %c0_35 = arith.constant 0 : index
    %34 = vector.load %arg3[%c4, %c0_34, %c0_35] : memref<36x8x8xf32, #tpu.memory_space<vmem>>, vector<1x8x8xf32>
    %35 = vector.shape_cast %34 : vector<1x8x8xf32> to vector<8x8xf32>
    %cst_36 = arith.constant dense<0.000000e+00> : vector<8x144xf32>
    %36 = tpu.matmul %35, %33, %cst_36 {dimension_numbers = #tpu.dot_dimension_numbers<[1], [0], [0], [1], [0, 0, 1, 1], [], []>} : vector<8x8xf32>, vector<8x144xf32>, vector<8x144xf32> -> vector<8x144xf32>
    %37 = arith.addf %31, %36 : vector<8x144xf32>
    %c0_37 = arith.constant 0 : index
    %c0_38 = arith.constant 0 : index
    %c14 = arith.constant 14 : index
    %38 = vector.load %arg1[%c0_37, %c0_38, %c14] : memref<1x32x196xf32, #tpu.memory_space<vmem>>, vector<1x8x144xf32>
    %39 = vector.shape_cast %38 : vector<1x8x144xf32> to vector<8x144xf32>
    %c5 = arith.constant 5 : index
    %c0_39 = arith.constant 0 : index
    %c0_40 = arith.constant 0 : index
    %40 = vector.load %arg3[%c5, %c0_39, %c0_40] : memref<36x8x8xf32, #tpu.memory_space<vmem>>, vector<1x8x8xf32>
    %41 = vector.shape_cast %40 : vector<1x8x8xf32> to vector<8x8xf32>
    %cst_41 = arith.constant dense<0.000000e+00> : vector<8x144xf32>
    %42 = tpu.matmul %41, %39, %cst_41 {dimension_numbers = #tpu.dot_dimension_numbers<[1], [0], [0], [1], [0, 0, 1, 1], [], []>} : vector<8x8xf32>, vector<8x144xf32>, vector<8x144xf32> -> vector<8x144xf32>
    %43 = arith.addf %37, %42 : vector<8x144xf32>
    %c0_42 = arith.constant 0 : index
    %c0_43 = arith.constant 0 : index
    %c24 = arith.constant 24 : index
    %44 = vector.load %arg1[%c0_42, %c0_43, %c24] : memref<1x32x196xf32, #tpu.memory_space<vmem>>, vector<1x8x144xf32>
    %45 = vector.shape_cast %44 : vector<1x8x144xf32> to vector<8x144xf32>
    %c6 = arith.constant 6 : index
    %c0_44 = arith.constant 0 : index
    %c0_45 = arith.constant 0 : index
    %46 = vector.load %arg3[%c6, %c0_44, %c0_45] : memref<36x8x8xf32, #tpu.memory_space<vmem>>, vector<1x8x8xf32>
    %47 = vector.shape_cast %46 : vector<1x8x8xf32> to vector<8x8xf32>
    %cst_46 = arith.constant dense<0.000000e+00> : vector<8x144xf32>
    %48 = tpu.matmul %47, %45, %cst_46 {dimension_numbers = #tpu.dot_dimension_numbers<[1], [0], [0], [1], [0, 0, 1, 1], [], []>} : vector<8x8xf32>, vector<8x144xf32>, vector<8x144xf32> -> vector<8x144xf32>
    %49 = arith.addf %43, %48 : vector<8x144xf32>
    %c0_47 = arith.constant 0 : index
    %c0_48 = arith.constant 0 : index
    %c25 = arith.constant 25 : index
    %50 = vector.load %arg1[%c0_47, %c0_48, %c25] : memref<1x32x196xf32, #tpu.memory_space<vmem>>, vector<1x8x144xf32>
    %51 = vector.shape_cast %50 : vector<1x8x144xf32> to vector<8x144xf32>
    %c7 = arith.constant 7 : index
    %c0_49 = arith.constant 0 : index
    %c0_50 = arith.constant 0 : index
    %52 = vector.load %arg3[%c7, %c0_49, %c0_50] : memref<36x8x8xf32, #tpu.memory_space<vmem>>, vector<1x8x8xf32>
    %53 = vector.shape_cast %52 : vector<1x8x8xf32> to vector<8x8xf32>
    %cst_51 = arith.constant dense<0.000000e+00> : vector<8x144xf32>
    %54 = tpu.matmul %53, %51, %cst_51 {dimension_numbers = #tpu.dot_dimension_numbers<[1], [0], [0], [1], [0, 0, 1, 1], [], []>} : vector<8x8xf32>, vector<8x144xf32>, vector<8x144xf32> -> vector<8x144xf32>
    %55 = arith.addf %49, %54 : vector<8x144xf32>
    %c0_52 = arith.constant 0 : index
    %c0_53 = arith.constant 0 : index
    %c26 = arith.constant 26 : index
    %56 = vector.load %arg1[%c0_52, %c0_53, %c26] : memref<1x32x196xf32, #tpu.memory_space<vmem>>, vector<1x8x144xf32>
    %57 = vector.shape_cast %56 : vector<1x8x144xf32> to vector<8x144xf32>
    %c8 = arith.constant 8 : index
    %c0_54 = arith.constant 0 : index
    %c0_55 = arith.constant 0 : index
    %58 = vector.load %arg3[%c8, %c0_54, %c0_55] : memref<36x8x8xf32, #tpu.memory_space<vmem>>, vector<1x8x8xf32>
    %59 = vector.shape_cast %58 : vector<1x8x8xf32> to vector<8x8xf32>
    %cst_56 = arith.constant dense<0.000000e+00> : vector<8x144xf32>
    %60 = tpu.matmul %59, %57, %cst_56 {dimension_numbers = #tpu.dot_dimension_numbers<[1], [0], [0], [1], [0, 0, 1, 1], [], []>} : vector<8x8xf32>, vector<8x144xf32>, vector<8x144xf32> -> vector<8x144xf32>
    %61 = arith.addf %55, %60 : vector<8x144xf32>
    %c0_57 = arith.constant 0 : index
    %c8_58 = arith.constant 8 : index
    %c0_59 = arith.constant 0 : index
    %62 = vector.load %arg1[%c0_57, %c8_58, %c0_59] : memref<1x32x196xf32, #tpu.memory_space<vmem>>, vector<1x8x144xf32>
    %63 = vector.shape_cast %62 : vector<1x8x144xf32> to vector<8x144xf32>
    %c9 = arith.constant 9 : index
    %c0_60 = arith.constant 0 : index
    %c0_61 = arith.constant 0 : index
    %64 = vector.load %arg3[%c9, %c0_60, %c0_61] : memref<36x8x8xf32, #tpu.memory_space<vmem>>, vector<1x8x8xf32>
    %65 = vector.shape_cast %64 : vector<1x8x8xf32> to vector<8x8xf32>
    %cst_62 = arith.constant dense<0.000000e+00> : vector<8x144xf32>
    %66 = tpu.matmul %65, %63, %cst_62 {dimension_numbers = #tpu.dot_dimension_numbers<[1], [0], [0], [1], [0, 0, 1, 1], [], []>} : vector<8x8xf32>, vector<8x144xf32>, vector<8x144xf32> -> vector<8x144xf32>
    %67 = arith.addf %61, %66 : vector<8x144xf32>
    %c0_63 = arith.constant 0 : index
    %c8_64 = arith.constant 8 : index
    %c1_65 = arith.constant 1 : index
    %68 = vector.load %arg1[%c0_63, %c8_64, %c1_65] : memref<1x32x196xf32, #tpu.memory_space<vmem>>, vector<1x8x144xf32>
    %69 = vector.shape_cast %68 : vector<1x8x144xf32> to vector<8x144xf32>
    %c10 = arith.constant 10 : index
    %c0_66 = arith.constant 0 : index
    %c0_67 = arith.constant 0 : index
    %70 = vector.load %arg3[%c10, %c0_66, %c0_67] : memref<36x8x8xf32, #tpu.memory_space<vmem>>, vector<1x8x8xf32>
    %71 = vector.shape_cast %70 : vector<1x8x8xf32> to vector<8x8xf32>
    %cst_68 = arith.constant dense<0.000000e+00> : vector<8x144xf32>
    %72 = tpu.matmul %71, %69, %cst_68 {dimension_numbers = #tpu.dot_dimension_numbers<[1], [0], [0], [1], [0, 0, 1, 1], [], []>} : vector<8x8xf32>, vector<8x144xf32>, vector<8x144xf32> -> vector<8x144xf32>
    %73 = arith.addf %67, %72 : vector<8x144xf32>
    %c0_69 = arith.constant 0 : index
    %c8_70 = arith.constant 8 : index
    %c12_71 = arith.constant 12 : index
    %74 = vector.load %arg1[%c0_69, %c8_70, %c12_71] : memref<1x32x196xf32, #tpu.memory_space<vmem>>, vector<1x8x144xf32>
    %75 = vector.shape_cast %74 : vector<1x8x144xf32> to vector<8x144xf32>
    %c12_72 = arith.constant 12 : index
    %c0_73 = arith.constant 0 : index
    %c0_74 = arith.constant 0 : index
    %76 = vector.load %arg3[%c12_72, %c0_73, %c0_74] : memref<36x8x8xf32, #tpu.memory_space<vmem>>, vector<1x8x8xf32>
    %77 = vector.shape_cast %76 : vector<1x8x8xf32> to vector<8x8xf32>
    %cst_75 = arith.constant dense<0.000000e+00> : vector<8x144xf32>
    %78 = tpu.matmul %77, %75, %cst_75 {dimension_numbers = #tpu.dot_dimension_numbers<[1], [0], [0], [1], [0, 0, 1, 1], [], []>} : vector<8x8xf32>, vector<8x144xf32>, vector<8x144xf32> -> vector<8x144xf32>
    %79 = arith.addf %73, %78 : vector<8x144xf32>
    %c0_76 = arith.constant 0 : index
    %c8_77 = arith.constant 8 : index
    %c13_78 = arith.constant 13 : index
    %80 = vector.load %arg1[%c0_76, %c8_77, %c13_78] : memref<1x32x196xf32, #tpu.memory_space<vmem>>, vector<1x8x144xf32>
    %81 = vector.shape_cast %80 : vector<1x8x144xf32> to vector<8x144xf32>
    %c13_79 = arith.constant 13 : index
    %c0_80 = arith.constant 0 : index
    %c0_81 = arith.constant 0 : index
    %82 = vector.load %arg3[%c13_79, %c0_80, %c0_81] : memref<36x8x8xf32, #tpu.memory_space<vmem>>, vector<1x8x8xf32>
    %83 = vector.shape_cast %82 : vector<1x8x8xf32> to vector<8x8xf32>
    %cst_82 = arith.constant dense<0.000000e+00> : vector<8x144xf32>
    %84 = tpu.matmul %83, %81, %cst_82 {dimension_numbers = #tpu.dot_dimension_numbers<[1], [0], [0], [1], [0, 0, 1, 1], [], []>} : vector<8x8xf32>, vector<8x144xf32>, vector<8x144xf32> -> vector<8x144xf32>
    %85 = arith.addf %79, %84 : vector<8x144xf32>
    %c0_83 = arith.constant 0 : index
    %c8_84 = arith.constant 8 : index
    %c24_85 = arith.constant 24 : index
    %86 = vector.load %arg1[%c0_83, %c8_84, %c24_85] : memref<1x32x196xf32, #tpu.memory_space<vmem>>, vector<1x8x144xf32>
    %87 = vector.shape_cast %86 : vector<1x8x144xf32> to vector<8x144xf32>
    %c15 = arith.constant 15 : index
    %c0_86 = arith.constant 0 : index
    %c0_87 = arith.constant 0 : index
    %88 = vector.load %arg3[%c15, %c0_86, %c0_87] : memref<36x8x8xf32, #tpu.memory_space<vmem>>, vector<1x8x8xf32>
    %89 = vector.shape_cast %88 : vector<1x8x8xf32> to vector<8x8xf32>
    %cst_88 = arith.constant dense<0.000000e+00> : vector<8x144xf32>
    %90 = tpu.matmul %89, %87, %cst_88 {dimension_numbers = #tpu.dot_dimension_numbers<[1], [0], [0], [1], [0, 0, 1, 1], [], []>} : vector<8x8xf32>, vector<8x144xf32>, vector<8x144xf32> -> vector<8x144xf32>
    %91 = arith.addf %85, %90 : vector<8x144xf32>
    %c0_89 = arith.constant 0 : index
    %c8_90 = arith.constant 8 : index
    %c25_91 = arith.constant 25 : index
    %92 = vector.load %arg1[%c0_89, %c8_90, %c25_91] : memref<1x32x196xf32, #tpu.memory_space<vmem>>, vector<1x8x144xf32>
    %93 = vector.shape_cast %92 : vector<1x8x144xf32> to vector<8x144xf32>
    %c16 = arith.constant 16 : index
    %c0_92 = arith.constant 0 : index
    %c0_93 = arith.constant 0 : index
    %94 = vector.load %arg3[%c16, %c0_92, %c0_93] : memref<36x8x8xf32, #tpu.memory_space<vmem>>, vector<1x8x8xf32>
    %95 = vector.shape_cast %94 : vector<1x8x8xf32> to vector<8x8xf32>
    %cst_94 = arith.constant dense<0.000000e+00> : vector<8x144xf32>
    %96 = tpu.matmul %95, %93, %cst_94 {dimension_numbers = #tpu.dot_dimension_numbers<[1], [0], [0], [1], [0, 0, 1, 1], [], []>} : vector<8x8xf32>, vector<8x144xf32>, vector<8x144xf32> -> vector<8x144xf32>
    %97 = arith.addf %91, %96 : vector<8x144xf32>
    %c0_95 = arith.constant 0 : index
    %c16_96 = arith.constant 16 : index
    %c0_97 = arith.constant 0 : index
    %98 = vector.load %arg1[%c0_95, %c16_96, %c0_97] : memref<1x32x196xf32, #tpu.memory_space<vmem>>, vector<1x8x144xf32>
    %99 = vector.shape_cast %98 : vector<1x8x144xf32> to vector<8x144xf32>
    %c18 = arith.constant 18 : index
    %c0_98 = arith.constant 0 : index
    %c0_99 = arith.constant 0 : index
    %100 = vector.load %arg3[%c18, %c0_98, %c0_99] : memref<36x8x8xf32, #tpu.memory_space<vmem>>, vector<1x8x8xf32>
    %101 = vector.shape_cast %100 : vector<1x8x8xf32> to vector<8x8xf32>
    %cst_100 = arith.constant dense<0.000000e+00> : vector<8x144xf32>
    %102 = tpu.matmul %101, %99, %cst_100 {dimension_numbers = #tpu.dot_dimension_numbers<[1], [0], [0], [1], [0, 0, 1, 1], [], []>} : vector<8x8xf32>, vector<8x144xf32>, vector<8x144xf32> -> vector<8x144xf32>
    %103 = arith.addf %97, %102 : vector<8x144xf32>
    %c0_101 = arith.constant 0 : index
    %c16_102 = arith.constant 16 : index
    %c1_103 = arith.constant 1 : index
    %104 = vector.load %arg1[%c0_101, %c16_102, %c1_103] : memref<1x32x196xf32, #tpu.memory_space<vmem>>, vector<1x8x144xf32>
    %105 = vector.shape_cast %104 : vector<1x8x144xf32> to vector<8x144xf32>
    %c19 = arith.constant 19 : index
    %c0_104 = arith.constant 0 : index
    %c0_105 = arith.constant 0 : index
    %106 = vector.load %arg3[%c19, %c0_104, %c0_105] : memref<36x8x8xf32, #tpu.memory_space<vmem>>, vector<1x8x8xf32>
    %107 = vector.shape_cast %106 : vector<1x8x8xf32> to vector<8x8xf32>
    %cst_106 = arith.constant dense<0.000000e+00> : vector<8x144xf32>
    %108 = tpu.matmul %107, %105, %cst_106 {dimension_numbers = #tpu.dot_dimension_numbers<[1], [0], [0], [1], [0, 0, 1, 1], [], []>} : vector<8x8xf32>, vector<8x144xf32>, vector<8x144xf32> -> vector<8x144xf32>
    %109 = arith.addf %103, %108 : vector<8x144xf32>
    %c0_107 = arith.constant 0 : index
    %c16_108 = arith.constant 16 : index
    %c2_109 = arith.constant 2 : index
    %110 = vector.load %arg1[%c0_107, %c16_108, %c2_109] : memref<1x32x196xf32, #tpu.memory_space<vmem>>, vector<1x8x144xf32>
    %111 = vector.shape_cast %110 : vector<1x8x144xf32> to vector<8x144xf32>
    %c20 = arith.constant 20 : index
    %c0_110 = arith.constant 0 : index
    %c0_111 = arith.constant 0 : index
    %112 = vector.load %arg3[%c20, %c0_110, %c0_111] : memref<36x8x8xf32, #tpu.memory_space<vmem>>, vector<1x8x8xf32>
    %113 = vector.shape_cast %112 : vector<1x8x8xf32> to vector<8x8xf32>
    %cst_112 = arith.constant dense<0.000000e+00> : vector<8x144xf32>
    %114 = tpu.matmul %113, %111, %cst_112 {dimension_numbers = #tpu.dot_dimension_numbers<[1], [0], [0], [1], [0, 0, 1, 1], [], []>} : vector<8x8xf32>, vector<8x144xf32>, vector<8x144xf32> -> vector<8x144xf32>
    %115 = arith.addf %109, %114 : vector<8x144xf32>
    %c0_113 = arith.constant 0 : index
    %c16_114 = arith.constant 16 : index
    %c12_115 = arith.constant 12 : index
    %116 = vector.load %arg1[%c0_113, %c16_114, %c12_115] : memref<1x32x196xf32, #tpu.memory_space<vmem>>, vector<1x8x144xf32>
    %117 = vector.shape_cast %116 : vector<1x8x144xf32> to vector<8x144xf32>
    %c21 = arith.constant 21 : index
    %c0_116 = arith.constant 0 : index
    %c0_117 = arith.constant 0 : index
    %118 = vector.load %arg3[%c21, %c0_116, %c0_117] : memref<36x8x8xf32, #tpu.memory_space<vmem>>, vector<1x8x8xf32>
    %119 = vector.shape_cast %118 : vector<1x8x8xf32> to vector<8x8xf32>
    %cst_118 = arith.constant dense<0.000000e+00> : vector<8x144xf32>
    %120 = tpu.matmul %119, %117, %cst_118 {dimension_numbers = #tpu.dot_dimension_numbers<[1], [0], [0], [1], [0, 0, 1, 1], [], []>} : vector<8x8xf32>, vector<8x144xf32>, vector<8x144xf32> -> vector<8x144xf32>
    %121 = arith.addf %115, %120 : vector<8x144xf32>
    %c0_119 = arith.constant 0 : index
    %c16_120 = arith.constant 16 : index
    %c13_121 = arith.constant 13 : index
    %122 = vector.load %arg1[%c0_119, %c16_120, %c13_121] : memref<1x32x196xf32, #tpu.memory_space<vmem>>, vector<1x8x144xf32>
    %123 = vector.shape_cast %122 : vector<1x8x144xf32> to vector<8x144xf32>
    %c22 = arith.constant 22 : index
    %c0_122 = arith.constant 0 : index
    %c0_123 = arith.constant 0 : index
    %124 = vector.load %arg3[%c22, %c0_122, %c0_123] : memref<36x8x8xf32, #tpu.memory_space<vmem>>, vector<1x8x8xf32>
    %125 = vector.shape_cast %124 : vector<1x8x8xf32> to vector<8x8xf32>
    %cst_124 = arith.constant dense<0.000000e+00> : vector<8x144xf32>
    %126 = tpu.matmul %125, %123, %cst_124 {dimension_numbers = #tpu.dot_dimension_numbers<[1], [0], [0], [1], [0, 0, 1, 1], [], []>} : vector<8x8xf32>, vector<8x144xf32>, vector<8x144xf32> -> vector<8x144xf32>
    %127 = arith.addf %121, %126 : vector<8x144xf32>
    %c0_125 = arith.constant 0 : index
    %c16_126 = arith.constant 16 : index
    %c14_127 = arith.constant 14 : index
    %128 = vector.load %arg1[%c0_125, %c16_126, %c14_127] : memref<1x32x196xf32, #tpu.memory_space<vmem>>, vector<1x8x144xf32>
    %129 = vector.shape_cast %128 : vector<1x8x144xf32> to vector<8x144xf32>
    %c23 = arith.constant 23 : index
    %c0_128 = arith.constant 0 : index
    %c0_129 = arith.constant 0 : index
    %130 = vector.load %arg3[%c23, %c0_128, %c0_129] : memref<36x8x8xf32, #tpu.memory_space<vmem>>, vector<1x8x8xf32>
    %131 = vector.shape_cast %130 : vector<1x8x8xf32> to vector<8x8xf32>
    %cst_130 = arith.constant dense<0.000000e+00> : vector<8x144xf32>
    %132 = tpu.matmul %131, %129, %cst_130 {dimension_numbers = #tpu.dot_dimension_numbers<[1], [0], [0], [1], [0, 0, 1, 1], [], []>} : vector<8x8xf32>, vector<8x144xf32>, vector<8x144xf32> -> vector<8x144xf32>
    %133 = arith.addf %127, %132 : vector<8x144xf32>
    %c0_131 = arith.constant 0 : index
    %c24_132 = arith.constant 24 : index
    %c0_133 = arith.constant 0 : index
    %134 = vector.load %arg1[%c0_131, %c24_132, %c0_133] : memref<1x32x196xf32, #tpu.memory_space<vmem>>, vector<1x8x144xf32>
    %135 = vector.shape_cast %134 : vector<1x8x144xf32> to vector<8x144xf32>
    %c27 = arith.constant 27 : index
    %c0_134 = arith.constant 0 : index
    %c0_135 = arith.constant 0 : index
    %136 = vector.load %arg3[%c27, %c0_134, %c0_135] : memref<36x8x8xf32, #tpu.memory_space<vmem>>, vector<1x8x8xf32>
    %137 = vector.shape_cast %136 : vector<1x8x8xf32> to vector<8x8xf32>
    %cst_136 = arith.constant dense<0.000000e+00> : vector<8x144xf32>
    %138 = tpu.matmul %137, %135, %cst_136 {dimension_numbers = #tpu.dot_dimension_numbers<[1], [0], [0], [1], [0, 0, 1, 1], [], []>} : vector<8x8xf32>, vector<8x144xf32>, vector<8x144xf32> -> vector<8x144xf32>
    %139 = arith.addf %133, %138 : vector<8x144xf32>
    %c0_137 = arith.constant 0 : index
    %c24_138 = arith.constant 24 : index
    %c1_139 = arith.constant 1 : index
    %140 = vector.load %arg1[%c0_137, %c24_138, %c1_139] : memref<1x32x196xf32, #tpu.memory_space<vmem>>, vector<1x8x144xf32>
    %141 = vector.shape_cast %140 : vector<1x8x144xf32> to vector<8x144xf32>
    %c28 = arith.constant 28 : index
    %c0_140 = arith.constant 0 : index
    %c0_141 = arith.constant 0 : index
    %142 = vector.load %arg3[%c28, %c0_140, %c0_141] : memref<36x8x8xf32, #tpu.memory_space<vmem>>, vector<1x8x8xf32>
    %143 = vector.shape_cast %142 : vector<1x8x8xf32> to vector<8x8xf32>
    %cst_142 = arith.constant dense<0.000000e+00> : vector<8x144xf32>
    %144 = tpu.matmul %143, %141, %cst_142 {dimension_numbers = #tpu.dot_dimension_numbers<[1], [0], [0], [1], [0, 0, 1, 1], [], []>} : vector<8x8xf32>, vector<8x144xf32>, vector<8x144xf32> -> vector<8x144xf32>
    %145 = arith.addf %139, %144 : vector<8x144xf32>
    %c0_143 = arith.constant 0 : index
    %c24_144 = arith.constant 24 : index
    %c12_145 = arith.constant 12 : index
    %146 = vector.load %arg1[%c0_143, %c24_144, %c12_145] : memref<1x32x196xf32, #tpu.memory_space<vmem>>, vector<1x8x144xf32>
    %147 = vector.shape_cast %146 : vector<1x8x144xf32> to vector<8x144xf32>
    %c30 = arith.constant 30 : index
    %c0_146 = arith.constant 0 : index
    %c0_147 = arith.constant 0 : index
    %148 = vector.load %arg3[%c30, %c0_146, %c0_147] : memref<36x8x8xf32, #tpu.memory_space<vmem>>, vector<1x8x8xf32>
    %149 = vector.shape_cast %148 : vector<1x8x8xf32> to vector<8x8xf32>
    %cst_148 = arith.constant dense<0.000000e+00> : vector<8x144xf32>
    %150 = tpu.matmul %149, %147, %cst_148 {dimension_numbers = #tpu.dot_dimension_numbers<[1], [0], [0], [1], [0, 0, 1, 1], [], []>} : vector<8x8xf32>, vector<8x144xf32>, vector<8x144xf32> -> vector<8x144xf32>
    %151 = arith.addf %145, %150 : vector<8x144xf32>
    %c0_149 = arith.constant 0 : index
    %c24_150 = arith.constant 24 : index
    %c13_151 = arith.constant 13 : index
    %152 = vector.load %arg1[%c0_149, %c24_150, %c13_151] : memref<1x32x196xf32, #tpu.memory_space<vmem>>, vector<1x8x144xf32>
    %153 = vector.shape_cast %152 : vector<1x8x144xf32> to vector<8x144xf32>
    %c31 = arith.constant 31 : index
    %c0_152 = arith.constant 0 : index
    %c0_153 = arith.constant 0 : index
    %154 = vector.load %arg3[%c31, %c0_152, %c0_153] : memref<36x8x8xf32, #tpu.memory_space<vmem>>, vector<1x8x8xf32>
    %155 = vector.shape_cast %154 : vector<1x8x8xf32> to vector<8x8xf32>
    %cst_154 = arith.constant dense<0.000000e+00> : vector<8x144xf32>
    %156 = tpu.matmul %155, %153, %cst_154 {dimension_numbers = #tpu.dot_dimension_numbers<[1], [0], [0], [1], [0, 0, 1, 1], [], []>} : vector<8x8xf32>, vector<8x144xf32>, vector<8x144xf32> -> vector<8x144xf32>
    %157 = arith.addf %151, %156 : vector<8x144xf32>
    %c0_155 = arith.constant 0 : index
    %c0_156 = arith.constant 0 : index
    %158 = vector.load %arg4[%c0_155, %c0_156] : memref<8x1xf32, #tpu.memory_space<vmem>>, vector<8x1xf32>
    %159 = vector.broadcast %158 : vector<8x1xf32> to vector<8x144xf32>
    %160 = arith.addf %157, %159 : vector<8x144xf32>
    %cst_157 = arith.constant 0.000000e+00 : f32
    %161 = vector.shape_cast %2 : vector<1x144xi1> to vector<1x144xi1>
    %162 = vector.broadcast %161 : vector<1x144xi1> to vector<8x144xi1>
    %163 = vector.broadcast %cst_157 : f32 to vector<8x144xf32>
    %164 = arith.select %162, %160, %163 : vector<8x144xi1>, vector<8x144xf32>
    %c0_158 = arith.constant 0 : index
    %c0_159 = arith.constant 0 : index
    %165 = vector.load %arg5[%c0_158, %c0_159] : memref<8x8xf32, #tpu.memory_space<vmem>>, vector<8x8xf32>
    %166 = arith.mulf %164, %164 : vector<8x144xf32>
    %cst_160 = arith.constant dense<0.000000e+00> : vector<8x144xf32>
    %167 = tpu.matmul %165, %166, %cst_160 {dimension_numbers = #tpu.dot_dimension_numbers<[1], [0], [0], [1], [0, 0, 1, 1], [], []>} : vector<8x8xf32>, vector<8x144xf32>, vector<8x144xf32> -> vector<8x144xf32>
    %c0_161 = arith.constant 0 : index
    %c0_162 = arith.constant 0 : index
    %168 = vector.load %arg6[%c0_161, %c0_162] : memref<8x1xf32, #tpu.memory_space<vmem>>, vector<8x1xf32>
    %169 = vector.broadcast %168 : vector<8x1xf32> to vector<8x144xf32>
    %170 = arith.addf %167, %169 : vector<8x144xf32>
    %cst_163 = arith.constant 9.99999971E-10 : f32
    %171 = vector.broadcast %cst_163 : f32 to vector<8x144xf32>
    %172 = arith.maximumf %170, %171 : vector<8x144xf32>
    %173 = math.rsqrt %172 : vector<8x144xf32>
    %174 = arith.mulf %164, %173 : vector<8x144xf32>
    %c0_164 = arith.constant 0 : index
    %c26_165 = arith.constant 26 : index
    %175 = vector.load %arg25[%c0_164, %c26_165] : memref<16x196xf32, #tpu.memory_space<vmem>>, vector<8x144xf32>
    tpu.vector_store %arg25[%c0_164, %c26_165], %174 {strides = array<i32>} : memref<16x196xf32, #tpu.memory_space<vmem>>, vector<8x144xf32>,
    %cst_166 = arith.constant 0.000000e+00 : f32
    %176 = vector.broadcast %cst_166 : f32 to vector<16x144xf32>
    %c0_167 = arith.constant 0 : index
    %c0_168 = arith.constant 0 : index
    %177 = vector.load %arg25[%c0_167, %c0_168] : memref<16x196xf32, #tpu.memory_space<vmem>>, vector<8x144xf32>
    %c0_169 = arith.constant 0 : index
    %c0_170 = arith.constant 0 : index
    %c0_171 = arith.constant 0 : index
    %178 = vector.load %arg7[%c0_169, %c0_170, %c0_171] : memref<25x16x8xf32, #tpu.memory_space<vmem>>, vector<1x16x8xf32>
    %179 = vector.shape_cast %178 : vector<1x16x8xf32> to vector<16x8xf32>
    %cst_172 = arith.constant dense<0.000000e+00> : vector<16x144xf32>
    %180 = tpu.matmul %179, %177, %cst_172 {dimension_numbers = #tpu.dot_dimension_numbers<[1], [0], [0], [1], [0, 0, 1, 1], [], []>} : vector<16x8xf32>, vector<8x144xf32>, vector<16x144xf32> -> vector<16x144xf32>
    %181 = arith.addf %176, %180 : vector<16x144xf32>
    %c0_173 = arith.constant 0 : index
    %c1_174 = arith.constant 1 : index
    %182 = vector.load %arg25[%c0_173, %c1_174] : memref<16x196xf32, #tpu.memory_space<vmem>>, vector<8x144xf32>
    %c1_175 = arith.constant 1 : index
    %c0_176 = arith.constant 0 : index
    %c0_177 = arith.constant 0 : index
    %183 = vector.load %arg7[%c1_175, %c0_176, %c0_177] : memref<25x16x8xf32, #tpu.memory_space<vmem>>, vector<1x16x8xf32>
    %184 = vector.shape_cast %183 : vector<1x16x8xf32> to vector<16x8xf32>
    %cst_178 = arith.constant dense<0.000000e+00> : vector<16x144xf32>
    %185 = tpu.matmul %184, %182, %cst_178 {dimension_numbers = #tpu.dot_dimension_numbers<[1], [0], [0], [1], [0, 0, 1, 1], [], []>} : vector<16x8xf32>, vector<8x144xf32>, vector<16x144xf32> -> vector<16x144xf32>
    %186 = arith.addf %181, %185 : vector<16x144xf32>
    %c0_179 = arith.constant 0 : index
    %c2_180 = arith.constant 2 : index
    %187 = vector.load %arg25[%c0_179, %c2_180] : memref<16x196xf32, #tpu.memory_space<vmem>>, vector<8x144xf32>
    %c2_181 = arith.constant 2 : index
    %c0_182 = arith.constant 0 : index
    %c0_183 = arith.constant 0 : index
    %188 = vector.load %arg7[%c2_181, %c0_182, %c0_183] : memref<25x16x8xf32, #tpu.memory_space<vmem>>, vector<1x16x8xf32>
    %189 = vector.shape_cast %188 : vector<1x16x8xf32> to vector<16x8xf32>
    %cst_184 = arith.constant dense<0.000000e+00> : vector<16x144xf32>
    %190 = tpu.matmul %189, %187, %cst_184 {dimension_numbers = #tpu.dot_dimension_numbers<[1], [0], [0], [1], [0, 0, 1, 1], [], []>} : vector<16x8xf32>, vector<8x144xf32>, vector<16x144xf32> -> vector<16x144xf32>
    %191 = arith.addf %186, %190 : vector<16x144xf32>
    %c0_185 = arith.constant 0 : index
    %c3_186 = arith.constant 3 : index
    %192 = vector.load %arg25[%c0_185, %c3_186] : memref<16x196xf32, #tpu.memory_space<vmem>>, vector<8x144xf32>
    %c3_187 = arith.constant 3 : index
    %c0_188 = arith.constant 0 : index
    %c0_189 = arith.constant 0 : index
    %193 = vector.load %arg7[%c3_187, %c0_188, %c0_189] : memref<25x16x8xf32, #tpu.memory_space<vmem>>, vector<1x16x8xf32>
    %194 = vector.shape_cast %193 : vector<1x16x8xf32> to vector<16x8xf32>
    %cst_190 = arith.constant dense<0.000000e+00> : vector<16x144xf32>
    %195 = tpu.matmul %194, %192, %cst_190 {dimension_numbers = #tpu.dot_dimension_numbers<[1], [0], [0], [1], [0, 0, 1, 1], [], []>} : vector<16x8xf32>, vector<8x144xf32>, vector<16x144xf32> -> vector<16x144xf32>
    %196 = arith.addf %191, %195 : vector<16x144xf32>
    %c0_191 = arith.constant 0 : index
    %c4_192 = arith.constant 4 : index
    %197 = vector.load %arg25[%c0_191, %c4_192] : memref<16x196xf32, #tpu.memory_space<vmem>>, vector<8x144xf32>
    %c4_193 = arith.constant 4 : index
    %c0_194 = arith.constant 0 : index
    %c0_195 = arith.constant 0 : index
    %198 = vector.load %arg7[%c4_193, %c0_194, %c0_195] : memref<25x16x8xf32, #tpu.memory_space<vmem>>, vector<1x16x8xf32>
    %199 = vector.shape_cast %198 : vector<1x16x8xf32> to vector<16x8xf32>
    %cst_196 = arith.constant dense<0.000000e+00> : vector<16x144xf32>
    %200 = tpu.matmul %199, %197, %cst_196 {dimension_numbers = #tpu.dot_dimension_numbers<[1], [0], [0], [1], [0, 0, 1, 1], [], []>} : vector<16x8xf32>, vector<8x144xf32>, vector<16x144xf32> -> vector<16x144xf32>
    %201 = arith.addf %196, %200 : vector<16x144xf32>
    %c0_197 = arith.constant 0 : index
    %c12_198 = arith.constant 12 : index
    %202 = vector.load %arg25[%c0_197, %c12_198] : memref<16x196xf32, #tpu.memory_space<vmem>>, vector<8x144xf32>
    %c5_199 = arith.constant 5 : index
    %c0_200 = arith.constant 0 : index
    %c0_201 = arith.constant 0 : index
    %203 = vector.load %arg7[%c5_199, %c0_200, %c0_201] : memref<25x16x8xf32, #tpu.memory_space<vmem>>, vector<1x16x8xf32>
    %204 = vector.shape_cast %203 : vector<1x16x8xf32> to vector<16x8xf32>
    %cst_202 = arith.constant dense<0.000000e+00> : vector<16x144xf32>
    %205 = tpu.matmul %204, %202, %cst_202 {dimension_numbers = #tpu.dot_dimension_numbers<[1], [0], [0], [1], [0, 0, 1, 1], [], []>} : vector<16x8xf32>, vector<8x144xf32>, vector<16x144xf32> -> vector<16x144xf32>
    %206 = arith.addf %201, %205 : vector<16x144xf32>
    %c0_203 = arith.constant 0 : index
    %c13_204 = arith.constant 13 : index
    %207 = vector.load %arg25[%c0_203, %c13_204] : memref<16x196xf32, #tpu.memory_space<vmem>>, vector<8x144xf32>
    %c6_205 = arith.constant 6 : index
    %c0_206 = arith.constant 0 : index
    %c0_207 = arith.constant 0 : index
    %208 = vector.load %arg7[%c6_205, %c0_206, %c0_207] : memref<25x16x8xf32, #tpu.memory_space<vmem>>, vector<1x16x8xf32>
    %209 = vector.shape_cast %208 : vector<1x16x8xf32> to vector<16x8xf32>
    %cst_208 = arith.constant dense<0.000000e+00> : vector<16x144xf32>
    %210 = tpu.matmul %209, %207, %cst_208 {dimension_numbers = #tpu.dot_dimension_numbers<[1], [0], [0], [1], [0, 0, 1, 1], [], []>} : vector<16x8xf32>, vector<8x144xf32>, vector<16x144xf32> -> vector<16x144xf32>
    %211 = arith.addf %206, %210 : vector<16x144xf32>
    %c0_209 = arith.constant 0 : index
    %c14_210 = arith.constant 14 : index
    %212 = vector.load %arg25[%c0_209, %c14_210] : memref<16x196xf32, #tpu.memory_space<vmem>>, vector<8x144xf32>
    %c7_211 = arith.constant 7 : index
    %c0_212 = arith.constant 0 : index
    %c0_213 = arith.constant 0 : index
    %213 = vector.load %arg7[%c7_211, %c0_212, %c0_213] : memref<25x16x8xf32, #tpu.memory_space<vmem>>, vector<1x16x8xf32>
    %214 = vector.shape_cast %213 : vector<1x16x8xf32> to vector<16x8xf32>
    %cst_214 = arith.constant dense<0.000000e+00> : vector<16x144xf32>
    %215 = tpu.matmul %214, %212, %cst_214 {dimension_numbers = #tpu.dot_dimension_numbers<[1], [0], [0], [1], [0, 0, 1, 1], [], []>} : vector<16x8xf32>, vector<8x144xf32>, vector<16x144xf32> -> vector<16x144xf32>
    %216 = arith.addf %211, %215 : vector<16x144xf32>
    %c0_215 = arith.constant 0 : index
    %c15_216 = arith.constant 15 : index
    %217 = vector.load %arg25[%c0_215, %c15_216] : memref<16x196xf32, #tpu.memory_space<vmem>>, vector<8x144xf32>
    %c8_217 = arith.constant 8 : index
    %c0_218 = arith.constant 0 : index
    %c0_219 = arith.constant 0 : index
    %218 = vector.load %arg7[%c8_217, %c0_218, %c0_219] : memref<25x16x8xf32, #tpu.memory_space<vmem>>, vector<1x16x8xf32>
    %219 = vector.shape_cast %218 : vector<1x16x8xf32> to vector<16x8xf32>
    %cst_220 = arith.constant dense<0.000000e+00> : vector<16x144xf32>
    %220 = tpu.matmul %219, %217, %cst_220 {dimension_numbers = #tpu.dot_dimension_numbers<[1], [0], [0], [1], [0, 0, 1, 1], [], []>} : vector<16x8xf32>, vector<8x144xf32>, vector<16x144xf32> -> vector<16x144xf32>
    %221 = arith.addf %216, %220 : vector<16x144xf32>
    %c0_221 = arith.constant 0 : index
    %c16_222 = arith.constant 16 : index
    %222 = vector.load %arg25[%c0_221, %c16_222] : memref<16x196xf32, #tpu.memory_space<vmem>>, vector<8x144xf32>
    %c9_223 = arith.constant 9 : index
    %c0_224 = arith.constant 0 : index
    %c0_225 = arith.constant 0 : index
    %223 = vector.load %arg7[%c9_223, %c0_224, %c0_225] : memref<25x16x8xf32, #tpu.memory_space<vmem>>, vector<1x16x8xf32>
    %224 = vector.shape_cast %223 : vector<1x16x8xf32> to vector<16x8xf32>
    %cst_226 = arith.constant dense<0.000000e+00> : vector<16x144xf32>
    %225 = tpu.matmul %224, %222, %cst_226 {dimension_numbers = #tpu.dot_dimension_numbers<[1], [0], [0], [1], [0, 0, 1, 1], [], []>} : vector<16x8xf32>, vector<8x144xf32>, vector<16x144xf32> -> vector<16x144xf32>
    %226 = arith.addf %221, %225 : vector<16x144xf32>
    %c0_227 = arith.constant 0 : index
    %c24_228 = arith.constant 24 : index
    %227 = vector.load %arg25[%c0_227, %c24_228] : memref<16x196xf32, #tpu.memory_space<vmem>>, vector<8x144xf32>
    %c10_229 = arith.constant 10 : index
    %c0_230 = arith.constant 0 : index
    %c0_231 = arith.constant 0 : index
    %228 = vector.load %arg7[%c10_229, %c0_230, %c0_231] : memref<25x16x8xf32, #tpu.memory_space<vmem>>, vector<1x16x8xf32>
    %229 = vector.shape_cast %228 : vector<1x16x8xf32> to vector<16x8xf32>
    %cst_232 = arith.constant dense<0.000000e+00> : vector<16x144xf32>
    %230 = tpu.matmul %229, %227, %cst_232 {dimension_numbers = #tpu.dot_dimension_numbers<[1], [0], [0], [1], [0, 0, 1, 1], [], []>} : vector<16x8xf32>, vector<8x144xf32>, vector<16x144xf32> -> vector<16x144xf32>
    %231 = arith.addf %226, %230 : vector<16x144xf32>
    %c0_233 = arith.constant 0 : index
    %c25_234 = arith.constant 25 : index
    %232 = vector.load %arg25[%c0_233, %c25_234] : memref<16x196xf32, #tpu.memory_space<vmem>>, vector<8x144xf32>
    %c11 = arith.constant 11 : index
    %c0_235 = arith.constant 0 : index
    %c0_236 = arith.constant 0 : index
    %233 = vector.load %arg7[%c11, %c0_235, %c0_236] : memref<25x16x8xf32, #tpu.memory_space<vmem>>, vector<1x16x8xf32>
    %234 = vector.shape_cast %233 : vector<1x16x8xf32> to vector<16x8xf32>
    %cst_237 = arith.constant dense<0.000000e+00> : vector<16x144xf32>
    %235 = tpu.matmul %234, %232, %cst_237 {dimension_numbers = #tpu.dot_dimension_numbers<[1], [0], [0], [1], [0, 0, 1, 1], [], []>} : vector<16x8xf32>, vector<8x144xf32>, vector<16x144xf32> -> vector<16x144xf32>
    %236 = arith.addf %231, %235 : vector<16x144xf32>
    %c0_238 = arith.constant 0 : index
    %c26_239 = arith.constant 26 : index
    %237 = vector.load %arg25[%c0_238, %c26_239] : memref<16x196xf32, #tpu.memory_space<vmem>>, vector<8x144xf32>
    %c12_240 = arith.constant 12 : index
    %c0_241 = arith.constant 0 : index
    %c0_242 = arith.constant 0 : index
    %238 = vector.load %arg7[%c12_240, %c0_241, %c0_242] : memref<25x16x8xf32, #tpu.memory_space<vmem>>, vector<1x16x8xf32>
    %239 = vector.shape_cast %238 : vector<1x16x8xf32> to vector<16x8xf32>
    %cst_243 = arith.constant dense<0.000000e+00> : vector<16x144xf32>
    %240 = tpu.matmul %239, %237, %cst_243 {dimension_numbers = #tpu.dot_dimension_numbers<[1], [0], [0], [1], [0, 0, 1, 1], [], []>} : vector<16x8xf32>, vector<8x144xf32>, vector<16x144xf32> -> vector<16x144xf32>
    %241 = arith.addf %236, %240 : vector<16x144xf32>
    %c0_244 = arith.constant 0 : index
    %c27_245 = arith.constant 27 : index
    %242 = vector.load %arg25[%c0_244, %c27_245] : memref<16x196xf32, #tpu.memory_space<vmem>>, vector<8x144xf32>
    %c13_246 = arith.constant 13 : index
    %c0_247 = arith.constant 0 : index
    %c0_248 = arith.constant 0 : index
    %243 = vector.load %arg7[%c13_246, %c0_247, %c0_248] : memref<25x16x8xf32, #tpu.memory_space<vmem>>, vector<1x16x8xf32>
    %244 = vector.shape_cast %243 : vector<1x16x8xf32> to vector<16x8xf32>
    %cst_249 = arith.constant dense<0.000000e+00> : vector<16x144xf32>
    %245 = tpu.matmul %244, %242, %cst_249 {dimension_numbers = #tpu.dot_dimension_numbers<[1], [0], [0], [1], [0, 0, 1, 1], [], []>} : vector<16x8xf32>, vector<8x144xf32>, vector<16x144xf32> -> vector<16x144xf32>
    %246 = arith.addf %241, %245 : vector<16x144xf32>
    %c0_250 = arith.constant 0 : index
    %c28_251 = arith.constant 28 : index
    %247 = vector.load %arg25[%c0_250, %c28_251] : memref<16x196xf32, #tpu.memory_space<vmem>>, vector<8x144xf32>
    %c14_252 = arith.constant 14 : index
    %c0_253 = arith.constant 0 : index
    %c0_254 = arith.constant 0 : index
    %248 = vector.load %arg7[%c14_252, %c0_253, %c0_254] : memref<25x16x8xf32, #tpu.memory_space<vmem>>, vector<1x16x8xf32>
    %249 = vector.shape_cast %248 : vector<1x16x8xf32> to vector<16x8xf32>
    %cst_255 = arith.constant dense<0.000000e+00> : vector<16x144xf32>
    %250 = tpu.matmul %249, %247, %cst_255 {dimension_numbers = #tpu.dot_dimension_numbers<[1], [0], [0], [1], [0, 0, 1, 1], [], []>} : vector<16x8xf32>, vector<8x144xf32>, vector<16x144xf32> -> vector<16x144xf32>
    %251 = arith.addf %246, %250 : vector<16x144xf32>
    %c0_256 = arith.constant 0 : index
    %c36 = arith.constant 36 : index
    %252 = vector.load %arg25[%c0_256, %c36] : memref<16x196xf32, #tpu.memory_space<vmem>>, vector<8x144xf32>
    %c15_257 = arith.constant 15 : index
    %c0_258 = arith.constant 0 : index
    %c0_259 = arith.constant 0 : index
    %253 = vector.load %arg7[%c15_257, %c0_258, %c0_259] : memref<25x16x8xf32, #tpu.memory_space<vmem>>, vector<1x16x8xf32>
    %254 = vector.shape_cast %253 : vector<1x16x8xf32> to vector<16x8xf32>
    %cst_260 = arith.constant dense<0.000000e+00> : vector<16x144xf32>
    %255 = tpu.matmul %254, %252, %cst_260 {dimension_numbers = #tpu.dot_dimension_numbers<[1], [0], [0], [1], [0, 0, 1, 1], [], []>} : vector<16x8xf32>, vector<8x144xf32>, vector<16x144xf32> -> vector<16x144xf32>
    %256 = arith.addf %251, %255 : vector<16x144xf32>
    %c0_261 = arith.constant 0 : index
    %c37 = arith.constant 37 : index
    %257 = vector.load %arg25[%c0_261, %c37] : memref<16x196xf32, #tpu.memory_space<vmem>>, vector<8x144xf32>
    %c16_262 = arith.constant 16 : index
    %c0_263 = arith.constant 0 : index
    %c0_264 = arith.constant 0 : index
    %258 = vector.load %arg7[%c16_262, %c0_263, %c0_264] : memref<25x16x8xf32, #tpu.memory_space<vmem>>, vector<1x16x8xf32>
    %259 = vector.shape_cast %258 : vector<1x16x8xf32> to vector<16x8xf32>
    %cst_265 = arith.constant dense<0.000000e+00> : vector<16x144xf32>
    %260 = tpu.matmul %259, %257, %cst_265 {dimension_numbers = #tpu.dot_dimension_numbers<[1], [0], [0], [1], [0, 0, 1, 1], [], []>} : vector<16x8xf32>, vector<8x144xf32>, vector<16x144xf32> -> vector<16x144xf32>
    %261 = arith.addf %256, %260 : vector<16x144xf32>
    %c0_266 = arith.constant 0 : index
    %c38 = arith.constant 38 : index
    %262 = vector.load %arg25[%c0_266, %c38] : memref<16x196xf32, #tpu.memory_space<vmem>>, vector<8x144xf32>
    %c17 = arith.constant 17 : index
    %c0_267 = arith.constant 0 : index
    %c0_268 = arith.constant 0 : index
    %263 = vector.load %arg7[%c17, %c0_267, %c0_268] : memref<25x16x8xf32, #tpu.memory_space<vmem>>, vector<1x16x8xf32>
    %264 = vector.shape_cast %263 : vector<1x16x8xf32> to vector<16x8xf32>
    %cst_269 = arith.constant dense<0.000000e+00> : vector<16x144xf32>
    %265 = tpu.matmul %264, %262, %cst_269 {dimension_numbers = #tpu.dot_dimension_numbers<[1], [0], [0], [1], [0, 0, 1, 1], [], []>} : vector<16x8xf32>, vector<8x144xf32>, vector<16x144xf32> -> vector<16x144xf32>
    %266 = arith.addf %261, %265 : vector<16x144xf32>
    %c0_270 = arith.constant 0 : index
    %c39 = arith.constant 39 : index
    %267 = vector.load %arg25[%c0_270, %c39] : memref<16x196xf32, #tpu.memory_space<vmem>>, vector<8x144xf32>
    %c18_271 = arith.constant 18 : index
    %c0_272 = arith.constant 0 : index
    %c0_273 = arith.constant 0 : index
    %268 = vector.load %arg7[%c18_271, %c0_272, %c0_273] : memref<25x16x8xf32, #tpu.memory_space<vmem>>, vector<1x16x8xf32>
    %269 = vector.shape_cast %268 : vector<1x16x8xf32> to vector<16x8xf32>
    %cst_274 = arith.constant dense<0.000000e+00> : vector<16x144xf32>
    %270 = tpu.matmul %269, %267, %cst_274 {dimension_numbers = #tpu.dot_dimension_numbers<[1], [0], [0], [1], [0, 0, 1, 1], [], []>} : vector<16x8xf32>, vector<8x144xf32>, vector<16x144xf32> -> vector<16x144xf32>
    %271 = arith.addf %266, %270 : vector<16x144xf32>
    %c0_275 = arith.constant 0 : index
    %c40 = arith.constant 40 : index
    %272 = vector.load %arg25[%c0_275, %c40] : memref<16x196xf32, #tpu.memory_space<vmem>>, vector<8x144xf32>
    %c19_276 = arith.constant 19 : index
    %c0_277 = arith.constant 0 : index
    %c0_278 = arith.constant 0 : index
    %273 = vector.load %arg7[%c19_276, %c0_277, %c0_278] : memref<25x16x8xf32, #tpu.memory_space<vmem>>, vector<1x16x8xf32>
    %274 = vector.shape_cast %273 : vector<1x16x8xf32> to vector<16x8xf32>
    %cst_279 = arith.constant dense<0.000000e+00> : vector<16x144xf32>
    %275 = tpu.matmul %274, %272, %cst_279 {dimension_numbers = #tpu.dot_dimension_numbers<[1], [0], [0], [1], [0, 0, 1, 1], [], []>} : vector<16x8xf32>, vector<8x144xf32>, vector<16x144xf32> -> vector<16x144xf32>
    %276 = arith.addf %271, %275 : vector<16x144xf32>
    %c0_280 = arith.constant 0 : index
    %c48 = arith.constant 48 : index
    %277 = vector.load %arg25[%c0_280, %c48] : memref<16x196xf32, #tpu.memory_space<vmem>>, vector<8x144xf32>
    %c20_281 = arith.constant 20 : index
    %c0_282 = arith.constant 0 : index
    %c0_283 = arith.constant 0 : index
    %278 = vector.load %arg7[%c20_281, %c0_282, %c0_283] : memref<25x16x8xf32, #tpu.memory_space<vmem>>, vector<1x16x8xf32>
    %279 = vector.shape_cast %278 : vector<1x16x8xf32> to vector<16x8xf32>
    %cst_284 = arith.constant dense<0.000000e+00> : vector<16x144xf32>
    %280 = tpu.matmul %279, %277, %cst_284 {dimension_numbers = #tpu.dot_dimension_numbers<[1], [0], [0], [1], [0, 0, 1, 1], [], []>} : vector<16x8xf32>, vector<8x144xf32>, vector<16x144xf32> -> vector<16x144xf32>
    %281 = arith.addf %276, %280 : vector<16x144xf32>
    %c0_285 = arith.constant 0 : index
    %c49 = arith.constant 49 : index
    %282 = vector.load %arg25[%c0_285, %c49] : memref<16x196xf32, #tpu.memory_space<vmem>>, vector<8x144xf32>
    %c21_286 = arith.constant 21 : index
    %c0_287 = arith.constant 0 : index
    %c0_288 = arith.constant 0 : index
    %283 = vector.load %arg7[%c21_286, %c0_287, %c0_288] : memref<25x16x8xf32, #tpu.memory_space<vmem>>, vector<1x16x8xf32>
    %284 = vector.shape_cast %283 : vector<1x16x8xf32> to vector<16x8xf32>
    %cst_289 = arith.constant dense<0.000000e+00> : vector<16x144xf32>
    %285 = tpu.matmul %284, %282, %cst_289 {dimension_numbers = #tpu.dot_dimension_numbers<[1], [0], [0], [1], [0, 0, 1, 1], [], []>} : vector<16x8xf32>, vector<8x144xf32>, vector<16x144xf32> -> vector<16x144xf32>
    %286 = arith.addf %281, %285 : vector<16x144xf32>
    %c0_290 = arith.constant 0 : index
    %c50 = arith.constant 50 : index
    %287 = vector.load %arg25[%c0_290, %c50] : memref<16x196xf32, #tpu.memory_space<vmem>>, vector<8x144xf32>
    %c22_291 = arith.constant 22 : index
    %c0_292 = arith.constant 0 : index
    %c0_293 = arith.constant 0 : index
    %288 = vector.load %arg7[%c22_291, %c0_292, %c0_293] : memref<25x16x8xf32, #tpu.memory_space<vmem>>, vector<1x16x8xf32>
    %289 = vector.shape_cast %288 : vector<1x16x8xf32> to vector<16x8xf32>
    %cst_294 = arith.constant dense<0.000000e+00> : vector<16x144xf32>
    %290 = tpu.matmul %289, %287, %cst_294 {dimension_numbers = #tpu.dot_dimension_numbers<[1], [0], [0], [1], [0, 0, 1, 1], [], []>} : vector<16x8xf32>, vector<8x144xf32>, vector<16x144xf32> -> vector<16x144xf32>
    %291 = arith.addf %286, %290 : vector<16x144xf32>
    %c0_295 = arith.constant 0 : index
    %c51 = arith.constant 51 : index
    %292 = vector.load %arg25[%c0_295, %c51] : memref<16x196xf32, #tpu.memory_space<vmem>>, vector<8x144xf32>
    %c23_296 = arith.constant 23 : index
    %c0_297 = arith.constant 0 : index
    %c0_298 = arith.constant 0 : index
    %293 = vector.load %arg7[%c23_296, %c0_297, %c0_298] : memref<25x16x8xf32, #tpu.memory_space<vmem>>, vector<1x16x8xf32>
    %294 = vector.shape_cast %293 : vector<1x16x8xf32> to vector<16x8xf32>
    %cst_299 = arith.constant dense<0.000000e+00> : vector<16x144xf32>
    %295 = tpu.matmul %294, %292, %cst_299 {dimension_numbers = #tpu.dot_dimension_numbers<[1], [0], [0], [1], [0, 0, 1, 1], [], []>} : vector<16x8xf32>, vector<8x144xf32>, vector<16x144xf32> -> vector<16x144xf32>
    %296 = arith.addf %291, %295 : vector<16x144xf32>
    %c0_300 = arith.constant 0 : index
    %c52 = arith.constant 52 : index
    %297 = vector.load %arg25[%c0_300, %c52] : memref<16x196xf32, #tpu.memory_space<vmem>>, vector<8x144xf32>
    %c24_301 = arith.constant 24 : index
    %c0_302 = arith.constant 0 : index
    %c0_303 = arith.constant 0 : index
    %298 = vector.load %arg7[%c24_301, %c0_302, %c0_303] : memref<25x16x8xf32, #tpu.memory_space<vmem>>, vector<1x16x8xf32>
    %299 = vector.shape_cast %298 : vector<1x16x8xf32> to vector<16x8xf32>
    %cst_304 = arith.constant dense<0.000000e+00> : vector<16x144xf32>
    %300 = tpu.matmul %299, %297, %cst_304 {dimension_numbers = #tpu.dot_dimension_numbers<[1], [0], [0], [1], [0, 0, 1, 1], [], []>} : vector<16x8xf32>, vector<8x144xf32>, vector<16x144xf32> -> vector<16x144xf32>
    %301 = arith.addf %296, %300 : vector<16x144xf32>
    %c0_305 = arith.constant 0 : index
    %c0_306 = arith.constant 0 : index
    %302 = vector.load %arg8[%c0_305, %c0_306] : memref<16x1xf32, #tpu.memory_space<vmem>>, vector<16x1xf32>
    %303 = vector.broadcast %302 : vector<16x1xf32> to vector<16x144xf32>
    %304 = arith.addf %301, %303 : vector<16x144xf32>
    %cst_307 = arith.constant 0.000000e+00 : f32
    %305 = vector.shape_cast %2 : vector<1x144xi1> to vector<1x144xi1>
    %306 = vector.broadcast %305 : vector<1x144xi1> to vector<16x144xi1>
    %307 = vector.broadcast %cst_307 : f32 to vector<16x144xf32>
    %308 = arith.select %306, %304, %307 : vector<16x144xi1>, vector<16x144xf32>
    %c0_308 = arith.constant 0 : index
    %c0_309 = arith.constant 0 : index
    %309 = vector.load %arg9[%c0_308, %c0_309] : memref<16x16xf32, #tpu.memory_space<vmem>>, vector<16x16xf32>
    %310 = arith.mulf %308, %308 : vector<16x144xf32>
    %cst_310 = arith.constant dense<0.000000e+00> : vector<16x144xf32>
    %311 = tpu.matmul %309, %310, %cst_310 {dimension_numbers = #tpu.dot_dimension_numbers<[1], [0], [0], [1], [0, 0, 1, 1], [], []>} : vector<16x16xf32>, vector<16x144xf32>, vector<16x144xf32> -> vector<16x144xf32>
    %c0_311 = arith.constant 0 : index
    %c0_312 = arith.constant 0 : index
    %312 = vector.load %arg10[%c0_311, %c0_312] : memref<16x1xf32, #tpu.memory_space<vmem>>, vector<16x1xf32>
    %313 = vector.broadcast %312 : vector<16x1xf32> to vector<16x144xf32>
    %314 = arith.addf %311, %313 : vector<16x144xf32>
    %cst_313 = arith.constant 9.99999971E-10 : f32
    %315 = vector.broadcast %cst_313 : f32 to vector<16x144xf32>
    %316 = arith.maximumf %314, %315 : vector<16x144xf32>
    %317 = math.rsqrt %316 : vector<16x144xf32>
    %318 = arith.mulf %308, %317 : vector<16x144xf32>
    %c0_314 = arith.constant 0 : index
    %c26_315 = arith.constant 26 : index
    %319 = vector.load %arg26[%c0_314, %c26_315] : memref<16x196xf32, #tpu.memory_space<vmem>>, vector<16x144xf32>
    tpu.vector_store %arg26[%c0_314, %c26_315], %318 {strides = array<i32>} : memref<16x196xf32, #tpu.memory_space<vmem>>, vector<16x144xf32>,
    %cst_316 = arith.constant 0.000000e+00 : f32
    %320 = vector.broadcast %cst_316 : f32 to vector<16x144xf32>
    %c0_317 = arith.constant 0 : index
    %c0_318 = arith.constant 0 : index
    %321 = vector.load %arg26[%c0_317, %c0_318] : memref<16x196xf32, #tpu.memory_space<vmem>>, vector<16x144xf32>
    %c0_319 = arith.constant 0 : index
    %c0_320 = arith.constant 0 : index
    %c0_321 = arith.constant 0 : index
    %322 = vector.load %arg11[%c0_319, %c0_320, %c0_321] : memref<25x16x16xf32, #tpu.memory_space<vmem>>, vector<1x16x16xf32>
    %323 = vector.shape_cast %322 : vector<1x16x16xf32> to vector<16x16xf32>
    %cst_322 = arith.constant dense<0.000000e+00> : vector<16x144xf32>
    %324 = tpu.matmul %323, %321, %cst_322 {dimension_numbers = #tpu.dot_dimension_numbers<[1], [0], [0], [1], [0, 0, 1, 1], [], []>} : vector<16x16xf32>, vector<16x144xf32>, vector<16x144xf32> -> vector<16x144xf32>
    %325 = arith.addf %320, %324 : vector<16x144xf32>
    %c0_323 = arith.constant 0 : index
    %c1_324 = arith.constant 1 : index
    %326 = vector.load %arg26[%c0_323, %c1_324] : memref<16x196xf32, #tpu.memory_space<vmem>>, vector<16x144xf32>
    %c1_325 = arith.constant 1 : index
    %c0_326 = arith.constant 0 : index
    %c0_327 = arith.constant 0 : index
    %327 = vector.load %arg11[%c1_325, %c0_326, %c0_327] : memref<25x16x16xf32, #tpu.memory_space<vmem>>, vector<1x16x16xf32>
    %328 = vector.shape_cast %327 : vector<1x16x16xf32> to vector<16x16xf32>
    %cst_328 = arith.constant dense<0.000000e+00> : vector<16x144xf32>
    %329 = tpu.matmul %328, %326, %cst_328 {dimension_numbers = #tpu.dot_dimension_numbers<[1], [0], [0], [1], [0, 0, 1, 1], [], []>} : vector<16x16xf32>, vector<16x144xf32>, vector<16x144xf32> -> vector<16x144xf32>
    %330 = arith.addf %325, %329 : vector<16x144xf32>
    %c0_329 = arith.constant 0 : index
    %c2_330 = arith.constant 2 : index
    %331 = vector.load %arg26[%c0_329, %c2_330] : memref<16x196xf32, #tpu.memory_space<vmem>>, vector<16x144xf32>
    %c2_331 = arith.constant 2 : index
    %c0_332 = arith.constant 0 : index
    %c0_333 = arith.constant 0 : index
    %332 = vector.load %arg11[%c2_331, %c0_332, %c0_333] : memref<25x16x16xf32, #tpu.memory_space<vmem>>, vector<1x16x16xf32>
    %333 = vector.shape_cast %332 : vector<1x16x16xf32> to vector<16x16xf32>
    %cst_334 = arith.constant dense<0.000000e+00> : vector<16x144xf32>
    %334 = tpu.matmul %333, %331, %cst_334 {dimension_numbers = #tpu.dot_dimension_numbers<[1], [0], [0], [1], [0, 0, 1, 1], [], []>} : vector<16x16xf32>, vector<16x144xf32>, vector<16x144xf32> -> vector<16x144xf32>
    %335 = arith.addf %330, %334 : vector<16x144xf32>
    %c0_335 = arith.constant 0 : index
    %c3_336 = arith.constant 3 : index
    %336 = vector.load %arg26[%c0_335, %c3_336] : memref<16x196xf32, #tpu.memory_space<vmem>>, vector<16x144xf32>
    %c3_337 = arith.constant 3 : index
    %c0_338 = arith.constant 0 : index
    %c0_339 = arith.constant 0 : index
    %337 = vector.load %arg11[%c3_337, %c0_338, %c0_339] : memref<25x16x16xf32, #tpu.memory_space<vmem>>, vector<1x16x16xf32>
    %338 = vector.shape_cast %337 : vector<1x16x16xf32> to vector<16x16xf32>
    %cst_340 = arith.constant dense<0.000000e+00> : vector<16x144xf32>
    %339 = tpu.matmul %338, %336, %cst_340 {dimension_numbers = #tpu.dot_dimension_numbers<[1], [0], [0], [1], [0, 0, 1, 1], [], []>} : vector<16x16xf32>, vector<16x144xf32>, vector<16x144xf32> -> vector<16x144xf32>
    %340 = arith.addf %335, %339 : vector<16x144xf32>
    %c0_341 = arith.constant 0 : index
    %c4_342 = arith.constant 4 : index
    %341 = vector.load %arg26[%c0_341, %c4_342] : memref<16x196xf32, #tpu.memory_space<vmem>>, vector<16x144xf32>
    %c4_343 = arith.constant 4 : index
    %c0_344 = arith.constant 0 : index
    %c0_345 = arith.constant 0 : index
    %342 = vector.load %arg11[%c4_343, %c0_344, %c0_345] : memref<25x16x16xf32, #tpu.memory_space<vmem>>, vector<1x16x16xf32>
    %343 = vector.shape_cast %342 : vector<1x16x16xf32> to vector<16x16xf32>
    %cst_346 = arith.constant dense<0.000000e+00> : vector<16x144xf32>
    %344 = tpu.matmul %343, %341, %cst_346 {dimension_numbers = #tpu.dot_dimension_numbers<[1], [0], [0], [1], [0, 0, 1, 1], [], []>} : vector<16x16xf32>, vector<16x144xf32>, vector<16x144xf32> -> vector<16x144xf32>
    %345 = arith.addf %340, %344 : vector<16x144xf32>
    %c0_347 = arith.constant 0 : index
    %c12_348 = arith.constant 12 : index
    %346 = vector.load %arg26[%c0_347, %c12_348] : memref<16x196xf32, #tpu.memory_space<vmem>>, vector<16x144xf32>
    %c5_349 = arith.constant 5 : index
    %c0_350 = arith.constant 0 : index
    %c0_351 = arith.constant 0 : index
    %347 = vector.load %arg11[%c5_349, %c0_350, %c0_351] : memref<25x16x16xf32, #tpu.memory_space<vmem>>, vector<1x16x16xf32>
    %348 = vector.shape_cast %347 : vector<1x16x16xf32> to vector<16x16xf32>
    %cst_352 = arith.constant dense<0.000000e+00> : vector<16x144xf32>
    %349 = tpu.matmul %348, %346, %cst_352 {dimension_numbers = #tpu.dot_dimension_numbers<[1], [0], [0], [1], [0, 0, 1, 1], [], []>} : vector<16x16xf32>, vector<16x144xf32>, vector<16x144xf32> -> vector<16x144xf32>
    %350 = arith.addf %345, %349 : vector<16x144xf32>
    %c0_353 = arith.constant 0 : index
    %c13_354 = arith.constant 13 : index
    %351 = vector.load %arg26[%c0_353, %c13_354] : memref<16x196xf32, #tpu.memory_space<vmem>>, vector<16x144xf32>
    %c6_355 = arith.constant 6 : index
    %c0_356 = arith.constant 0 : index
    %c0_357 = arith.constant 0 : index
    %352 = vector.load %arg11[%c6_355, %c0_356, %c0_357] : memref<25x16x16xf32, #tpu.memory_space<vmem>>, vector<1x16x16xf32>
    %353 = vector.shape_cast %352 : vector<1x16x16xf32> to vector<16x16xf32>
    %cst_358 = arith.constant dense<0.000000e+00> : vector<16x144xf32>
    %354 = tpu.matmul %353, %351, %cst_358 {dimension_numbers = #tpu.dot_dimension_numbers<[1], [0], [0], [1], [0, 0, 1, 1], [], []>} : vector<16x16xf32>, vector<16x144xf32>, vector<16x144xf32> -> vector<16x144xf32>
    %355 = arith.addf %350, %354 : vector<16x144xf32>
    %c0_359 = arith.constant 0 : index
    %c14_360 = arith.constant 14 : index
    %356 = vector.load %arg26[%c0_359, %c14_360] : memref<16x196xf32, #tpu.memory_space<vmem>>, vector<16x144xf32>
    %c7_361 = arith.constant 7 : index
    %c0_362 = arith.constant 0 : index
    %c0_363 = arith.constant 0 : index
    %357 = vector.load %arg11[%c7_361, %c0_362, %c0_363] : memref<25x16x16xf32, #tpu.memory_space<vmem>>, vector<1x16x16xf32>
    %358 = vector.shape_cast %357 : vector<1x16x16xf32> to vector<16x16xf32>
    %cst_364 = arith.constant dense<0.000000e+00> : vector<16x144xf32>
    %359 = tpu.matmul %358, %356, %cst_364 {dimension_numbers = #tpu.dot_dimension_numbers<[1], [0], [0], [1], [0, 0, 1, 1], [], []>} : vector<16x16xf32>, vector<16x144xf32>, vector<16x144xf32> -> vector<16x144xf32>
    %360 = arith.addf %355, %359 : vector<16x144xf32>
    %c0_365 = arith.constant 0 : index
    %c15_366 = arith.constant 15 : index
    %361 = vector.load %arg26[%c0_365, %c15_366] : memref<16x196xf32, #tpu.memory_space<vmem>>, vector<16x144xf32>
    %c8_367 = arith.constant 8 : index
    %c0_368 = arith.constant 0 : index
    %c0_369 = arith.constant 0 : index
    %362 = vector.load %arg11[%c8_367, %c0_368, %c0_369] : memref<25x16x16xf32, #tpu.memory_space<vmem>>, vector<1x16x16xf32>
    %363 = vector.shape_cast %362 : vector<1x16x16xf32> to vector<16x16xf32>
    %cst_370 = arith.constant dense<0.000000e+00> : vector<16x144xf32>
    %364 = tpu.matmul %363, %361, %cst_370 {dimension_numbers = #tpu.dot_dimension_numbers<[1], [0], [0], [1], [0, 0, 1, 1], [], []>} : vector<16x16xf32>, vector<16x144xf32>, vector<16x144xf32> -> vector<16x144xf32>
    %365 = arith.addf %360, %364 : vector<16x144xf32>
    %c0_371 = arith.constant 0 : index
    %c16_372 = arith.constant 16 : index
    %366 = vector.load %arg26[%c0_371, %c16_372] : memref<16x196xf32, #tpu.memory_space<vmem>>, vector<16x144xf32>
    %c9_373 = arith.constant 9 : index
    %c0_374 = arith.constant 0 : index
    %c0_375 = arith.constant 0 : index
    %367 = vector.load %arg11[%c9_373, %c0_374, %c0_375] : memref<25x16x16xf32, #tpu.memory_space<vmem>>, vector<1x16x16xf32>
    %368 = vector.shape_cast %367 : vector<1x16x16xf32> to vector<16x16xf32>
    %cst_376 = arith.constant dense<0.000000e+00> : vector<16x144xf32>
    %369 = tpu.matmul %368, %366, %cst_376 {dimension_numbers = #tpu.dot_dimension_numbers<[1], [0], [0], [1], [0, 0, 1, 1], [], []>} : vector<16x16xf32>, vector<16x144xf32>, vector<16x144xf32> -> vector<16x144xf32>
    %370 = arith.addf %365, %369 : vector<16x144xf32>
    %c0_377 = arith.constant 0 : index
    %c24_378 = arith.constant 24 : index
    %371 = vector.load %arg26[%c0_377, %c24_378] : memref<16x196xf32, #tpu.memory_space<vmem>>, vector<16x144xf32>
    %c10_379 = arith.constant 10 : index
    %c0_380 = arith.constant 0 : index
    %c0_381 = arith.constant 0 : index
    %372 = vector.load %arg11[%c10_379, %c0_380, %c0_381] : memref<25x16x16xf32, #tpu.memory_space<vmem>>, vector<1x16x16xf32>
    %373 = vector.shape_cast %372 : vector<1x16x16xf32> to vector<16x16xf32>
    %cst_382 = arith.constant dense<0.000000e+00> : vector<16x144xf32>
    %374 = tpu.matmul %373, %371, %cst_382 {dimension_numbers = #tpu.dot_dimension_numbers<[1], [0], [0], [1], [0, 0, 1, 1], [], []>} : vector<16x16xf32>, vector<16x144xf32>, vector<16x144xf32> -> vector<16x144xf32>
    %375 = arith.addf %370, %374 : vector<16x144xf32>
    %c0_383 = arith.constant 0 : index
    %c25_384 = arith.constant 25 : index
    %376 = vector.load %arg26[%c0_383, %c25_384] : memref<16x196xf32, #tpu.memory_space<vmem>>, vector<16x144xf32>
    %c11_385 = arith.constant 11 : index
    %c0_386 = arith.constant 0 : index
    %c0_387 = arith.constant 0 : index
    %377 = vector.load %arg11[%c11_385, %c0_386, %c0_387] : memref<25x16x16xf32, #tpu.memory_space<vmem>>, vector<1x16x16xf32>
    %378 = vector.shape_cast %377 : vector<1x16x16xf32> to vector<16x16xf32>
    %cst_388 = arith.constant dense<0.000000e+00> : vector<16x144xf32>
    %379 = tpu.matmul %378, %376, %cst_388 {dimension_numbers = #tpu.dot_dimension_numbers<[1], [0], [0], [1], [0, 0, 1, 1], [], []>} : vector<16x16xf32>, vector<16x144xf32>, vector<16x144xf32> -> vector<16x144xf32>
    %380 = arith.addf %375, %379 : vector<16x144xf32>
    %c0_389 = arith.constant 0 : index
    %c26_390 = arith.constant 26 : index
    %381 = vector.load %arg26[%c0_389, %c26_390] : memref<16x196xf32, #tpu.memory_space<vmem>>, vector<16x144xf32>
    %c12_391 = arith.constant 12 : index
    %c0_392 = arith.constant 0 : index
    %c0_393 = arith.constant 0 : index
    %382 = vector.load %arg11[%c12_391, %c0_392, %c0_393] : memref<25x16x16xf32, #tpu.memory_space<vmem>>, vector<1x16x16xf32>
    %383 = vector.shape_cast %382 : vector<1x16x16xf32> to vector<16x16xf32>
    %cst_394 = arith.constant dense<0.000000e+00> : vector<16x144xf32>
    %384 = tpu.matmul %383, %381, %cst_394 {dimension_numbers = #tpu.dot_dimension_numbers<[1], [0], [0], [1], [0, 0, 1, 1], [], []>} : vector<16x16xf32>, vector<16x144xf32>, vector<16x144xf32> -> vector<16x144xf32>
    %385 = arith.addf %380, %384 : vector<16x144xf32>
    %c0_395 = arith.constant 0 : index
    %c27_396 = arith.constant 27 : index
    %386 = vector.load %arg26[%c0_395, %c27_396] : memref<16x196xf32, #tpu.memory_space<vmem>>, vector<16x144xf32>
    %c13_397 = arith.constant 13 : index
    %c0_398 = arith.constant 0 : index
    %c0_399 = arith.constant 0 : index
    %387 = vector.load %arg11[%c13_397, %c0_398, %c0_399] : memref<25x16x16xf32, #tpu.memory_space<vmem>>, vector<1x16x16xf32>
    %388 = vector.shape_cast %387 : vector<1x16x16xf32> to vector<16x16xf32>
    %cst_400 = arith.constant dense<0.000000e+00> : vector<16x144xf32>
    %389 = tpu.matmul %388, %386, %cst_400 {dimension_numbers = #tpu.dot_dimension_numbers<[1], [0], [0], [1], [0, 0, 1, 1], [], []>} : vector<16x16xf32>, vector<16x144xf32>, vector<16x144xf32> -> vector<16x144xf32>
    %390 = arith.addf %385, %389 : vector<16x144xf32>
    %c0_401 = arith.constant 0 : index
    %c28_402 = arith.constant 28 : index
    %391 = vector.load %arg26[%c0_401, %c28_402] : memref<16x196xf32, #tpu.memory_space<vmem>>, vector<16x144xf32>
    %c14_403 = arith.constant 14 : index
    %c0_404 = arith.constant 0 : index
    %c0_405 = arith.constant 0 : index
    %392 = vector.load %arg11[%c14_403, %c0_404, %c0_405] : memref<25x16x16xf32, #tpu.memory_space<vmem>>, vector<1x16x16xf32>
    %393 = vector.shape_cast %392 : vector<1x16x16xf32> to vector<16x16xf32>
    %cst_406 = arith.constant dense<0.000000e+00> : vector<16x144xf32>
    %394 = tpu.matmul %393, %391, %cst_406 {dimension_numbers = #tpu.dot_dimension_numbers<[1], [0], [0], [1], [0, 0, 1, 1], [], []>} : vector<16x16xf32>, vector<16x144xf32>, vector<16x144xf32> -> vector<16x144xf32>
    %395 = arith.addf %390, %394 : vector<16x144xf32>
    %c0_407 = arith.constant 0 : index
    %c36_408 = arith.constant 36 : index
    %396 = vector.load %arg26[%c0_407, %c36_408] : memref<16x196xf32, #tpu.memory_space<vmem>>, vector<16x144xf32>
    %c15_409 = arith.constant 15 : index
    %c0_410 = arith.constant 0 : index
    %c0_411 = arith.constant 0 : index
    %397 = vector.load %arg11[%c15_409, %c0_410, %c0_411] : memref<25x16x16xf32, #tpu.memory_space<vmem>>, vector<1x16x16xf32>
    %398 = vector.shape_cast %397 : vector<1x16x16xf32> to vector<16x16xf32>
    %cst_412 = arith.constant dense<0.000000e+00> : vector<16x144xf32>
    %399 = tpu.matmul %398, %396, %cst_412 {dimension_numbers = #tpu.dot_dimension_numbers<[1], [0], [0], [1], [0, 0, 1, 1], [], []>} : vector<16x16xf32>, vector<16x144xf32>, vector<16x144xf32> -> vector<16x144xf32>
    %400 = arith.addf %395, %399 : vector<16x144xf32>
    %c0_413 = arith.constant 0 : index
    %c37_414 = arith.constant 37 : index
    %401 = vector.load %arg26[%c0_413, %c37_414] : memref<16x196xf32, #tpu.memory_space<vmem>>, vector<16x144xf32>
    %c16_415 = arith.constant 16 : index
    %c0_416 = arith.constant 0 : index
    %c0_417 = arith.constant 0 : index
    %402 = vector.load %arg11[%c16_415, %c0_416, %c0_417] : memref<25x16x16xf32, #tpu.memory_space<vmem>>, vector<1x16x16xf32>
    %403 = vector.shape_cast %402 : vector<1x16x16xf32> to vector<16x16xf32>
    %cst_418 = arith.constant dense<0.000000e+00> : vector<16x144xf32>
    %404 = tpu.matmul %403, %401, %cst_418 {dimension_numbers = #tpu.dot_dimension_numbers<[1], [0], [0], [1], [0, 0, 1, 1], [], []>} : vector<16x16xf32>, vector<16x144xf32>, vector<16x144xf32> -> vector<16x144xf32>
    %405 = arith.addf %400, %404 : vector<16x144xf32>
    %c0_419 = arith.constant 0 : index
    %c38_420 = arith.constant 38 : index
    %406 = vector.load %arg26[%c0_419, %c38_420] : memref<16x196xf32, #tpu.memory_space<vmem>>, vector<16x144xf32>
    %c17_421 = arith.constant 17 : index
    %c0_422 = arith.constant 0 : index
    %c0_423 = arith.constant 0 : index
    %407 = vector.load %arg11[%c17_421, %c0_422, %c0_423] : memref<25x16x16xf32, #tpu.memory_space<vmem>>, vector<1x16x16xf32>
    %408 = vector.shape_cast %407 : vector<1x16x16xf32> to vector<16x16xf32>
    %cst_424 = arith.constant dense<0.000000e+00> : vector<16x144xf32>
    %409 = tpu.matmul %408, %406, %cst_424 {dimension_numbers = #tpu.dot_dimension_numbers<[1], [0], [0], [1], [0, 0, 1, 1], [], []>} : vector<16x16xf32>, vector<16x144xf32>, vector<16x144xf32> -> vector<16x144xf32>
    %410 = arith.addf %405, %409 : vector<16x144xf32>
    %c0_425 = arith.constant 0 : index
    %c39_426 = arith.constant 39 : index
    %411 = vector.load %arg26[%c0_425, %c39_426] : memref<16x196xf32, #tpu.memory_space<vmem>>, vector<16x144xf32>
    %c18_427 = arith.constant 18 : index
    %c0_428 = arith.constant 0 : index
    %c0_429 = arith.constant 0 : index
    %412 = vector.load %arg11[%c18_427, %c0_428, %c0_429] : memref<25x16x16xf32, #tpu.memory_space<vmem>>, vector<1x16x16xf32>
    %413 = vector.shape_cast %412 : vector<1x16x16xf32> to vector<16x16xf32>
    %cst_430 = arith.constant dense<0.000000e+00> : vector<16x144xf32>
    %414 = tpu.matmul %413, %411, %cst_430 {dimension_numbers = #tpu.dot_dimension_numbers<[1], [0], [0], [1], [0, 0, 1, 1], [], []>} : vector<16x16xf32>, vector<16x144xf32>, vector<16x144xf32> -> vector<16x144xf32>
    %415 = arith.addf %410, %414 : vector<16x144xf32>
    %c0_431 = arith.constant 0 : index
    %c40_432 = arith.constant 40 : index
    %416 = vector.load %arg26[%c0_431, %c40_432] : memref<16x196xf32, #tpu.memory_space<vmem>>, vector<16x144xf32>
    %c19_433 = arith.constant 19 : index
    %c0_434 = arith.constant 0 : index
    %c0_435 = arith.constant 0 : index
    %417 = vector.load %arg11[%c19_433, %c0_434, %c0_435] : memref<25x16x16xf32, #tpu.memory_space<vmem>>, vector<1x16x16xf32>
    %418 = vector.shape_cast %417 : vector<1x16x16xf32> to vector<16x16xf32>
    %cst_436 = arith.constant dense<0.000000e+00> : vector<16x144xf32>
    %419 = tpu.matmul %418, %416, %cst_436 {dimension_numbers = #tpu.dot_dimension_numbers<[1], [0], [0], [1], [0, 0, 1, 1], [], []>} : vector<16x16xf32>, vector<16x144xf32>, vector<16x144xf32> -> vector<16x144xf32>
    %420 = arith.addf %415, %419 : vector<16x144xf32>
    %c0_437 = arith.constant 0 : index
    %c48_438 = arith.constant 48 : index
    %421 = vector.load %arg26[%c0_437, %c48_438] : memref<16x196xf32, #tpu.memory_space<vmem>>, vector<16x144xf32>
    %c20_439 = arith.constant 20 : index
    %c0_440 = arith.constant 0 : index
    %c0_441 = arith.constant 0 : index
    %422 = vector.load %arg11[%c20_439, %c0_440, %c0_441] : memref<25x16x16xf32, #tpu.memory_space<vmem>>, vector<1x16x16xf32>
    %423 = vector.shape_cast %422 : vector<1x16x16xf32> to vector<16x16xf32>
    %cst_442 = arith.constant dense<0.000000e+00> : vector<16x144xf32>
    %424 = tpu.matmul %423, %421, %cst_442 {dimension_numbers = #tpu.dot_dimension_numbers<[1], [0], [0], [1], [0, 0, 1, 1], [], []>} : vector<16x16xf32>, vector<16x144xf32>, vector<16x144xf32> -> vector<16x144xf32>
    %425 = arith.addf %420, %424 : vector<16x144xf32>
    %c0_443 = arith.constant 0 : index
    %c49_444 = arith.constant 49 : index
    %426 = vector.load %arg26[%c0_443, %c49_444] : memref<16x196xf32, #tpu.memory_space<vmem>>, vector<16x144xf32>
    %c21_445 = arith.constant 21 : index
    %c0_446 = arith.constant 0 : index
    %c0_447 = arith.constant 0 : index
    %427 = vector.load %arg11[%c21_445, %c0_446, %c0_447] : memref<25x16x16xf32, #tpu.memory_space<vmem>>, vector<1x16x16xf32>
    %428 = vector.shape_cast %427 : vector<1x16x16xf32> to vector<16x16xf32>
    %cst_448 = arith.constant dense<0.000000e+00> : vector<16x144xf32>
    %429 = tpu.matmul %428, %426, %cst_448 {dimension_numbers = #tpu.dot_dimension_numbers<[1], [0], [0], [1], [0, 0, 1, 1], [], []>} : vector<16x16xf32>, vector<16x144xf32>, vector<16x144xf32> -> vector<16x144xf32>
    %430 = arith.addf %425, %429 : vector<16x144xf32>
    %c0_449 = arith.constant 0 : index
    %c50_450 = arith.constant 50 : index
    %431 = vector.load %arg26[%c0_449, %c50_450] : memref<16x196xf32, #tpu.memory_space<vmem>>, vector<16x144xf32>
    %c22_451 = arith.constant 22 : index
    %c0_452 = arith.constant 0 : index
    %c0_453 = arith.constant 0 : index
    %432 = vector.load %arg11[%c22_451, %c0_452, %c0_453] : memref<25x16x16xf32, #tpu.memory_space<vmem>>, vector<1x16x16xf32>
    %433 = vector.shape_cast %432 : vector<1x16x16xf32> to vector<16x16xf32>
    %cst_454 = arith.constant dense<0.000000e+00> : vector<16x144xf32>
    %434 = tpu.matmul %433, %431, %cst_454 {dimension_numbers = #tpu.dot_dimension_numbers<[1], [0], [0], [1], [0, 0, 1, 1], [], []>} : vector<16x16xf32>, vector<16x144xf32>, vector<16x144xf32> -> vector<16x144xf32>
    %435 = arith.addf %430, %434 : vector<16x144xf32>
    %c0_455 = arith.constant 0 : index
    %c51_456 = arith.constant 51 : index
    %436 = vector.load %arg26[%c0_455, %c51_456] : memref<16x196xf32, #tpu.memory_space<vmem>>, vector<16x144xf32>
    %c23_457 = arith.constant 23 : index
    %c0_458 = arith.constant 0 : index
    %c0_459 = arith.constant 0 : index
    %437 = vector.load %arg11[%c23_457, %c0_458, %c0_459] : memref<25x16x16xf32, #tpu.memory_space<vmem>>, vector<1x16x16xf32>
    %438 = vector.shape_cast %437 : vector<1x16x16xf32> to vector<16x16xf32>
    %cst_460 = arith.constant dense<0.000000e+00> : vector<16x144xf32>
    %439 = tpu.matmul %438, %436, %cst_460 {dimension_numbers = #tpu.dot_dimension_numbers<[1], [0], [0], [1], [0, 0, 1, 1], [], []>} : vector<16x16xf32>, vector<16x144xf32>, vector<16x144xf32> -> vector<16x144xf32>
    %440 = arith.addf %435, %439 : vector<16x144xf32>
    %c0_461 = arith.constant 0 : index
    %c52_462 = arith.constant 52 : index
    %441 = vector.load %arg26[%c0_461, %c52_462] : memref<16x196xf32, #tpu.memory_space<vmem>>, vector<16x144xf32>
    %c24_463 = arith.constant 24 : index
    %c0_464 = arith.constant 0 : index
    %c0_465 = arith.constant 0 : index
    %442 = vector.load %arg11[%c24_463, %c0_464, %c0_465] : memref<25x16x16xf32, #tpu.memory_space<vmem>>, vector<1x16x16xf32>
    %443 = vector.shape_cast %442 : vector<1x16x16xf32> to vector<16x16xf32>
    %cst_466 = arith.constant dense<0.000000e+00> : vector<16x144xf32>
    %444 = tpu.matmul %443, %441, %cst_466 {dimension_numbers = #tpu.dot_dimension_numbers<[1], [0], [0], [1], [0, 0, 1, 1], [], []>} : vector<16x16xf32>, vector<16x144xf32>, vector<16x144xf32> -> vector<16x144xf32>
    %445 = arith.addf %440, %444 : vector<16x144xf32>
    %c0_467 = arith.constant 0 : index
    %c0_468 = arith.constant 0 : index
    %446 = vector.load %arg12[%c0_467, %c0_468] : memref<16x1xf32, #tpu.memory_space<vmem>>, vector<16x1xf32>
    %447 = vector.broadcast %446 : vector<16x1xf32> to vector<16x144xf32>
    %448 = arith.addf %445, %447 : vector<16x144xf32>
    %cst_469 = arith.constant 0.000000e+00 : f32
    %449 = vector.shape_cast %2 : vector<1x144xi1> to vector<1x144xi1>
    %450 = vector.broadcast %449 : vector<1x144xi1> to vector<16x144xi1>
    %451 = vector.broadcast %cst_469 : f32 to vector<16x144xf32>
    %452 = arith.select %450, %448, %451 : vector<16x144xi1>, vector<16x144xf32>
    %c0_470 = arith.constant 0 : index
    %c0_471 = arith.constant 0 : index
    %c0_472 = arith.constant 0 : index
    %453 = vector.load %arg23[%c0_470, %c0_471, %c0_472] : memref<1x16x144xf32, #tpu.memory_space<vmem>>, vector<1x16x144xf32>
    %454 = vector.shape_cast %453 : vector<1x16x144xf32> to vector<16x144xf32>
    %455 = vector.shape_cast %452 : vector<16x144xf32> to vector<1x16x144xf32>
    tpu.vector_store %arg23[%c0_470, %c0_471, %c0_472], %455 {strides = array<i32>} : memref<1x16x144xf32, #tpu.memory_space<vmem>>, vector<1x16x144xf32>,
    %c0_473 = arith.constant 0 : index
    %c26_474 = arith.constant 26 : index
    %456 = vector.load %arg25[%c0_473, %c26_474] : memref<16x196xf32, #tpu.memory_space<vmem>>, vector<16x144xf32>
    tpu.vector_store %arg25[%c0_473, %c26_474], %452 {strides = array<i32>} : memref<16x196xf32, #tpu.memory_space<vmem>>, vector<16x144xf32>,
    %cst_475 = arith.constant 0.000000e+00 : f32
    %457 = vector.broadcast %cst_475 : f32 to vector<16x144xf32>
    %c0_476 = arith.constant 0 : index
    %c0_477 = arith.constant 0 : index
    %458 = vector.load %arg25[%c0_476, %c0_477] : memref<16x196xf32, #tpu.memory_space<vmem>>, vector<16x144xf32>
    %c0_478 = arith.constant 0 : index
    %c0_479 = arith.constant 0 : index
    %c0_480 = arith.constant 0 : index
    %459 = vector.load %arg13[%c0_478, %c0_479, %c0_480] : memref<25x16x16xf32, #tpu.memory_space<vmem>>, vector<1x16x16xf32>
    %460 = vector.shape_cast %459 : vector<1x16x16xf32> to vector<16x16xf32>
    %cst_481 = arith.constant dense<0.000000e+00> : vector<16x144xf32>
    %461 = tpu.matmul %460, %458, %cst_481 {dimension_numbers = #tpu.dot_dimension_numbers<[1], [0], [0], [1], [0, 0, 1, 1], [], []>} : vector<16x16xf32>, vector<16x144xf32>, vector<16x144xf32> -> vector<16x144xf32>
    %462 = arith.addf %457, %461 : vector<16x144xf32>
    %c0_482 = arith.constant 0 : index
    %c1_483 = arith.constant 1 : index
    %463 = vector.load %arg25[%c0_482, %c1_483] : memref<16x196xf32, #tpu.memory_space<vmem>>, vector<16x144xf32>
    %c1_484 = arith.constant 1 : index
    %c0_485 = arith.constant 0 : index
    %c0_486 = arith.constant 0 : index
    %464 = vector.load %arg13[%c1_484, %c0_485, %c0_486] : memref<25x16x16xf32, #tpu.memory_space<vmem>>, vector<1x16x16xf32>
    %465 = vector.shape_cast %464 : vector<1x16x16xf32> to vector<16x16xf32>
    %cst_487 = arith.constant dense<0.000000e+00> : vector<16x144xf32>
    %466 = tpu.matmul %465, %463, %cst_487 {dimension_numbers = #tpu.dot_dimension_numbers<[1], [0], [0], [1], [0, 0, 1, 1], [], []>} : vector<16x16xf32>, vector<16x144xf32>, vector<16x144xf32> -> vector<16x144xf32>
    %467 = arith.addf %462, %466 : vector<16x144xf32>
    %c0_488 = arith.constant 0 : index
    %c2_489 = arith.constant 2 : index
    %468 = vector.load %arg25[%c0_488, %c2_489] : memref<16x196xf32, #tpu.memory_space<vmem>>, vector<16x144xf32>
    %c2_490 = arith.constant 2 : index
    %c0_491 = arith.constant 0 : index
    %c0_492 = arith.constant 0 : index
    %469 = vector.load %arg13[%c2_490, %c0_491, %c0_492] : memref<25x16x16xf32, #tpu.memory_space<vmem>>, vector<1x16x16xf32>
    %470 = vector.shape_cast %469 : vector<1x16x16xf32> to vector<16x16xf32>
    %cst_493 = arith.constant dense<0.000000e+00> : vector<16x144xf32>
    %471 = tpu.matmul %470, %468, %cst_493 {dimension_numbers = #tpu.dot_dimension_numbers<[1], [0], [0], [1], [0, 0, 1, 1], [], []>} : vector<16x16xf32>, vector<16x144xf32>, vector<16x144xf32> -> vector<16x144xf32>
    %472 = arith.addf %467, %471 : vector<16x144xf32>
    %c0_494 = arith.constant 0 : index
    %c3_495 = arith.constant 3 : index
    %473 = vector.load %arg25[%c0_494, %c3_495] : memref<16x196xf32, #tpu.memory_space<vmem>>, vector<16x144xf32>
    %c3_496 = arith.constant 3 : index
    %c0_497 = arith.constant 0 : index
    %c0_498 = arith.constant 0 : index
    %474 = vector.load %arg13[%c3_496, %c0_497, %c0_498] : memref<25x16x16xf32, #tpu.memory_space<vmem>>, vector<1x16x16xf32>
    %475 = vector.shape_cast %474 : vector<1x16x16xf32> to vector<16x16xf32>
    %cst_499 = arith.constant dense<0.000000e+00> : vector<16x144xf32>
    %476 = tpu.matmul %475, %473, %cst_499 {dimension_numbers = #tpu.dot_dimension_numbers<[1], [0], [0], [1], [0, 0, 1, 1], [], []>} : vector<16x16xf32>, vector<16x144xf32>, vector<16x144xf32> -> vector<16x144xf32>
    %477 = arith.addf %472, %476 : vector<16x144xf32>
    %c0_500 = arith.constant 0 : index
    %c4_501 = arith.constant 4 : index
    %478 = vector.load %arg25[%c0_500, %c4_501] : memref<16x196xf32, #tpu.memory_space<vmem>>, vector<16x144xf32>
    %c4_502 = arith.constant 4 : index
    %c0_503 = arith.constant 0 : index
    %c0_504 = arith.constant 0 : index
    %479 = vector.load %arg13[%c4_502, %c0_503, %c0_504] : memref<25x16x16xf32, #tpu.memory_space<vmem>>, vector<1x16x16xf32>
    %480 = vector.shape_cast %479 : vector<1x16x16xf32> to vector<16x16xf32>
    %cst_505 = arith.constant dense<0.000000e+00> : vector<16x144xf32>
    %481 = tpu.matmul %480, %478, %cst_505 {dimension_numbers = #tpu.dot_dimension_numbers<[1], [0], [0], [1], [0, 0, 1, 1], [], []>} : vector<16x16xf32>, vector<16x144xf32>, vector<16x144xf32> -> vector<16x144xf32>
    %482 = arith.addf %477, %481 : vector<16x144xf32>
    %c0_506 = arith.constant 0 : index
    %c12_507 = arith.constant 12 : index
    %483 = vector.load %arg25[%c0_506, %c12_507] : memref<16x196xf32, #tpu.memory_space<vmem>>, vector<16x144xf32>
    %c5_508 = arith.constant 5 : index
    %c0_509 = arith.constant 0 : index
    %c0_510 = arith.constant 0 : index
    %484 = vector.load %arg13[%c5_508, %c0_509, %c0_510] : memref<25x16x16xf32, #tpu.memory_space<vmem>>, vector<1x16x16xf32>
    %485 = vector.shape_cast %484 : vector<1x16x16xf32> to vector<16x16xf32>
    %cst_511 = arith.constant dense<0.000000e+00> : vector<16x144xf32>
    %486 = tpu.matmul %485, %483, %cst_511 {dimension_numbers = #tpu.dot_dimension_numbers<[1], [0], [0], [1], [0, 0, 1, 1], [], []>} : vector<16x16xf32>, vector<16x144xf32>, vector<16x144xf32> -> vector<16x144xf32>
    %487 = arith.addf %482, %486 : vector<16x144xf32>
    %c0_512 = arith.constant 0 : index
    %c13_513 = arith.constant 13 : index
    %488 = vector.load %arg25[%c0_512, %c13_513] : memref<16x196xf32, #tpu.memory_space<vmem>>, vector<16x144xf32>
    %c6_514 = arith.constant 6 : index
    %c0_515 = arith.constant 0 : index
    %c0_516 = arith.constant 0 : index
    %489 = vector.load %arg13[%c6_514, %c0_515, %c0_516] : memref<25x16x16xf32, #tpu.memory_space<vmem>>, vector<1x16x16xf32>
    %490 = vector.shape_cast %489 : vector<1x16x16xf32> to vector<16x16xf32>
    %cst_517 = arith.constant dense<0.000000e+00> : vector<16x144xf32>
    %491 = tpu.matmul %490, %488, %cst_517 {dimension_numbers = #tpu.dot_dimension_numbers<[1], [0], [0], [1], [0, 0, 1, 1], [], []>} : vector<16x16xf32>, vector<16x144xf32>, vector<16x144xf32> -> vector<16x144xf32>
    %492 = arith.addf %487, %491 : vector<16x144xf32>
    %c0_518 = arith.constant 0 : index
    %c14_519 = arith.constant 14 : index
    %493 = vector.load %arg25[%c0_518, %c14_519] : memref<16x196xf32, #tpu.memory_space<vmem>>, vector<16x144xf32>
    %c7_520 = arith.constant 7 : index
    %c0_521 = arith.constant 0 : index
    %c0_522 = arith.constant 0 : index
    %494 = vector.load %arg13[%c7_520, %c0_521, %c0_522] : memref<25x16x16xf32, #tpu.memory_space<vmem>>, vector<1x16x16xf32>
    %495 = vector.shape_cast %494 : vector<1x16x16xf32> to vector<16x16xf32>
    %cst_523 = arith.constant dense<0.000000e+00> : vector<16x144xf32>
    %496 = tpu.matmul %495, %493, %cst_523 {dimension_numbers = #tpu.dot_dimension_numbers<[1], [0], [0], [1], [0, 0, 1, 1], [], []>} : vector<16x16xf32>, vector<16x144xf32>, vector<16x144xf32> -> vector<16x144xf32>
    %497 = arith.addf %492, %496 : vector<16x144xf32>
    %c0_524 = arith.constant 0 : index
    %c15_525 = arith.constant 15 : index
    %498 = vector.load %arg25[%c0_524, %c15_525] : memref<16x196xf32, #tpu.memory_space<vmem>>, vector<16x144xf32>
    %c8_526 = arith.constant 8 : index
    %c0_527 = arith.constant 0 : index
    %c0_528 = arith.constant 0 : index
    %499 = vector.load %arg13[%c8_526, %c0_527, %c0_528] : memref<25x16x16xf32, #tpu.memory_space<vmem>>, vector<1x16x16xf32>
    %500 = vector.shape_cast %499 : vector<1x16x16xf32> to vector<16x16xf32>
    %cst_529 = arith.constant dense<0.000000e+00> : vector<16x144xf32>
    %501 = tpu.matmul %500, %498, %cst_529 {dimension_numbers = #tpu.dot_dimension_numbers<[1], [0], [0], [1], [0, 0, 1, 1], [], []>} : vector<16x16xf32>, vector<16x144xf32>, vector<16x144xf32> -> vector<16x144xf32>
    %502 = arith.addf %497, %501 : vector<16x144xf32>
    %c0_530 = arith.constant 0 : index
    %c16_531 = arith.constant 16 : index
    %503 = vector.load %arg25[%c0_530, %c16_531] : memref<16x196xf32, #tpu.memory_space<vmem>>, vector<16x144xf32>
    %c9_532 = arith.constant 9 : index
    %c0_533 = arith.constant 0 : index
    %c0_534 = arith.constant 0 : index
    %504 = vector.load %arg13[%c9_532, %c0_533, %c0_534] : memref<25x16x16xf32, #tpu.memory_space<vmem>>, vector<1x16x16xf32>
    %505 = vector.shape_cast %504 : vector<1x16x16xf32> to vector<16x16xf32>
    %cst_535 = arith.constant dense<0.000000e+00> : vector<16x144xf32>
    %506 = tpu.matmul %505, %503, %cst_535 {dimension_numbers = #tpu.dot_dimension_numbers<[1], [0], [0], [1], [0, 0, 1, 1], [], []>} : vector<16x16xf32>, vector<16x144xf32>, vector<16x144xf32> -> vector<16x144xf32>
    %507 = arith.addf %502, %506 : vector<16x144xf32>
    %c0_536 = arith.constant 0 : index
    %c24_537 = arith.constant 24 : index
    %508 = vector.load %arg25[%c0_536, %c24_537] : memref<16x196xf32, #tpu.memory_space<vmem>>, vector<16x144xf32>
    %c10_538 = arith.constant 10 : index
    %c0_539 = arith.constant 0 : index
    %c0_540 = arith.constant 0 : index
    %509 = vector.load %arg13[%c10_538, %c0_539, %c0_540] : memref<25x16x16xf32, #tpu.memory_space<vmem>>, vector<1x16x16xf32>
    %510 = vector.shape_cast %509 : vector<1x16x16xf32> to vector<16x16xf32>
    %cst_541 = arith.constant dense<0.000000e+00> : vector<16x144xf32>
    %511 = tpu.matmul %510, %508, %cst_541 {dimension_numbers = #tpu.dot_dimension_numbers<[1], [0], [0], [1], [0, 0, 1, 1], [], []>} : vector<16x16xf32>, vector<16x144xf32>, vector<16x144xf32> -> vector<16x144xf32>
    %512 = arith.addf %507, %511 : vector<16x144xf32>
    %c0_542 = arith.constant 0 : index
    %c25_543 = arith.constant 25 : index
    %513 = vector.load %arg25[%c0_542, %c25_543] : memref<16x196xf32, #tpu.memory_space<vmem>>, vector<16x144xf32>
    %c11_544 = arith.constant 11 : index
    %c0_545 = arith.constant 0 : index
    %c0_546 = arith.constant 0 : index
    %514 = vector.load %arg13[%c11_544, %c0_545, %c0_546] : memref<25x16x16xf32, #tpu.memory_space<vmem>>, vector<1x16x16xf32>
    %515 = vector.shape_cast %514 : vector<1x16x16xf32> to vector<16x16xf32>
    %cst_547 = arith.constant dense<0.000000e+00> : vector<16x144xf32>
    %516 = tpu.matmul %515, %513, %cst_547 {dimension_numbers = #tpu.dot_dimension_numbers<[1], [0], [0], [1], [0, 0, 1, 1], [], []>} : vector<16x16xf32>, vector<16x144xf32>, vector<16x144xf32> -> vector<16x144xf32>
    %517 = arith.addf %512, %516 : vector<16x144xf32>
    %c0_548 = arith.constant 0 : index
    %c26_549 = arith.constant 26 : index
    %518 = vector.load %arg25[%c0_548, %c26_549] : memref<16x196xf32, #tpu.memory_space<vmem>>, vector<16x144xf32>
    %c12_550 = arith.constant 12 : index
    %c0_551 = arith.constant 0 : index
    %c0_552 = arith.constant 0 : index
    %519 = vector.load %arg13[%c12_550, %c0_551, %c0_552] : memref<25x16x16xf32, #tpu.memory_space<vmem>>, vector<1x16x16xf32>
    %520 = vector.shape_cast %519 : vector<1x16x16xf32> to vector<16x16xf32>
    %cst_553 = arith.constant dense<0.000000e+00> : vector<16x144xf32>
    %521 = tpu.matmul %520, %518, %cst_553 {dimension_numbers = #tpu.dot_dimension_numbers<[1], [0], [0], [1], [0, 0, 1, 1], [], []>} : vector<16x16xf32>, vector<16x144xf32>, vector<16x144xf32> -> vector<16x144xf32>
    %522 = arith.addf %517, %521 : vector<16x144xf32>
    %c0_554 = arith.constant 0 : index
    %c27_555 = arith.constant 27 : index
    %523 = vector.load %arg25[%c0_554, %c27_555] : memref<16x196xf32, #tpu.memory_space<vmem>>, vector<16x144xf32>
    %c13_556 = arith.constant 13 : index
    %c0_557 = arith.constant 0 : index
    %c0_558 = arith.constant 0 : index
    %524 = vector.load %arg13[%c13_556, %c0_557, %c0_558] : memref<25x16x16xf32, #tpu.memory_space<vmem>>, vector<1x16x16xf32>
    %525 = vector.shape_cast %524 : vector<1x16x16xf32> to vector<16x16xf32>
    %cst_559 = arith.constant dense<0.000000e+00> : vector<16x144xf32>
    %526 = tpu.matmul %525, %523, %cst_559 {dimension_numbers = #tpu.dot_dimension_numbers<[1], [0], [0], [1], [0, 0, 1, 1], [], []>} : vector<16x16xf32>, vector<16x144xf32>, vector<16x144xf32> -> vector<16x144xf32>
    %527 = arith.addf %522, %526 : vector<16x144xf32>
    %c0_560 = arith.constant 0 : index
    %c28_561 = arith.constant 28 : index
    %528 = vector.load %arg25[%c0_560, %c28_561] : memref<16x196xf32, #tpu.memory_space<vmem>>, vector<16x144xf32>
    %c14_562 = arith.constant 14 : index
    %c0_563 = arith.constant 0 : index
    %c0_564 = arith.constant 0 : index
    %529 = vector.load %arg13[%c14_562, %c0_563, %c0_564] : memref<25x16x16xf32, #tpu.memory_space<vmem>>, vector<1x16x16xf32>
    %530 = vector.shape_cast %529 : vector<1x16x16xf32> to vector<16x16xf32>
    %cst_565 = arith.constant dense<0.000000e+00> : vector<16x144xf32>
    %531 = tpu.matmul %530, %528, %cst_565 {dimension_numbers = #tpu.dot_dimension_numbers<[1], [0], [0], [1], [0, 0, 1, 1], [], []>} : vector<16x16xf32>, vector<16x144xf32>, vector<16x144xf32> -> vector<16x144xf32>
    %532 = arith.addf %527, %531 : vector<16x144xf32>
    %c0_566 = arith.constant 0 : index
    %c36_567 = arith.constant 36 : index
    %533 = vector.load %arg25[%c0_566, %c36_567] : memref<16x196xf32, #tpu.memory_space<vmem>>, vector<16x144xf32>
    %c15_568 = arith.constant 15 : index
    %c0_569 = arith.constant 0 : index
    %c0_570 = arith.constant 0 : index
    %534 = vector.load %arg13[%c15_568, %c0_569, %c0_570] : memref<25x16x16xf32, #tpu.memory_space<vmem>>, vector<1x16x16xf32>
    %535 = vector.shape_cast %534 : vector<1x16x16xf32> to vector<16x16xf32>
    %cst_571 = arith.constant dense<0.000000e+00> : vector<16x144xf32>
    %536 = tpu.matmul %535, %533, %cst_571 {dimension_numbers = #tpu.dot_dimension_numbers<[1], [0], [0], [1], [0, 0, 1, 1], [], []>} : vector<16x16xf32>, vector<16x144xf32>, vector<16x144xf32> -> vector<16x144xf32>
    %537 = arith.addf %532, %536 : vector<16x144xf32>
    %c0_572 = arith.constant 0 : index
    %c37_573 = arith.constant 37 : index
    %538 = vector.load %arg25[%c0_572, %c37_573] : memref<16x196xf32, #tpu.memory_space<vmem>>, vector<16x144xf32>
    %c16_574 = arith.constant 16 : index
    %c0_575 = arith.constant 0 : index
    %c0_576 = arith.constant 0 : index
    %539 = vector.load %arg13[%c16_574, %c0_575, %c0_576] : memref<25x16x16xf32, #tpu.memory_space<vmem>>, vector<1x16x16xf32>
    %540 = vector.shape_cast %539 : vector<1x16x16xf32> to vector<16x16xf32>
    %cst_577 = arith.constant dense<0.000000e+00> : vector<16x144xf32>
    %541 = tpu.matmul %540, %538, %cst_577 {dimension_numbers = #tpu.dot_dimension_numbers<[1], [0], [0], [1], [0, 0, 1, 1], [], []>} : vector<16x16xf32>, vector<16x144xf32>, vector<16x144xf32> -> vector<16x144xf32>
    %542 = arith.addf %537, %541 : vector<16x144xf32>
    %c0_578 = arith.constant 0 : index
    %c38_579 = arith.constant 38 : index
    %543 = vector.load %arg25[%c0_578, %c38_579] : memref<16x196xf32, #tpu.memory_space<vmem>>, vector<16x144xf32>
    %c17_580 = arith.constant 17 : index
    %c0_581 = arith.constant 0 : index
    %c0_582 = arith.constant 0 : index
    %544 = vector.load %arg13[%c17_580, %c0_581, %c0_582] : memref<25x16x16xf32, #tpu.memory_space<vmem>>, vector<1x16x16xf32>
    %545 = vector.shape_cast %544 : vector<1x16x16xf32> to vector<16x16xf32>
    %cst_583 = arith.constant dense<0.000000e+00> : vector<16x144xf32>
    %546 = tpu.matmul %545, %543, %cst_583 {dimension_numbers = #tpu.dot_dimension_numbers<[1], [0], [0], [1], [0, 0, 1, 1], [], []>} : vector<16x16xf32>, vector<16x144xf32>, vector<16x144xf32> -> vector<16x144xf32>
    %547 = arith.addf %542, %546 : vector<16x144xf32>
    %c0_584 = arith.constant 0 : index
    %c39_585 = arith.constant 39 : index
    %548 = vector.load %arg25[%c0_584, %c39_585] : memref<16x196xf32, #tpu.memory_space<vmem>>, vector<16x144xf32>
    %c18_586 = arith.constant 18 : index
    %c0_587 = arith.constant 0 : index
    %c0_588 = arith.constant 0 : index
    %549 = vector.load %arg13[%c18_586, %c0_587, %c0_588] : memref<25x16x16xf32, #tpu.memory_space<vmem>>, vector<1x16x16xf32>
    %550 = vector.shape_cast %549 : vector<1x16x16xf32> to vector<16x16xf32>
    %cst_589 = arith.constant dense<0.000000e+00> : vector<16x144xf32>
    %551 = tpu.matmul %550, %548, %cst_589 {dimension_numbers = #tpu.dot_dimension_numbers<[1], [0], [0], [1], [0, 0, 1, 1], [], []>} : vector<16x16xf32>, vector<16x144xf32>, vector<16x144xf32> -> vector<16x144xf32>
    %552 = arith.addf %547, %551 : vector<16x144xf32>
    %c0_590 = arith.constant 0 : index
    %c40_591 = arith.constant 40 : index
    %553 = vector.load %arg25[%c0_590, %c40_591] : memref<16x196xf32, #tpu.memory_space<vmem>>, vector<16x144xf32>
    %c19_592 = arith.constant 19 : index
    %c0_593 = arith.constant 0 : index
    %c0_594 = arith.constant 0 : index
    %554 = vector.load %arg13[%c19_592, %c0_593, %c0_594] : memref<25x16x16xf32, #tpu.memory_space<vmem>>, vector<1x16x16xf32>
    %555 = vector.shape_cast %554 : vector<1x16x16xf32> to vector<16x16xf32>
    %cst_595 = arith.constant dense<0.000000e+00> : vector<16x144xf32>
    %556 = tpu.matmul %555, %553, %cst_595 {dimension_numbers = #tpu.dot_dimension_numbers<[1], [0], [0], [1], [0, 0, 1, 1], [], []>} : vector<16x16xf32>, vector<16x144xf32>, vector<16x144xf32> -> vector<16x144xf32>
    %557 = arith.addf %552, %556 : vector<16x144xf32>
    %c0_596 = arith.constant 0 : index
    %c48_597 = arith.constant 48 : index
    %558 = vector.load %arg25[%c0_596, %c48_597] : memref<16x196xf32, #tpu.memory_space<vmem>>, vector<16x144xf32>
    %c20_598 = arith.constant 20 : index
    %c0_599 = arith.constant 0 : index
    %c0_600 = arith.constant 0 : index
    %559 = vector.load %arg13[%c20_598, %c0_599, %c0_600] : memref<25x16x16xf32, #tpu.memory_space<vmem>>, vector<1x16x16xf32>
    %560 = vector.shape_cast %559 : vector<1x16x16xf32> to vector<16x16xf32>
    %cst_601 = arith.constant dense<0.000000e+00> : vector<16x144xf32>
    %561 = tpu.matmul %560, %558, %cst_601 {dimension_numbers = #tpu.dot_dimension_numbers<[1], [0], [0], [1], [0, 0, 1, 1], [], []>} : vector<16x16xf32>, vector<16x144xf32>, vector<16x144xf32> -> vector<16x144xf32>
    %562 = arith.addf %557, %561 : vector<16x144xf32>
    %c0_602 = arith.constant 0 : index
    %c49_603 = arith.constant 49 : index
    %563 = vector.load %arg25[%c0_602, %c49_603] : memref<16x196xf32, #tpu.memory_space<vmem>>, vector<16x144xf32>
    %c21_604 = arith.constant 21 : index
    %c0_605 = arith.constant 0 : index
    %c0_606 = arith.constant 0 : index
    %564 = vector.load %arg13[%c21_604, %c0_605, %c0_606] : memref<25x16x16xf32, #tpu.memory_space<vmem>>, vector<1x16x16xf32>
    %565 = vector.shape_cast %564 : vector<1x16x16xf32> to vector<16x16xf32>
    %cst_607 = arith.constant dense<0.000000e+00> : vector<16x144xf32>
    %566 = tpu.matmul %565, %563, %cst_607 {dimension_numbers = #tpu.dot_dimension_numbers<[1], [0], [0], [1], [0, 0, 1, 1], [], []>} : vector<16x16xf32>, vector<16x144xf32>, vector<16x144xf32> -> vector<16x144xf32>
    %567 = arith.addf %562, %566 : vector<16x144xf32>
    %c0_608 = arith.constant 0 : index
    %c50_609 = arith.constant 50 : index
    %568 = vector.load %arg25[%c0_608, %c50_609] : memref<16x196xf32, #tpu.memory_space<vmem>>, vector<16x144xf32>
    %c22_610 = arith.constant 22 : index
    %c0_611 = arith.constant 0 : index
    %c0_612 = arith.constant 0 : index
    %569 = vector.load %arg13[%c22_610, %c0_611, %c0_612] : memref<25x16x16xf32, #tpu.memory_space<vmem>>, vector<1x16x16xf32>
    %570 = vector.shape_cast %569 : vector<1x16x16xf32> to vector<16x16xf32>
    %cst_613 = arith.constant dense<0.000000e+00> : vector<16x144xf32>
    %571 = tpu.matmul %570, %568, %cst_613 {dimension_numbers = #tpu.dot_dimension_numbers<[1], [0], [0], [1], [0, 0, 1, 1], [], []>} : vector<16x16xf32>, vector<16x144xf32>, vector<16x144xf32> -> vector<16x144xf32>
    %572 = arith.addf %567, %571 : vector<16x144xf32>
    %c0_614 = arith.constant 0 : index
    %c51_615 = arith.constant 51 : index
    %573 = vector.load %arg25[%c0_614, %c51_615] : memref<16x196xf32, #tpu.memory_space<vmem>>, vector<16x144xf32>
    %c23_616 = arith.constant 23 : index
    %c0_617 = arith.constant 0 : index
    %c0_618 = arith.constant 0 : index
    %574 = vector.load %arg13[%c23_616, %c0_617, %c0_618] : memref<25x16x16xf32, #tpu.memory_space<vmem>>, vector<1x16x16xf32>
    %575 = vector.shape_cast %574 : vector<1x16x16xf32> to vector<16x16xf32>
    %cst_619 = arith.constant dense<0.000000e+00> : vector<16x144xf32>
    %576 = tpu.matmul %575, %573, %cst_619 {dimension_numbers = #tpu.dot_dimension_numbers<[1], [0], [0], [1], [0, 0, 1, 1], [], []>} : vector<16x16xf32>, vector<16x144xf32>, vector<16x144xf32> -> vector<16x144xf32>
    %577 = arith.addf %572, %576 : vector<16x144xf32>
    %c0_620 = arith.constant 0 : index
    %c52_621 = arith.constant 52 : index
    %578 = vector.load %arg25[%c0_620, %c52_621] : memref<16x196xf32, #tpu.memory_space<vmem>>, vector<16x144xf32>
    %c24_622 = arith.constant 24 : index
    %c0_623 = arith.constant 0 : index
    %c0_624 = arith.constant 0 : index
    %579 = vector.load %arg13[%c24_622, %c0_623, %c0_624] : memref<25x16x16xf32, #tpu.memory_space<vmem>>, vector<1x16x16xf32>
    %580 = vector.shape_cast %579 : vector<1x16x16xf32> to vector<16x16xf32>
    %cst_625 = arith.constant dense<0.000000e+00> : vector<16x144xf32>
    %581 = tpu.matmul %580, %578, %cst_625 {dimension_numbers = #tpu.dot_dimension_numbers<[1], [0], [0], [1], [0, 0, 1, 1], [], []>} : vector<16x16xf32>, vector<16x144xf32>, vector<16x144xf32> -> vector<16x144xf32>
    %582 = arith.addf %577, %581 : vector<16x144xf32>
    %c0_626 = arith.constant 0 : index
    %c0_627 = arith.constant 0 : index
    %583 = vector.load %arg14[%c0_626, %c0_627] : memref<16x1xf32, #tpu.memory_space<vmem>>, vector<16x1xf32>
    %584 = vector.broadcast %583 : vector<16x1xf32> to vector<16x144xf32>
    %585 = arith.addf %582, %584 : vector<16x144xf32>
    %cst_628 = arith.constant 0.000000e+00 : f32
    %586 = vector.shape_cast %2 : vector<1x144xi1> to vector<1x144xi1>
    %587 = vector.broadcast %586 : vector<1x144xi1> to vector<16x144xi1>
    %588 = vector.broadcast %cst_628 : f32 to vector<16x144xf32>
    %589 = arith.select %587, %585, %588 : vector<16x144xi1>, vector<16x144xf32>
    %c0_629 = arith.constant 0 : index
    %c0_630 = arith.constant 0 : index
    %590 = vector.load %arg15[%c0_629, %c0_630] : memref<16x16xf32, #tpu.memory_space<vmem>>, vector<16x16xf32>
    %591 = arith.mulf %589, %589 : vector<16x144xf32>
    %cst_631 = arith.constant dense<0.000000e+00> : vector<16x144xf32>
    %592 = tpu.matmul %590, %591, %cst_631 {dimension_numbers = #tpu.dot_dimension_numbers<[1], [0], [0], [1], [0, 0, 1, 1], [], []>} : vector<16x16xf32>, vector<16x144xf32>, vector<16x144xf32> -> vector<16x144xf32>
    %c0_632 = arith.constant 0 : index
    %c0_633 = arith.constant 0 : index
    %593 = vector.load %arg16[%c0_632, %c0_633] : memref<16x1xf32, #tpu.memory_space<vmem>>, vector<16x1xf32>
    %594 = vector.broadcast %593 : vector<16x1xf32> to vector<16x144xf32>
    %595 = arith.addf %592, %594 : vector<16x144xf32>
    %cst_634 = arith.constant 9.99999971E-10 : f32
    %596 = vector.broadcast %cst_634 : f32 to vector<16x144xf32>
    %597 = arith.maximumf %595, %596 : vector<16x144xf32>
    %598 = math.sqrt %597 : vector<16x144xf32>
    %599 = arith.mulf %589, %598 : vector<16x144xf32>
    %c0_635 = arith.constant 0 : index
    %c26_636 = arith.constant 26 : index
    %600 = vector.load %arg26[%c0_635, %c26_636] : memref<16x196xf32, #tpu.memory_space<vmem>>, vector<16x144xf32>
    tpu.vector_store %arg26[%c0_635, %c26_636], %599 {strides = array<i32>} : memref<16x196xf32, #tpu.memory_space<vmem>>, vector<16x144xf32>,
    %cst_637 = arith.constant 0.000000e+00 : f32
    %601 = vector.broadcast %cst_637 : f32 to vector<8x144xf32>
    %c0_638 = arith.constant 0 : index
    %c0_639 = arith.constant 0 : index
    %602 = vector.load %arg26[%c0_638, %c0_639] : memref<16x196xf32, #tpu.memory_space<vmem>>, vector<16x144xf32>
    %c0_640 = arith.constant 0 : index
    %c0_641 = arith.constant 0 : index
    %c0_642 = arith.constant 0 : index
    %603 = vector.load %arg17[%c0_640, %c0_641, %c0_642] : memref<25x8x16xf32, #tpu.memory_space<vmem>>, vector<1x8x16xf32>
    %604 = vector.shape_cast %603 : vector<1x8x16xf32> to vector<8x16xf32>
    %cst_643 = arith.constant dense<0.000000e+00> : vector<8x144xf32>
    %605 = tpu.matmul %604, %602, %cst_643 {dimension_numbers = #tpu.dot_dimension_numbers<[1], [0], [0], [1], [0, 0, 1, 1], [], []>} : vector<8x16xf32>, vector<16x144xf32>, vector<8x144xf32> -> vector<8x144xf32>
    %606 = arith.addf %601, %605 : vector<8x144xf32>
    %c0_644 = arith.constant 0 : index
    %c1_645 = arith.constant 1 : index
    %607 = vector.load %arg26[%c0_644, %c1_645] : memref<16x196xf32, #tpu.memory_space<vmem>>, vector<16x144xf32>
    %c1_646 = arith.constant 1 : index
    %c0_647 = arith.constant 0 : index
    %c0_648 = arith.constant 0 : index
    %608 = vector.load %arg17[%c1_646, %c0_647, %c0_648] : memref<25x8x16xf32, #tpu.memory_space<vmem>>, vector<1x8x16xf32>
    %609 = vector.shape_cast %608 : vector<1x8x16xf32> to vector<8x16xf32>
    %cst_649 = arith.constant dense<0.000000e+00> : vector<8x144xf32>
    %610 = tpu.matmul %609, %607, %cst_649 {dimension_numbers = #tpu.dot_dimension_numbers<[1], [0], [0], [1], [0, 0, 1, 1], [], []>} : vector<8x16xf32>, vector<16x144xf32>, vector<8x144xf32> -> vector<8x144xf32>
    %611 = arith.addf %606, %610 : vector<8x144xf32>
    %c0_650 = arith.constant 0 : index
    %c2_651 = arith.constant 2 : index
    %612 = vector.load %arg26[%c0_650, %c2_651] : memref<16x196xf32, #tpu.memory_space<vmem>>, vector<16x144xf32>
    %c2_652 = arith.constant 2 : index
    %c0_653 = arith.constant 0 : index
    %c0_654 = arith.constant 0 : index
    %613 = vector.load %arg17[%c2_652, %c0_653, %c0_654] : memref<25x8x16xf32, #tpu.memory_space<vmem>>, vector<1x8x16xf32>
    %614 = vector.shape_cast %613 : vector<1x8x16xf32> to vector<8x16xf32>
    %cst_655 = arith.constant dense<0.000000e+00> : vector<8x144xf32>
    %615 = tpu.matmul %614, %612, %cst_655 {dimension_numbers = #tpu.dot_dimension_numbers<[1], [0], [0], [1], [0, 0, 1, 1], [], []>} : vector<8x16xf32>, vector<16x144xf32>, vector<8x144xf32> -> vector<8x144xf32>
    %616 = arith.addf %611, %615 : vector<8x144xf32>
    %c0_656 = arith.constant 0 : index
    %c3_657 = arith.constant 3 : index
    %617 = vector.load %arg26[%c0_656, %c3_657] : memref<16x196xf32, #tpu.memory_space<vmem>>, vector<16x144xf32>
    %c3_658 = arith.constant 3 : index
    %c0_659 = arith.constant 0 : index
    %c0_660 = arith.constant 0 : index
    %618 = vector.load %arg17[%c3_658, %c0_659, %c0_660] : memref<25x8x16xf32, #tpu.memory_space<vmem>>, vector<1x8x16xf32>
    %619 = vector.shape_cast %618 : vector<1x8x16xf32> to vector<8x16xf32>
    %cst_661 = arith.constant dense<0.000000e+00> : vector<8x144xf32>
    %620 = tpu.matmul %619, %617, %cst_661 {dimension_numbers = #tpu.dot_dimension_numbers<[1], [0], [0], [1], [0, 0, 1, 1], [], []>} : vector<8x16xf32>, vector<16x144xf32>, vector<8x144xf32> -> vector<8x144xf32>
    %621 = arith.addf %616, %620 : vector<8x144xf32>
    %c0_662 = arith.constant 0 : index
    %c4_663 = arith.constant 4 : index
    %622 = vector.load %arg26[%c0_662, %c4_663] : memref<16x196xf32, #tpu.memory_space<vmem>>, vector<16x144xf32>
    %c4_664 = arith.constant 4 : index
    %c0_665 = arith.constant 0 : index
    %c0_666 = arith.constant 0 : index
    %623 = vector.load %arg17[%c4_664, %c0_665, %c0_666] : memref<25x8x16xf32, #tpu.memory_space<vmem>>, vector<1x8x16xf32>
    %624 = vector.shape_cast %623 : vector<1x8x16xf32> to vector<8x16xf32>
    %cst_667 = arith.constant dense<0.000000e+00> : vector<8x144xf32>
    %625 = tpu.matmul %624, %622, %cst_667 {dimension_numbers = #tpu.dot_dimension_numbers<[1], [0], [0], [1], [0, 0, 1, 1], [], []>} : vector<8x16xf32>, vector<16x144xf32>, vector<8x144xf32> -> vector<8x144xf32>
    %626 = arith.addf %621, %625 : vector<8x144xf32>
    %c0_668 = arith.constant 0 : index
    %c12_669 = arith.constant 12 : index
    %627 = vector.load %arg26[%c0_668, %c12_669] : memref<16x196xf32, #tpu.memory_space<vmem>>, vector<16x144xf32>
    %c5_670 = arith.constant 5 : index
    %c0_671 = arith.constant 0 : index
    %c0_672 = arith.constant 0 : index
    %628 = vector.load %arg17[%c5_670, %c0_671, %c0_672] : memref<25x8x16xf32, #tpu.memory_space<vmem>>, vector<1x8x16xf32>
    %629 = vector.shape_cast %628 : vector<1x8x16xf32> to vector<8x16xf32>
    %cst_673 = arith.constant dense<0.000000e+00> : vector<8x144xf32>
    %630 = tpu.matmul %629, %627, %cst_673 {dimension_numbers = #tpu.dot_dimension_numbers<[1], [0], [0], [1], [0, 0, 1, 1], [], []>} : vector<8x16xf32>, vector<16x144xf32>, vector<8x144xf32> -> vector<8x144xf32>
    %631 = arith.addf %626, %630 : vector<8x144xf32>
    %c0_674 = arith.constant 0 : index
    %c13_675 = arith.constant 13 : index
    %632 = vector.load %arg26[%c0_674, %c13_675] : memref<16x196xf32, #tpu.memory_space<vmem>>, vector<16x144xf32>
    %c6_676 = arith.constant 6 : index
    %c0_677 = arith.constant 0 : index
    %c0_678 = arith.constant 0 : index
    %633 = vector.load %arg17[%c6_676, %c0_677, %c0_678] : memref<25x8x16xf32, #tpu.memory_space<vmem>>, vector<1x8x16xf32>
    %634 = vector.shape_cast %633 : vector<1x8x16xf32> to vector<8x16xf32>
    %cst_679 = arith.constant dense<0.000000e+00> : vector<8x144xf32>
    %635 = tpu.matmul %634, %632, %cst_679 {dimension_numbers = #tpu.dot_dimension_numbers<[1], [0], [0], [1], [0, 0, 1, 1], [], []>} : vector<8x16xf32>, vector<16x144xf32>, vector<8x144xf32> -> vector<8x144xf32>
    %636 = arith.addf %631, %635 : vector<8x144xf32>
    %c0_680 = arith.constant 0 : index
    %c14_681 = arith.constant 14 : index
    %637 = vector.load %arg26[%c0_680, %c14_681] : memref<16x196xf32, #tpu.memory_space<vmem>>, vector<16x144xf32>
    %c7_682 = arith.constant 7 : index
    %c0_683 = arith.constant 0 : index
    %c0_684 = arith.constant 0 : index
    %638 = vector.load %arg17[%c7_682, %c0_683, %c0_684] : memref<25x8x16xf32, #tpu.memory_space<vmem>>, vector<1x8x16xf32>
    %639 = vector.shape_cast %638 : vector<1x8x16xf32> to vector<8x16xf32>
    %cst_685 = arith.constant dense<0.000000e+00> : vector<8x144xf32>
    %640 = tpu.matmul %639, %637, %cst_685 {dimension_numbers = #tpu.dot_dimension_numbers<[1], [0], [0], [1], [0, 0, 1, 1], [], []>} : vector<8x16xf32>, vector<16x144xf32>, vector<8x144xf32> -> vector<8x144xf32>
    %641 = arith.addf %636, %640 : vector<8x144xf32>
    %c0_686 = arith.constant 0 : index
    %c15_687 = arith.constant 15 : index
    %642 = vector.load %arg26[%c0_686, %c15_687] : memref<16x196xf32, #tpu.memory_space<vmem>>, vector<16x144xf32>
    %c8_688 = arith.constant 8 : index
    %c0_689 = arith.constant 0 : index
    %c0_690 = arith.constant 0 : index
    %643 = vector.load %arg17[%c8_688, %c0_689, %c0_690] : memref<25x8x16xf32, #tpu.memory_space<vmem>>, vector<1x8x16xf32>
    %644 = vector.shape_cast %643 : vector<1x8x16xf32> to vector<8x16xf32>
    %cst_691 = arith.constant dense<0.000000e+00> : vector<8x144xf32>
    %645 = tpu.matmul %644, %642, %cst_691 {dimension_numbers = #tpu.dot_dimension_numbers<[1], [0], [0], [1], [0, 0, 1, 1], [], []>} : vector<8x16xf32>, vector<16x144xf32>, vector<8x144xf32> -> vector<8x144xf32>
    %646 = arith.addf %641, %645 : vector<8x144xf32>
    %c0_692 = arith.constant 0 : index
    %c16_693 = arith.constant 16 : index
    %647 = vector.load %arg26[%c0_692, %c16_693] : memref<16x196xf32, #tpu.memory_space<vmem>>, vector<16x144xf32>
    %c9_694 = arith.constant 9 : index
    %c0_695 = arith.constant 0 : index
    %c0_696 = arith.constant 0 : index
    %648 = vector.load %arg17[%c9_694, %c0_695, %c0_696] : memref<25x8x16xf32, #tpu.memory_space<vmem>>, vector<1x8x16xf32>
    %649 = vector.shape_cast %648 : vector<1x8x16xf32> to vector<8x16xf32>
    %cst_697 = arith.constant dense<0.000000e+00> : vector<8x144xf32>
    %650 = tpu.matmul %649, %647, %cst_697 {dimension_numbers = #tpu.dot_dimension_numbers<[1], [0], [0], [1], [0, 0, 1, 1], [], []>} : vector<8x16xf32>, vector<16x144xf32>, vector<8x144xf32> -> vector<8x144xf32>
    %651 = arith.addf %646, %650 : vector<8x144xf32>
    %c0_698 = arith.constant 0 : index
    %c24_699 = arith.constant 24 : index
    %652 = vector.load %arg26[%c0_698, %c24_699] : memref<16x196xf32, #tpu.memory_space<vmem>>, vector<16x144xf32>
    %c10_700 = arith.constant 10 : index
    %c0_701 = arith.constant 0 : index
    %c0_702 = arith.constant 0 : index
    %653 = vector.load %arg17[%c10_700, %c0_701, %c0_702] : memref<25x8x16xf32, #tpu.memory_space<vmem>>, vector<1x8x16xf32>
    %654 = vector.shape_cast %653 : vector<1x8x16xf32> to vector<8x16xf32>
    %cst_703 = arith.constant dense<0.000000e+00> : vector<8x144xf32>
    %655 = tpu.matmul %654, %652, %cst_703 {dimension_numbers = #tpu.dot_dimension_numbers<[1], [0], [0], [1], [0, 0, 1, 1], [], []>} : vector<8x16xf32>, vector<16x144xf32>, vector<8x144xf32> -> vector<8x144xf32>
    %656 = arith.addf %651, %655 : vector<8x144xf32>
    %c0_704 = arith.constant 0 : index
    %c25_705 = arith.constant 25 : index
    %657 = vector.load %arg26[%c0_704, %c25_705] : memref<16x196xf32, #tpu.memory_space<vmem>>, vector<16x144xf32>
    %c11_706 = arith.constant 11 : index
    %c0_707 = arith.constant 0 : index
    %c0_708 = arith.constant 0 : index
    %658 = vector.load %arg17[%c11_706, %c0_707, %c0_708] : memref<25x8x16xf32, #tpu.memory_space<vmem>>, vector<1x8x16xf32>
    %659 = vector.shape_cast %658 : vector<1x8x16xf32> to vector<8x16xf32>
    %cst_709 = arith.constant dense<0.000000e+00> : vector<8x144xf32>
    %660 = tpu.matmul %659, %657, %cst_709 {dimension_numbers = #tpu.dot_dimension_numbers<[1], [0], [0], [1], [0, 0, 1, 1], [], []>} : vector<8x16xf32>, vector<16x144xf32>, vector<8x144xf32> -> vector<8x144xf32>
    %661 = arith.addf %656, %660 : vector<8x144xf32>
    %c0_710 = arith.constant 0 : index
    %c26_711 = arith.constant 26 : index
    %662 = vector.load %arg26[%c0_710, %c26_711] : memref<16x196xf32, #tpu.memory_space<vmem>>, vector<16x144xf32>
    %c12_712 = arith.constant 12 : index
    %c0_713 = arith.constant 0 : index
    %c0_714 = arith.constant 0 : index
    %663 = vector.load %arg17[%c12_712, %c0_713, %c0_714] : memref<25x8x16xf32, #tpu.memory_space<vmem>>, vector<1x8x16xf32>
    %664 = vector.shape_cast %663 : vector<1x8x16xf32> to vector<8x16xf32>
    %cst_715 = arith.constant dense<0.000000e+00> : vector<8x144xf32>
    %665 = tpu.matmul %664, %662, %cst_715 {dimension_numbers = #tpu.dot_dimension_numbers<[1], [0], [0], [1], [0, 0, 1, 1], [], []>} : vector<8x16xf32>, vector<16x144xf32>, vector<8x144xf32> -> vector<8x144xf32>
    %666 = arith.addf %661, %665 : vector<8x144xf32>
    %c0_716 = arith.constant 0 : index
    %c27_717 = arith.constant 27 : index
    %667 = vector.load %arg26[%c0_716, %c27_717] : memref<16x196xf32, #tpu.memory_space<vmem>>, vector<16x144xf32>
    %c13_718 = arith.constant 13 : index
    %c0_719 = arith.constant 0 : index
    %c0_720 = arith.constant 0 : index
    %668 = vector.load %arg17[%c13_718, %c0_719, %c0_720] : memref<25x8x16xf32, #tpu.memory_space<vmem>>, vector<1x8x16xf32>
    %669 = vector.shape_cast %668 : vector<1x8x16xf32> to vector<8x16xf32>
    %cst_721 = arith.constant dense<0.000000e+00> : vector<8x144xf32>
    %670 = tpu.matmul %669, %667, %cst_721 {dimension_numbers = #tpu.dot_dimension_numbers<[1], [0], [0], [1], [0, 0, 1, 1], [], []>} : vector<8x16xf32>, vector<16x144xf32>, vector<8x144xf32> -> vector<8x144xf32>
    %671 = arith.addf %666, %670 : vector<8x144xf32>
    %c0_722 = arith.constant 0 : index
    %c28_723 = arith.constant 28 : index
    %672 = vector.load %arg26[%c0_722, %c28_723] : memref<16x196xf32, #tpu.memory_space<vmem>>, vector<16x144xf32>
    %c14_724 = arith.constant 14 : index
    %c0_725 = arith.constant 0 : index
    %c0_726 = arith.constant 0 : index
    %673 = vector.load %arg17[%c14_724, %c0_725, %c0_726] : memref<25x8x16xf32, #tpu.memory_space<vmem>>, vector<1x8x16xf32>
    %674 = vector.shape_cast %673 : vector<1x8x16xf32> to vector<8x16xf32>
    %cst_727 = arith.constant dense<0.000000e+00> : vector<8x144xf32>
    %675 = tpu.matmul %674, %672, %cst_727 {dimension_numbers = #tpu.dot_dimension_numbers<[1], [0], [0], [1], [0, 0, 1, 1], [], []>} : vector<8x16xf32>, vector<16x144xf32>, vector<8x144xf32> -> vector<8x144xf32>
    %676 = arith.addf %671, %675 : vector<8x144xf32>
    %c0_728 = arith.constant 0 : index
    %c36_729 = arith.constant 36 : index
    %677 = vector.load %arg26[%c0_728, %c36_729] : memref<16x196xf32, #tpu.memory_space<vmem>>, vector<16x144xf32>
    %c15_730 = arith.constant 15 : index
    %c0_731 = arith.constant 0 : index
    %c0_732 = arith.constant 0 : index
    %678 = vector.load %arg17[%c15_730, %c0_731, %c0_732] : memref<25x8x16xf32, #tpu.memory_space<vmem>>, vector<1x8x16xf32>
    %679 = vector.shape_cast %678 : vector<1x8x16xf32> to vector<8x16xf32>
    %cst_733 = arith.constant dense<0.000000e+00> : vector<8x144xf32>
    %680 = tpu.matmul %679, %677, %cst_733 {dimension_numbers = #tpu.dot_dimension_numbers<[1], [0], [0], [1], [0, 0, 1, 1], [], []>} : vector<8x16xf32>, vector<16x144xf32>, vector<8x144xf32> -> vector<8x144xf32>
    %681 = arith.addf %676, %680 : vector<8x144xf32>
    %c0_734 = arith.constant 0 : index
    %c37_735 = arith.constant 37 : index
    %682 = vector.load %arg26[%c0_734, %c37_735] : memref<16x196xf32, #tpu.memory_space<vmem>>, vector<16x144xf32>
    %c16_736 = arith.constant 16 : index
    %c0_737 = arith.constant 0 : index
    %c0_738 = arith.constant 0 : index
    %683 = vector.load %arg17[%c16_736, %c0_737, %c0_738] : memref<25x8x16xf32, #tpu.memory_space<vmem>>, vector<1x8x16xf32>
    %684 = vector.shape_cast %683 : vector<1x8x16xf32> to vector<8x16xf32>
    %cst_739 = arith.constant dense<0.000000e+00> : vector<8x144xf32>
    %685 = tpu.matmul %684, %682, %cst_739 {dimension_numbers = #tpu.dot_dimension_numbers<[1], [0], [0], [1], [0, 0, 1, 1], [], []>} : vector<8x16xf32>, vector<16x144xf32>, vector<8x144xf32> -> vector<8x144xf32>
    %686 = arith.addf %681, %685 : vector<8x144xf32>
    %c0_740 = arith.constant 0 : index
    %c38_741 = arith.constant 38 : index
    %687 = vector.load %arg26[%c0_740, %c38_741] : memref<16x196xf32, #tpu.memory_space<vmem>>, vector<16x144xf32>
    %c17_742 = arith.constant 17 : index
    %c0_743 = arith.constant 0 : index
    %c0_744 = arith.constant 0 : index
    %688 = vector.load %arg17[%c17_742, %c0_743, %c0_744] : memref<25x8x16xf32, #tpu.memory_space<vmem>>, vector<1x8x16xf32>
    %689 = vector.shape_cast %688 : vector<1x8x16xf32> to vector<8x16xf32>
    %cst_745 = arith.constant dense<0.000000e+00> : vector<8x144xf32>
    %690 = tpu.matmul %689, %687, %cst_745 {dimension_numbers = #tpu.dot_dimension_numbers<[1], [0], [0], [1], [0, 0, 1, 1], [], []>} : vector<8x16xf32>, vector<16x144xf32>, vector<8x144xf32> -> vector<8x144xf32>
    %691 = arith.addf %686, %690 : vector<8x144xf32>
    %c0_746 = arith.constant 0 : index
    %c39_747 = arith.constant 39 : index
    %692 = vector.load %arg26[%c0_746, %c39_747] : memref<16x196xf32, #tpu.memory_space<vmem>>, vector<16x144xf32>
    %c18_748 = arith.constant 18 : index
    %c0_749 = arith.constant 0 : index
    %c0_750 = arith.constant 0 : index
    %693 = vector.load %arg17[%c18_748, %c0_749, %c0_750] : memref<25x8x16xf32, #tpu.memory_space<vmem>>, vector<1x8x16xf32>
    %694 = vector.shape_cast %693 : vector<1x8x16xf32> to vector<8x16xf32>
    %cst_751 = arith.constant dense<0.000000e+00> : vector<8x144xf32>
    %695 = tpu.matmul %694, %692, %cst_751 {dimension_numbers = #tpu.dot_dimension_numbers<[1], [0], [0], [1], [0, 0, 1, 1], [], []>} : vector<8x16xf32>, vector<16x144xf32>, vector<8x144xf32> -> vector<8x144xf32>
    %696 = arith.addf %691, %695 : vector<8x144xf32>
    %c0_752 = arith.constant 0 : index
    %c40_753 = arith.constant 40 : index
    %697 = vector.load %arg26[%c0_752, %c40_753] : memref<16x196xf32, #tpu.memory_space<vmem>>, vector<16x144xf32>
    %c19_754 = arith.constant 19 : index
    %c0_755 = arith.constant 0 : index
    %c0_756 = arith.constant 0 : index
    %698 = vector.load %arg17[%c19_754, %c0_755, %c0_756] : memref<25x8x16xf32, #tpu.memory_space<vmem>>, vector<1x8x16xf32>
    %699 = vector.shape_cast %698 : vector<1x8x16xf32> to vector<8x16xf32>
    %cst_757 = arith.constant dense<0.000000e+00> : vector<8x144xf32>
    %700 = tpu.matmul %699, %697, %cst_757 {dimension_numbers = #tpu.dot_dimension_numbers<[1], [0], [0], [1], [0, 0, 1, 1], [], []>} : vector<8x16xf32>, vector<16x144xf32>, vector<8x144xf32> -> vector<8x144xf32>
    %701 = arith.addf %696, %700 : vector<8x144xf32>
    %c0_758 = arith.constant 0 : index
    %c48_759 = arith.constant 48 : index
    %702 = vector.load %arg26[%c0_758, %c48_759] : memref<16x196xf32, #tpu.memory_space<vmem>>, vector<16x144xf32>
    %c20_760 = arith.constant 20 : index
    %c0_761 = arith.constant 0 : index
    %c0_762 = arith.constant 0 : index
    %703 = vector.load %arg17[%c20_760, %c0_761, %c0_762] : memref<25x8x16xf32, #tpu.memory_space<vmem>>, vector<1x8x16xf32>
    %704 = vector.shape_cast %703 : vector<1x8x16xf32> to vector<8x16xf32>
    %cst_763 = arith.constant dense<0.000000e+00> : vector<8x144xf32>
    %705 = tpu.matmul %704, %702, %cst_763 {dimension_numbers = #tpu.dot_dimension_numbers<[1], [0], [0], [1], [0, 0, 1, 1], [], []>} : vector<8x16xf32>, vector<16x144xf32>, vector<8x144xf32> -> vector<8x144xf32>
    %706 = arith.addf %701, %705 : vector<8x144xf32>
    %c0_764 = arith.constant 0 : index
    %c49_765 = arith.constant 49 : index
    %707 = vector.load %arg26[%c0_764, %c49_765] : memref<16x196xf32, #tpu.memory_space<vmem>>, vector<16x144xf32>
    %c21_766 = arith.constant 21 : index
    %c0_767 = arith.constant 0 : index
    %c0_768 = arith.constant 0 : index
    %708 = vector.load %arg17[%c21_766, %c0_767, %c0_768] : memref<25x8x16xf32, #tpu.memory_space<vmem>>, vector<1x8x16xf32>
    %709 = vector.shape_cast %708 : vector<1x8x16xf32> to vector<8x16xf32>
    %cst_769 = arith.constant dense<0.000000e+00> : vector<8x144xf32>
    %710 = tpu.matmul %709, %707, %cst_769 {dimension_numbers = #tpu.dot_dimension_numbers<[1], [0], [0], [1], [0, 0, 1, 1], [], []>} : vector<8x16xf32>, vector<16x144xf32>, vector<8x144xf32> -> vector<8x144xf32>
    %711 = arith.addf %706, %710 : vector<8x144xf32>
    %c0_770 = arith.constant 0 : index
    %c50_771 = arith.constant 50 : index
    %712 = vector.load %arg26[%c0_770, %c50_771] : memref<16x196xf32, #tpu.memory_space<vmem>>, vector<16x144xf32>
    %c22_772 = arith.constant 22 : index
    %c0_773 = arith.constant 0 : index
    %c0_774 = arith.constant 0 : index
    %713 = vector.load %arg17[%c22_772, %c0_773, %c0_774] : memref<25x8x16xf32, #tpu.memory_space<vmem>>, vector<1x8x16xf32>
    %714 = vector.shape_cast %713 : vector<1x8x16xf32> to vector<8x16xf32>
    %cst_775 = arith.constant dense<0.000000e+00> : vector<8x144xf32>
    %715 = tpu.matmul %714, %712, %cst_775 {dimension_numbers = #tpu.dot_dimension_numbers<[1], [0], [0], [1], [0, 0, 1, 1], [], []>} : vector<8x16xf32>, vector<16x144xf32>, vector<8x144xf32> -> vector<8x144xf32>
    %716 = arith.addf %711, %715 : vector<8x144xf32>
    %c0_776 = arith.constant 0 : index
    %c51_777 = arith.constant 51 : index
    %717 = vector.load %arg26[%c0_776, %c51_777] : memref<16x196xf32, #tpu.memory_space<vmem>>, vector<16x144xf32>
    %c23_778 = arith.constant 23 : index
    %c0_779 = arith.constant 0 : index
    %c0_780 = arith.constant 0 : index
    %718 = vector.load %arg17[%c23_778, %c0_779, %c0_780] : memref<25x8x16xf32, #tpu.memory_space<vmem>>, vector<1x8x16xf32>
    %719 = vector.shape_cast %718 : vector<1x8x16xf32> to vector<8x16xf32>
    %cst_781 = arith.constant dense<0.000000e+00> : vector<8x144xf32>
    %720 = tpu.matmul %719, %717, %cst_781 {dimension_numbers = #tpu.dot_dimension_numbers<[1], [0], [0], [1], [0, 0, 1, 1], [], []>} : vector<8x16xf32>, vector<16x144xf32>, vector<8x144xf32> -> vector<8x144xf32>
    %721 = arith.addf %716, %720 : vector<8x144xf32>
    %c0_782 = arith.constant 0 : index
    %c52_783 = arith.constant 52 : index
    %722 = vector.load %arg26[%c0_782, %c52_783] : memref<16x196xf32, #tpu.memory_space<vmem>>, vector<16x144xf32>
    %c24_784 = arith.constant 24 : index
    %c0_785 = arith.constant 0 : index
    %c0_786 = arith.constant 0 : index
    %723 = vector.load %arg17[%c24_784, %c0_785, %c0_786] : memref<25x8x16xf32, #tpu.memory_space<vmem>>, vector<1x8x16xf32>
    %724 = vector.shape_cast %723 : vector<1x8x16xf32> to vector<8x16xf32>
    %cst_787 = arith.constant dense<0.000000e+00> : vector<8x144xf32>
    %725 = tpu.matmul %724, %722, %cst_787 {dimension_numbers = #tpu.dot_dimension_numbers<[1], [0], [0], [1], [0, 0, 1, 1], [], []>} : vector<8x16xf32>, vector<16x144xf32>, vector<8x144xf32> -> vector<8x144xf32>
    %726 = arith.addf %721, %725 : vector<8x144xf32>
    %c0_788 = arith.constant 0 : index
    %c0_789 = arith.constant 0 : index
    %727 = vector.load %arg18[%c0_788, %c0_789] : memref<8x1xf32, #tpu.memory_space<vmem>>, vector<8x1xf32>
    %728 = vector.broadcast %727 : vector<8x1xf32> to vector<8x144xf32>
    %729 = arith.addf %726, %728 : vector<8x144xf32>
    %cst_790 = arith.constant 0.000000e+00 : f32
    %730 = vector.shape_cast %2 : vector<1x144xi1> to vector<1x144xi1>
    %731 = vector.broadcast %730 : vector<1x144xi1> to vector<8x144xi1>
    %732 = vector.broadcast %cst_790 : f32 to vector<8x144xf32>
    %733 = arith.select %731, %729, %732 : vector<8x144xi1>, vector<8x144xf32>
    %c0_791 = arith.constant 0 : index
    %c0_792 = arith.constant 0 : index
    %734 = vector.load %arg19[%c0_791, %c0_792] : memref<8x8xf32, #tpu.memory_space<vmem>>, vector<8x8xf32>
    %735 = arith.mulf %733, %733 : vector<8x144xf32>
    %cst_793 = arith.constant dense<0.000000e+00> : vector<8x144xf32>
    %736 = tpu.matmul %734, %735, %cst_793 {dimension_numbers = #tpu.dot_dimension_numbers<[1], [0], [0], [1], [0, 0, 1, 1], [], []>} : vector<8x8xf32>, vector<8x144xf32>, vector<8x144xf32> -> vector<8x144xf32>
    %c0_794 = arith.constant 0 : index
    %c0_795 = arith.constant 0 : index
    %737 = vector.load %arg20[%c0_794, %c0_795] : memref<8x1xf32, #tpu.memory_space<vmem>>, vector<8x1xf32>
    %738 = vector.broadcast %737 : vector<8x1xf32> to vector<8x144xf32>
    %739 = arith.addf %736, %738 : vector<8x144xf32>
    %cst_796 = arith.constant 9.99999971E-10 : f32
    %740 = vector.broadcast %cst_796 : f32 to vector<8x144xf32>
    %741 = arith.maximumf %739, %740 : vector<8x144xf32>
    %742 = math.sqrt %741 : vector<8x144xf32>
    %743 = arith.mulf %733, %742 : vector<8x144xf32>
    %c0_797 = arith.constant 0 : index
    %c26_798 = arith.constant 26 : index
    %744 = vector.load %arg25[%c0_797, %c26_798] : memref<16x196xf32, #tpu.memory_space<vmem>>, vector<8x144xf32>
    tpu.vector_store %arg25[%c0_797, %c26_798], %743 {strides = array<i32>} : memref<16x196xf32, #tpu.memory_space<vmem>>, vector<8x144xf32>,
    %cst_799 = arith.constant 0.000000e+00 : f32
    %745 = vector.broadcast %cst_799 : f32 to vector<4x144xf32>
    %c0_800 = arith.constant 0 : index
    %c39_801 = arith.constant 39 : index
    %746 = vector.load %arg25[%c0_800, %c39_801] : memref<16x196xf32, #tpu.memory_space<vmem>>, vector<8x144xf32>
    %c0_802 = arith.constant 0 : index
    %c0_803 = arith.constant 0 : index
    %c0_804 = arith.constant 0 : index
    %747 = vector.load %arg21[%c0_802, %c0_803, %c0_804] : memref<36x4x8xf32, #tpu.memory_space<vmem>>, vector<1x4x8xf32>
    %748 = vector.shape_cast %747 : vector<1x4x8xf32> to vector<4x8xf32>
    %cst_805 = arith.constant dense<0.000000e+00> : vector<4x144xf32>
    %749 = tpu.matmul %748, %746, %cst_805 {dimension_numbers = #tpu.dot_dimension_numbers<[1], [0], [0], [1], [0, 0, 1, 1], [], []>} : vector<4x8xf32>, vector<8x144xf32>, vector<4x144xf32> -> vector<4x144xf32>
    %750 = arith.addf %745, %749 : vector<4x144xf32>
    %c0_806 = arith.constant 0 : index
    %c38_807 = arith.constant 38 : index
    %751 = vector.load %arg25[%c0_806, %c38_807] : memref<16x196xf32, #tpu.memory_space<vmem>>, vector<8x144xf32>
    %c1_808 = arith.constant 1 : index
    %c0_809 = arith.constant 0 : index
    %c0_810 = arith.constant 0 : index
    %752 = vector.load %arg21[%c1_808, %c0_809, %c0_810] : memref<36x4x8xf32, #tpu.memory_space<vmem>>, vector<1x4x8xf32>
    %753 = vector.shape_cast %752 : vector<1x4x8xf32> to vector<4x8xf32>
    %cst_811 = arith.constant dense<0.000000e+00> : vector<4x144xf32>
    %754 = tpu.matmul %753, %751, %cst_811 {dimension_numbers = #tpu.dot_dimension_numbers<[1], [0], [0], [1], [0, 0, 1, 1], [], []>} : vector<4x8xf32>, vector<8x144xf32>, vector<4x144xf32> -> vector<4x144xf32>
    %755 = arith.addf %750, %754 : vector<4x144xf32>
    %c0_812 = arith.constant 0 : index
    %c37_813 = arith.constant 37 : index
    %756 = vector.load %arg25[%c0_812, %c37_813] : memref<16x196xf32, #tpu.memory_space<vmem>>, vector<8x144xf32>
    %c2_814 = arith.constant 2 : index
    %c0_815 = arith.constant 0 : index
    %c0_816 = arith.constant 0 : index
    %757 = vector.load %arg21[%c2_814, %c0_815, %c0_816] : memref<36x4x8xf32, #tpu.memory_space<vmem>>, vector<1x4x8xf32>
    %758 = vector.shape_cast %757 : vector<1x4x8xf32> to vector<4x8xf32>
    %cst_817 = arith.constant dense<0.000000e+00> : vector<4x144xf32>
    %759 = tpu.matmul %758, %756, %cst_817 {dimension_numbers = #tpu.dot_dimension_numbers<[1], [0], [0], [1], [0, 0, 1, 1], [], []>} : vector<4x8xf32>, vector<8x144xf32>, vector<4x144xf32> -> vector<4x144xf32>
    %760 = arith.addf %755, %759 : vector<4x144xf32>
    %c0_818 = arith.constant 0 : index
    %c27_819 = arith.constant 27 : index
    %761 = vector.load %arg25[%c0_818, %c27_819] : memref<16x196xf32, #tpu.memory_space<vmem>>, vector<8x144xf32>
    %c3_820 = arith.constant 3 : index
    %c0_821 = arith.constant 0 : index
    %c0_822 = arith.constant 0 : index
    %762 = vector.load %arg21[%c3_820, %c0_821, %c0_822] : memref<36x4x8xf32, #tpu.memory_space<vmem>>, vector<1x4x8xf32>
    %763 = vector.shape_cast %762 : vector<1x4x8xf32> to vector<4x8xf32>
    %cst_823 = arith.constant dense<0.000000e+00> : vector<4x144xf32>
    %764 = tpu.matmul %763, %761, %cst_823 {dimension_numbers = #tpu.dot_dimension_numbers<[1], [0], [0], [1], [0, 0, 1, 1], [], []>} : vector<4x8xf32>, vector<8x144xf32>, vector<4x144xf32> -> vector<4x144xf32>
    %765 = arith.addf %760, %764 : vector<4x144xf32>
    %c0_824 = arith.constant 0 : index
    %c26_825 = arith.constant 26 : index
    %766 = vector.load %arg25[%c0_824, %c26_825] : memref<16x196xf32, #tpu.memory_space<vmem>>, vector<8x144xf32>
    %c4_826 = arith.constant 4 : index
    %c0_827 = arith.constant 0 : index
    %c0_828 = arith.constant 0 : index
    %767 = vector.load %arg21[%c4_826, %c0_827, %c0_828] : memref<36x4x8xf32, #tpu.memory_space<vmem>>, vector<1x4x8xf32>
    %768 = vector.shape_cast %767 : vector<1x4x8xf32> to vector<4x8xf32>
    %cst_829 = arith.constant dense<0.000000e+00> : vector<4x144xf32>
    %769 = tpu.matmul %768, %766, %cst_829 {dimension_numbers = #tpu.dot_dimension_numbers<[1], [0], [0], [1], [0, 0, 1, 1], [], []>} : vector<4x8xf32>, vector<8x144xf32>, vector<4x144xf32> -> vector<4x144xf32>
    %770 = arith.addf %765, %769 : vector<4x144xf32>
    %c0_830 = arith.constant 0 : index
    %c25_831 = arith.constant 25 : index
    %771 = vector.load %arg25[%c0_830, %c25_831] : memref<16x196xf32, #tpu.memory_space<vmem>>, vector<8x144xf32>
    %c5_832 = arith.constant 5 : index
    %c0_833 = arith.constant 0 : index
    %c0_834 = arith.constant 0 : index
    %772 = vector.load %arg21[%c5_832, %c0_833, %c0_834] : memref<36x4x8xf32, #tpu.memory_space<vmem>>, vector<1x4x8xf32>
    %773 = vector.shape_cast %772 : vector<1x4x8xf32> to vector<4x8xf32>
    %cst_835 = arith.constant dense<0.000000e+00> : vector<4x144xf32>
    %774 = tpu.matmul %773, %771, %cst_835 {dimension_numbers = #tpu.dot_dimension_numbers<[1], [0], [0], [1], [0, 0, 1, 1], [], []>} : vector<4x8xf32>, vector<8x144xf32>, vector<4x144xf32> -> vector<4x144xf32>
    %775 = arith.addf %770, %774 : vector<4x144xf32>
    %c0_836 = arith.constant 0 : index
    %c15_837 = arith.constant 15 : index
    %776 = vector.load %arg25[%c0_836, %c15_837] : memref<16x196xf32, #tpu.memory_space<vmem>>, vector<8x144xf32>
    %c6_838 = arith.constant 6 : index
    %c0_839 = arith.constant 0 : index
    %c0_840 = arith.constant 0 : index
    %777 = vector.load %arg21[%c6_838, %c0_839, %c0_840] : memref<36x4x8xf32, #tpu.memory_space<vmem>>, vector<1x4x8xf32>
    %778 = vector.shape_cast %777 : vector<1x4x8xf32> to vector<4x8xf32>
    %cst_841 = arith.constant dense<0.000000e+00> : vector<4x144xf32>
    %779 = tpu.matmul %778, %776, %cst_841 {dimension_numbers = #tpu.dot_dimension_numbers<[1], [0], [0], [1], [0, 0, 1, 1], [], []>} : vector<4x8xf32>, vector<8x144xf32>, vector<4x144xf32> -> vector<4x144xf32>
    %780 = arith.addf %775, %779 : vector<4x144xf32>
    %c0_842 = arith.constant 0 : index
    %c14_843 = arith.constant 14 : index
    %781 = vector.load %arg25[%c0_842, %c14_843] : memref<16x196xf32, #tpu.memory_space<vmem>>, vector<8x144xf32>
    %c7_844 = arith.constant 7 : index
    %c0_845 = arith.constant 0 : index
    %c0_846 = arith.constant 0 : index
    %782 = vector.load %arg21[%c7_844, %c0_845, %c0_846] : memref<36x4x8xf32, #tpu.memory_space<vmem>>, vector<1x4x8xf32>
    %783 = vector.shape_cast %782 : vector<1x4x8xf32> to vector<4x8xf32>
    %cst_847 = arith.constant dense<0.000000e+00> : vector<4x144xf32>
    %784 = tpu.matmul %783, %781, %cst_847 {dimension_numbers = #tpu.dot_dimension_numbers<[1], [0], [0], [1], [0, 0, 1, 1], [], []>} : vector<4x8xf32>, vector<8x144xf32>, vector<4x144xf32> -> vector<4x144xf32>
    %785 = arith.addf %780, %784 : vector<4x144xf32>
    %c0_848 = arith.constant 0 : index
    %c13_849 = arith.constant 13 : index
    %786 = vector.load %arg25[%c0_848, %c13_849] : memref<16x196xf32, #tpu.memory_space<vmem>>, vector<8x144xf32>
    %c8_850 = arith.constant 8 : index
    %c0_851 = arith.constant 0 : index
    %c0_852 = arith.constant 0 : index
    %787 = vector.load %arg21[%c8_850, %c0_851, %c0_852] : memref<36x4x8xf32, #tpu.memory_space<vmem>>, vector<1x4x8xf32>
    %788 = vector.shape_cast %787 : vector<1x4x8xf32> to vector<4x8xf32>
    %cst_853 = arith.constant dense<0.000000e+00> : vector<4x144xf32>
    %789 = tpu.matmul %788, %786, %cst_853 {dimension_numbers = #tpu.dot_dimension_numbers<[1], [0], [0], [1], [0, 0, 1, 1], [], []>} : vector<4x8xf32>, vector<8x144xf32>, vector<4x144xf32> -> vector<4x144xf32>
    %790 = arith.addf %785, %789 : vector<4x144xf32>
    %c0_854 = arith.constant 0 : index
    %c0_855 = arith.constant 0 : index
    %791 = vector.load %arg22[%c0_854, %c0_855] : memref<4x1xf32, #tpu.memory_space<vmem>>, vector<4x1xf32>
    %792 = vector.broadcast %791 : vector<4x1xf32> to vector<4x144xf32>
    %793 = arith.addf %790, %792 : vector<4x144xf32>
    %c0_856 = arith.constant 0 : index
    %c0_857 = arith.constant 0 : index
    %c0_858 = arith.constant 0 : index
    %794 = vector.load %arg24[%c0_856, %c0_857, %c0_858] : memref<1x16x144xf32, #tpu.memory_space<vmem>>, vector<1x4x144xf32>
    %795 = vector.shape_cast %794 : vector<1x4x144xf32> to vector<4x144xf32>
    %796 = vector.shape_cast %793 : vector<4x144xf32> to vector<1x4x144xf32>
    tpu.vector_store %arg24[%c0_856, %c0_857, %c0_858], %796 {strides = array<i32>} : memref<1x16x144xf32, #tpu.memory_space<vmem>>, vector<1x4x144xf32>,
    %cst_859 = arith.constant 0.000000e+00 : f32
    %797 = vector.broadcast %cst_859 : f32 to vector<4x144xf32>
    %c0_860 = arith.constant 0 : index
    %c39_861 = arith.constant 39 : index
    %798 = vector.load %arg25[%c0_860, %c39_861] : memref<16x196xf32, #tpu.memory_space<vmem>>, vector<8x144xf32>
    %c9_862 = arith.constant 9 : index
    %c0_863 = arith.constant 0 : index
    %c0_864 = arith.constant 0 : index
    %799 = vector.load %arg21[%c9_862, %c0_863, %c0_864] : memref<36x4x8xf32, #tpu.memory_space<vmem>>, vector<1x4x8xf32>
    %800 = vector.shape_cast %799 : vector<1x4x8xf32> to vector<4x8xf32>
    %cst_865 = arith.constant dense<0.000000e+00> : vector<4x144xf32>
    %801 = tpu.matmul %800, %798, %cst_865 {dimension_numbers = #tpu.dot_dimension_numbers<[1], [0], [0], [1], [0, 0, 1, 1], [], []>} : vector<4x8xf32>, vector<8x144xf32>, vector<4x144xf32> -> vector<4x144xf32>
    %802 = arith.addf %797, %801 : vector<4x144xf32>
    %c0_866 = arith.constant 0 : index
    %c38_867 = arith.constant 38 : index
    %803 = vector.load %arg25[%c0_866, %c38_867] : memref<16x196xf32, #tpu.memory_space<vmem>>, vector<8x144xf32>
    %c10_868 = arith.constant 10 : index
    %c0_869 = arith.constant 0 : index
    %c0_870 = arith.constant 0 : index
    %804 = vector.load %arg21[%c10_868, %c0_869, %c0_870] : memref<36x4x8xf32, #tpu.memory_space<vmem>>, vector<1x4x8xf32>
    %805 = vector.shape_cast %804 : vector<1x4x8xf32> to vector<4x8xf32>
    %cst_871 = arith.constant dense<0.000000e+00> : vector<4x144xf32>
    %806 = tpu.matmul %805, %803, %cst_871 {dimension_numbers = #tpu.dot_dimension_numbers<[1], [0], [0], [1], [0, 0, 1, 1], [], []>} : vector<4x8xf32>, vector<8x144xf32>, vector<4x144xf32> -> vector<4x144xf32>
    %807 = arith.addf %802, %806 : vector<4x144xf32>
    %c0_872 = arith.constant 0 : index
    %c27_873 = arith.constant 27 : index
    %808 = vector.load %arg25[%c0_872, %c27_873] : memref<16x196xf32, #tpu.memory_space<vmem>>, vector<8x144xf32>
    %c12_874 = arith.constant 12 : index
    %c0_875 = arith.constant 0 : index
    %c0_876 = arith.constant 0 : index
    %809 = vector.load %arg21[%c12_874, %c0_875, %c0_876] : memref<36x4x8xf32, #tpu.memory_space<vmem>>, vector<1x4x8xf32>
    %810 = vector.shape_cast %809 : vector<1x4x8xf32> to vector<4x8xf32>
    %cst_877 = arith.constant dense<0.000000e+00> : vector<4x144xf32>
    %811 = tpu.matmul %810, %808, %cst_877 {dimension_numbers = #tpu.dot_dimension_numbers<[1], [0], [0], [1], [0, 0, 1, 1], [], []>} : vector<4x8xf32>, vector<8x144xf32>, vector<4x144xf32> -> vector<4x144xf32>
    %812 = arith.addf %807, %811 : vector<4x144xf32>
    %c0_878 = arith.constant 0 : index
    %c26_879 = arith.constant 26 : index
    %813 = vector.load %arg25[%c0_878, %c26_879] : memref<16x196xf32, #tpu.memory_space<vmem>>, vector<8x144xf32>
    %c13_880 = arith.constant 13 : index
    %c0_881 = arith.constant 0 : index
    %c0_882 = arith.constant 0 : index
    %814 = vector.load %arg21[%c13_880, %c0_881, %c0_882] : memref<36x4x8xf32, #tpu.memory_space<vmem>>, vector<1x4x8xf32>
    %815 = vector.shape_cast %814 : vector<1x4x8xf32> to vector<4x8xf32>
    %cst_883 = arith.constant dense<0.000000e+00> : vector<4x144xf32>
    %816 = tpu.matmul %815, %813, %cst_883 {dimension_numbers = #tpu.dot_dimension_numbers<[1], [0], [0], [1], [0, 0, 1, 1], [], []>} : vector<4x8xf32>, vector<8x144xf32>, vector<4x144xf32> -> vector<4x144xf32>
    %817 = arith.addf %812, %816 : vector<4x144xf32>
    %c0_884 = arith.constant 0 : index
    %c15_885 = arith.constant 15 : index
    %818 = vector.load %arg25[%c0_884, %c15_885] : memref<16x196xf32, #tpu.memory_space<vmem>>, vector<8x144xf32>
    %c15_886 = arith.constant 15 : index
    %c0_887 = arith.constant 0 : index
    %c0_888 = arith.constant 0 : index
    %819 = vector.load %arg21[%c15_886, %c0_887, %c0_888] : memref<36x4x8xf32, #tpu.memory_space<vmem>>, vector<1x4x8xf32>
    %820 = vector.shape_cast %819 : vector<1x4x8xf32> to vector<4x8xf32>
    %cst_889 = arith.constant dense<0.000000e+00> : vector<4x144xf32>
    %821 = tpu.matmul %820, %818, %cst_889 {dimension_numbers = #tpu.dot_dimension_numbers<[1], [0], [0], [1], [0, 0, 1, 1], [], []>} : vector<4x8xf32>, vector<8x144xf32>, vector<4x144xf32> -> vector<4x144xf32>
    %822 = arith.addf %817, %821 : vector<4x144xf32>
    %c0_890 = arith.constant 0 : index
    %c14_891 = arith.constant 14 : index
    %823 = vector.load %arg25[%c0_890, %c14_891] : memref<16x196xf32, #tpu.memory_space<vmem>>, vector<8x144xf32>
    %c16_892 = arith.constant 16 : index
    %c0_893 = arith.constant 0 : index
    %c0_894 = arith.constant 0 : index
    %824 = vector.load %arg21[%c16_892, %c0_893, %c0_894] : memref<36x4x8xf32, #tpu.memory_space<vmem>>, vector<1x4x8xf32>
    %825 = vector.shape_cast %824 : vector<1x4x8xf32> to vector<4x8xf32>
    %cst_895 = arith.constant dense<0.000000e+00> : vector<4x144xf32>
    %826 = tpu.matmul %825, %823, %cst_895 {dimension_numbers = #tpu.dot_dimension_numbers<[1], [0], [0], [1], [0, 0, 1, 1], [], []>} : vector<4x8xf32>, vector<8x144xf32>, vector<4x144xf32> -> vector<4x144xf32>
    %827 = arith.addf %822, %826 : vector<4x144xf32>
    %c0_896 = arith.constant 0 : index
    %c0_897 = arith.constant 0 : index
    %828 = vector.load %arg22[%c0_896, %c0_897] : memref<4x1xf32, #tpu.memory_space<vmem>>, vector<4x1xf32>
    %829 = vector.broadcast %828 : vector<4x1xf32> to vector<4x144xf32>
    %830 = arith.addf %827, %829 : vector<4x144xf32>
    %c0_898 = arith.constant 0 : index
    %c4_899 = arith.constant 4 : index
    %c0_900 = arith.constant 0 : index
    %831 = vector.load %arg24[%c0_898, %c4_899, %c0_900] : memref<1x16x144xf32, #tpu.memory_space<vmem>>, vector<1x4x144xf32>
    %832 = vector.shape_cast %831 : vector<1x4x144xf32> to vector<4x144xf32>
    %833 = vector.shape_cast %830 : vector<4x144xf32> to vector<1x4x144xf32>
    tpu.vector_store %arg24[%c0_898, %c4_899, %c0_900], %833 {strides = array<i32>} : memref<1x16x144xf32, #tpu.memory_space<vmem>>, vector<1x4x144xf32>,
    %cst_901 = arith.constant 0.000000e+00 : f32
    %834 = vector.broadcast %cst_901 : f32 to vector<4x144xf32>
    %c0_902 = arith.constant 0 : index
    %c39_903 = arith.constant 39 : index
    %835 = vector.load %arg25[%c0_902, %c39_903] : memref<16x196xf32, #tpu.memory_space<vmem>>, vector<8x144xf32>
    %c18_904 = arith.constant 18 : index
    %c0_905 = arith.constant 0 : index
    %c0_906 = arith.constant 0 : index
    %836 = vector.load %arg21[%c18_904, %c0_905, %c0_906] : memref<36x4x8xf32, #tpu.memory_space<vmem>>, vector<1x4x8xf32>
    %837 = vector.shape_cast %836 : vector<1x4x8xf32> to vector<4x8xf32>
    %cst_907 = arith.constant dense<0.000000e+00> : vector<4x144xf32>
    %838 = tpu.matmul %837, %835, %cst_907 {dimension_numbers = #tpu.dot_dimension_numbers<[1], [0], [0], [1], [0, 0, 1, 1], [], []>} : vector<4x8xf32>, vector<8x144xf32>, vector<4x144xf32> -> vector<4x144xf32>
    %839 = arith.addf %834, %838 : vector<4x144xf32>
    %c0_908 = arith.constant 0 : index
    %c38_909 = arith.constant 38 : index
    %840 = vector.load %arg25[%c0_908, %c38_909] : memref<16x196xf32, #tpu.memory_space<vmem>>, vector<8x144xf32>
    %c19_910 = arith.constant 19 : index
    %c0_911 = arith.constant 0 : index
    %c0_912 = arith.constant 0 : index
    %841 = vector.load %arg21[%c19_910, %c0_911, %c0_912] : memref<36x4x8xf32, #tpu.memory_space<vmem>>, vector<1x4x8xf32>
    %842 = vector.shape_cast %841 : vector<1x4x8xf32> to vector<4x8xf32>
    %cst_913 = arith.constant dense<0.000000e+00> : vector<4x144xf32>
    %843 = tpu.matmul %842, %840, %cst_913 {dimension_numbers = #tpu.dot_dimension_numbers<[1], [0], [0], [1], [0, 0, 1, 1], [], []>} : vector<4x8xf32>, vector<8x144xf32>, vector<4x144xf32> -> vector<4x144xf32>
    %844 = arith.addf %839, %843 : vector<4x144xf32>
    %c0_914 = arith.constant 0 : index
    %c37_915 = arith.constant 37 : index
    %845 = vector.load %arg25[%c0_914, %c37_915] : memref<16x196xf32, #tpu.memory_space<vmem>>, vector<8x144xf32>
    %c20_916 = arith.constant 20 : index
    %c0_917 = arith.constant 0 : index
    %c0_918 = arith.constant 0 : index
    %846 = vector.load %arg21[%c20_916, %c0_917, %c0_918] : memref<36x4x8xf32, #tpu.memory_space<vmem>>, vector<1x4x8xf32>
    %847 = vector.shape_cast %846 : vector<1x4x8xf32> to vector<4x8xf32>
    %cst_919 = arith.constant dense<0.000000e+00> : vector<4x144xf32>
    %848 = tpu.matmul %847, %845, %cst_919 {dimension_numbers = #tpu.dot_dimension_numbers<[1], [0], [0], [1], [0, 0, 1, 1], [], []>} : vector<4x8xf32>, vector<8x144xf32>, vector<4x144xf32> -> vector<4x144xf32>
    %849 = arith.addf %844, %848 : vector<4x144xf32>
    %c0_920 = arith.constant 0 : index
    %c27_921 = arith.constant 27 : index
    %850 = vector.load %arg25[%c0_920, %c27_921] : memref<16x196xf32, #tpu.memory_space<vmem>>, vector<8x144xf32>
    %c21_922 = arith.constant 21 : index
    %c0_923 = arith.constant 0 : index
    %c0_924 = arith.constant 0 : index
    %851 = vector.load %arg21[%c21_922, %c0_923, %c0_924] : memref<36x4x8xf32, #tpu.memory_space<vmem>>, vector<1x4x8xf32>
    %852 = vector.shape_cast %851 : vector<1x4x8xf32> to vector<4x8xf32>
    %cst_925 = arith.constant dense<0.000000e+00> : vector<4x144xf32>
    %853 = tpu.matmul %852, %850, %cst_925 {dimension_numbers = #tpu.dot_dimension_numbers<[1], [0], [0], [1], [0, 0, 1, 1], [], []>} : vector<4x8xf32>, vector<8x144xf32>, vector<4x144xf32> -> vector<4x144xf32>
    %854 = arith.addf %849, %853 : vector<4x144xf32>
    %c0_926 = arith.constant 0 : index
    %c26_927 = arith.constant 26 : index
    %855 = vector.load %arg25[%c0_926, %c26_927] : memref<16x196xf32, #tpu.memory_space<vmem>>, vector<8x144xf32>
    %c22_928 = arith.constant 22 : index
    %c0_929 = arith.constant 0 : index
    %c0_930 = arith.constant 0 : index
    %856 = vector.load %arg21[%c22_928, %c0_929, %c0_930] : memref<36x4x8xf32, #tpu.memory_space<vmem>>, vector<1x4x8xf32>
    %857 = vector.shape_cast %856 : vector<1x4x8xf32> to vector<4x8xf32>
    %cst_931 = arith.constant dense<0.000000e+00> : vector<4x144xf32>
    %858 = tpu.matmul %857, %855, %cst_931 {dimension_numbers = #tpu.dot_dimension_numbers<[1], [0], [0], [1], [0, 0, 1, 1], [], []>} : vector<4x8xf32>, vector<8x144xf32>, vector<4x144xf32> -> vector<4x144xf32>
    %859 = arith.addf %854, %858 : vector<4x144xf32>
    %c0_932 = arith.constant 0 : index
    %c25_933 = arith.constant 25 : index
    %860 = vector.load %arg25[%c0_932, %c25_933] : memref<16x196xf32, #tpu.memory_space<vmem>>, vector<8x144xf32>
    %c23_934 = arith.constant 23 : index
    %c0_935 = arith.constant 0 : index
    %c0_936 = arith.constant 0 : index
    %861 = vector.load %arg21[%c23_934, %c0_935, %c0_936] : memref<36x4x8xf32, #tpu.memory_space<vmem>>, vector<1x4x8xf32>
    %862 = vector.shape_cast %861 : vector<1x4x8xf32> to vector<4x8xf32>
    %cst_937 = arith.constant dense<0.000000e+00> : vector<4x144xf32>
    %863 = tpu.matmul %862, %860, %cst_937 {dimension_numbers = #tpu.dot_dimension_numbers<[1], [0], [0], [1], [0, 0, 1, 1], [], []>} : vector<4x8xf32>, vector<8x144xf32>, vector<4x144xf32> -> vector<4x144xf32>
    %864 = arith.addf %859, %863 : vector<4x144xf32>
    %c0_938 = arith.constant 0 : index
    %c0_939 = arith.constant 0 : index
    %865 = vector.load %arg22[%c0_938, %c0_939] : memref<4x1xf32, #tpu.memory_space<vmem>>, vector<4x1xf32>
    %866 = vector.broadcast %865 : vector<4x1xf32> to vector<4x144xf32>
    %867 = arith.addf %864, %866 : vector<4x144xf32>
    %c0_940 = arith.constant 0 : index
    %c8_941 = arith.constant 8 : index
    %c0_942 = arith.constant 0 : index
    %868 = vector.load %arg24[%c0_940, %c8_941, %c0_942] : memref<1x16x144xf32, #tpu.memory_space<vmem>>, vector<1x4x144xf32>
    %869 = vector.shape_cast %868 : vector<1x4x144xf32> to vector<4x144xf32>
    %870 = vector.shape_cast %867 : vector<4x144xf32> to vector<1x4x144xf32>
    tpu.vector_store %arg24[%c0_940, %c8_941, %c0_942], %870 {strides = array<i32>} : memref<1x16x144xf32, #tpu.memory_space<vmem>>, vector<1x4x144xf32>,
    %cst_943 = arith.constant 0.000000e+00 : f32
    %871 = vector.broadcast %cst_943 : f32 to vector<4x144xf32>
    %c0_944 = arith.constant 0 : index
    %c39_945 = arith.constant 39 : index
    %872 = vector.load %arg25[%c0_944, %c39_945] : memref<16x196xf32, #tpu.memory_space<vmem>>, vector<8x144xf32>
    %c27_946 = arith.constant 27 : index
    %c0_947 = arith.constant 0 : index
    %c0_948 = arith.constant 0 : index
    %873 = vector.load %arg21[%c27_946, %c0_947, %c0_948] : memref<36x4x8xf32, #tpu.memory_space<vmem>>, vector<1x4x8xf32>
    %874 = vector.shape_cast %873 : vector<1x4x8xf32> to vector<4x8xf32>
    %cst_949 = arith.constant dense<0.000000e+00> : vector<4x144xf32>
    %875 = tpu.matmul %874, %872, %cst_949 {dimension_numbers = #tpu.dot_dimension_numbers<[1], [0], [0], [1], [0, 0, 1, 1], [], []>} : vector<4x8xf32>, vector<8x144xf32>, vector<4x144xf32> -> vector<4x144xf32>
    %876 = arith.addf %871, %875 : vector<4x144xf32>
    %c0_950 = arith.constant 0 : index
    %c38_951 = arith.constant 38 : index
    %877 = vector.load %arg25[%c0_950, %c38_951] : memref<16x196xf32, #tpu.memory_space<vmem>>, vector<8x144xf32>
    %c28_952 = arith.constant 28 : index
    %c0_953 = arith.constant 0 : index
    %c0_954 = arith.constant 0 : index
    %878 = vector.load %arg21[%c28_952, %c0_953, %c0_954] : memref<36x4x8xf32, #tpu.memory_space<vmem>>, vector<1x4x8xf32>
    %879 = vector.shape_cast %878 : vector<1x4x8xf32> to vector<4x8xf32>
    %cst_955 = arith.constant dense<0.000000e+00> : vector<4x144xf32>
    %880 = tpu.matmul %879, %877, %cst_955 {dimension_numbers = #tpu.dot_dimension_numbers<[1], [0], [0], [1], [0, 0, 1, 1], [], []>} : vector<4x8xf32>, vector<8x144xf32>, vector<4x144xf32> -> vector<4x144xf32>
    %881 = arith.addf %876, %880 : vector<4x144xf32>
    %c0_956 = arith.constant 0 : index
    %c27_957 = arith.constant 27 : index
    %882 = vector.load %arg25[%c0_956, %c27_957] : memref<16x196xf32, #tpu.memory_space<vmem>>, vector<8x144xf32>
    %c30_958 = arith.constant 30 : index
    %c0_959 = arith.constant 0 : index
    %c0_960 = arith.constant 0 : index
    %883 = vector.load %arg21[%c30_958, %c0_959, %c0_960] : memref<36x4x8xf32, #tpu.memory_space<vmem>>, vector<1x4x8xf32>
    %884 = vector.shape_cast %883 : vector<1x4x8xf32> to vector<4x8xf32>
    %cst_961 = arith.constant dense<0.000000e+00> : vector<4x144xf32>
    %885 = tpu.matmul %884, %882, %cst_961 {dimension_numbers = #tpu.dot_dimension_numbers<[1], [0], [0], [1], [0, 0, 1, 1], [], []>} : vector<4x8xf32>, vector<8x144xf32>, vector<4x144xf32> -> vector<4x144xf32>
    %886 = arith.addf %881, %885 : vector<4x144xf32>
    %c0_962 = arith.constant 0 : index
    %c26_963 = arith.constant 26 : index
    %887 = vector.load %arg25[%c0_962, %c26_963] : memref<16x196xf32, #tpu.memory_space<vmem>>, vector<8x144xf32>
    %c31_964 = arith.constant 31 : index
    %c0_965 = arith.constant 0 : index
    %c0_966 = arith.constant 0 : index
    %888 = vector.load %arg21[%c31_964, %c0_965, %c0_966] : memref<36x4x8xf32, #tpu.memory_space<vmem>>, vector<1x4x8xf32>
    %889 = vector.shape_cast %888 : vector<1x4x8xf32> to vector<4x8xf32>
    %cst_967 = arith.constant dense<0.000000e+00> : vector<4x144xf32>
    %890 = tpu.matmul %889, %887, %cst_967 {dimension_numbers = #tpu.dot_dimension_numbers<[1], [0], [0], [1], [0, 0, 1, 1], [], []>} : vector<4x8xf32>, vector<8x144xf32>, vector<4x144xf32> -> vector<4x144xf32>
    %891 = arith.addf %886, %890 : vector<4x144xf32>
    %c0_968 = arith.constant 0 : index
    %c0_969 = arith.constant 0 : index
    %892 = vector.load %arg22[%c0_968, %c0_969] : memref<4x1xf32, #tpu.memory_space<vmem>>, vector<4x1xf32>
    %893 = vector.broadcast %892 : vector<4x1xf32> to vector<4x144xf32>
    %894 = arith.addf %891, %893 : vector<4x144xf32>
    %c0_970 = arith.constant 0 : index
    %c12_971 = arith.constant 12 : index
    %c0_972 = arith.constant 0 : index
    %895 = vector.load %arg24[%c0_970, %c12_971, %c0_972] : memref<1x16x144xf32, #tpu.memory_space<vmem>>, vector<1x4x144xf32>
    %896 = vector.shape_cast %895 : vector<1x4x144xf32> to vector<4x144xf32>
    %897 = vector.shape_cast %894 : vector<4x144xf32> to vector<1x4x144xf32>
    tpu.vector_store %arg24[%c0_970, %c12_971, %c0_972], %897 {strides = array<i32>} : memref<1x16x144xf32, #tpu.memory_space<vmem>>, vector<1x4x144xf32>,
    return
  }
  func.func @transform_0(%arg0: i32) -> (i32, i32, i32) {
    %c0_i32 = arith.constant 0 : i32
    %c0_i32_0 = arith.constant 0 : i32
    %c0_i32_1 = arith.constant 0 : i32
    return %arg0, %c0_i32, %c0_i32_0 : i32, i32, i32
  }
  func.func @transform_1(%arg0: i32) -> (i32, i32) {
    %c0_i32 = arith.constant 0 : i32
    %c0_i32_0 = arith.constant 0 : i32
    %c0_i32_1 = arith.constant 0 : i32
    return %c0_i32, %c0_i32_0 : i32, i32
  }
  func.func @transform_2(%arg0: i32) -> (i32, i32, i32) {
    %c0_i32 = arith.constant 0 : i32
    %c0_i32_0 = arith.constant 0 : i32
    %c0_i32_1 = arith.constant 0 : i32
    %c0_i32_2 = arith.constant 0 : i32
    return %c0_i32, %c0_i32_0, %c0_i32_1 : i32, i32, i32
  }
  func.func @transform_3(%arg0: i32) -> (i32, i32) {
    %c0_i32 = arith.constant 0 : i32
    %c0_i32_0 = arith.constant 0 : i32
    %c0_i32_1 = arith.constant 0 : i32
    return %c0_i32, %c0_i32_0 : i32, i32
  }
  func.func @transform_4(%arg0: i32) -> (i32, i32) {
    %c0_i32 = arith.constant 0 : i32
    %c0_i32_0 = arith.constant 0 : i32
    %c0_i32_1 = arith.constant 0 : i32
    return %c0_i32, %c0_i32_0 : i32, i32
  }
  func.func @transform_5(%arg0: i32) -> (i32, i32) {
    %c0_i32 = arith.constant 0 : i32
    %c0_i32_0 = arith.constant 0 : i32
    %c0_i32_1 = arith.constant 0 : i32
    return %c0_i32, %c0_i32_0 : i32, i32
  }
  func.func @transform_6(%arg0: i32) -> (i32, i32, i32) {
    %c0_i32 = arith.constant 0 : i32
    %c0_i32_0 = arith.constant 0 : i32
    %c0_i32_1 = arith.constant 0 : i32
    %c0_i32_2 = arith.constant 0 : i32
    return %c0_i32, %c0_i32_0, %c0_i32_1 : i32, i32, i32
  }
  func.func @transform_7(%arg0: i32) -> (i32, i32) {
    %c0_i32 = arith.constant 0 : i32
    %c0_i32_0 = arith.constant 0 : i32
    %c0_i32_1 = arith.constant 0 : i32
    return %c0_i32, %c0_i32_0 : i32, i32
  }
  func.func @transform_8(%arg0: i32) -> (i32, i32) {
    %c0_i32 = arith.constant 0 : i32
    %c0_i32_0 = arith.constant 0 : i32
    %c0_i32_1 = arith.constant 0 : i32
    return %c0_i32, %c0_i32_0 : i32, i32
  }
  func.func @transform_9(%arg0: i32) -> (i32, i32) {
    %c0_i32 = arith.constant 0 : i32
    %c0_i32_0 = arith.constant 0 : i32
    %c0_i32_1 = arith.constant 0 : i32
    return %c0_i32, %c0_i32_0 : i32, i32
  }
  func.func @transform_10(%arg0: i32) -> (i32, i32, i32) {
    %c0_i32 = arith.constant 0 : i32
    %c0_i32_0 = arith.constant 0 : i32
    %c0_i32_1 = arith.constant 0 : i32
    %c0_i32_2 = arith.constant 0 : i32
    return %c0_i32, %c0_i32_0, %c0_i32_1 : i32, i32, i32
  }
  func.func @transform_11(%arg0: i32) -> (i32, i32) {
    %c0_i32 = arith.constant 0 : i32
    %c0_i32_0 = arith.constant 0 : i32
    %c0_i32_1 = arith.constant 0 : i32
    return %c0_i32, %c0_i32_0 : i32, i32
  }
  func.func @transform_12(%arg0: i32) -> (i32, i32, i32) {
    %c0_i32 = arith.constant 0 : i32
    %c0_i32_0 = arith.constant 0 : i32
    %c0_i32_1 = arith.constant 0 : i32
    %c0_i32_2 = arith.constant 0 : i32
    return %c0_i32, %c0_i32_0, %c0_i32_1 : i32, i32, i32
  }
  func.func @transform_13(%arg0: i32) -> (i32, i32) {
    %c0_i32 = arith.constant 0 : i32
    %c0_i32_0 = arith.constant 0 : i32
    %c0_i32_1 = arith.constant 0 : i32
    return %c0_i32, %c0_i32_0 : i32, i32
  }
  func.func @transform_14(%arg0: i32) -> (i32, i32) {
    %c0_i32 = arith.constant 0 : i32
    %c0_i32_0 = arith.constant 0 : i32
    %c0_i32_1 = arith.constant 0 : i32
    return %c0_i32, %c0_i32_0 : i32, i32
  }
  func.func @transform_15(%arg0: i32) -> (i32, i32) {
    %c0_i32 = arith.constant 0 : i32
    %c0_i32_0 = arith.constant 0 : i32
    %c0_i32_1 = arith.constant 0 : i32
    return %c0_i32, %c0_i32_0 : i32, i32
  }
  func.func @transform_16(%arg0: i32) -> (i32, i32, i32) {
    %c0_i32 = arith.constant 0 : i32
    %c0_i32_0 = arith.constant 0 : i32
    %c0_i32_1 = arith.constant 0 : i32
    %c0_i32_2 = arith.constant 0 : i32
    return %c0_i32, %c0_i32_0, %c0_i32_1 : i32, i32, i32
  }
  func.func @transform_17(%arg0: i32) -> (i32, i32) {
    %c0_i32 = arith.constant 0 : i32
    %c0_i32_0 = arith.constant 0 : i32
    %c0_i32_1 = arith.constant 0 : i32
    return %c0_i32, %c0_i32_0 : i32, i32
  }
  func.func @transform_18(%arg0: i32) -> (i32, i32) {
    %c0_i32 = arith.constant 0 : i32
    %c0_i32_0 = arith.constant 0 : i32
    %c0_i32_1 = arith.constant 0 : i32
    return %c0_i32, %c0_i32_0 : i32, i32
  }
  func.func @transform_19(%arg0: i32) -> (i32, i32) {
    %c0_i32 = arith.constant 0 : i32
    %c0_i32_0 = arith.constant 0 : i32
    %c0_i32_1 = arith.constant 0 : i32
    return %c0_i32, %c0_i32_0 : i32, i32
  }
  func.func @transform_20(%arg0: i32) -> (i32, i32, i32) {
    %c0_i32 = arith.constant 0 : i32
    %c0_i32_0 = arith.constant 0 : i32
    %c0_i32_1 = arith.constant 0 : i32
    %c0_i32_2 = arith.constant 0 : i32
    return %c0_i32, %c0_i32_0, %c0_i32_1 : i32, i32, i32
  }
  func.func @transform_21(%arg0: i32) -> (i32, i32) {
    %c0_i32 = arith.constant 0 : i32
    %c0_i32_0 = arith.constant 0 : i32
    %c0_i32_1 = arith.constant 0 : i32
    return %c0_i32, %c0_i32_0 : i32, i32
  }
  func.func @transform_22(%arg0: i32) -> (i32, i32, i32) {
    %c0_i32 = arith.constant 0 : i32
    %c0_i32_0 = arith.constant 0 : i32
    %c0_i32_1 = arith.constant 0 : i32
    return %arg0, %c0_i32, %c0_i32_0 : i32, i32, i32
  }
  func.func @transform_23(%arg0: i32) -> (i32, i32, i32) {
    %c0_i32 = arith.constant 0 : i32
    %c0_i32_0 = arith.constant 0 : i32
    %c0_i32_1 = arith.constant 0 : i32
    return %arg0, %c0_i32, %c0_i32_0 : i32, i32, i32
  }
}

</mosaic_0001>

<bundles_post_ra>
// kernel: sparse_autoencoder3_forward.1
= control target key start
LH: loop header
LB: loop body
LE: loop exit
PB: predicated region body
PF: predicated region fallthrough
CT: control target
= control target key end

     0   :  { %s19799_s0 = inlined_call_operand.vmem [shape: f32[2,32,196], index: 0, kind: input, shape index: {}]   ;;  %s19800_s1 = inlined_call_operand.vmem [shape: f32[1,144], index: 1, kind: input, shape index: {}]   ;;  %s19801_s2 = inlined_call_operand.vmem [shape: f32[36,8,8], index: 2, kind: input, shape index: {}]   ;;  %s19802_s3 = inlined_call_operand.vmem [shape: f32[8,1], index: 3, kind: input, shape index: {}]   ;;  %s19803_s4 = inlined_call_operand.vmem [shape: f32[8,8], index: 4, kind: input, shape index: {}, may-alias: {4,18}]   ;;  %s19804_s5 = inlined_call_operand.vmem [shape: f32[8,1], index: 5, kind: input, shape index: {}, may-alias: {5,19}]   ;;  %s19805_s6 = inlined_call_operand.vmem [shape: f32[25,16,8], index: 6, kind: input, shape index: {}]   ;;  %s19806_s7 = inlined_call_operand.vmem [shape: f32[16,1], index: 7, kind: input, shape index: {}]   ;;  %s19807_s8 = inlined_call_operand.vmem [shape: f32[16,16], index: 8, kind: input, shape index: {}, may-alias: {8,14}]   ;;  %s19808_s9 = inlined_call_operand.vmem [shape: f32[16,1], index: 9, kind: input, shape index: {}, may-alias: {9,15}]   ;;  %s19809_s10 = inlined_call_operand.vmem [shape: f32[25,16,16], index: 10, kind: input, shape index: {}]   ;;  %s19810_s11 = inlined_call_operand.vmem [shape: f32[16,1], index: 11, kind: input, shape index: {}]   ;;  %s19811_s12 = inlined_call_operand.vmem [shape: f32[25,16,16], index: 12, kind: input, shape index: {}]   ;;  %s19812_s13 = inlined_call_operand.vmem [shape: f32[16,1], index: 13, kind: input, shape index: {}]   ;;  %s19813_s14 = inlined_call_operand.vmem [shape: f32[16,16], index: 14, kind: input, shape index: {}, may-alias: {8,14}]   ;;  %s19814_s15 = inlined_call_operand.vmem [shape: f32[16,1], index: 15, kind: input, shape index: {}, may-alias: {9,15}]   ;;  %s19815_s16 = inlined_call_operand.vmem [shape: f32[25,8,16], index: 16, kind: input, shape index: {}]   ;;  %s19816_s17 = inlined_call_operand.vmem [shape: f32[8,1], index: 17, kind: input, shape index: {}]   ;;  %s19817_s18 = inlined_call_operand.vmem [shape: f32[8,8], index: 18, kind: input, shape index: {}, may-alias: {4,18}]   ;;  %s19818_s19 = inlined_call_operand.vmem [shape: f32[8,1], index: 19, kind: input, shape index: {}, may-alias: {5,19}]   ;;  %s19819_s20 = inlined_call_operand.vmem [shape: f32[36,4,8], index: 20, kind: input, shape index: {}]   ;;  %s19820_s21 = inlined_call_operand.vmem [shape: f32[4,1], index: 21, kind: input, shape index: {}]   ;;  %s19821_s22 = inlined_call_operand.vmem [shape: f32[2,16,144], index: 22, kind: output, shape index: {0}]   ;;  %s19822_s23 = inlined_call_operand.vmem [shape: f32[2,16,144], index: 23, kind: output, shape index: {1}]  }
   0x1   :  { %19918 = sst [smem:[#allocation6_spill]] %s19799_s0 }
   0x2   :  { %19919 = sst [smem:[#allocation7_spill]] %s19800_s1 }
   0x3   :  { %19920 = sst [smem:[#allocation8_spill]] %s19801_s2 }
   0x4   :  { %19921 = sst [smem:[#allocation9_spill]] %s19802_s3 }
   0x5   :  { %19922 = sst [smem:[#allocation10_spill]] %s19803_s4  ;;  %s17768_s4 = smov 0  }
   0x6   :  { %19923 = sst [smem:[#allocation11_spill]] %s19804_s5 }
   0x7   :  { %19924 = sst [smem:[#allocation12_spill]] %s19805_s6 }
   0x8   :  { %19925 = sst [smem:[#allocation13_spill]] %s19806_s7 }
   0x9   :  { %19926 = sst [smem:[#allocation14_spill]] %s19807_s8 }
   0xa   :  { %19927 = sst [smem:[#allocation15_spill]] %s19808_s9 }
   0xb   :  { %19928 = sst [smem:[#allocation16_spill]] %s19809_s10 }
   0xc   :  { %19929 = sst [smem:[#allocation17_spill]] %s19810_s11 }
   0xd   :  { %19930 = sst [smem:[#allocation18_spill]] %s19811_s12 }
   0xe   :  { %19931 = sst [smem:[#allocation19_spill]] %s19812_s13 }
   0xf   :  { %19932 = sst [smem:[#allocation20_spill]] %s19813_s14 }
  0x10   :  { %19933 = sst [smem:[#allocation21_spill]] %s19814_s15 }
  0x11   :  { %19934 = sst [smem:[#allocation22_spill]] %s19815_s16 }
  0x12   :  { %19935 = sst [smem:[#allocation23_spill]] %s19816_s17 }
  0x13   :  { %19936 = sst [smem:[#allocation24_spill]] %s19817_s18 }
  0x14   :  { %19937 = sst [smem:[#allocation25_spill]] %s19818_s19 }
  0x15   :  { %19938 = sst [smem:[#allocation26_spill]] %s19819_s20 }
  0x16   :  { %19939 = sst [smem:[#allocation27_spill]] %s19820_s21 }
  0x17   :  { %19940 = sst [smem:[#allocation28_spill]] %s19821_s22 }
  0x18   :  { %19941 = sst [smem:[#allocation29_spill]] %s19822_s23 }
  0x19 LB: > { %19942 = sst [smem:[#allocation4_spill]] %s17619_s4  ;;  %s15633_s30 = sadd.s32 4294967295, %s17619_s4   ;;  %s17619_s4 = sphi %s17768_s4, %s34_s4  }
  0x1a   : > { %p15637_p0 = scmp.ge.s32.totalorder %s17619_s4, 1  ;;  %p640_p1 = scmp.lt.s32.totalorder %s17619_s4, 3 }
  0x1c   : > { %p641_p2 = pnand %p15637_p0, %p640_p1 }
  0x1e   : > { %644 = sbr.rel (%p641_p2) target bundleno = 4719 (0x126f), region = 108 }
  0x25   : > { %p709_p3 = scmp.lt.s32.totalorder %s15633_s30, 1  ;;  %v17621_v0 = vmov 0.0   ;;  %s19944_s1 = sld [smem:[#allocation6_spill]]  ;;  %vm746_vm0 = vcmask 1039360   ;;  %vm19892_vm1 = vcmask 64512   ;;  %vm905_vm2 = vcmask 1031168  }
  0x26   : > { %818 = vmatprep.mubr.f32.mxu0 %v17621_v0  ;;  %726 = vst [vmem:[#allocation2] sm:$0xff] %v17621_v0  ;;  %729 = vst [vmem:[#allocation2 + $0x10] sm:$0xff] %v17621_v0  ;;  %2949 = vmatprep.mubr.f32.mxu1 %v17621_v0  ;;  %s19866_s2 = smov 127   ;;  %s19864_s6 = smov 126   ;;  %vm19905_vm3 = vcmask 949248   ;;  %vm19878_vm4 = vcmask 941056  }
  0x27   : > { %731 = vst [vmem:[#allocation3] sm:$0xff] %v17621_v0  ;;  %733 = vst [vmem:[#allocation3 + $0x10] sm:$0xff] %v17621_v0  ;;  %s20151_s30 = smov (!%p709_p3, %s15633_s30), 1  ;;  %s19840_s27 = smov 116   ;;  %vm19879_vm5 = vcmask 932864   ;;  %vm1249_vm6 = vcmask 850944  }
  0x28   : > { %19943 = sst [smem:[#allocation5_spill]] %s20151_s30  ;;  %s16093_s24 = sshll.u32 %s20151_s30, 6  ;;  %vm19880_vm7 = vcmask 842752   ;;  %vm19881_vm8 = vcmask 834560   ;;  %v17630_v44 = vmov 0   ;;  %vm727_vm12 = vcmask 556032  }
  0x29   : > { %s19836_s7 = smov 115   ;;  %s19832_s28 = smov 114   ;;  %16865 = vset.pattern.permute.xlu0 %v17630_v44  ;;  %16866 = vset.pattern.permute.xlu1 %v17630_v44  ;;  %728 = vst.msk [vmem:[#allocation2 + $0x8] sm:$0xff] %vm727_vm12, %v17621_v0  ;;  %730 = vst.msk [vmem:[#allocation2 + $0x18] sm:$0xff] %vm727_vm12, %v17621_v0  ;;  %vm2972_vm13 = vcmask 1047760   ;;  %vm2968_vm14 = vcmask 211968  }
  0x2a   : > { %s19830_s29 = smov 104   ;;  %s19828_s3 = smov 103   ;;  %732 = vst.msk [vmem:[#allocation3 + $0x8] sm:$0xff] %vm727_vm12, %v17621_v0  ;;  %734 = vst.msk [vmem:[#allocation3 + $0x18] sm:$0xff] %vm727_vm12, %v17621_v0  ;;  %vm2974_vm15 = vcmask 343040   ;;  %vm19904_vm12 = vcmask 1014784  }
  0x2b   : > { %s17788_s26 = scalar_lea.vmem %s19944_s1, %s16093_s24  ;;  %s19826_s0 = smov 102  }
  0x2c   : > { %v17791_v1 = vld [vmem:[%s17788_s26] sm:$0xff]  ;;  %v17798_v2 = vld [vmem:[%s17788_s26 + $0x8] sm:$0xff]  ;;  %v17829_v3 = vld [vmem:[%s17788_s26 + $0x18] sm:$0xff]  ;;  %s19945_s5 = sld [smem:[#allocation8_spill]]  ;;  %s19946_s1 = sld [smem:[#allocation9_spill]] }
  0x2d   : > { %742 = vrot.lane.b32.xlu0 %v17791_v1, %s19866_s2  ;;  %901 = vrot.lane.b32.xlu1 %v17791_v1, %s19864_s6  ;;  %v17832_v4 = vld [vmem:[%s17788_s26 + $0x10] sm:$0xff]  ;;  %v17855_v5 = vld [vmem:[%s17788_s26 + $0x28] sm:$0xff]  ;;  %s19870_s24 = smov 26   ;;  %s19950_s25 = smov 114  }
  0x2e   : > { %v17858_v6 = vld [vmem:[%s17788_s26 + $0x20] sm:$0xff]  ;;  %v17881_v7 = vld [vmem:[%s17788_s26 + $0x38] sm:$0xff]  ;;  %v17884_v8 = vld [vmem:[%s17788_s26 + $0x30] sm:$0xff]  ;;  %s19949_s26 = sld [smem:[#allocation10_spill]]  ;;  %s19955_s9 = sld [smem:[#allocation15_spill]] }
  0x2f   : > { %s19957_s8 = sld [smem:[#allocation14_spill]]  ;;  %s19960_s4 = smov 126  }
  0x30   : > { %s19970_s23 = smov 91   ;;  %s19971_s20 = smov 90  }
  0x31   : > { %744 = vrot.lane.b32.xlu0 %v17798_v2, %s19866_s2  ;;  %903 = vrot.lane.b32.xlu1 %v17798_v2, %s19864_s6  ;;  %s19972_s21 = smov 89   ;;  %s19973_s18 = smov 88  }
  0x32   : > { %v15644_v12 = vld [vmem:[%s19945_s5 + $0x8] sm:$0xff]  ;;  %v737_v15 = vld [vmem:[%s19945_s5] sm:$0xff]  ;;  %v15647_v19 = vld [vmem:[%s19945_s5 + $0x10] sm:$0xff]  ;;  %s19974_s16 = smov 80   ;;  %s19975_s19 = smov 79  }
  0x33   : > { %v15649_v23 = vld [vmem:[%s19945_s5 + $0x18] sm:$0xff]  ;;  %v15651_v27 = vld [vmem:[%s19945_s5 + $0x20] sm:$0xff]  ;;  %v15653_v31 = vld [vmem:[%s19945_s5 + $0x28] sm:$0xff]  ;;  %s19976_s17 = smov 78   ;;  %s19977_s14 = smov 77  }
  0x34   : > { %v15655_v35 = vld [vmem:[%s19945_s5 + $0x30] sm:$0xff]  ;;  %v15657_v39 = vld [vmem:[%s19945_s5 + $0x38] sm:$0xff]  ;;  %v15659_v41 = vld [vmem:[%s19945_s5 + $0x40] sm:$0xff]  ;;  %s19978_s12 = smov 76   ;;  %s19979_s11 = sld [smem:[#allocation17_spill]] }
  0x35   : > { %989 = vrot.lane.b32.xlu1 %v17798_v2, %s19840_s27  ;;  %987 = vrot.lane.b32.xlu0 %v17791_v1, %s19840_s27  ;;  %v2852_v43 = vld [vmem:[%s19946_s1] sm:$0xff]  ;;  %v15661_v46 = vld [vmem:[%s19945_s5 + $0x48] sm:$0xff]  ;;  %s19834_s1 = smov 113   ;;  %s19980_s10 = sld [smem:[#allocation16_spill]] }
  0x36   : > { %v15663_v50 = vld [vmem:[%s19945_s5 + $0x50] sm:$0xff]  ;;  %v15665_v54 = vld [vmem:[%s19945_s5 + $0x60] sm:$0xff]  ;;  %v15667_v58 = vld [vmem:[%s19945_s5 + $0x68] sm:$0xff]  ;;  %s20009_s22 = sld [smem:[#allocation28_spill]]  ;;  %s20013_s15 = smov 76  }
  0x37   : > { %v15669_v62 = vld [vmem:[%s19945_s5 + $0x78] sm:$0xff] }
  0x39   : > { %1075 = vrot.lane.b32.xlu1 %v17798_v2, %s19836_s7  ;;  %1073 = vrot.lane.b32.xlu0 %v17791_v1, %s19836_s7 }
  0x3d   : > { %1161 = vrot.lane.b32.xlu1 %v17798_v2, %s19832_s28  ;;  %1159 = vrot.lane.b32.xlu0 %v17791_v1, %s19832_s28 }
  0x41   : > { %1247 = vrot.lane.b32.xlu1 %v17798_v2, %s19830_s29  ;;  %1245 = vrot.lane.b32.xlu0 %v17791_v1, %s19830_s29 }
  0x45   : > { %1333 = vrot.lane.b32.xlu1 %v17798_v2, %s19828_s3  ;;  %1331 = vrot.lane.b32.xlu0 %v17791_v1, %s19828_s3 }
  0x49   : > { %1419 = vrot.lane.b32.xlu1 %v17798_v2, %s19826_s0  ;;  %1417 = vrot.lane.b32.xlu0 %v17791_v1, %s19826_s0  ;;  %s19842_s0 = smov 124  }
  0x4d   : > { %1587 = vrot.lane.b32.xlu1 %v17829_v3, %s19866_s2  ;;  %1585 = vrot.lane.b32.xlu0 %v17832_v4, %s19866_s2 }
  0x51   : > { %1672 = vrot.lane.b32.xlu1 %v17829_v3, %s19840_s27  ;;  %1670 = vrot.lane.b32.xlu0 %v17832_v4, %s19840_s27 }
  0x55   : > { %1757 = vrot.lane.b32.xlu1 %v17829_v3, %s19836_s7  ;;  %1755 = vrot.lane.b32.xlu0 %v17832_v4, %s19836_s7 }
  0x59   : > { %1842 = vrot.lane.b32.xlu1 %v17829_v3, %s19830_s29  ;;  %1840 = vrot.lane.b32.xlu0 %v17832_v4, %s19830_s29  ;;  %s19947_s29 = sld [smem:[#allocation11_spill]] }
  0x5d   : > { %1927 = vrot.lane.b32.xlu1 %v17829_v3, %s19828_s3  ;;  %1925 = vrot.lane.b32.xlu0 %v17832_v4, %s19828_s3  ;;  %s19860_s3 = smov 125  }
  0x61   : > { %2094 = vrot.lane.b32.xlu1 %v17855_v5, %s19866_s2  ;;  %2092 = vrot.lane.b32.xlu0 %v17858_v6, %s19866_s2 }
  0x65   : > { %2179 = vrot.lane.b32.xlu1 %v17855_v5, %s19864_s6  ;;  %2177 = vrot.lane.b32.xlu0 %v17858_v6, %s19864_s6 }
  0x69   : > { %2264 = vrot.lane.b32.xlu1 %v17855_v5, %s19840_s27  ;;  %2262 = vrot.lane.b32.xlu0 %v17858_v6, %s19840_s27 }
  0x6d   : > { %2349 = vrot.lane.b32.xlu1 %v17855_v5, %s19836_s7  ;;  %2347 = vrot.lane.b32.xlu0 %v17858_v6, %s19836_s7 }
  0x71   : > { %2434 = vrot.lane.b32.xlu1 %v17855_v5, %s19832_s28  ;;  %2432 = vrot.lane.b32.xlu0 %v17858_v6, %s19832_s28  ;;  %s19948_s28 = sld [smem:[#allocation7_spill]] }
  0x75   : > { %2601 = vrot.lane.b32.xlu1 %v17881_v7, %s19866_s2  ;;  %2599 = vrot.lane.b32.xlu0 %v17884_v8, %s19866_s2 }
  0x79   : > { %2686 = vrot.lane.b32.xlu1 %v17881_v7, %s19840_s27  ;;  %2684 = vrot.lane.b32.xlu0 %v17884_v8, %s19840_s27 }
  0x7d   : > { %2771 = vrot.lane.b32.xlu1 %v17881_v7, %s19836_s7  ;;  %2769 = vrot.lane.b32.xlu0 %v17884_v8, %s19836_s7 }
  0x81   : > { %2855 = vperm.xlu0 %16865, %v2852_v43  }
  0x9f   : > { %v743_v9 = vpop.permute.xlu0 %742  ;;  %v902_v10 = vpop.permute.xlu1 %901 }
  0xa3   : > { %v745_v11 = vpop.permute.xlu0 %744  ;;  %v904_v14 = vpop.permute.xlu1 %903 }
  0xa4   : > { %754 = vmatprep.subr.mxu0 %v745_v11  ;;  %v747_v13 = vsel %vm746_vm0, %v743_v9, %v745_v11  ;;  %v906_v16 = vsel %vm905_vm2, %v902_v10, %v904_v14 }
  0xa5   : > { %755 = vmatpush1.msra.mxu0 %v747_v13 }
  0xa6   : > { %15645 = vmatmul.mubr.msk.f32.vlgmr.msra.gmra.mrb[0].mxu0 %vm19892_vm1, %v15644_v12  ;;  %828 = vmatprep.subr.mxu0 %v17798_v2 }
  0xa7   : > { %829 = vmatpush1.msra.mxu0 %v17791_v1  ;;  %892 = vmatprep.mubr.f32.mxu0 %v17621_v0  ;;  %v990_v17 = vpop.permute.xlu1 %989  ;;  %v988_v18 = vpop.permute.xlu0 %987  ;;  %v15671_v1 = vld [vmem:[%s19945_s5 + $0x80] sm:$0xff] }
  0xa8   : > { %912 = vmatprep.subr.mxu0 %v904_v14  ;;  %v992_v20 = vsel %vm19905_vm3, %v988_v18, %v990_v17  ;;  %v15677_v14 = vld [vmem:[%s19945_s5 + $0xa0] sm:$0xff]  ;;  %v15679_v18 = vld [vmem:[%s19945_s5 + $0xa8] sm:$0xff] }
  0xab   : > { %v1076_v21 = vpop.permute.xlu1 %1075  ;;  %v1074_v22 = vpop.permute.xlu0 %1073 }
  0xac   : > { %v1078_v24 = vsel %vm19878_vm4, %v1074_v22, %v1076_v21  ;;  %v15681_v22 = vld [vmem:[%s19945_s5 + $0xb0] sm:$0xff] }
  0xae   : > { %15646 = vmatmul.mubr.msk.f32.vlgmr.msra.gmra.mrb[0].mxu0 %vm19892_vm1, %v737_v15 }
  0xaf   : > { %913 = vmatpush1.msra.mxu0 %v906_v16  ;;  %976 = vmatprep.mubr.f32.mxu0 %v17621_v0  ;;  %v1162_v25 = vpop.permute.xlu1 %1161  ;;  %v1160_v26 = vpop.permute.xlu0 %1159 }
  0xb0   : > { %998 = vmatprep.subr.mxu0 %v990_v17  ;;  %v1164_v28 = vsel %vm19879_vm5, %v1160_v26, %v1162_v25 }
  0xb3   : > { %v1248_v29 = vpop.permute.xlu1 %1247  ;;  %v1246_v30 = vpop.permute.xlu0 %1245 }
  0xb4   : > { %v1250_v32 = vsel %vm1249_vm6, %v1246_v30, %v1248_v29 }
  0xb6   : > { %15648 = vmatmul.mubr.msk.f32.vlgmr.msra.gmra.mrb[0].mxu0 %vm19892_vm1, %v15647_v19 }
  0xb7   : > { %999 = vmatpush1.msra.mxu0 %v992_v20  ;;  %1062 = vmatprep.mubr.f32.mxu0 %v17621_v0  ;;  %v1334_v33 = vpop.permute.xlu1 %1333  ;;  %v1332_v34 = vpop.permute.xlu0 %1331 }
  0xb8   : > { %1084 = vmatprep.subr.mxu0 %v1076_v21  ;;  %v1336_v36 = vsel %vm19880_vm7, %v1332_v34, %v1334_v33 }
  0xbb   : > { %v1420_v37 = vpop.permute.xlu1 %1419  ;;  %v1418_v38 = vpop.permute.xlu0 %1417 }
  0xbc   : > { %v1422_v40 = vsel %vm19881_vm8, %v1418_v38, %v1420_v37  ;;  %v724_v38 = vld [vmem:[%s19948_s28] sm:$0x3]  ;;  %s19838_s28 = smov 112  }
  0xbd   : > { %vm725_vm9 = vcmp.gt.f32.partialorder %v724_v38, 0.5 }
  0xbe   : > { %15650 = vmatmul.mubr.msk.f32.vlgmr.msra.gmra.mrb[0].mxu0 %vm19892_vm1, %v15649_v23 }
  0xbf   : > { %1085 = vmatpush1.msra.mxu0 %v1078_v24  ;;  %1148 = vmatprep.mubr.f32.mxu0 %v17621_v0  ;;  %v1588_v42 = vpop.permute.xlu1 %1587  ;;  %v1586_v45 = vpop.permute.xlu0 %1585  ;;  %v15683_v24 = vld [vmem:[%s19945_s5 + $0xb8] sm:$0xff] }
  0xc0   : > { %1170 = vmatprep.subr.mxu0 %v1162_v25  ;;  %v1589_v47 = vsel %vm746_vm0, %v1586_v45, %v1588_v42 }
  0xc3   : > { %v1673_v48 = vpop.permute.xlu1 %1672  ;;  %v1671_v49 = vpop.permute.xlu0 %1670 }
  0xc4   : > { %v1674_v51 = vsel %vm19905_vm3, %v1671_v49, %v1673_v48 }
  0xc6   : > { %15652 = vmatmul.mubr.msk.f32.vlgmr.msra.gmra.mrb[0].mxu0 %vm19892_vm1, %v15651_v27  ;;  %v15685_v27 = vld [vmem:[%s19945_s5 + $0xd8] sm:$0xff] }
  0xc7   : > { %1171 = vmatpush1.msra.mxu0 %v1164_v28  ;;  %1234 = vmatprep.mubr.f32.mxu0 %v17621_v0  ;;  %v1758_v52 = vpop.permute.xlu1 %1757  ;;  %v1756_v53 = vpop.permute.xlu0 %1755 }
  0xc8   : > { %1256 = vmatprep.subr.mxu0 %v1248_v29  ;;  %v1759_v55 = vsel %vm19878_vm4, %v1756_v53, %v1758_v52 }
  0xcb   : > { %v1843_v56 = vpop.permute.xlu1 %1842  ;;  %v1841_v57 = vpop.permute.xlu0 %1840 }
  0xcc   : > { %v1844_v59 = vsel %vm1249_vm6, %v1841_v57, %v1843_v56 }
  0xce   : > { %15654 = vmatmul.mubr.msk.f32.vlgmr.msra.gmra.mrb[0].mxu0 %vm19892_vm1, %v15653_v31 }
  0xcf   : > { %1257 = vmatpush1.msra.mxu0 %v1250_v32  ;;  %1320 = vmatprep.mubr.f32.mxu0 %v17621_v0  ;;  %v1928_v60 = vpop.permute.xlu1 %1927  ;;  %v1926_v61 = vpop.permute.xlu0 %1925 }
  0xd0   : > { %1342 = vmatprep.subr.mxu0 %v1334_v33  ;;  %v1929_v63 = vsel %vm19880_vm7, %v1926_v61, %v1928_v60  ;;  %v15689_v33 = vld [vmem:[%s19945_s5 + $0xf0] sm:$0xff] }
  0xd3   : > { %v2095_v2 = vpop.permute.xlu1 %2094 }
  0xd6   : > { %15656 = vmatmul.mubr.msk.f32.vlgmr.msra.gmra.mrb[0].mxu0 %vm19892_vm1, %v15655_v35  ;;  %v15691_v35 = vld [vmem:[%s19945_s5 + $0xf8] sm:$0xff] }
  0xd7   : > { %1343 = vmatpush1.msra.mxu0 %v1336_v36  ;;  %1406 = vmatprep.mubr.f32.mxu0 %v17621_v0  ;;  %v2876_v36 = vld [vmem:[%s19947_s29] sm:$0xff]  ;;  %s19951_s29 = smov 104  }
  0xd8   : > { %1428 = vmatprep.subr.mxu0 %v1420_v37  ;;  %2879 = vperm.xlu1 %16866, %v2876_v36   ;;  %v2861_v37 = vlaneseq }
  0xde   : > { %15658 = vmatmul.mubr.msk.f32.vlgmr.msra.gmra.mrb[0].mxu0 %vm19892_vm1, %v15657_v39  ;;  %v2862_v39 = vshrl.u32 %v2861_v37, 7 }
  0xdf   : > { %1429 = vmatpush1.msra.mxu0 %v1422_v40  ;;  %1492 = vmatprep.mubr.f32.mxu0 %v17621_v0 }
  0xe0   : > { %1508 = vmatprep.subr.mxu0 %v17829_v3  ;;  %v2093_v3 = vpop.permute.xlu0 %2092  ;;  %v2863_v40 = vsub.s32 0, %v2862_v39 }
  0xe1   : > { %v2096_v9 = vsel %vm746_vm0, %v2093_v3, %v2095_v2 }
  0xe4   : > { %v2178_v10 = vpop.permute.xlu0 %2177 }
  0xe6   : > { %15660 = vmatmul.mubr.msk.f32.vlgmr.msra.gmra.mrb[0].mxu0 %vm19892_vm1, %v15659_v41  ;;  %v2867_v41 = vsub.s32 1, %v2862_v39 }
  0xe7   : > { %1509 = vmatpush1.msra.mxu0 %v17832_v4  ;;  %1572 = vmatprep.mubr.f32.mxu0 %v17621_v0  ;;  %v15673_v4 = vld [vmem:[%s19945_s5 + $0x90] sm:$0xff] }
  0xe8   : > { %1595 = vmatprep.subr.mxu0 %v1588_v42  ;;  %v2263_v13 = vpop.permute.xlu0 %2262  ;;  %v2860_v42 = vsel %vm725_vm9, 1, %v17630_v44  ;;  %vm3262_vm9 = vcmask 1022976  }
  0xe9   : > { %v18064_v43 = vrot.slane %v2860_v42, %v2863_v40  ;;  %v18066_v45 = vrot.slane %v2860_v42, %v2867_v41 }
  0xeb   : > { %vm19915_vm10 = vcmp.eq.s32.totalorder %v18064_v43, 1  ;;  %vm19914_vm11 = vcmp.eq.s32.totalorder %v18066_v45, 1 }
  0xec   : > { %v2348_v17 = vpop.permute.xlu0 %2347 }
  0xee   : > { %15662 = vmatmul.mubr.msk.f32.vlgmr.msra.gmra.mrb[0].mxu0 %vm19892_vm1, %v15661_v46 }
  0xef   : > { %1596 = vmatpush1.msra.mxu0 %v1589_v47  ;;  %1659 = vmatprep.mubr.f32.mxu0 %v17621_v0 }
  0xf0   : > { %1680 = vmatprep.subr.mxu0 %v1673_v48  ;;  %v2433_v21 = vpop.permute.xlu0 %2432 }
  0xf4   : > { %v2600_v26 = vpop.permute.xlu0 %2599 }
  0xf6   : > { %15664 = vmatmul.mubr.msk.f32.vlgmr.msra.gmra.mrb[0].mxu0 %vm19892_vm1, %v15663_v50 }
  0xf7   : > { %1681 = vmatpush1.msra.mxu0 %v1674_v51  ;;  %1744 = vmatprep.mubr.f32.mxu0 %v17621_v0 }
  0xf8   : > { %1765 = vmatprep.subr.mxu0 %v1758_v52  ;;  %v2685_v29 = vpop.permute.xlu0 %2684 }
  0xfc   : > { %v2770_v32 = vpop.permute.xlu0 %2769 }
  0xfe   : > { %15666 = vmatmul.mubr.msk.f32.vlgmr.msra.gmra.mrb[0].mxu0 %vm19892_vm1, %v15665_v54  ;;  %v2873_v54 = vld [vmem:[%s19949_s26] sm:$0xff]  ;;  %s19952_s26 = smov 103  }
  0xff   : > { %1766 = vmatpush1.msra.mxu0 %v1759_v55  ;;  %1829 = vmatprep.mubr.f32.mxu0 %v17621_v0 }
 0x100   : > { %1850 = vmatprep.subr.mxu0 %v1843_v56  ;;  %v2856_v46 = vpop.permute.xlu0 %2855 }
 0x106   : > { %15668 = vmatmul.mubr.msk.f32.vlgmr.msra.gmra.mrb[0].mxu0 %vm19892_vm1, %v15667_v58 }
 0x107   : > { %1851 = vmatpush1.msra.mxu0 %v1844_v59  ;;  %1914 = vmatprep.mubr.f32.mxu0 %v17621_v0 }
 0x108   : > { %1935 = vmatprep.subr.mxu0 %v1928_v60 }
 0x10e   : > { %15670 = vmatmul.mubr.msk.f32.vlgmr.msra.gmra.mrb[0].mxu0 %vm19892_vm1, %v15669_v62 }
 0x10f   : > { %1936 = vmatpush1.msra.mxu0 %v1929_v63  ;;  %1999 = vmatprep.mubr.f32.mxu0 %v17621_v0 }
 0x110   : > { %2015 = vmatprep.subr.mxu0 %v17855_v5  ;;  %v2180_v5 = vpop.permute.xlu1 %2179 }
 0x111   : > { %v2181_v11 = vsel %vm905_vm2, %v2178_v10, %v2180_v5 }
 0x114   : > { %v2265_v12 = vpop.permute.xlu1 %2264 }
 0x115   : > { %v2266_v15 = vsel %vm19905_vm3, %v2263_v13, %v2265_v12  ;;  %v5432_v13 = vld [vmem:[%s19955_s9 + $0x8] sm:$0xff] }
 0x116   : > { %15672 = vmatmul.mubr.msk.f32.vlgmr.msra.gmra.mrb[0].mxu0 %vm19892_vm1, %v15671_v1 }
 0x117   : > { %2016 = vmatpush1.msra.mxu0 %v17858_v6  ;;  %2079 = vmatprep.mubr.f32.mxu0 %v17621_v0  ;;  %v15675_v6 = vld [vmem:[%s19945_s5 + $0x98] sm:$0xff] }
 0x118   : > { %2102 = vmatprep.subr.mxu0 %v2095_v2  ;;  %v2350_v16 = vpop.permute.xlu1 %2349 }
 0x119   : > { %v2351_v19 = vsel %vm19878_vm4, %v2348_v17, %v2350_v16 }
 0x11c   : > { %v2435_v20 = vpop.permute.xlu1 %2434 }
 0x11d   : > { %v2436_v23 = vsel %vm19879_vm5, %v2433_v21, %v2435_v20 }
 0x11e   : > { %15674 = vmatmul.mubr.msk.f32.vlgmr.msra.gmra.mrb[0].mxu0 %vm19892_vm1, %v15673_v4 }
 0x11f   : > { %2103 = vmatpush1.msra.mxu0 %v2096_v9  ;;  %2166 = vmatprep.mubr.f32.mxu0 %v17621_v0 }
 0x120   : > { %2187 = vmatprep.subr.mxu0 %v2180_v5  ;;  %v2602_v25 = vpop.permute.xlu1 %2601 }
 0x121   : > { %v2603_v28 = vsel %vm746_vm0, %v2600_v26, %v2602_v25 }
 0x126   : > { %15676 = vmatmul.mubr.msk.f32.vlgmr.msra.gmra.mrb[0].mxu0 %vm19892_vm1, %v15675_v6 }
 0x127   : > { %2188 = vmatpush1.msra.mxu0 %v2181_v11  ;;  %2251 = vmatprep.mubr.f32.mxu0 %v17621_v0 }
 0x128   : > { %2272 = vmatprep.subr.mxu0 %v2265_v12  ;;  %v5431_v12 = vld [vmem:[%s19955_s9] sm:$0xff]  ;;  %s19969_s9 = smov 92  }
 0x12e   : > { %15678 = vmatmul.mubr.msk.f32.vlgmr.msra.gmra.mrb[0].mxu0 %vm19892_vm1, %v15677_v14 }
 0x12f   : > { %2273 = vmatpush1.msra.mxu0 %v2266_v15  ;;  %2336 = vmatprep.mubr.f32.mxu0 %v17621_v0 }
 0x130   : > { %2357 = vmatprep.subr.mxu0 %v2350_v16 }
 0x136   : > { %15680 = vmatmul.mubr.msk.f32.vlgmr.msra.gmra.mrb[0].mxu0 %vm19892_vm1, %v15679_v18 }
 0x137   : > { %2358 = vmatpush1.msra.mxu0 %v2351_v19  ;;  %2421 = vmatprep.mubr.f32.mxu0 %v17621_v0 }
 0x138   : > { %2442 = vmatprep.subr.mxu0 %v2435_v20 }
 0x13e   : > { %15682 = vmatmul.mubr.msk.f32.vlgmr.msra.gmra.mrb[0].mxu0 %vm19892_vm1, %v15681_v22 }
 0x13f   : > { %2443 = vmatpush1.msra.mxu0 %v2436_v23  ;;  %2506 = vmatprep.mubr.f32.mxu0 %v17621_v0 }
 0x140   : > { %2522 = vmatprep.subr.mxu0 %v17881_v7  ;;  %v2687_v7 = vpop.permute.xlu1 %2686 }
 0x141   : > { %v2688_v30 = vsel %vm19905_vm3, %v2685_v29, %v2687_v7 }
 0x144   : > { %v2772_v31 = vpop.permute.xlu1 %2771 }
 0x145   : > { %v2773_v34 = vsel %vm19878_vm4, %v2770_v32, %v2772_v31 }
 0x146   : > { %15684 = vmatmul.mubr.msk.f32.vlgmr.msra.gmra.mrb[0].mxu0 %vm19892_vm1, %v15683_v24 }
 0x147   : > { %2523 = vmatpush1.msra.mxu0 %v17884_v8  ;;  %2586 = vmatprep.mubr.f32.mxu0 %v17621_v0  ;;  %v15687_v8 = vld [vmem:[%s19945_s5 + $0xe0] sm:$0xff]  ;;  %s19963_s5 = smov 116  }
 0x148   : > { %2609 = vmatprep.subr.mxu0 %v2602_v25 }
 0x14e   : > { %15686 = vmatmul.mubr.msk.f32.vlgmr.msra.gmra.mrb[0].mxu0 %vm19892_vm1, %v15685_v27 }
 0x14f   : > { %2610 = vmatpush1.msra.mxu0 %v2603_v28  ;;  %2673 = vmatprep.mubr.f32.mxu0 %v17621_v0 }
 0x150   : > { %2694 = vmatprep.subr.mxu0 %v2687_v7 }
 0x156   : > { %15688 = vmatmul.mubr.msk.f32.vlgmr.msra.gmra.mrb[0].mxu0 %vm19892_vm1, %v15687_v8 }
 0x157   : > { %2695 = vmatpush1.msra.mxu0 %v2688_v30  ;;  %2758 = vmatprep.mubr.f32.mxu0 %v17621_v0  ;;  %v2880_v55 = vpop.permute.xlu1 %2879 }
 0x158   : > { %2779 = vmatprep.subr.mxu0 %v2772_v31 }
 0x15e   : > { %15690 = vmatmul.mubr.msk.f32.vlgmr.msra.gmra.mrb[0].mxu0 %vm19892_vm1, %v15689_v33 }
 0x15f   : > { %2780 = vmatpush1.msra.mxu0 %v2773_v34  ;;  %2843 = vmatprep.mubr.f32.mxu0 %v17621_v0 }
 0x166   : > { %15692 = vmatmul.mubr.msk.f32.vlgmr.msra.gmra.mrb[0].mxu0 %vm19892_vm1, %v15691_v35 }
 0x167   : > { %5514 = vmatprep.mubr.f32.mxu0 %v17621_v0 }
 0x239   : > { %v2845_v47 = vpop.f32.mrb[0].mxu0 }
 0x23a   : > { %v2858_v48 = vadd.f32 %v2856_v46, %v2845_v47  ;;  %v2847_v49 = vpop.f32.mrb[1].mxu0 }
 0x23b   : > { %v2859_v50 = vadd.f32 %v2856_v46, %v2847_v49 }
 0x23c   : > { %v2871_v51 = vsel %vm19915_vm10, %v2858_v48, 0.0 }
 0x23d   : > { %v2872_v52 = vsel %vm19914_vm11, %v2859_v50, 0.0  ;;  %v2874_v53 = vmul.f32 %v2871_v51, %v2871_v51 }
 0x23e   : > { %v2875_v44 = vmul.f32 %v2872_v52, %v2872_v52 }
 0x240   : > { %2885 = vmatprep.subr.mxu1 %v2875_v44 }
 0x241   : > { %2886 = vmatpush1.msra.mxu1 %v2874_v53 }
 0x242   : > { %15693 = vmatmul.mubr.msk.f32.vlgmr.msra.gmra.mrb[0].mxu1 %vm19892_vm1, %v2873_v54 }
 0x243   : > { %3062 = vmatprep.mubr.f32.mxu1 %v17621_v0 }
 0x315   : > { %v2951_v56 = vpop.f32.mrb[0].mxu1 }
 0x316   : > { %v2952_v57 = vadd.f32 %v2951_v56, %v2880_v55  ;;  %v2953_v58 = vpop.f32.mrb[1].mxu1 }
 0x317   : > { %v2954_v59 = vadd.f32 %v2953_v58, %v2880_v55 }
 0x318   : > { %v2956_v60 = vmax.f32 %v2952_v57, 1e-09 }
 0x319   : > { %v2957_v61 = vmax.f32 %v2954_v59, 1e-09 }
 0x31a   : > { %17587 = vrsqrt.f32 %v2956_v60 }
 0x31b   : > { %17589 = vrsqrt.f32 %v2957_v61 }
 0x324   : > { %v17588_v62 = vpop.eup %17587 }
 0x325   : > { %v17590_v63 = vpop.eup %17589  ;;  %v2960_v1 = vmul.f32 %v17588_v62, %v2871_v51 }
 0x326   : > { %v2961_v2 = vmul.f32 %v17590_v63, %v2872_v52 }
 0x327   : > { %2964 = vrot.lane.b32.xlu1 %v2960_v1, %s19870_s24 }
 0x328   : > { %2966 = vrot.lane.b32.xlu0 %v2961_v2, %s19870_s24  ;;  %v18311_v2 = vld [vmem:[#allocation2 + $0x10] sm:$0xff]  ;;  %s19964_s24 = smov 115  }
 0x399   : > { %v2965_v3 = vpop.permute.xlu1 %2964 }
 0x39a   : > { %2973 = vst.msk [vmem:[#allocation2] sm:$0xff] %vm2972_vm13, %v2965_v3  ;;  %v2967_v4 = vpop.permute.xlu0 %2966 }
 0x39b   : > { %v2969_v9 = vsel %vm2968_vm14, %v2965_v3, %v2967_v4 }
 0x39c   : > { %2975 = vst.msk [vmem:[#allocation2 + $0x8] sm:$0xff] %vm2974_vm15, %v2969_v9 }
 0x3a1   : > { %v18088_v5 = vld [vmem:[#allocation2] sm:$0xff] }
 0x3a2   : > { %2985 = vrot.lane.b32.xlu1 %v18088_v5, %s19866_s2 }
 0x3a3   : > { %v18092_v10 = vld [vmem:[#allocation2 + $0x8] sm:$0xff] }
 0x3a4   : > { %2987 = vrot.lane.b32.xlu0 %v18092_v10, %s19866_s2  ;;  %s19961_s2 = smov 125  }
 0x3a6   : > { %3161 = vrot.lane.b32.xlu1 %v18088_v5, %s19864_s6 }
 0x3a8   : > { %3163 = vrot.lane.b32.xlu0 %v18092_v10, %s19864_s6  ;;  %s19954_s6 = sld [smem:[#allocation13_spill]] }
 0x3aa   : > { %3258 = vrot.lane.b32.xlu1 %v18088_v5, %s19860_s3 }
 0x3ac   : > { %3260 = vrot.lane.b32.xlu0 %v18092_v10, %s19860_s3  ;;  %s19959_s3 = smov 127  }
 0x3ae   : > { %3356 = vrot.lane.b32.xlu1 %v18088_v5, %s19842_s0  ;;  %v5405_v6 = vld [vmem:[%s19954_s6] sm:$0xff]  ;;  %v5406_v11 = vld [vmem:[%s19954_s6 + $0x8] sm:$0xff]  ;;  %s19967_s6 = smov 101  }
 0x3b0   : > { %3358 = vrot.lane.b32.xlu0 %v18092_v10, %s19842_s0  ;;  %s19850_s0 = smov 91  }
 0x3b2   : > { %3454 = vrot.lane.b32.xlu1 %v18088_v5, %s19840_s27 }
 0x3b4   : > { %3456 = vrot.lane.b32.xlu0 %v18092_v10, %s19840_s27  ;;  %s19848_s27 = smov 92  }
 0x3b6   : > { %3551 = vrot.lane.b32.xlu1 %v18088_v5, %s19836_s7 }
 0x3b8   : > { %3553 = vrot.lane.b32.xlu0 %v18092_v10, %s19836_s7  ;;  %s19844_s7 = smov 101  }
 0x3ba   : > { %3648 = vrot.lane.b32.xlu1 %v18088_v5, %s19950_s25 }
 0x3bc   : > { %3650 = vrot.lane.b32.xlu0 %v18092_v10, %s19950_s25 }
 0x3be   : > { %3745 = vrot.lane.b32.xlu1 %v18088_v5, %s19834_s1 }
 0x3c0   : > { %3747 = vrot.lane.b32.xlu0 %v18092_v10, %s19834_s1  ;;  %s19953_s1 = smov 102  }
 0x3c2   : > { %3843 = vrot.lane.b32.xlu1 %v18088_v5, %s19838_s28 }
 0x3c4   : > { %3845 = vrot.lane.b32.xlu0 %v18092_v10, %s19838_s28  ;;  %s19846_s28 = smov 100  }
 0x3c6   : > { %3941 = vrot.lane.b32.xlu1 %v18088_v5, %s19951_s29 }
 0x3c8   : > { %3943 = vrot.lane.b32.xlu0 %v18092_v10, %s19951_s29 }
 0x3ca   : > { %4038 = vrot.lane.b32.xlu1 %v18088_v5, %s19952_s26 }
 0x3cc   : > { %4040 = vrot.lane.b32.xlu0 %v18092_v10, %s19952_s26 }
 0x3ce   : > { %4135 = vrot.lane.b32.xlu1 %v18088_v5, %s19953_s1 }
 0x3d0   : > { %4137 = vrot.lane.b32.xlu0 %v18092_v10, %s19953_s1 }
 0x3d2   : > { %4232 = vrot.lane.b32.xlu1 %v18088_v5, %s19844_s7 }
 0x3d4   : > { %4234 = vrot.lane.b32.xlu0 %v18092_v10, %s19844_s7  ;;  %s19852_s7 = smov 90  }
 0x3d6   : > { %4330 = vrot.lane.b32.xlu1 %v18088_v5, %s19846_s28 }
 0x3d8   : > { %4332 = vrot.lane.b32.xlu0 %v18092_v10, %s19846_s28  ;;  %s19854_s28 = smov 89  }
 0x3da   : > { %4428 = vrot.lane.b32.xlu1 %v18088_v5, %s19848_s27 }
 0x3dc   : > { %4430 = vrot.lane.b32.xlu0 %v18092_v10, %s19848_s27  ;;  %s19856_s27 = smov 88  }
 0x3de   : > { %4526 = vrot.lane.b32.xlu1 %v18088_v5, %s19850_s0 }
 0x3e0   : > { %4528 = vrot.lane.b32.xlu0 %v18092_v10, %s19850_s0  ;;  %s19858_s0 = smov 80  }
 0x3e2   : > { %4624 = vrot.lane.b32.xlu1 %v18088_v5, %s19852_s7 }
 0x3e4   : > { %4626 = vrot.lane.b32.xlu0 %v18092_v10, %s19852_s7  ;;  %s19862_s7 = smov 79  }
 0x3e6   : > { %4722 = vrot.lane.b32.xlu1 %v18088_v5, %s19854_s28 }
 0x3e8   : > { %4724 = vrot.lane.b32.xlu0 %v18092_v10, %s19854_s28  ;;  %s19868_s28 = smov 78  }
 0x3ea   : > { %4820 = vrot.lane.b32.xlu1 %v18088_v5, %s19856_s27 }
 0x3ec   : > { %4822 = vrot.lane.b32.xlu0 %v18092_v10, %s19856_s27  ;;  %s19873_s27 = smov 77  }
 0x3ee   : > { %4918 = vrot.lane.b32.xlu1 %v18088_v5, %s19858_s0 }
 0x3f0   : > { %4920 = vrot.lane.b32.xlu0 %v18092_v10, %s19858_s0  ;;  %s19876_s0 = smov 76  }
 0x3f2   : > { %5016 = vrot.lane.b32.xlu1 %v18088_v5, %s19862_s7 }
 0x3f4   : > { %5018 = vrot.lane.b32.xlu0 %v18092_v10, %s19862_s7  ;;  %s19958_s7 = smov 26  }
 0x3f6   : > { %5114 = vrot.lane.b32.xlu1 %v18088_v5, %s19868_s28 }
 0x3f8   : > { %5116 = vrot.lane.b32.xlu0 %v18092_v10, %s19868_s28  ;;  %s19965_s28 = smov 113  }
 0x3fa   : > { %5212 = vrot.lane.b32.xlu1 %v18088_v5, %s19873_s27 }
 0x3fc   : > { %5214 = vrot.lane.b32.xlu0 %v18092_v10, %s19873_s27  ;;  %s19962_s27 = smov 124  }
 0x3fe   : > { %5310 = vrot.lane.b32.xlu1 %v18088_v5, %s19876_s0 }
 0x400   : > { %5312 = vrot.lane.b32.xlu0 %v18092_v10, %s19876_s0  ;;  %s19956_s0 = sld [smem:[#allocation12_spill]] }
 0x402   : > { %5409 = vperm.xlu1 %16866, %v5405_v6  }
 0x404   : > { %5414 = vperm.xlu0 %16865, %v5406_v11  }
 0x406   : > { %5435 = vperm.xlu1 %16866, %v5431_v12   ;;  %v15694_v16 = vld [vmem:[%s19956_s0 + $0x10] sm:$0xff]  ;;  %v15695_v19 = vld [vmem:[%s19956_s0 + $0x18] sm:$0xff]  ;;  %v2978_v20 = vld [vmem:[%s19956_s0] sm:$0xff] }
 0x407   : > { %v2979_v24 = vld [vmem:[%s19956_s0 + $0x8] sm:$0xff]  ;;  %v15700_v25 = vld [vmem:[%s19956_s0 + $0x20] sm:$0xff]  ;;  %v15704_v29 = vld [vmem:[%s19956_s0 + $0x30] sm:$0xff] }
 0x408   : > { %5440 = vperm.xlu0 %16865, %v5432_v13   ;;  %v15701_v7 = vld [vmem:[%s19956_s0 + $0x28] sm:$0xff]  ;;  %v15705_v32 = vld [vmem:[%s19956_s0 + $0x38] sm:$0xff]  ;;  %v15708_v33 = vld [vmem:[%s19956_s0 + $0x40] sm:$0xff] }
 0x409   : > { %v15709_v37 = vld [vmem:[%s19956_s0 + $0x48] sm:$0xff]  ;;  %v15712_v38 = vld [vmem:[%s19956_s0 + $0x50] sm:$0xff]  ;;  %v15713_v42 = vld [vmem:[%s19956_s0 + $0x58] sm:$0xff] }
 0x40a   : > { %v15716_v46 = vld [vmem:[%s19956_s0 + $0x60] sm:$0xff]  ;;  %v15717_v50 = vld [vmem:[%s19956_s0 + $0x68] sm:$0xff]  ;;  %v15720_v51 = vld [vmem:[%s19956_s0 + $0x70] sm:$0xff] }
 0x40b   : > { %v15721_v54 = vld [vmem:[%s19956_s0 + $0x78] sm:$0xff]  ;;  %v15724_v55 = vld [vmem:[%s19956_s0 + $0x80] sm:$0xff]  ;;  %v15725_v59 = vld [vmem:[%s19956_s0 + $0x88] sm:$0xff] }
 0x40c   : > { %v15728_v60 = vld [vmem:[%s19956_s0 + $0x90] sm:$0xff]  ;;  %v15729_v1 = vld [vmem:[%s19956_s0 + $0x98] sm:$0xff]  ;;  %v15732_v3 = vld [vmem:[%s19956_s0 + $0xa0] sm:$0xff] }
 0x40d   : > { %v15737_v13 = vld [vmem:[%s19956_s0 + $0xb8] sm:$0xff] }
 0x414   : > { %v2986_v14 = vpop.permute.xlu1 %2985 }
 0x416   : > { %v2988_v15 = vpop.permute.xlu0 %2987 }
 0x417   : > { %2998 = vmatprep.subr.mxu1 %v2988_v15  ;;  %v2989_v17 = vsel %vm746_vm0, %v2986_v14, %v2988_v15  ;;  %v15740_v14 = vld [vmem:[%s19956_s0 + $0xc0] sm:$0xff] }
 0x418   : > { %2999 = vmatpush1.msra.mxu1 %v2989_v17  ;;  %v3162_v21 = vpop.permute.xlu1 %3161 }
 0x419   : > { %15696 = vmatmul.mubr.msk.f32.vlgmr.msra.gmra.mrb[2].mxu1 %vm19892_vm1, %v15694_v16  ;;  %3081 = vmatprep.subr.mxu1 %v18092_v10  ;;  %v15736_v10 = vld [vmem:[%s19956_s0 + $0xb0] sm:$0xff] }
 0x41a   : > { %3082 = vmatpush1.msra.mxu1 %v18088_v5  ;;  %v3164_v18 = vpop.permute.xlu0 %3163  ;;  %3068 = vmatprep.mubr.f32.mxu1 %v17621_v0  ;;  %v15733_v5 = vld [vmem:[%s19956_s0 + $0xa8] sm:$0xff] }
 0x41b   : > { %3174 = vmatprep.subr.mxu1 %v3164_v18  ;;  %v3165_v22 = vsel %vm905_vm2, %v3162_v21, %v3164_v18  ;;  %v15741_v18 = vld [vmem:[%s19956_s0 + $0xc8] sm:$0xff] }
 0x41c   : > { %v3259_v26 = vpop.permute.xlu1 %3258 }
 0x41d   : > { %15697 = vmatmul.mubr.msk.f32.gmra.mrb[4].mxu1 %vm19892_vm1, %v15695_v19  ;;  %v15744_v19 = vld [vmem:[%s19956_s0 + $0xd0] sm:$0xff] }
 0x41e   : > { %3145 = vmatprep.mubr.f32.mxu1 %v17621_v0  ;;  %v3261_v23 = vpop.permute.xlu0 %3260 }
 0x41f   : > { %v3263_v27 = vsel %vm3262_vm9, %v3259_v26, %v3261_v23 }
 0x420   : > { %v3357_v8 = vpop.permute.xlu1 %3356 }
 0x421   : > { %15698 = vmatmul.mubr.msk.f32.vlgmr.msra.gmra.mrb[2].mxu1 %vm19892_vm1, %v2978_v20 }
 0x422   : > { %3175 = vmatpush1.msra.mxu1 %v3165_v22  ;;  %3151 = vmatprep.mubr.f32.mxu1 %v17621_v0  ;;  %v3359_v28 = vpop.permute.xlu0 %3358 }
 0x423   : > { %3272 = vmatprep.subr.mxu1 %v3261_v23  ;;  %v3361_v30 = vsel %vm19904_vm12, %v3357_v8, %v3359_v28  ;;  %v15745_v23 = vld [vmem:[%s19956_s0 + $0xd8] sm:$0xff] }
 0x424   : > { %v3455_v34 = vpop.permute.xlu1 %3454 }
 0x425   : > { %15699 = vmatmul.mubr.msk.f32.gmra.mrb[4].mxu1 %vm19892_vm1, %v2979_v24  ;;  %v15748_v24 = vld [vmem:[%s19956_s0 + $0xe0] sm:$0xff] }
 0x426   : > { %3238 = vmatprep.mubr.f32.mxu1 %v17621_v0  ;;  %v3457_v31 = vpop.permute.xlu0 %3456 }
 0x427   : > { %v3458_v35 = vsel %vm19905_vm3, %v3455_v34, %v3457_v31 }
 0x428   : > { %v3552_v39 = vpop.permute.xlu1 %3551 }
 0x429   : > { %15702 = vmatmul.mubr.msk.f32.vlgmr.msra.gmra.mrb[2].mxu1 %vm19892_vm1, %v15700_v25 }
 0x42a   : > { %3273 = vmatpush1.msra.mxu1 %v3263_v27  ;;  %3244 = vmatprep.mubr.f32.mxu1 %v17621_v0  ;;  %v3554_v36 = vpop.permute.xlu0 %3553 }
 0x42b   : > { %3370 = vmatprep.subr.mxu1 %v3359_v28  ;;  %v3555_v40 = vsel %vm19878_vm4, %v3552_v39, %v3554_v36  ;;  %vm3749_vm4 = vcmask 924672   ;;  %v15749_v28 = vld [vmem:[%s19956_s0 + $0xe8] sm:$0xff] }
 0x42c   : > { %v3649_v47 = vpop.permute.xlu1 %3648 }
 0x42d   : > { %15703 = vmatmul.mubr.msk.f32.gmra.mrb[4].mxu1 %vm19892_vm1, %v15701_v7  ;;  %v15752_v7 = vld [vmem:[%s19956_s0 + $0xf0] sm:$0xff] }
 0x42e   : > { %3336 = vmatprep.mubr.f32.mxu1 %v17621_v0  ;;  %v3651_v41 = vpop.permute.xlu0 %3650 }
 0x42f   : > { %v3652_v48 = vsel %vm19879_vm5, %v3649_v47, %v3651_v41  ;;  %vm3847_vm5 = vcmask 916480  }
 0x430   : > { %v3746_v52 = vpop.permute.xlu1 %3745 }
 0x431   : > { %15706 = vmatmul.mubr.msk.f32.vlgmr.msra.gmra.mrb[2].mxu1 %vm19892_vm1, %v15704_v29 }
 0x432   : > { %3371 = vmatpush1.msra.mxu1 %v3361_v30  ;;  %3342 = vmatprep.mubr.f32.mxu1 %v17621_v0  ;;  %v3748_v49 = vpop.permute.xlu0 %3747 }
 0x433   : > { %3467 = vmatprep.subr.mxu1 %v3457_v31  ;;  %v3750_v44 = vsel %vm3749_vm4, %v3746_v52, %v3748_v49  ;;  %v15753_v31 = vld [vmem:[%s19956_s0 + $0xf8] sm:$0xff] }
 0x434   : > { %v3844_v56 = vpop.permute.xlu1 %3843 }
 0x435   : > { %15707 = vmatmul.mubr.msk.f32.gmra.mrb[4].mxu1 %vm19892_vm1, %v15705_v32  ;;  %v15756_v32 = vld [vmem:[%s19956_s0 + $0x100] sm:$0xff] }
 0x436   : > { %3434 = vmatprep.mubr.f32.mxu1 %v17621_v0  ;;  %v3846_v53 = vpop.permute.xlu0 %3845 }
 0x437   : > { %v3848_v57 = vsel %vm3847_vm5, %v3844_v56, %v3846_v53 }
 0x438   : > { %v3942_v61 = vpop.permute.xlu1 %3941 }
 0x439   : > { %15710 = vmatmul.mubr.msk.f32.vlgmr.msra.gmra.mrb[2].mxu1 %vm19892_vm1, %v15708_v33 }
 0x43a   : > { %3468 = vmatpush1.msra.mxu1 %v3458_v35  ;;  %3440 = vmatprep.mubr.f32.mxu1 %v17621_v0  ;;  %v3944_v58 = vpop.permute.xlu0 %3943 }
 0x43b   : > { %3564 = vmatprep.subr.mxu1 %v3554_v36  ;;  %v3945_v62 = vsel %vm1249_vm6, %v3942_v61, %v3944_v58  ;;  %v15757_v36 = vld [vmem:[%s19956_s0 + $0x108] sm:$0xff] }
 0x43c   : > { %v4039_v4 = vpop.permute.xlu1 %4038 }
 0x43d   : > { %15711 = vmatmul.mubr.msk.f32.gmra.mrb[4].mxu1 %vm19892_vm1, %v15709_v37  ;;  %v15760_v37 = vld [vmem:[%s19956_s0 + $0x110] sm:$0xff] }
 0x43e   : > { %3531 = vmatprep.mubr.f32.mxu1 %v17621_v0  ;;  %v4041_v63 = vpop.permute.xlu0 %4040 }
 0x440   : > { %v4136_v6 = vpop.permute.xlu1 %4135 }
 0x441   : > { %15714 = vmatmul.mubr.msk.f32.vlgmr.msra.gmra.mrb[2].mxu1 %vm19892_vm1, %v15712_v38 }
 0x442   : > { %3565 = vmatpush1.msra.mxu1 %v3555_v40  ;;  %3537 = vmatprep.mubr.f32.mxu1 %v17621_v0  ;;  %v4138_v9 = vpop.permute.xlu0 %4137 }
 0x443   : > { %3661 = vmatprep.subr.mxu1 %v3651_v41  ;;  %v4139_v11 = vsel %vm19881_vm8, %v4136_v6, %v4138_v9  ;;  %vm19883_vm8 = vcmask 818176   ;;  %v15761_v41 = vld [vmem:[%s19956_s0 + $0x118] sm:$0xff] }
 0x444   : > { %v4233_v15 = vpop.permute.xlu1 %4232 }
 0x445   : > { %15715 = vmatmul.mubr.msk.f32.gmra.mrb[4].mxu1 %vm19892_vm1, %v15713_v42  ;;  %v15764_v42 = vld [vmem:[%s19956_s0 + $0x120] sm:$0xff] }
 0x446   : > { %3628 = vmatprep.mubr.f32.mxu1 %v17621_v0  ;;  %v4235_v12 = vpop.permute.xlu0 %4234 }
 0x448   : > { %v4331_v20 = vpop.permute.xlu1 %4330 }
 0x449   : > { %15718 = vmatmul.mubr.msk.f32.vlgmr.msra.gmra.mrb[2].mxu1 %vm19892_vm1, %v15716_v46 }
 0x44a   : > { %3662 = vmatpush1.msra.mxu1 %v3652_v48  ;;  %3634 = vmatprep.mubr.f32.mxu1 %v17621_v0  ;;  %v4333_v17 = vpop.permute.xlu0 %4332 }
 0x44b   : > { %3759 = vmatprep.subr.mxu1 %v3748_v49  ;;  %v4335_v21 = vsel %vm19883_vm8, %v4331_v20, %v4333_v17  ;;  %vm19885_vm8 = vcmask 744448   ;;  %v15765_v49 = vld [vmem:[%s19956_s0 + $0x128] sm:$0xff] }
 0x44c   : > { %v4429_v25 = vpop.permute.xlu1 %4428 }
 0x44d   : > { %15719 = vmatmul.mubr.msk.f32.gmra.mrb[4].mxu1 %vm19892_vm1, %v15717_v50  ;;  %v15768_v50 = vld [vmem:[%s19956_s0 + $0x130] sm:$0xff] }
 0x44e   : > { %3725 = vmatprep.mubr.f32.mxu1 %v17621_v0  ;;  %v4431_v22 = vpop.permute.xlu0 %4430 }
 0x450   : > { %v4527_v29 = vpop.permute.xlu1 %4526 }
 0x451   : > { %15722 = vmatmul.mubr.msk.f32.vlgmr.msra.gmra.mrb[2].mxu1 %vm19892_vm1, %v15720_v51 }
 0x452   : > { %3760 = vmatpush1.msra.mxu1 %v3750_v44  ;;  %3731 = vmatprep.mubr.f32.mxu1 %v17621_v0  ;;  %v4529_v27 = vpop.permute.xlu0 %4528 }
 0x453   : > { %3857 = vmatprep.subr.mxu1 %v3846_v53  ;;  %v4531_v8 = vsel %vm19885_vm8, %v4527_v29, %v4529_v27  ;;  %vm19887_vm8 = vcmask 728064   ;;  %v15769_v53 = vld [vmem:[%s19956_s0 + $0x138] sm:$0xff] }
 0x454   : > { %v4625_v33 = vpop.permute.xlu1 %4624 }
 0x455   : > { %15723 = vmatmul.mubr.msk.f32.gmra.mrb[4].mxu1 %vm19892_vm1, %v15721_v54  ;;  %v15772_v54 = vld [vmem:[%s19956_s0 + $0x140] sm:$0xff] }
 0x456   : > { %3823 = vmatprep.mubr.f32.mxu1 %v17621_v0  ;;  %v4627_v30 = vpop.permute.xlu0 %4626 }
 0x458   : > { %v4723_v38 = vpop.permute.xlu1 %4722 }
 0x459   : > { %15726 = vmatmul.mubr.msk.f32.vlgmr.msra.gmra.mrb[2].mxu1 %vm19892_vm1, %v15724_v55 }
 0x45a   : > { %3858 = vmatpush1.msra.mxu1 %v3848_v57  ;;  %3829 = vmatprep.mubr.f32.mxu1 %v17621_v0  ;;  %v4725_v35 = vpop.permute.xlu0 %4724 }
 0x45b   : > { %3954 = vmatprep.subr.mxu1 %v3944_v58  ;;  %v4727_v39 = vsel %vm19887_vm8, %v4723_v38, %v4725_v35  ;;  %vm19889_vm8 = vcmask 654336   ;;  %v15773_v58 = vld [vmem:[%s19956_s0 + $0x148] sm:$0xff] }
 0x45c   : > { %v4821_v46 = vpop.permute.xlu1 %4820 }
 0x45d   : > { %15727 = vmatmul.mubr.msk.f32.gmra.mrb[4].mxu1 %vm19892_vm1, %v15725_v59  ;;  %v15776_v59 = vld [vmem:[%s19956_s0 + $0x150] sm:$0xff] }
 0x45e   : > { %3921 = vmatprep.mubr.f32.mxu1 %v17621_v0  ;;  %v4823_v40 = vpop.permute.xlu0 %4822 }
 0x460   : > { %v4919_v51 = vpop.permute.xlu1 %4918 }
 0x461   : > { %15730 = vmatmul.mubr.msk.f32.vlgmr.msra.gmra.mrb[2].mxu1 %vm19892_vm1, %v15728_v60 }
 0x462   : > { %3955 = vmatpush1.msra.mxu1 %v3945_v62  ;;  %3927 = vmatprep.mubr.f32.mxu1 %v17621_v0  ;;  %v4042_v0 = vsel %vm19880_vm7, %v4039_v4, %v4041_v63  ;;  %vm19882_vm7 = vcmask 826368   ;;  %v4921_v48 = vpop.permute.xlu0 %4920 }
 0x463   : > { %4051 = vmatprep.subr.mxu1 %v4041_v63  ;;  %v4237_v16 = vsel %vm19882_vm7, %v4233_v15, %v4235_v12  ;;  %vm19884_vm7 = vcmask 752640   ;;  %v4923_v52 = vsel %vm19889_vm8, %v4919_v51, %v4921_v48  ;;  %vm19891_vm8 = vcmask 637952   ;;  %v15777_v63 = vld [vmem:[%s19956_s0 + $0x158] sm:$0xff] }
 0x464   : > { %v4433_v26 = vsel %vm19884_vm7, %v4429_v25, %v4431_v22  ;;  %vm19886_vm7 = vcmask 736256   ;;  %v5017_v55 = vpop.permute.xlu1 %5016 }
 0x465   : > { %15731 = vmatmul.mubr.msk.f32.gmra.mrb[4].mxu1 %vm19892_vm1, %v15729_v1  ;;  %v4629_v34 = vsel %vm19886_vm7, %v4625_v33, %v4627_v30  ;;  %vm19888_vm7 = vcmask 719872   ;;  %v15780_v1 = vld [vmem:[%s19956_s0 + $0x160] sm:$0xff]  ;;  %v5426_v33 = vld [vmem:[%s19957_s8 + $0x8] sm:$0xff] }
 0x466   : > { %4018 = vmatprep.mubr.f32.mxu1 %v18311_v2  ;;  %v4825_v47 = vsel %vm19888_vm7, %v4821_v46, %v4823_v40  ;;  %v5019_v44 = vpop.permute.xlu0 %5018  ;;  %vm19890_vm7 = vcmask 646144  }
 0x467   : > { %v5021_v56 = vsel %vm19890_vm7, %v5017_v55, %v5019_v44  ;;  %vm19917_vm7 = vcmask 629760  }
 0x468   : > { %v5115_v60 = vpop.permute.xlu1 %5114 }
 0x469   : > { %15734 = vmatmul.mubr.msk.f32.vlgmr.msra.gmra.mrb[2].mxu1 %vm19892_vm1, %v15732_v3 }
 0x46a   : > { %4052 = vmatpush1.msra.mxu1 %v4042_v0  ;;  %4024 = vmatprep.mubr.f32.mxu1 %v18311_v2  ;;  %v5117_v57 = vpop.permute.xlu0 %5116 }
 0x46b   : > { %4148 = vmatprep.subr.mxu1 %v4138_v9  ;;  %v5119_v61 = vsel %vm19891_vm8, %v5115_v60, %v5117_v57  ;;  %v15781_v9 = vld [vmem:[%s19956_s0 + $0x168] sm:$0xff]  ;;  %vm19916_vm8 = vcmask 621568  }
 0x46c   : > { %v5213_v3 = vpop.permute.xlu1 %5212 }
 0x46d   : > { %15735 = vmatmul.mubr.msk.f32.gmra.mrb[4].mxu1 %vm19892_vm1, %v15733_v5  ;;  %v15784_v5 = vld [vmem:[%s19956_s0 + $0x170] sm:$0xff] }
 0x46e   : > { %4115 = vmatprep.mubr.f32.mxu1 %v18311_v2  ;;  %v5215_v62 = vpop.permute.xlu0 %5214 }
 0x46f   : > { %v5217_v4 = vsel %vm19917_vm7, %v5213_v3, %v5215_v62 }
 0x471   : > { %15738 = vmatmul.mubr.msk.f32.vlgmr.msra.gmra.mrb[2].mxu1 %vm19892_vm1, %v15736_v10  ;;  %v5311_v10 = vpop.permute.xlu1 %5310 }
 0x472   : > { %4149 = vmatpush1.msra.mxu1 %v4139_v11  ;;  %4121 = vmatprep.mubr.f32.mxu1 %v18311_v2  ;;  %v5313_v0 = vpop.permute.xlu0 %5312  ;;  %v15785_v11 = vld [vmem:[%s19956_s0 + $0x178] sm:$0xff] }
 0x473   : > { %4246 = vmatprep.subr.mxu1 %v4235_v12  ;;  %v5315_v6 = vsel %vm19916_vm8, %v5311_v10, %v5313_v0  ;;  %v15788_v12 = vld [vmem:[%s19956_s0 + $0x180] sm:$0xff] }
 0x474   : > { %v8146_v10 = vld [vmem:[%s19979_s11] sm:$0xff] }
 0x475   : > { %15739 = vmatmul.mubr.msk.f32.gmra.mrb[4].mxu1 %vm19892_vm1, %v15737_v13  ;;  %v15789_v13 = vld [vmem:[%s19956_s0 + $0x188] sm:$0xff]  ;;  %s19966_s0 = smov 112  }
 0x476   : > { %4212 = vmatprep.mubr.f32.mxu1 %v18311_v2 }
 0x479   : > { %15742 = vmatmul.mubr.msk.f32.vlgmr.msra.gmra.mrb[2].mxu1 %vm19892_vm1, %v15740_v14 }
 0x47a   : > { %4247 = vmatpush1.msra.mxu1 %v4237_v16  ;;  %4218 = vmatprep.mubr.f32.mxu1 %v18311_v2 }
 0x47b   : > { %4344 = vmatprep.subr.mxu1 %v4333_v17 }
 0x47d   : > { %15743 = vmatmul.mubr.msk.f32.gmra.mrb[4].mxu1 %vm19892_vm1, %v15741_v18 }
 0x47e   : > { %4310 = vmatprep.mubr.f32.mxu1 %v18311_v2 }
 0x481   : > { %15746 = vmatmul.mubr.msk.f32.vlgmr.msra.gmra.mrb[2].mxu1 %vm19892_vm1, %v15744_v19  ;;  %v5410_v15 = vpop.permute.xlu1 %5409 }
 0x482   : > { %4345 = vmatpush1.msra.mxu1 %v4335_v21  ;;  %4316 = vmatprep.mubr.f32.mxu1 %v18311_v2 }
 0x483   : > { %4442 = vmatprep.subr.mxu1 %v4431_v22  ;;  %v5415_v19 = vpop.permute.xlu0 %5414 }
 0x485   : > { %15747 = vmatmul.mubr.msk.f32.gmra.mrb[4].mxu1 %vm19892_vm1, %v15745_v23 }
 0x486   : > { %4408 = vmatprep.mubr.f32.mxu1 %v18311_v2 }
 0x489   : > { %15750 = vmatmul.mubr.msk.f32.vlgmr.msra.gmra.mrb[2].mxu1 %vm19892_vm1, %v15748_v24 }
 0x48a   : > { %4443 = vmatpush1.msra.mxu1 %v4433_v26  ;;  %4414 = vmatprep.mubr.f32.mxu1 %v18311_v2 }
 0x48b   : > { %4540 = vmatprep.subr.mxu1 %v4529_v27 }
 0x48d   : > { %15751 = vmatmul.mubr.msk.f32.gmra.mrb[4].mxu1 %vm19892_vm1, %v15749_v28 }
 0x48e   : > { %4506 = vmatprep.mubr.f32.mxu1 %v18311_v2 }
 0x491   : > { %15754 = vmatmul.mubr.msk.f32.vlgmr.msra.gmra.mrb[2].mxu1 %vm19892_vm1, %v15752_v7 }
 0x492   : > { %4541 = vmatpush1.msra.mxu1 %v4531_v8  ;;  %4512 = vmatprep.mubr.f32.mxu1 %v18311_v2 }
 0x493   : > { %4638 = vmatprep.subr.mxu1 %v4627_v30 }
 0x495   : > { %15755 = vmatmul.mubr.msk.f32.gmra.mrb[4].mxu1 %vm19892_vm1, %v15753_v31 }
 0x496   : > { %4604 = vmatprep.mubr.f32.mxu1 %v18311_v2 }
 0x499   : > { %15758 = vmatmul.mubr.msk.f32.vlgmr.msra.gmra.mrb[2].mxu1 %vm19892_vm1, %v15756_v32  ;;  %v5425_v32 = vld [vmem:[%s19957_s8] sm:$0xff]  ;;  %s19968_s8 = smov 100  }
 0x49a   : > { %4639 = vmatpush1.msra.mxu1 %v4629_v34  ;;  %4610 = vmatprep.mubr.f32.mxu1 %v18311_v2  ;;  %v5436_v34 = vpop.permute.xlu1 %5435 }
 0x49b   : > { %4736 = vmatprep.subr.mxu1 %v4725_v35 }
 0x49d   : > { %15759 = vmatmul.mubr.msk.f32.gmra.mrb[4].mxu1 %vm19892_vm1, %v15757_v36 }
 0x49e   : > { %4702 = vmatprep.mubr.f32.mxu1 %v18311_v2 }
 0x4a1   : > { %15762 = vmatmul.mubr.msk.f32.vlgmr.msra.gmra.mrb[2].mxu1 %vm19892_vm1, %v15760_v37 }
 0x4a2   : > { %4737 = vmatpush1.msra.mxu1 %v4727_v39  ;;  %4708 = vmatprep.mubr.f32.mxu1 %v18311_v2 }
 0x4a3   : > { %4834 = vmatprep.subr.mxu1 %v4823_v40  ;;  %v5441_v40 = vpop.permute.xlu0 %5440 }
 0x4a5   : > { %15763 = vmatmul.mubr.msk.f32.gmra.mrb[4].mxu1 %vm19892_vm1, %v15761_v41 }
 0x4a6   : > { %4800 = vmatprep.mubr.f32.mxu1 %v18311_v2 }
 0x4a9   : > { %15766 = vmatmul.mubr.msk.f32.vlgmr.msra.gmra.mrb[2].mxu1 %vm19892_vm1, %v15764_v42 }
 0x4aa   : > { %4835 = vmatpush1.msra.mxu1 %v4825_v47  ;;  %4806 = vmatprep.mubr.f32.mxu1 %v18311_v2 }
 0x4ab   : > { %4932 = vmatprep.subr.mxu1 %v4921_v48 }
 0x4ad   : > { %15767 = vmatmul.mubr.msk.f32.gmra.mrb[4].mxu1 %vm19892_vm1, %v15765_v49 }
 0x4ae   : > { %4898 = vmatprep.mubr.f32.mxu1 %v18311_v2 }
 0x4b1   : > { %15770 = vmatmul.mubr.msk.f32.vlgmr.msra.gmra.mrb[2].mxu1 %vm19892_vm1, %v15768_v50 }
 0x4b2   : > { %4933 = vmatpush1.msra.mxu1 %v4923_v52  ;;  %4904 = vmatprep.mubr.f32.mxu1 %v18311_v2 }
 0x4b3   : > { %5030 = vmatprep.subr.mxu1 %v5019_v44 }
 0x4b5   : > { %15771 = vmatmul.mubr.msk.f32.gmra.mrb[4].mxu1 %vm19892_vm1, %v15769_v53 }
 0x4b6   : > { %4996 = vmatprep.mubr.f32.mxu1 %v18311_v2 }
 0x4b9   : > { %15774 = vmatmul.mubr.msk.f32.vlgmr.msra.gmra.mrb[2].mxu1 %vm19892_vm1, %v15772_v54 }
 0x4ba   : > { %5031 = vmatpush1.msra.mxu1 %v5021_v56  ;;  %5002 = vmatprep.mubr.f32.mxu1 %v18311_v2 }
 0x4bb   : > { %5128 = vmatprep.subr.mxu1 %v5117_v57 }
 0x4bd   : > { %15775 = vmatmul.mubr.msk.f32.gmra.mrb[4].mxu1 %vm19892_vm1, %v15773_v58 }
 0x4be   : > { %5094 = vmatprep.mubr.f32.mxu1 %v18311_v2 }
 0x4c1   : > { %15778 = vmatmul.mubr.msk.f32.vlgmr.msra.gmra.mrb[2].mxu1 %vm19892_vm1, %v15776_v59 }
 0x4c2   : > { %5129 = vmatpush1.msra.mxu1 %v5119_v61  ;;  %5100 = vmatprep.mubr.f32.mxu1 %v18311_v2 }
 0x4c3   : > { %5226 = vmatprep.subr.mxu1 %v5215_v62 }
 0x4c5   : > { %15779 = vmatmul.mubr.msk.f32.gmra.mrb[4].mxu1 %vm19892_vm1, %v15777_v63 }
 0x4c6   : > { %5192 = vmatprep.mubr.f32.mxu1 %v18311_v2 }
 0x4c9   : > { %15782 = vmatmul.mubr.msk.f32.vlgmr.msra.gmra.mrb[2].mxu1 %vm19892_vm1, %v15780_v1 }
 0x4ca   : > { %5227 = vmatpush1.msra.mxu1 %v5217_v4  ;;  %5198 = vmatprep.mubr.f32.mxu1 %v18311_v2 }
 0x4cb   : > { %5324 = vmatprep.subr.mxu1 %v5313_v0 }
 0x4cd   : > { %15783 = vmatmul.mubr.msk.f32.gmra.mrb[4].mxu1 %vm19892_vm1, %v15781_v9 }
 0x4ce   : > { %5290 = vmatprep.mubr.f32.mxu1 %v18311_v2 }
 0x4d1   : > { %15786 = vmatmul.mubr.msk.f32.vlgmr.msra.gmra.mrb[2].mxu1 %vm19892_vm1, %v15784_v5 }
 0x4d2   : > { %5325 = vmatpush1.msra.mxu1 %v5315_v6  ;;  %5296 = vmatprep.mubr.f32.mxu1 %v18311_v2  ;;  %v8147_v6 = vld [vmem:[%s19979_s11 + $0x8] sm:$0xff]  ;;  %s20010_s11 = smov 88  }
 0x4d5   : > { %15787 = vmatmul.mubr.msk.f32.gmra.mrb[4].mxu1 %vm19892_vm1, %v15785_v11 }
 0x4d6   : > { %5388 = vmatprep.mubr.f32.mxu1 %v18311_v2 }
 0x4d9   : > { %15790 = vmatmul.mubr.msk.f32.vlgmr.msra.gmra.mrb[2].mxu1 %vm19892_vm1, %v15788_v12 }
 0x4da   : > { %5394 = vmatprep.mubr.f32.mxu1 %v18311_v2 }
 0x4dd   : > { %15791 = vmatmul.mubr.msk.f32.gmra.mrb[4].mxu1 %vm19892_vm1, %v15789_v13  ;;  %vm5443_vm1 = vcmask 130048  }
 0x4de   : > { %8289 = vmatprep.mubr.f32.mxu1 %v18311_v2 }
 0x5ac   : > { %v5390_v14 = vpop.f32.mrb[2].mxu1 }
 0x5ad   : > { %v5392_v16 = vpop.f32.mrb[3].mxu1  ;;  %v5417_v18 = vadd.f32 %v5410_v15, %v5390_v14 }
 0x5ae   : > { %v5418_v17 = vadd.f32 %v5410_v15, %v5392_v16 }
 0x5af   : > { %v5421_v25 = vsel %vm19915_vm10, %v5417_v18, 0.0 }
 0x5b0   : > { %v5396_v20 = vpop.f32.mrb[4].mxu1  ;;  %v5422_v23 = vsel %vm19914_vm11, %v5418_v17, 0.0  ;;  %v5427_v8 = vmul.f32 %v5421_v25, %v5421_v25 }
 0x5b1   : > { %v5419_v21 = vadd.f32 %v5415_v19, %v5396_v20  ;;  %v5398_v22 = vpop.f32.mrb[5].mxu1  ;;  %v5428_v7 = vmul.f32 %v5422_v23, %v5422_v23 }
 0x5b2   : > { %v5420_v24 = vadd.f32 %v5415_v19, %v5398_v22 }
 0x5b3   : > { %v5423_v26 = vsel %vm19915_vm10, %v5419_v21, 0.0 }
 0x5b4   : > { %v5429_v27 = vmul.f32 %v5423_v26, %v5423_v26  ;;  %v5424_v28 = vsel %vm19914_vm11, %v5420_v24, 0.0 }
 0x5b5   : > { %v5430_v29 = vmul.f32 %v5424_v28, %v5424_v28 }
 0x5b6   : > { %v16098_v31 = vpack.c.bf16 %v5429_v27, %v5427_v8  ;;  %v15795_v8 = vld [vmem:[%s19980_s10 + $0x18] sm:$0xff] }
 0x5b7   : > { %v16096_v30 = vpack.c.bf16 %v5430_v29, %v5428_v7 }
 0x5b9   : > { %16097 = vmatprep.subr.bf16.mxu0 %v16096_v30 }
 0x5ba   : > { %16099 = vmatpush1.bf16.msra.mxu0 %v16098_v31 }
 0x5bd   : > { %15792 = vmatmul.mubr.msk.f32.vlgmr.msra.gmra.mrb[2].mxu0 %vm5443_vm1, %v5425_v32 }
 0x5be   : > { %5520 = vmatprep.mubr.f32.mxu0 %v18311_v2 }
 0x5c1   : > { %15793 = vmatmul.mubr.msk.f32.gmra.mrb[4].mxu0 %vm5443_vm1, %v5426_v33 }
 0x5c2   : > { %5658 = vmatprep.mubr.f32.mxu0 %v18311_v2 }
 0x690   : > { %v5516_v35 = vpop.f32.mrb[2].mxu0 }
 0x691   : > { %v5517_v36 = vadd.f32 %v5516_v35, %v5436_v34  ;;  %v5518_v37 = vpop.f32.mrb[3].mxu0 }
 0x692   : > { %v5519_v38 = vadd.f32 %v5518_v37, %v5436_v34  ;;  %v5565_v34 = vld [vmem:[%s19980_s10] sm:$0xff] }
 0x693   : > { %v5527_v39 = vmax.f32 %v5517_v36, 1e-09 }
 0x694   : > { %v5528_v41 = vmax.f32 %v5519_v38, 1e-09  ;;  %v5522_v42 = vpop.f32.mrb[4].mxu0 }
 0x695   : > { %17591 = vrsqrt.f32 %v5527_v39  ;;  %v5523_v46 = vadd.f32 %v5522_v42, %v5441_v40  ;;  %v5524_v47 = vpop.f32.mrb[5].mxu0 }
 0x696   : > { %17593 = vrsqrt.f32 %v5528_v41  ;;  %v5525_v48 = vadd.f32 %v5524_v47, %v5441_v40  ;;  %v5566_v41 = vld [vmem:[%s19980_s10 + $0x8] sm:$0xff] }
 0x697   : > { %v5529_v49 = vmax.f32 %v5523_v46, 1e-09 }
 0x698   : > { %v5530_v50 = vmax.f32 %v5525_v48, 1e-09 }
 0x699   : > { %17595 = vrsqrt.f32 %v5529_v49  ;;  %v15800_v49 = vld [vmem:[%s19980_s10 + $0x20] sm:$0xff] }
 0x69a   : > { %17597 = vrsqrt.f32 %v5530_v50 }
 0x69f   : > { %v17592_v51 = vpop.eup %17591 }
 0x6a0   : > { %v17594_v52 = vpop.eup %17593  ;;  %v5535_v44 = vmul.f32 %v17592_v51, %v5421_v25  ;;  %v15794_v25 = vld [vmem:[%s19980_s10 + $0x10] sm:$0xff] }
 0x6a1   : > { %v5536_v53 = vmul.f32 %v17594_v52, %v5422_v23 }
 0x6a2   : > { %5543 = vrot.lane.b32.xlu1 %v5535_v44, %s19958_s7 }
 0x6a3   : > { %v17596_v54 = vpop.eup %17595  ;;  %5545 = vrot.lane.b32.xlu0 %v5536_v53, %s19958_s7 }
 0x6a4   : > { %v17598_v55 = vpop.eup %17597  ;;  %v5537_v56 = vmul.f32 %v17596_v54, %v5423_v26 }
 0x6a5   : > { %v5538_v57 = vmul.f32 %v17598_v55, %v5424_v28  ;;  %v15801_v55 = vld [vmem:[%s19980_s10 + $0x28] sm:$0xff] }
 0x6a6   : > { %5547 = vrot.lane.b32.xlu1 %v5537_v56, %s19958_s7 }
 0x6a7   : > { %5549 = vrot.lane.b32.xlu0 %v5538_v57, %s19958_s7 }
 0x714   : > { %v5544_v58 = vpop.permute.xlu1 %5543 }
 0x715   : > { %5557 = vst.msk [vmem:[#allocation3] sm:$0xff] %vm2972_vm13, %v5544_v58  ;;  %v5546_v59 = vpop.permute.xlu0 %5545 }
 0x716   : > { %v5551_v60 = vsel %vm2968_vm14, %v5544_v58, %v5546_v59 }
 0x717   : > { %5558 = vst.msk [vmem:[#allocation3 + $0x8] sm:$0xff] %vm2974_vm15, %v5551_v60  ;;  %v15804_v60 = vld [vmem:[%s19980_s10 + $0x30] sm:$0xff] }
 0x718   : > { %v5548_v61 = vpop.permute.xlu1 %5547 }
 0x719   : > { %5559 = vst.msk [vmem:[#allocation3 + $0x10] sm:$0xff] %vm2972_vm13, %v5548_v61  ;;  %v5550_v62 = vpop.permute.xlu0 %5549 }
 0x71a   : > { %v5552_v63 = vsel %vm2968_vm14, %v5548_v61, %v5550_v62 }
 0x71b   : > { %5560 = vst.msk [vmem:[#allocation3 + $0x18] sm:$0xff] %vm2974_vm15, %v5552_v63 }
 0x71c   : > { %v18506_v1 = vld [vmem:[#allocation3] sm:$0xff] }
 0x71e   : > { %v18508_v3 = vld [vmem:[#allocation3 + $0x8] sm:$0xff] }
 0x71f   : > { %v16867_v4 = vpack.i.bf16 %v18508_v3, %v18506_v1 }
 0x720   : > { %v18513_v0 = vld [vmem:[#allocation3 + $0x10] sm:$0xff] }
 0x721   : > { %16868 = vrot.lane.b32.xlu1 %v16867_v4, %s19959_s3  ;;  %v16106_v27 = vpack.c.bf16 %v18513_v0, %v18506_v1 }
 0x722   : > { %v18515_v9 = vld [vmem:[#allocation3 + $0x18] sm:$0xff] }
 0x723   : > { %v16872_v5 = vpack.i.bf16 %v18515_v9, %v18513_v0  ;;  %v16104_v24 = vpack.c.bf16 %v18515_v9, %v18508_v3  ;;  %v15805_v0 = vld [vmem:[%s19980_s10 + $0x38] sm:$0xff] }
 0x725   : > { %16878 = vrot.lane.b32.xlu1 %v16867_v4, %s19960_s4  ;;  %16873 = vrot.lane.b32.xlu0 %v16872_v5, %s19959_s3 }
 0x729   : > { %16888 = vrot.lane.b32.xlu1 %v16867_v4, %s19961_s2  ;;  %16883 = vrot.lane.b32.xlu0 %v16872_v5, %s19960_s4 }
 0x72d   : > { %16898 = vrot.lane.b32.xlu1 %v16867_v4, %s19962_s27  ;;  %16893 = vrot.lane.b32.xlu0 %v16872_v5, %s19961_s2 }
 0x731   : > { %16908 = vrot.lane.b32.xlu1 %v16867_v4, %s19963_s5  ;;  %16903 = vrot.lane.b32.xlu0 %v16872_v5, %s19962_s27 }
 0x735   : > { %16918 = vrot.lane.b32.xlu1 %v16867_v4, %s19964_s24  ;;  %16913 = vrot.lane.b32.xlu0 %v16872_v5, %s19963_s5 }
 0x739   : > { %16928 = vrot.lane.b32.xlu1 %v16867_v4, %s19950_s25  ;;  %16923 = vrot.lane.b32.xlu0 %v16872_v5, %s19964_s24 }
 0x73d   : > { %16938 = vrot.lane.b32.xlu1 %v16867_v4, %s19965_s28  ;;  %16933 = vrot.lane.b32.xlu0 %v16872_v5, %s19950_s25 }
 0x741   : > { %16948 = vrot.lane.b32.xlu1 %v16867_v4, %s19966_s0  ;;  %16943 = vrot.lane.b32.xlu0 %v16872_v5, %s19965_s28 }
 0x745   : > { %16958 = vrot.lane.b32.xlu1 %v16867_v4, %s19951_s29  ;;  %16953 = vrot.lane.b32.xlu0 %v16872_v5, %s19966_s0 }
 0x749   : > { %16968 = vrot.lane.b32.xlu1 %v16867_v4, %s19952_s26  ;;  %16963 = vrot.lane.b32.xlu0 %v16872_v5, %s19951_s29 }
 0x74d   : > { %16978 = vrot.lane.b32.xlu1 %v16867_v4, %s19953_s1  ;;  %16973 = vrot.lane.b32.xlu0 %v16872_v5, %s19952_s26 }
 0x751   : > { %16988 = vrot.lane.b32.xlu1 %v16867_v4, %s19967_s6  ;;  %16983 = vrot.lane.b32.xlu0 %v16872_v5, %s19953_s1 }
 0x755   : > { %16998 = vrot.lane.b32.xlu1 %v16867_v4, %s19968_s8  ;;  %16993 = vrot.lane.b32.xlu0 %v16872_v5, %s19967_s6 }
 0x759   : > { %17008 = vrot.lane.b32.xlu1 %v16867_v4, %s19969_s9  ;;  %17003 = vrot.lane.b32.xlu0 %v16872_v5, %s19968_s8 }
 0x75d   : > { %17018 = vrot.lane.b32.xlu1 %v16867_v4, %s19970_s23  ;;  %17013 = vrot.lane.b32.xlu0 %v16872_v5, %s19969_s9 }
 0x761   : > { %17028 = vrot.lane.b32.xlu1 %v16867_v4, %s19971_s20  ;;  %17023 = vrot.lane.b32.xlu0 %v16872_v5, %s19970_s23 }
 0x765   : > { %17038 = vrot.lane.b32.xlu1 %v16867_v4, %s19972_s21  ;;  %17033 = vrot.lane.b32.xlu0 %v16872_v5, %s19971_s20 }
 0x769   : > { %17048 = vrot.lane.b32.xlu1 %v16867_v4, %s19973_s18  ;;  %17043 = vrot.lane.b32.xlu0 %v16872_v5, %s19972_s21 }
 0x76d   : > { %17058 = vrot.lane.b32.xlu1 %v16867_v4, %s19974_s16  ;;  %17053 = vrot.lane.b32.xlu0 %v16872_v5, %s19973_s18  ;;  %s20095_s18 = sld [smem:[#allocation24_spill]] }
 0x771   : > { %17068 = vrot.lane.b32.xlu1 %v16867_v4, %s19975_s19  ;;  %17063 = vrot.lane.b32.xlu0 %v16872_v5, %s19974_s16  ;;  %s19908_s16 = sshll.u32 %s20151_s30, 5  ;;  %s20015_s30 = sld [smem:[#allocation21_spill]] }
 0x772   : > { %s718_s13 = scalar_lea.vmem %s20009_s22, %s19908_s16  ;;  %s20014_s16 = sld [smem:[#allocation19_spill]] }
 0x775   : > { %17078 = vrot.lane.b32.xlu1 %v16867_v4, %s19976_s17  ;;  %17073 = vrot.lane.b32.xlu0 %v16872_v5, %s19975_s19 }
 0x779   : > { %17088 = vrot.lane.b32.xlu1 %v16867_v4, %s19977_s14  ;;  %17083 = vrot.lane.b32.xlu0 %v16872_v5, %s19976_s17 }
 0x77d   : > { %17098 = vrot.lane.b32.xlu1 %v16867_v4, %s19978_s12  ;;  %17093 = vrot.lane.b32.xlu0 %v16872_v5, %s19977_s14  ;;  %s20012_s14 = smov 77  }
 0x781   : > { %8150 = vperm.xlu1 %16866, %v8146_v10   ;;  %17103 = vrot.lane.b32.xlu0 %v16872_v5, %s19978_s12  ;;  %s20011_s12 = smov 80  }
 0x785   : > { %8155 = vperm.xlu0 %16865, %v8147_v6  }
 0x793   : > { %v16869_v11 = vpop.permute.xlu1 %16868 }
 0x794   : > { %v16871_v12 = vunpack.i.h.bf16 %v16869_v11  ;;  %v16870_v13 = vunpack.i.l.bf16 %v16869_v11  ;;  %v15808_v11 = vld [vmem:[%s19980_s10 + $0x40] sm:$0xff] }
 0x796   : > { %v5582_v17 = vsel %vm746_vm0, %v16870_v13, %v16871_v12 }
 0x797   : > { %v16874_v14 = vpop.permute.xlu0 %16873  ;;  %v16879_v20 = vpop.permute.xlu1 %16878 }
 0x798   : > { %v16876_v15 = vunpack.i.h.bf16 %v16874_v14  ;;  %v16875_v16 = vunpack.i.l.bf16 %v16874_v14  ;;  %v16881_v26 = vunpack.i.h.bf16 %v16879_v20  ;;  %v16880_v30 = vunpack.i.l.bf16 %v16879_v20 }
 0x79a   : > { %v5583_v18 = vsel %vm746_vm0, %v16875_v16, %v16876_v15  ;;  %v16100_v19 = vpack.c.bf16 %v16876_v15, %v16871_v12  ;;  %v5765_v35 = vsel %vm905_vm2, %v16880_v30, %v16881_v26 }
 0x79b   : > { %v16884_v21 = vpop.permute.xlu0 %16883  ;;  %v16102_v22 = vpack.c.bf16 %v5583_v18, %v5582_v17  ;;  %v16889_v31 = vpop.permute.xlu1 %16888  ;;  %v15809_v18 = vld [vmem:[%s19980_s10 + $0x48] sm:$0xff] }
 0x79c   : > { %v16886_v23 = vunpack.i.h.bf16 %v16884_v21  ;;  %16101 = vmatprep.subr.bf16.mxu0 %v16100_v19  ;;  %v16885_v28 = vunpack.i.l.bf16 %v16884_v21  ;;  %v16891_v36 = vunpack.i.h.bf16 %v16889_v31  ;;  %v16890_v42 = vunpack.i.l.bf16 %v16889_v31 }
 0x79d   : > { %16103 = vmatpush1.bf16.msra.mxu0 %v16102_v22 }
 0x79e   : > { %16105 = vmatprep.subr.bf16.mxu0 %v16104_v24  ;;  %v16108_v7 = vpack.c.bf16 %v16886_v23, %v16881_v26  ;;  %v5766_v32 = vsel %vm905_vm2, %v16885_v28, %v16886_v23  ;;  %v5869_v50 = vsel %vm3262_vm9, %v16890_v42, %v16891_v36  ;;  %v15812_v23 = vld [vmem:[%s19980_s10 + $0x50] sm:$0xff] }
 0x79f   : > { %v16894_v29 = vpop.permute.xlu0 %16893  ;;  %v16110_v37 = vpack.c.bf16 %v5766_v32, %v5765_v35  ;;  %v16899_v46 = vpop.permute.xlu1 %16898 }
 0x7a0   : > { %15796 = vmatmul.mubr.msk.f32.vlgmr.msra.gmra.mrb[6].mxu0 %vm5443_vm1, %v15794_v25  ;;  %v16896_v33 = vunpack.i.h.bf16 %v16894_v29  ;;  %v16895_v38 = vunpack.i.l.bf16 %v16894_v29  ;;  %v16901_v51 = vunpack.i.h.bf16 %v16899_v46  ;;  %v16900_v56 = vunpack.i.l.bf16 %v16899_v46  ;;  %v15813_v29 = vld [vmem:[%s19980_s10 + $0x58] sm:$0xff] }
 0x7a1   : > { %16107 = vmatpush1.bf16.msra.mxu0 %v16106_v27  ;;  %5664 = vmatprep.mubr.f32.mxu0 %v18311_v2 }
 0x7a2   : > { %16109 = vmatprep.subr.bf16.mxu0 %v16108_v7  ;;  %v16112_v39 = vpack.c.bf16 %v16896_v33, %v16891_v36  ;;  %v5870_v47 = vsel %vm3262_vm9, %v16895_v38, %v16896_v33  ;;  %v5973_v61 = vsel %vm19904_vm12, %v16900_v56, %v16901_v51  ;;  %v15816_v33 = vld [vmem:[%s19980_s10 + $0x60] sm:$0xff] }
 0x7a3   : > { %v16904_v40 = vpop.permute.xlu0 %16903  ;;  %v16114_v52 = vpack.c.bf16 %v5870_v47, %v5869_v50  ;;  %v16909_v57 = vpop.permute.xlu1 %16908 }
 0x7a4   : > { %15797 = vmatmul.mubr.msk.f32.gmra.mrb[8].mxu0 %vm5443_vm1, %v15795_v8  ;;  %v16906_v48 = vunpack.i.h.bf16 %v16904_v40  ;;  %v16905_v44 = vunpack.i.l.bf16 %v16904_v40  ;;  %v16911_v62 = vunpack.i.h.bf16 %v16909_v57  ;;  %v16910_v9 = vunpack.i.l.bf16 %v16909_v57  ;;  %v15817_v40 = vld [vmem:[%s19980_s10 + $0x68] sm:$0xff] }
 0x7a5   : > { %5741 = vmatprep.mubr.f32.mxu0 %v18311_v2 }
 0x7a6   : > { %v16116_v53 = vpack.c.bf16 %v16906_v48, %v16901_v51  ;;  %v5974_v58 = vsel %vm19904_vm12, %v16905_v44, %v16906_v48  ;;  %v6077_v12 = vsel %vm19905_vm3, %v16910_v9, %v16911_v62  ;;  %vm19981_vm12 = vcmask 941056   ;;  %v15820_v48 = vld [vmem:[%s19980_s10 + $0x70] sm:$0xff] }
 0x7a7   : > { %v16914_v54 = vpop.permute.xlu0 %16913  ;;  %v16118_v63 = vpack.c.bf16 %v5974_v58, %v5973_v61  ;;  %v16919_v5 = vpop.permute.xlu1 %16918 }
 0x7a8   : > { %15798 = vmatmul.mubr.msk.f32.vlgmr.msra.gmra.mrb[6].mxu0 %vm5443_vm1, %v5565_v34  ;;  %v16916_v59 = vunpack.i.h.bf16 %v16914_v54  ;;  %v16915_v1 = vunpack.i.l.bf16 %v16914_v54  ;;  %v16921_v13 = vunpack.i.h.bf16 %v16919_v5  ;;  %v16920_v19 = vunpack.i.l.bf16 %v16919_v5  ;;  %v15821_v54 = vld [vmem:[%s19980_s10 + $0x78] sm:$0xff] }
 0x7a9   : > { %16111 = vmatpush1.bf16.msra.mxu0 %v16110_v37  ;;  %5747 = vmatprep.mubr.f32.mxu0 %v18311_v2 }
 0x7aa   : > { %16113 = vmatprep.subr.bf16.mxu0 %v16112_v39  ;;  %v16120_v3 = vpack.c.bf16 %v16916_v59, %v16911_v62  ;;  %v6078_v10 = vsel %vm19905_vm3, %v16915_v1, %v16916_v59  ;;  %vm19982_vm3 = vmmov %vm19981_vm12  ;;  %v15824_v59 = vld [vmem:[%s19980_s10 + $0x80] sm:$0xff] }
 0x7ab   : > { %v16924_v4 = vpop.permute.xlu0 %16923  ;;  %v16122_v14 = vpack.c.bf16 %v6078_v10, %v6077_v12  ;;  %v16929_v20 = vpop.permute.xlu1 %16928  ;;  %v6181_v24 = vsel %vm19982_vm3, %v16920_v19, %v16921_v13 }
 0x7ac   : > { %15799 = vmatmul.mubr.msk.f32.gmra.mrb[8].mxu0 %vm5443_vm1, %v5566_v41  ;;  %v16926_v6 = vunpack.i.h.bf16 %v16924_v4  ;;  %v16925_v15 = vunpack.i.l.bf16 %v16924_v4  ;;  %v16931_v25 = vunpack.i.h.bf16 %v16929_v20  ;;  %v16930_v8 = vunpack.i.l.bf16 %v16929_v20  ;;  %v18678_v4 = vld [vmem:[#allocation2 + $0x10] sm:$0xff] }
 0x7ad   : > { %5841 = vmatprep.mubr.f32.mxu0 %v18311_v2 }
 0x7ae   : > { %v16124_v16 = vpack.c.bf16 %v16926_v6, %v16921_v13  ;;  %v6182_v21 = vsel %vm19981_vm12, %v16925_v15, %v16926_v6  ;;  %vm19983_vm12 = vcmask 932864   ;;  %v15828_v6 = vld [vmem:[%s19980_s10 + $0x90] sm:$0xff] }
 0x7af   : > { %v16934_v17 = vpop.permute.xlu0 %16933  ;;  %v16126_v26 = vpack.c.bf16 %v6182_v21, %v6181_v24  ;;  %v16939_v30 = vpop.permute.xlu1 %16938  ;;  %vm19984_vm3 = vmmov %vm19983_vm12 }
 0x7b0   : > { %15802 = vmatmul.mubr.msk.f32.vlgmr.msra.gmra.mrb[6].mxu0 %vm5443_vm1, %v15800_v49  ;;  %v16936_v22 = vunpack.i.h.bf16 %v16934_v17  ;;  %v16935_v27 = vunpack.i.l.bf16 %v16934_v17  ;;  %v6285_v34 = vsel %vm19984_vm3, %v16930_v8, %v16931_v25  ;;  %v16941_v35 = vunpack.i.h.bf16 %v16939_v30  ;;  %v15829_v17 = vld [vmem:[%s19980_s10 + $0x98] sm:$0xff] }
 0x7b1   : > { %16115 = vmatpush1.bf16.msra.mxu0 %v16114_v52  ;;  %5847 = vmatprep.mubr.f32.mxu0 %v18311_v2  ;;  %v16940_v41 = vunpack.i.l.bf16 %v16939_v30 }
 0x7b2   : > { %16117 = vmatprep.subr.bf16.mxu0 %v16116_v53  ;;  %v16128_v28 = vpack.c.bf16 %v16936_v22, %v16931_v25  ;;  %v6286_v31 = vsel %vm19983_vm12, %v16935_v27, %v16936_v22  ;;  %vm19985_vm12 = vcmask 842752   ;;  %v15832_v22 = vld [vmem:[%s19980_s10 + $0xa0] sm:$0xff] }
 0x7b3   : > { %v16944_v7 = vpop.permute.xlu0 %16943  ;;  %v16130_v36 = vpack.c.bf16 %v6286_v31, %v6285_v34  ;;  %v16949_v42 = vpop.permute.xlu1 %16948  ;;  %v6389_v49 = vsel %vm3749_vm4, %v16940_v41, %v16941_v35  ;;  %vm19986_vm3 = vmmov %vm19985_vm12 }
 0x7b4   : > { %15803 = vmatmul.mubr.msk.f32.gmra.mrb[8].mxu0 %vm5443_vm1, %v15801_v55  ;;  %v16946_v32 = vunpack.i.h.bf16 %v16944_v7  ;;  %v16945_v37 = vunpack.i.l.bf16 %v16944_v7  ;;  %v16951_v50 = vunpack.i.h.bf16 %v16949_v42  ;;  %v16950_v55 = vunpack.i.l.bf16 %v16949_v42  ;;  %v15833_v7 = vld [vmem:[%s19980_s10 + $0xa8] sm:$0xff] }
 0x7b5   : > { %5945 = vmatprep.mubr.f32.mxu0 %v18311_v2 }
 0x7b6   : > { %v16132_v38 = vpack.c.bf16 %v16946_v32, %v16941_v35  ;;  %v6390_v46 = vsel %vm3749_vm4, %v16945_v37, %v16946_v32  ;;  %v15836_v32 = vld [vmem:[%s19980_s10 + $0xb0] sm:$0xff] }
 0x7b7   : > { %v16954_v39 = vpop.permute.xlu0 %16953  ;;  %v16134_v51 = vpack.c.bf16 %v6390_v46, %v6389_v49  ;;  %v16959_v56 = vpop.permute.xlu1 %16958 }
 0x7b8   : > { %15806 = vmatmul.mubr.msk.f32.vlgmr.msra.gmra.mrb[6].mxu0 %vm5443_vm1, %v15804_v60  ;;  %v16956_v47 = vunpack.i.h.bf16 %v16954_v39  ;;  %v16955_v52 = vunpack.i.l.bf16 %v16954_v39  ;;  %v6493_v60 = vsel %vm3847_vm5, %v16950_v55, %v16951_v50  ;;  %v16961_v61 = vunpack.i.h.bf16 %v16959_v56  ;;  %v15837_v39 = vld [vmem:[%s19980_s10 + $0xb8] sm:$0xff] }
 0x7b9   : > { %16119 = vmatpush1.bf16.msra.mxu0 %v16118_v63  ;;  %5951 = vmatprep.mubr.f32.mxu0 %v18311_v2 }
 0x7ba   : > { %16121 = vmatprep.subr.bf16.mxu0 %v16120_v3  ;;  %v16136_v44 = vpack.c.bf16 %v16956_v47, %v16951_v50  ;;  %v6494_v57 = vsel %vm3847_vm5, %v16955_v52, %v16956_v47  ;;  %v15840_v47 = vld [vmem:[%s19980_s10 + $0xc0] sm:$0xff] }
 0x7bb   : > { %v16964_v53 = vpop.permute.xlu0 %16963  ;;  %v16138_v62 = vpack.c.bf16 %v6494_v57, %v6493_v60  ;;  %v16969_v9 = vpop.permute.xlu1 %16968 }
 0x7bc   : > { %15807 = vmatmul.mubr.msk.f32.gmra.mrb[8].mxu0 %vm5443_vm1, %v15805_v0  ;;  %v16966_v58 = vunpack.i.h.bf16 %v16964_v53  ;;  %v16965_v63 = vunpack.i.l.bf16 %v16964_v53  ;;  %v16960_v0 = vunpack.i.l.bf16 %v16959_v56  ;;  %v16971_v12 = vunpack.i.h.bf16 %v16969_v9  ;;  %v15841_v53 = vld [vmem:[%s19980_s10 + $0xc8] sm:$0xff] }
 0x7bd   : > { %6049 = vmatprep.mubr.f32.mxu0 %v18311_v2 }
 0x7be   : > { %v16140_v1 = vpack.c.bf16 %v16966_v58, %v16961_v61  ;;  %v6598_v5 = vsel %vm1249_vm6, %v16965_v63, %v16966_v58  ;;  %v15844_v58 = vld [vmem:[%s19980_s10 + $0xd0] sm:$0xff] }
 0x7bf   : > { %v16974_v3 = vpop.permute.xlu0 %16973  ;;  %v16979_v19 = vpop.permute.xlu1 %16978 }
 0x7c0   : > { %15810 = vmatmul.mubr.msk.f32.vlgmr.msra.gmra.mrb[6].mxu0 %vm5443_vm1, %v15808_v11  ;;  %v16976_v10 = vunpack.i.h.bf16 %v16974_v3  ;;  %v6597_v11 = vsel %vm1249_vm6, %v16960_v0, %v16961_v61  ;;  %v16981_v24 = vunpack.i.h.bf16 %v16979_v19 }
 0x7c1   : > { %16123 = vmatpush1.bf16.msra.mxu0 %v16122_v14  ;;  %6055 = vmatprep.mubr.f32.mxu0 %v18311_v2  ;;  %v16142_v13 = vpack.c.bf16 %v6598_v5, %v6597_v11  ;;  %v16975_v14 = vunpack.i.l.bf16 %v16974_v3  ;;  %v15845_v3 = vld [vmem:[%s19980_s10 + $0xd8] sm:$0xff] }
 0x7c2   : > { %16125 = vmatprep.subr.bf16.mxu0 %v16124_v16  ;;  %v16144_v15 = vpack.c.bf16 %v16976_v10, %v16971_v12 }
 0x7c3   : > { %v16984_v16 = vpop.permute.xlu0 %16983  ;;  %v6702_v20 = vsel %vm19985_vm12, %v16975_v14, %v16976_v10  ;;  %v16989_v8 = vpop.permute.xlu1 %16988  ;;  %vm19987_vm12 = vcmask 834560   ;;  %v15848_v10 = vld [vmem:[%s19980_s10 + $0xe0] sm:$0xff] }
 0x7c4   : > { %15811 = vmatmul.mubr.msk.f32.gmra.mrb[8].mxu0 %vm5443_vm1, %v15809_v18  ;;  %v16970_v18 = vunpack.i.l.bf16 %v16969_v9  ;;  %v16986_v21 = vunpack.i.h.bf16 %v16984_v16  ;;  %v16991_v34 = vunpack.i.h.bf16 %v16989_v8 }
 0x7c5   : > { %6153 = vmatprep.mubr.f32.mxu0 %v18311_v2 }
 0x7c6   : > { %v16148_v27 = vpack.c.bf16 %v16986_v21, %v16981_v24 }
 0x7c7   : > { %v16999_v41 = vpop.permute.xlu1 %16998 }
 0x7c8   : > { %15814 = vmatmul.mubr.msk.f32.vlgmr.msra.gmra.mrb[6].mxu0 %vm5443_vm1, %v15812_v23  ;;  %v6701_v23 = vsel %vm19986_vm3, %v16970_v18, %v16971_v12  ;;  %vm19988_vm3 = vmmov %vm19987_vm12  ;;  %v17001_v49 = vunpack.i.h.bf16 %v16999_v41 }
 0x7c9   : > { %16127 = vmatpush1.bf16.msra.mxu0 %v16126_v26  ;;  %6159 = vmatprep.mubr.f32.mxu0 %v18311_v2  ;;  %v16146_v25 = vpack.c.bf16 %v6702_v20, %v6701_v23  ;;  %v16985_v26 = vunpack.i.l.bf16 %v16984_v16  ;;  %v15849_v16 = vld [vmem:[%s19980_s10 + $0xe8] sm:$0xff] }
 0x7ca   : > { %16129 = vmatprep.subr.bf16.mxu0 %v16128_v28  ;;  %v16994_v28 = vpop.permute.xlu0 %16993 }
 0x7cb   : > { %v6806_v30 = vsel %vm19987_vm12, %v16985_v26, %v16986_v21  ;;  %v16996_v31 = vunpack.i.h.bf16 %v16994_v28  ;;  %vm19989_vm12 = vcmask 826368   ;;  %v17009_v55 = vpop.permute.xlu1 %17008  ;;  %v15852_v21 = vld [vmem:[%s19980_s10 + $0xf0] sm:$0xff] }
 0x7cc   : > { %15815 = vmatmul.mubr.msk.f32.gmra.mrb[8].mxu0 %vm5443_vm1, %v15813_v29  ;;  %v16980_v29 = vunpack.i.l.bf16 %v16979_v19  ;;  %v17011_v60 = vunpack.i.h.bf16 %v17009_v55 }
 0x7cd   : > { %6257 = vmatprep.mubr.f32.mxu0 %v18311_v2  ;;  %v16152_v37 = vpack.c.bf16 %v16996_v31, %v16991_v34 }
 0x7cf   : > { %v17019_v0 = vpop.permute.xlu1 %17018 }
 0x7d0   : > { %15818 = vmatmul.mubr.msk.f32.vlgmr.msra.gmra.mrb[6].mxu0 %vm5443_vm1, %v15816_v33  ;;  %v6805_v33 = vsel %vm19988_vm3, %v16980_v29, %v16981_v24  ;;  %vm19990_vm3 = vmmov %vm19989_vm12  ;;  %v17021_v11 = vunpack.i.h.bf16 %v17019_v0 }
 0x7d1   : > { %16131 = vmatpush1.bf16.msra.mxu0 %v16130_v36  ;;  %6263 = vmatprep.mubr.f32.mxu0 %v18311_v2  ;;  %v16150_v35 = vpack.c.bf16 %v6806_v30, %v6805_v33  ;;  %v16995_v36 = vunpack.i.l.bf16 %v16994_v28  ;;  %v15853_v28 = vld [vmem:[%s19980_s10 + $0xf8] sm:$0xff] }
 0x7d2   : > { %16133 = vmatprep.subr.bf16.mxu0 %v16132_v38  ;;  %v17004_v38 = vpop.permute.xlu0 %17003 }
 0x7d3   : > { %v6910_v42 = vsel %vm19989_vm12, %v16995_v36, %v16996_v31  ;;  %v17006_v46 = vunpack.i.h.bf16 %v17004_v38  ;;  %vm19991_vm12 = vcmask 818176   ;;  %v17029_v18 = vpop.permute.xlu1 %17028  ;;  %v15856_v31 = vld [vmem:[%s19980_s10 + $0x100] sm:$0xff] }
 0x7d4   : > { %15819 = vmatmul.mubr.msk.f32.gmra.mrb[8].mxu0 %vm5443_vm1, %v15817_v40  ;;  %v16990_v40 = vunpack.i.l.bf16 %v16989_v8  ;;  %v17031_v23 = vunpack.i.h.bf16 %v17029_v18 }
 0x7d5   : > { %6361 = vmatprep.mubr.f32.mxu0 %v18311_v2  ;;  %v16156_v52 = vpack.c.bf16 %v17006_v46, %v17001_v49 }
 0x7d7   : > { %v17039_v29 = vpop.permute.xlu1 %17038 }
 0x7d8   : > { %15822 = vmatmul.mubr.msk.f32.vlgmr.msra.gmra.mrb[6].mxu0 %vm5443_vm1, %v15820_v48  ;;  %v6909_v48 = vsel %vm19990_vm3, %v16990_v40, %v16991_v34  ;;  %vm19992_vm3 = vmmov %vm19991_vm12  ;;  %v17041_v33 = vunpack.i.h.bf16 %v17039_v29 }
 0x7d9   : > { %16135 = vmatpush1.bf16.msra.mxu0 %v16134_v51  ;;  %6367 = vmatprep.mubr.f32.mxu0 %v18311_v2  ;;  %v16154_v50 = vpack.c.bf16 %v6910_v42, %v6909_v48  ;;  %v17005_v51 = vunpack.i.l.bf16 %v17004_v38  ;;  %v15857_v38 = vld [vmem:[%s19980_s10 + $0x108] sm:$0xff] }
 0x7da   : > { %16137 = vmatprep.subr.bf16.mxu0 %v16136_v44  ;;  %v17014_v44 = vpop.permute.xlu0 %17013 }
 0x7db   : > { %v7014_v56 = vsel %vm19991_vm12, %v17005_v51, %v17006_v46  ;;  %v17016_v57 = vunpack.i.h.bf16 %v17014_v44  ;;  %vm19993_vm12 = vcmask 752640   ;;  %v17049_v40 = vpop.permute.xlu1 %17048  ;;  %v15860_v46 = vld [vmem:[%s19980_s10 + $0x110] sm:$0xff] }
 0x7dc   : > { %15823 = vmatmul.mubr.msk.f32.gmra.mrb[8].mxu0 %vm5443_vm1, %v15821_v54  ;;  %v17000_v54 = vunpack.i.l.bf16 %v16999_v41  ;;  %v17051_v48 = vunpack.i.h.bf16 %v17049_v40 }
 0x7dd   : > { %6465 = vmatprep.mubr.f32.mxu0 %v18311_v2  ;;  %v15825_v2 = vld [vmem:[%s19980_s10 + $0x88] sm:$0xff]  ;;  %v16160_v63 = vpack.c.bf16 %v17016_v57, %v17011_v60 }
 0x7e0   : > { %15826 = vmatmul.mubr.msk.f32.vlgmr.msra.gmra.mrb[6].mxu0 %vm5443_vm1, %v15824_v59  ;;  %v7013_v59 = vsel %vm19992_vm3, %v17000_v54, %v17001_v49  ;;  %vm19994_vm3 = vmmov %vm19993_vm12  ;;  %v17059_v54 = vpop.permute.xlu1 %17058 }
 0x7e1   : > { %16139 = vmatpush1.bf16.msra.mxu0 %v16138_v62  ;;  %6471 = vmatprep.mubr.f32.mxu0 %v18678_v4  ;;  %v16158_v61 = vpack.c.bf16 %v7014_v56, %v7013_v59  ;;  %v17015_v62 = vunpack.i.l.bf16 %v17014_v44  ;;  %v15861_v44 = vld [vmem:[%s19980_s10 + $0x118] sm:$0xff]  ;;  %v17061_v59 = vunpack.i.h.bf16 %v17059_v54 }
 0x7e2   : > { %16141 = vmatprep.subr.bf16.mxu0 %v16140_v1  ;;  %v17024_v1 = vpop.permute.xlu0 %17023 }
 0x7e3   : > { %v7118_v9 = vsel %vm19993_vm12, %v17015_v62, %v17016_v57  ;;  %v17026_v5 = vunpack.i.h.bf16 %v17024_v1  ;;  %vm19995_vm12 = vcmask 744448   ;;  %v15864_v57 = vld [vmem:[%s19980_s10 + $0x120] sm:$0xff] }
 0x7e4   : > { %15827 = vmatmul.mubr.msk.f32.gmra.mrb[8].mxu0 %vm5443_vm1, %v15825_v2  ;;  %v17010_v2 = vunpack.i.l.bf16 %v17009_v55 }
 0x7e5   : > { %6569 = vmatprep.mubr.f32.mxu0 %v18678_v4  ;;  %v16164_v14 = vpack.c.bf16 %v17026_v5, %v17021_v11 }
 0x7e8   : > { %15830 = vmatmul.mubr.msk.f32.vlgmr.msra.gmra.mrb[6].mxu0 %vm5443_vm1, %v15828_v6  ;;  %v7117_v6 = vsel %vm19994_vm3, %v17010_v2, %v17011_v60  ;;  %vm19996_vm3 = vmmov %vm19995_vm12  ;;  %v17069_v2 = vpop.permute.xlu1 %17068 }
 0x7e9   : > { %16143 = vmatpush1.bf16.msra.mxu0 %v16142_v13  ;;  %6575 = vmatprep.mubr.f32.mxu0 %v18678_v4  ;;  %v16162_v12 = vpack.c.bf16 %v7118_v9, %v7117_v6  ;;  %v17025_v13 = vunpack.i.l.bf16 %v17024_v1  ;;  %v15865_v1 = vld [vmem:[%s19980_s10 + $0x128] sm:$0xff]  ;;  %v17071_v6 = vunpack.i.h.bf16 %v17069_v2 }
 0x7ea   : > { %16145 = vmatprep.subr.bf16.mxu0 %v16144_v15  ;;  %v17034_v15 = vpop.permute.xlu0 %17033 }
 0x7eb   : > { %v7222_v19 = vsel %vm19995_vm12, %v17025_v13, %v17026_v5  ;;  %v17036_v20 = vunpack.i.h.bf16 %v17034_v15  ;;  %vm19997_vm12 = vcmask 736256   ;;  %v15868_v5 = vld [vmem:[%s19980_s10 + $0x130] sm:$0xff] }
 0x7ec   : > { %15831 = vmatmul.mubr.msk.f32.gmra.mrb[8].mxu0 %vm5443_vm1, %v15829_v17  ;;  %v17020_v17 = vunpack.i.l.bf16 %v17019_v0 }
 0x7ed   : > { %6673 = vmatprep.mubr.f32.mxu0 %v18678_v4  ;;  %v16168_v26 = vpack.c.bf16 %v17036_v20, %v17031_v23 }
 0x7f0   : > { %15834 = vmatmul.mubr.msk.f32.vlgmr.msra.gmra.mrb[6].mxu0 %vm5443_vm1, %v15832_v22  ;;  %v7221_v22 = vsel %vm19996_vm3, %v17020_v17, %v17021_v11  ;;  %vm19998_vm3 = vmmov %vm19997_vm12  ;;  %v17079_v17 = vpop.permute.xlu1 %17078 }
 0x7f1   : > { %16147 = vmatpush1.bf16.msra.mxu0 %v16146_v25  ;;  %6679 = vmatprep.mubr.f32.mxu0 %v18678_v4  ;;  %v16166_v24 = vpack.c.bf16 %v7222_v19, %v7221_v22  ;;  %v17035_v25 = vunpack.i.l.bf16 %v17034_v15  ;;  %v15869_v15 = vld [vmem:[%s19980_s10 + $0x138] sm:$0xff]  ;;  %v17081_v22 = vunpack.i.h.bf16 %v17079_v17 }
 0x7f2   : > { %16149 = vmatprep.subr.bf16.mxu0 %v16148_v27  ;;  %v17044_v27 = vpop.permute.xlu0 %17043 }
 0x7f3   : > { %v7326_v8 = vsel %vm19997_vm12, %v17035_v25, %v17036_v20  ;;  %v17046_v30 = vunpack.i.h.bf16 %v17044_v27  ;;  %vm19999_vm12 = vcmask 728064   ;;  %v15872_v20 = vld [vmem:[%s19980_s10 + $0x140] sm:$0xff] }
 0x7f4   : > { %15835 = vmatmul.mubr.msk.f32.gmra.mrb[8].mxu0 %vm5443_vm1, %v15833_v7  ;;  %v17030_v7 = vunpack.i.l.bf16 %v17029_v18 }
 0x7f5   : > { %6777 = vmatprep.mubr.f32.mxu0 %v18678_v4  ;;  %v16172_v36 = vpack.c.bf16 %v17046_v30, %v17041_v33 }
 0x7f8   : > { %15838 = vmatmul.mubr.msk.f32.vlgmr.msra.gmra.mrb[6].mxu0 %vm5443_vm1, %v15836_v32  ;;  %v7325_v32 = vsel %vm19998_vm3, %v17030_v7, %v17031_v23  ;;  %vm20000_vm3 = vmmov %vm19999_vm12  ;;  %v17089_v7 = vpop.permute.xlu1 %17088 }
 0x7f9   : > { %16151 = vmatpush1.bf16.msra.mxu0 %v16150_v35  ;;  %6783 = vmatprep.mubr.f32.mxu0 %v18678_v4  ;;  %v16170_v34 = vpack.c.bf16 %v7326_v8, %v7325_v32  ;;  %v17045_v35 = vunpack.i.l.bf16 %v17044_v27  ;;  %v15873_v27 = vld [vmem:[%s19980_s10 + $0x148] sm:$0xff]  ;;  %v17091_v32 = vunpack.i.h.bf16 %v17089_v7 }
 0x7fa   : > { %16153 = vmatprep.subr.bf16.mxu0 %v16152_v37  ;;  %v17054_v37 = vpop.permute.xlu0 %17053 }
 0x7fb   : > { %v7430_v41 = vsel %vm19999_vm12, %v17045_v35, %v17046_v30  ;;  %v17056_v42 = vunpack.i.h.bf16 %v17054_v37  ;;  %vm20001_vm12 = vcmask 719872   ;;  %v15876_v30 = vld [vmem:[%s19980_s10 + $0x150] sm:$0xff] }
 0x7fc   : > { %15839 = vmatmul.mubr.msk.f32.gmra.mrb[8].mxu0 %vm5443_vm1, %v15837_v39  ;;  %v17040_v39 = vunpack.i.l.bf16 %v17039_v29 }
 0x7fd   : > { %6881 = vmatprep.mubr.f32.mxu0 %v18678_v4  ;;  %v16176_v51 = vpack.c.bf16 %v17056_v42, %v17051_v48 }
 0x800   : > { %15842 = vmatmul.mubr.msk.f32.vlgmr.msra.gmra.mrb[6].mxu0 %vm5443_vm1, %v15840_v47  ;;  %v7429_v47 = vsel %vm20000_vm3, %v17040_v39, %v17041_v33  ;;  %vm20002_vm3 = vmmov %vm20001_vm12  ;;  %v17099_v39 = vpop.permute.xlu1 %17098 }
 0x801   : > { %16155 = vmatpush1.bf16.msra.mxu0 %v16154_v50  ;;  %6887 = vmatprep.mubr.f32.mxu0 %v18678_v4  ;;  %v16174_v49 = vpack.c.bf16 %v7430_v41, %v7429_v47  ;;  %v17055_v50 = vunpack.i.l.bf16 %v17054_v37  ;;  %v15877_v37 = vld [vmem:[%s19980_s10 + $0x158] sm:$0xff]  ;;  %v17101_v47 = vunpack.i.h.bf16 %v17099_v39 }
 0x802   : > { %16157 = vmatprep.subr.bf16.mxu0 %v16156_v52  ;;  %v17064_v52 = vpop.permute.xlu0 %17063 }
 0x803   : > { %v7534_v55 = vsel %vm20001_vm12, %v17055_v50, %v17056_v42  ;;  %v17066_v56 = vunpack.i.h.bf16 %v17064_v52  ;;  %vm20003_vm12 = vcmask 654336   ;;  %v15880_v42 = vld [vmem:[%s19980_s10 + $0x160] sm:$0xff] }
 0x804   : > { %15843 = vmatmul.mubr.msk.f32.gmra.mrb[8].mxu0 %vm5443_vm1, %v15841_v53  ;;  %v17050_v53 = vunpack.i.l.bf16 %v17049_v40 }
 0x805   : > { %6985 = vmatprep.mubr.f32.mxu0 %v18678_v4  ;;  %v16180_v62 = vpack.c.bf16 %v17066_v56, %v17061_v59 }
 0x808   : > { %15846 = vmatmul.mubr.msk.f32.vlgmr.msra.gmra.mrb[6].mxu0 %vm5443_vm1, %v15844_v58  ;;  %v7533_v58 = vsel %vm20002_vm3, %v17050_v53, %v17051_v48  ;;  %vm20004_vm3 = vmmov %vm20003_vm12  ;;  %v15884_v53 = vld [vmem:[%s19980_s10 + $0x170] sm:$0xff] }
 0x809   : > { %16159 = vmatpush1.bf16.msra.mxu0 %v16158_v61  ;;  %6991 = vmatprep.mubr.f32.mxu0 %v18678_v4  ;;  %v16178_v60 = vpack.c.bf16 %v7534_v55, %v7533_v58  ;;  %v17065_v61 = vunpack.i.l.bf16 %v17064_v52  ;;  %v17100_v52 = vunpack.i.l.bf16 %v17099_v39  ;;  %v15889_v58 = vld [vmem:[%s19980_s10 + $0x188] sm:$0xff] }
 0x80a   : > { %16161 = vmatprep.subr.bf16.mxu0 %v16160_v63  ;;  %v17074_v63 = vpop.permute.xlu0 %17073 }
 0x80b   : > { %v7638_v0 = vsel %vm20003_vm12, %v17065_v61, %v17066_v56  ;;  %v17076_v9 = vunpack.i.h.bf16 %v17074_v63  ;;  %vm20005_vm12 = vcmask 646144   ;;  %v15885_v56 = vld [vmem:[%s19980_s10 + $0x178] sm:$0xff] }
 0x80c   : > { %15847 = vmatmul.mubr.msk.f32.gmra.mrb[8].mxu0 %vm5443_vm1, %v15845_v3  ;;  %v17060_v3 = vunpack.i.l.bf16 %v17059_v54  ;;  %v8053_v54 = vsel %vm19916_vm8, %v17100_v52, %v17101_v47 }
 0x80d   : > { %7089 = vmatprep.mubr.f32.mxu0 %v18678_v4  ;;  %v16184_v13 = vpack.c.bf16 %v17076_v9, %v17071_v6 }
 0x810   : > { %15850 = vmatmul.mubr.msk.f32.vlgmr.msra.gmra.mrb[6].mxu0 %vm5443_vm1, %v15848_v10  ;;  %v7637_v10 = vsel %vm20004_vm3, %v17060_v3, %v17061_v59  ;;  %vm20006_vm3 = vmmov %vm20005_vm12  ;;  %v8151_v59 = vpop.permute.xlu1 %8150 }
 0x811   : > { %16163 = vmatpush1.bf16.msra.mxu0 %v16162_v12  ;;  %7095 = vmatprep.mubr.f32.mxu0 %v18678_v4  ;;  %v16182_v11 = vpack.c.bf16 %v7638_v0, %v7637_v10  ;;  %v17075_v12 = vunpack.i.l.bf16 %v17074_v63 }
 0x812   : > { %16165 = vmatprep.subr.bf16.mxu0 %v16164_v14  ;;  %v17084_v14 = vpop.permute.xlu0 %17083 }
 0x813   : > { %v7742_v18 = vsel %vm20005_vm12, %v17075_v12, %v17076_v9  ;;  %v17086_v19 = vunpack.i.h.bf16 %v17084_v14  ;;  %vm20007_vm12 = vcmask 637952  }
 0x814   : > { %15851 = vmatmul.mubr.msk.f32.gmra.mrb[8].mxu0 %vm5443_vm1, %v15849_v16  ;;  %v17070_v16 = vunpack.i.l.bf16 %v17069_v2 }
 0x815   : > { %7193 = vmatprep.mubr.f32.mxu0 %v18678_v4  ;;  %v16188_v25 = vpack.c.bf16 %v17086_v19, %v17081_v22 }
 0x818   : > { %15854 = vmatmul.mubr.msk.f32.vlgmr.msra.gmra.mrb[6].mxu0 %vm5443_vm1, %v15852_v21  ;;  %v7741_v21 = vsel %vm20006_vm3, %v17070_v16, %v17071_v6  ;;  %vm20008_vm3 = vmmov %vm20007_vm12 }
 0x819   : > { %16167 = vmatpush1.bf16.msra.mxu0 %v16166_v24  ;;  %7199 = vmatprep.mubr.f32.mxu0 %v18678_v4  ;;  %v16186_v23 = vpack.c.bf16 %v7742_v18, %v7741_v21  ;;  %v17085_v24 = vunpack.i.l.bf16 %v17084_v14 }
 0x81a   : > { %16169 = vmatprep.subr.bf16.mxu0 %v16168_v26  ;;  %v17094_v26 = vpop.permute.xlu0 %17093 }
 0x81b   : > { %v7846_v29 = vsel %vm20007_vm12, %v17085_v24, %v17086_v19  ;;  %v17096_v8 = vunpack.i.h.bf16 %v17094_v26  ;;  %v10777_v24 = vld [vmem:[%s20014_s16] sm:$0xff]  ;;  %vm20017_vm12 = vcmask 1014784  }
 0x81c   : > { %15855 = vmatmul.mubr.msk.f32.gmra.mrb[8].mxu0 %vm5443_vm1, %v15853_v28  ;;  %v17080_v28 = vunpack.i.l.bf16 %v17079_v17 }
 0x81d   : > { %7297 = vmatprep.mubr.f32.mxu0 %v18678_v4  ;;  %v16192_v35 = vpack.c.bf16 %v17096_v8, %v17091_v32 }
 0x820   : > { %15858 = vmatmul.mubr.msk.f32.vlgmr.msra.gmra.mrb[6].mxu0 %vm5443_vm1, %v15856_v31  ;;  %v7845_v31 = vsel %vm20008_vm3, %v17080_v28, %v17081_v22  ;;  %vm20018_vm3 = vmmov %vm20017_vm12 }
 0x821   : > { %16171 = vmatpush1.bf16.msra.mxu0 %v16170_v34  ;;  %7303 = vmatprep.mubr.f32.mxu0 %v18678_v4  ;;  %v16190_v33 = vpack.c.bf16 %v7846_v29, %v7845_v31  ;;  %v17095_v34 = vunpack.i.l.bf16 %v17094_v26  ;;  %v10778_v26 = vld [vmem:[%s20014_s16 + $0x8] sm:$0xff] }
 0x822   : > { %16173 = vmatprep.subr.bf16.mxu0 %v16172_v36  ;;  %v17104_v36 = vpop.permute.xlu0 %17103 }
 0x823   : > { %v7950_v40 = vsel %vm19917_vm7, %v17095_v34, %v17096_v8  ;;  %v17106_v41 = vunpack.i.h.bf16 %v17104_v36 }
 0x824   : > { %15859 = vmatmul.mubr.msk.f32.gmra.mrb[8].mxu0 %vm5443_vm1, %v15857_v38  ;;  %v17090_v38 = vunpack.i.l.bf16 %v17089_v7 }
 0x825   : > { %7401 = vmatprep.mubr.f32.mxu0 %v18678_v4  ;;  %v16196_v50 = vpack.c.bf16 %v17106_v41, %v17101_v47 }
 0x826   : > { %v8156_v3 = vpop.permute.xlu0 %8155 }
 0x828   : > { %15862 = vmatmul.mubr.msk.f32.vlgmr.msra.gmra.mrb[6].mxu0 %vm5443_vm1, %v15860_v46  ;;  %v7949_v46 = vsel %vm19917_vm7, %v17090_v38, %v17091_v32 }
 0x829   : > { %16175 = vmatpush1.bf16.msra.mxu0 %v16174_v49  ;;  %7407 = vmatprep.mubr.f32.mxu0 %v18678_v4  ;;  %v16194_v48 = vpack.c.bf16 %v7950_v40, %v7949_v46  ;;  %v17105_v49 = vunpack.i.l.bf16 %v17104_v36 }
 0x82a   : > { %16177 = vmatprep.subr.bf16.mxu0 %v16176_v51  ;;  %v15881_v51 = vld [vmem:[%s19980_s10 + $0x168] sm:$0xff] }
 0x82c   : > { %15863 = vmatmul.mubr.msk.f32.gmra.mrb[8].mxu0 %vm5443_vm1, %v15861_v44  ;;  %v8054_v44 = vsel %vm19916_vm8, %v17105_v49, %v17106_v41 }
 0x82d   : > { %7505 = vmatprep.mubr.f32.mxu0 %v18678_v4  ;;  %v16198_v55 = vpack.c.bf16 %v8054_v44, %v8053_v54 }
 0x830   : > { %15866 = vmatmul.mubr.msk.f32.vlgmr.msra.gmra.mrb[6].mxu0 %vm5443_vm1, %v15864_v57  ;;  %v15888_v57 = vld [vmem:[%s19980_s10 + $0x180] sm:$0xff]  ;;  %s20055_s10 = sld [smem:[#allocation25_spill]] }
 0x831   : > { %16179 = vmatpush1.bf16.msra.mxu0 %v16178_v60  ;;  %7511 = vmatprep.mubr.f32.mxu0 %v18678_v4 }
 0x832   : > { %16181 = vmatprep.subr.bf16.mxu0 %v16180_v62 }
 0x834   : > { %15867 = vmatmul.mubr.msk.f32.gmra.mrb[8].mxu0 %vm5443_vm1, %v15865_v1 }
 0x835   : > { %7609 = vmatprep.mubr.f32.mxu0 %v18678_v4 }
 0x838   : > { %15870 = vmatmul.mubr.msk.f32.vlgmr.msra.gmra.mrb[6].mxu0 %vm5443_vm1, %v15868_v5 }
 0x839   : > { %16183 = vmatpush1.bf16.msra.mxu0 %v16182_v11  ;;  %7615 = vmatprep.mubr.f32.mxu0 %v18678_v4 }
 0x83a   : > { %16185 = vmatprep.subr.bf16.mxu0 %v16184_v13 }
 0x83c   : > { %15871 = vmatmul.mubr.msk.f32.gmra.mrb[8].mxu0 %vm5443_vm1, %v15869_v15 }
 0x83d   : > { %7713 = vmatprep.mubr.f32.mxu0 %v18678_v4 }
 0x840   : > { %15874 = vmatmul.mubr.msk.f32.vlgmr.msra.gmra.mrb[6].mxu0 %vm5443_vm1, %v15872_v20 }
 0x841   : > { %16187 = vmatpush1.bf16.msra.mxu0 %v16186_v23  ;;  %7719 = vmatprep.mubr.f32.mxu0 %v18678_v4 }
 0x842   : > { %16189 = vmatprep.subr.bf16.mxu0 %v16188_v25  ;;  %v10803_v25 = vld [vmem:[%s20015_s30] sm:$0xff] }
 0x844   : > { %15875 = vmatmul.mubr.msk.f32.gmra.mrb[8].mxu0 %vm5443_vm1, %v15873_v27  ;;  %v10804_v27 = vld [vmem:[%s20015_s30 + $0x8] sm:$0xff] }
 0x845   : > { %7817 = vmatprep.mubr.f32.mxu0 %v18678_v4 }
 0x848   : > { %15878 = vmatmul.mubr.msk.f32.vlgmr.msra.gmra.mrb[6].mxu0 %vm5443_vm1, %v15876_v30 }
 0x849   : > { %16191 = vmatpush1.bf16.msra.mxu0 %v16190_v33  ;;  %7823 = vmatprep.mubr.f32.mxu0 %v18678_v4 }
 0x84a   : > { %16193 = vmatprep.subr.bf16.mxu0 %v16192_v35 }
 0x84c   : > { %15879 = vmatmul.mubr.msk.f32.gmra.mrb[8].mxu0 %vm5443_vm1, %v15877_v37 }
 0x84d   : > { %7921 = vmatprep.mubr.f32.mxu0 %v18678_v4 }
 0x850   : > { %15882 = vmatmul.mubr.msk.f32.vlgmr.msra.gmra.mrb[6].mxu0 %vm5443_vm1, %v15880_v42 }
 0x851   : > { %16195 = vmatpush1.bf16.msra.mxu0 %v16194_v48  ;;  %7927 = vmatprep.mubr.f32.mxu0 %v18678_v4 }
 0x852   : > { %16197 = vmatprep.subr.bf16.mxu0 %v16196_v50 }
 0x854   : > { %15883 = vmatmul.mubr.msk.f32.gmra.mrb[8].mxu0 %vm5443_vm1, %v15881_v51 }
 0x855   : > { %8025 = vmatprep.mubr.f32.mxu0 %v18678_v4 }
 0x858   : > { %15886 = vmatmul.mubr.msk.f32.vlgmr.msra.gmra.mrb[6].mxu0 %vm5443_vm1, %v15884_v53 }
 0x859   : > { %16199 = vmatpush1.bf16.msra.mxu0 %v16198_v55  ;;  %8031 = vmatprep.mubr.f32.mxu0 %v18678_v4 }
 0x85c   : > { %15887 = vmatmul.mubr.msk.f32.gmra.mrb[8].mxu0 %vm5443_vm1, %v15885_v56 }
 0x85d   : > { %8129 = vmatprep.mubr.f32.mxu0 %v18678_v4 }
 0x860   : > { %15890 = vmatmul.mubr.msk.f32.vlgmr.msra.gmra.mrb[6].mxu0 %vm5443_vm1, %v15888_v57 }
 0x861   : > { %8135 = vmatprep.mubr.f32.mxu0 %v18678_v4 }
 0x864   : > { %15891 = vmatmul.mubr.msk.f32.gmra.mrb[8].mxu0 %vm5443_vm1, %v15889_v58 }
 0x865   : > { %10885 = vmatprep.mubr.f32.mxu0 %v18678_v4 }
 0x933   : > { %v8131_v60 = vpop.f32.mrb[6].mxu0 }
 0x934   : > { %v8158_v61 = vadd.f32 %v8151_v59, %v8131_v60  ;;  %v8133_v62 = vpop.f32.mrb[7].mxu0 }
 0x935   : > { %v8159_v63 = vadd.f32 %v8151_v59, %v8133_v62 }
 0x936   : > { %v8162_v1 = vsel %vm19915_vm10, %v8158_v61, 0.0 }
 0x937   : > { %8166 = vst [vmem:[%s718_s13] sm:$0xff] %v8162_v1  ;;  %v8163_v2 = vsel %vm19914_vm11, %v8159_v63, 0.0  ;;  %8174 = vrot.lane.b32.xlu1 %v8162_v1, %s19958_s7  ;;  %v8137_v0 = vpop.f32.mrb[8].mxu0 }
 0x938   : > { %8167 = vst.msk [vmem:[%s718_s13 + $0x8] sm:$0xff] %vm5443_vm1, %v8163_v2  ;;  %v8160_v9 = vadd.f32 %v8156_v3, %v8137_v0  ;;  %8176 = vrot.lane.b32.xlu0 %v8163_v2, %s19958_s7  ;;  %v8139_v5 = vpop.f32.mrb[9].mxu0 }
 0x939   : > { %v8161_v10 = vadd.f32 %v8156_v3, %v8139_v5 }
 0x93a   : > { %v8164_v6 = vsel %vm19915_vm10, %v8160_v9, 0.0 }
 0x93b   : > { %8168 = vst [vmem:[%s718_s13 + $0x10] sm:$0xff] %v8164_v6  ;;  %v8165_v11 = vsel %vm19914_vm11, %v8161_v10, 0.0  ;;  %8178 = vrot.lane.b32.xlu1 %v8164_v6, %s19958_s7 }
 0x93c   : > { %8169 = vst.msk [vmem:[%s718_s13 + $0x18] sm:$0xff] %vm5443_vm1, %v8165_v11  ;;  %8180 = vrot.lane.b32.xlu0 %v8165_v11, %s19958_s7  ;;  %s20143_s13 = sld [smem:[#allocation5_spill]] }
 0x9a9   : > { %v8175_v12 = vpop.permute.xlu1 %8174 }
 0x9aa   : > { %8188 = vst.msk [vmem:[#allocation2] sm:$0xff] %vm2972_vm13, %v8175_v12  ;;  %v8177_v13 = vpop.permute.xlu0 %8176 }
 0x9ab   : > { %v8182_v14 = vsel %vm2968_vm14, %v8175_v12, %v8177_v13 }
 0x9ac   : > { %8189 = vst.msk [vmem:[#allocation2 + $0x8] sm:$0xff] %vm2974_vm15, %v8182_v14 }
 0x9ad   : > { %v8179_v15 = vpop.permute.xlu1 %8178 }
 0x9ae   : > { %8190 = vst.msk [vmem:[#allocation2 + $0x10] sm:$0xff] %vm2972_vm13, %v8179_v15  ;;  %v8181_v16 = vpop.permute.xlu0 %8180 }
 0x9af   : > { %v8183_v17 = vsel %vm2968_vm14, %v8179_v15, %v8181_v16 }
 0x9b0   : > { %8191 = vst.msk [vmem:[#allocation2 + $0x18] sm:$0xff] %vm2974_vm15, %v8183_v17 }
 0x9b1   : > { %v18902_v18 = vld [vmem:[#allocation2] sm:$0xff] }
 0x9b3   : > { %v18904_v19 = vld [vmem:[#allocation2 + $0x8] sm:$0xff] }
 0x9b4   : > { %v17107_v20 = vpack.i.bf16 %v18904_v19, %v18902_v18 }
 0x9b5   : > { %v18909_v21 = vld [vmem:[#allocation2 + $0x10] sm:$0xff] }
 0x9b6   : > { %17108 = vrot.lane.b32.xlu1 %v17107_v20, %s19959_s3  ;;  %v16206_v42 = vpack.c.bf16 %v18909_v21, %v18902_v18 }
 0x9b7   : > { %v18911_v22 = vld [vmem:[#allocation2 + $0x18] sm:$0xff] }
 0x9b8   : > { %v17112_v23 = vpack.i.bf16 %v18911_v22, %v18909_v21  ;;  %v16204_v39 = vpack.c.bf16 %v18911_v22, %v18904_v19 }
 0x9ba   : > { %17118 = vrot.lane.b32.xlu1 %v17107_v20, %s19960_s4  ;;  %17113 = vrot.lane.b32.xlu0 %v17112_v23, %s19959_s3 }
 0x9be   : > { %17128 = vrot.lane.b32.xlu1 %v17107_v20, %s19961_s2  ;;  %17123 = vrot.lane.b32.xlu0 %v17112_v23, %s19960_s4 }
 0x9c2   : > { %17138 = vrot.lane.b32.xlu1 %v17107_v20, %s19962_s27  ;;  %17133 = vrot.lane.b32.xlu0 %v17112_v23, %s19961_s2 }
 0x9c6   : > { %17148 = vrot.lane.b32.xlu1 %v17107_v20, %s19963_s5  ;;  %17143 = vrot.lane.b32.xlu0 %v17112_v23, %s19962_s27 }
 0x9ca   : > { %17158 = vrot.lane.b32.xlu1 %v17107_v20, %s19964_s24  ;;  %17153 = vrot.lane.b32.xlu0 %v17112_v23, %s19963_s5 }
 0x9ce   : > { %17168 = vrot.lane.b32.xlu1 %v17107_v20, %s19950_s25  ;;  %17163 = vrot.lane.b32.xlu0 %v17112_v23, %s19964_s24 }
 0x9d2   : > { %17178 = vrot.lane.b32.xlu1 %v17107_v20, %s19965_s28  ;;  %17173 = vrot.lane.b32.xlu0 %v17112_v23, %s19950_s25 }
 0x9d6   : > { %17188 = vrot.lane.b32.xlu1 %v17107_v20, %s19966_s0  ;;  %17183 = vrot.lane.b32.xlu0 %v17112_v23, %s19965_s28 }
 0x9da   : > { %17198 = vrot.lane.b32.xlu1 %v17107_v20, %s19951_s29  ;;  %17193 = vrot.lane.b32.xlu0 %v17112_v23, %s19966_s0 }
 0x9de   : > { %17208 = vrot.lane.b32.xlu1 %v17107_v20, %s19952_s26  ;;  %17203 = vrot.lane.b32.xlu0 %v17112_v23, %s19951_s29 }
 0x9e2   : > { %17218 = vrot.lane.b32.xlu1 %v17107_v20, %s19953_s1  ;;  %17213 = vrot.lane.b32.xlu0 %v17112_v23, %s19952_s26 }
 0x9e6   : > { %17228 = vrot.lane.b32.xlu1 %v17107_v20, %s19967_s6  ;;  %17223 = vrot.lane.b32.xlu0 %v17112_v23, %s19953_s1 }
 0x9ea   : > { %17238 = vrot.lane.b32.xlu1 %v17107_v20, %s19968_s8  ;;  %17233 = vrot.lane.b32.xlu0 %v17112_v23, %s19967_s6 }
 0x9ee   : > { %17248 = vrot.lane.b32.xlu1 %v17107_v20, %s19969_s9  ;;  %17243 = vrot.lane.b32.xlu0 %v17112_v23, %s19968_s8 }
 0x9f2   : > { %17258 = vrot.lane.b32.xlu1 %v17107_v20, %s19970_s23  ;;  %17253 = vrot.lane.b32.xlu0 %v17112_v23, %s19969_s9 }
 0x9f6   : > { %17268 = vrot.lane.b32.xlu1 %v17107_v20, %s19971_s20  ;;  %17263 = vrot.lane.b32.xlu0 %v17112_v23, %s19970_s23 }
 0x9fa   : > { %17278 = vrot.lane.b32.xlu1 %v17107_v20, %s19972_s21  ;;  %17273 = vrot.lane.b32.xlu0 %v17112_v23, %s19971_s20 }
 0x9fe   : > { %17288 = vrot.lane.b32.xlu1 %v17107_v20, %s20010_s11  ;;  %17283 = vrot.lane.b32.xlu0 %v17112_v23, %s19972_s21 }
 0xa02   : > { %17298 = vrot.lane.b32.xlu1 %v17107_v20, %s20011_s12  ;;  %17293 = vrot.lane.b32.xlu0 %v17112_v23, %s20010_s11 }
 0xa06   : > { %17308 = vrot.lane.b32.xlu1 %v17107_v20, %s19975_s19  ;;  %17303 = vrot.lane.b32.xlu0 %v17112_v23, %s20011_s12  ;;  %s20049_s12 = sld [smem:[#allocation20_spill]] }
 0xa0a   : > { %17318 = vrot.lane.b32.xlu1 %v17107_v20, %s19976_s17  ;;  %17313 = vrot.lane.b32.xlu0 %v17112_v23, %s19975_s19  ;;  %s20016_s19 = sld [smem:[#allocation18_spill]] }
 0xa0e   : > { %17328 = vrot.lane.b32.xlu1 %v17107_v20, %s20012_s14  ;;  %17323 = vrot.lane.b32.xlu0 %v17112_v23, %s19976_s17  ;;  %s20056_s17 = sld [smem:[#allocation22_spill]] }
 0xa10   : > { %v15892_v40 = vld [vmem:[%s20016_s19 + $0x10] sm:$0xff]  ;;  %v15893_v49 = vld [vmem:[%s20016_s19 + $0x18] sm:$0xff]  ;;  %v8196_v53 = vld [vmem:[%s20016_s19] sm:$0xff] }
 0xa11   : > { %v8197_v60 = vld [vmem:[%s20016_s19 + $0x8] sm:$0xff]  ;;  %v15898_v3 = vld [vmem:[%s20016_s19 + $0x20] sm:$0xff]  ;;  %v15902_v16 = vld [vmem:[%s20016_s19 + $0x30] sm:$0xff] }
 0xa12   : > { %17338 = vrot.lane.b32.xlu1 %v17107_v20, %s20013_s15  ;;  %17333 = vrot.lane.b32.xlu0 %v17112_v23, %s20012_s14  ;;  %v15899_v11 = vld [vmem:[%s20016_s19 + $0x28] sm:$0xff] }
 0xa16   : > { %10781 = vperm.xlu1 %16866, %v10777_v24   ;;  %17343 = vrot.lane.b32.xlu0 %v17112_v23, %s20013_s15  ;;  %v15903_v23 = vld [vmem:[%s20016_s19 + $0x38] sm:$0xff] }
 0xa1a   : > { %10807 = vperm.xlu1 %16866, %v10803_v25   ;;  %10786 = vperm.xlu0 %16865, %v10778_v26  }
 0xa1e   : > { %10812 = vperm.xlu0 %16865, %v10804_v27  }
 0xa28   : > { %v17109_v28 = vpop.permute.xlu1 %17108 }
 0xa29   : > { %v17111_v7 = vunpack.i.h.bf16 %v17109_v28  ;;  %v17110_v29 = vunpack.i.l.bf16 %v17109_v28  ;;  %v15906_v28 = vld [vmem:[%s20016_s19 + $0x40] sm:$0xff] }
 0xa2b   : > { %v8213_v32 = vsel %vm746_vm0, %v17110_v29, %v17111_v7 }
 0xa2c   : > { %v17114_v8 = vpop.permute.xlu0 %17113  ;;  %v17119_v35 = vpop.permute.xlu1 %17118 }
 0xa2d   : > { %v17116_v30 = vunpack.i.h.bf16 %v17114_v8  ;;  %v17115_v31 = vunpack.i.l.bf16 %v17114_v8  ;;  %v17121_v41 = vunpack.i.h.bf16 %v17119_v35  ;;  %v17120_v50 = vunpack.i.l.bf16 %v17119_v35 }
 0xa2f   : > { %v8214_v33 = vsel %vm746_vm0, %v17115_v31, %v17116_v30  ;;  %v16200_v34 = vpack.c.bf16 %v17116_v30, %v17111_v7  ;;  %v8396_v54 = vsel %vm905_vm2, %v17120_v50, %v17121_v41 }
 0xa30   : > { %v17124_v36 = vpop.permute.xlu0 %17123  ;;  %v16202_v37 = vpack.c.bf16 %v8214_v33, %v8213_v32  ;;  %v17129_v51 = vpop.permute.xlu1 %17128  ;;  %v15907_v33 = vld [vmem:[%s20016_s19 + $0x48] sm:$0xff] }
 0xa31   : > { %v17126_v38 = vunpack.i.h.bf16 %v17124_v36  ;;  %16201 = vmatprep.subr.bf16.mxu1 %v16200_v34  ;;  %v17125_v46 = vunpack.i.l.bf16 %v17124_v36  ;;  %v17131_v55 = vunpack.i.h.bf16 %v17129_v51  ;;  %v17130_v61 = vunpack.i.l.bf16 %v17129_v51 }
 0xa32   : > { %16203 = vmatpush1.bf16.msra.mxu1 %v16202_v37 }
 0xa33   : > { %16205 = vmatprep.subr.bf16.mxu1 %v16204_v39  ;;  %v16208_v47 = vpack.c.bf16 %v17126_v38, %v17121_v41  ;;  %v8397_v52 = vsel %vm905_vm2, %v17125_v46, %v17126_v38  ;;  %v8500_v2 = vsel %vm3262_vm9, %v17130_v61, %v17131_v55  ;;  %v15910_v38 = vld [vmem:[%s20016_s19 + $0x50] sm:$0xff] }
 0xa34   : > { %v17134_v48 = vpop.permute.xlu0 %17133  ;;  %v16210_v56 = vpack.c.bf16 %v8397_v52, %v8396_v54  ;;  %v17139_v62 = vpop.permute.xlu1 %17138 }
 0xa35   : > { %15894 = vmatmul.mubr.msk.f32.vlgmr.msra.gmra.mrb[6].mxu1 %vm5443_vm1, %v15892_v40  ;;  %v17136_v44 = vunpack.i.h.bf16 %v17134_v48  ;;  %v17135_v57 = vunpack.i.l.bf16 %v17134_v48  ;;  %v17141_v0 = vunpack.i.h.bf16 %v17139_v62  ;;  %v17140_v12 = vunpack.i.l.bf16 %v17139_v62  ;;  %v15911_v48 = vld [vmem:[%s20016_s19 + $0x58] sm:$0xff] }
 0xa36   : > { %16207 = vmatpush1.bf16.msra.mxu1 %v16206_v42  ;;  %8295 = vmatprep.mubr.f32.mxu1 %v18678_v4 }
 0xa37   : > { %16209 = vmatprep.subr.bf16.mxu1 %v16208_v47  ;;  %v16212_v58 = vpack.c.bf16 %v17136_v44, %v17131_v55  ;;  %v8501_v63 = vsel %vm3262_vm9, %v17135_v57, %v17136_v44  ;;  %v8604_v17 = vsel %vm20018_vm3, %v17140_v12, %v17141_v0  ;;  %v15914_v44 = vld [vmem:[%s20016_s19 + $0x60] sm:$0xff] }
 0xa38   : > { %v17144_v59 = vpop.permute.xlu0 %17143  ;;  %v16214_v9 = vpack.c.bf16 %v8501_v63, %v8500_v2  ;;  %v17149_v13 = vpop.permute.xlu1 %17148 }
 0xa39   : > { %15895 = vmatmul.mubr.msk.f32.gmra.mrb[8].mxu1 %vm5443_vm1, %v15893_v49  ;;  %v17146_v1 = vunpack.i.h.bf16 %v17144_v59  ;;  %v17145_v5 = vunpack.i.l.bf16 %v17144_v59  ;;  %v17151_v18 = vunpack.i.h.bf16 %v17149_v13  ;;  %v17150_v24 = vunpack.i.l.bf16 %v17149_v13  ;;  %v15915_v59 = vld [vmem:[%s20016_s19 + $0x68] sm:$0xff] }
 0xa3a   : > { %8372 = vmatprep.mubr.f32.mxu1 %v18678_v4 }
 0xa3b   : > { %v16216_v10 = vpack.c.bf16 %v17146_v1, %v17141_v0  ;;  %v8605_v14 = vsel %vm20017_vm12, %v17145_v5, %v17146_v1  ;;  %vm20019_vm12 = vcmask 949248   ;;  %v15918_v1 = vld [vmem:[%s20016_s19 + $0x70] sm:$0xff] }
 0xa3c   : > { %v17154_v6 = vpop.permute.xlu0 %17153  ;;  %v16218_v19 = vpack.c.bf16 %v8605_v14, %v8604_v17  ;;  %v17159_v25 = vpop.permute.xlu1 %17158  ;;  %vm20020_vm3 = vmmov %vm20019_vm12 }
 0xa3d   : > { %15896 = vmatmul.mubr.msk.f32.vlgmr.msra.gmra.mrb[6].mxu1 %vm5443_vm1, %v8196_v53  ;;  %v17156_v15 = vunpack.i.h.bf16 %v17154_v6  ;;  %v17155_v20 = vunpack.i.l.bf16 %v17154_v6  ;;  %v8708_v7 = vsel %vm20020_vm3, %v17150_v24, %v17151_v18  ;;  %v17161_v29 = vunpack.i.h.bf16 %v17159_v25  ;;  %v15919_v6 = vld [vmem:[%s20016_s19 + $0x78] sm:$0xff] }
 0xa3e   : > { %16211 = vmatpush1.bf16.msra.mxu1 %v16210_v56  ;;  %8378 = vmatprep.mubr.f32.mxu1 %v18678_v4  ;;  %v17160_v34 = vunpack.i.l.bf16 %v17159_v25 }
 0xa3f   : > { %16213 = vmatprep.subr.bf16.mxu1 %v16212_v58  ;;  %v16220_v21 = vpack.c.bf16 %v17156_v15, %v17151_v18  ;;  %v8709_v26 = vsel %vm20019_vm12, %v17155_v20, %v17156_v15  ;;  %vm20021_vm12 = vcmask 941056   ;;  %v15922_v15 = vld [vmem:[%s20016_s19 + $0x80] sm:$0xff] }
 0xa40   : > { %v17164_v22 = vpop.permute.xlu0 %17163  ;;  %v16222_v8 = vpack.c.bf16 %v8709_v26, %v8708_v7  ;;  %v17169_v35 = vpop.permute.xlu1 %17168  ;;  %vm20022_vm3 = vmmov %vm20021_vm12 }
 0xa41   : > { %15897 = vmatmul.mubr.msk.f32.gmra.mrb[8].mxu1 %vm5443_vm1, %v8197_v60  ;;  %v17166_v27 = vunpack.i.h.bf16 %v17164_v22  ;;  %v17165_v30 = vunpack.i.l.bf16 %v17164_v22  ;;  %v8812_v39 = vsel %vm20022_vm3, %v17160_v34, %v17161_v29  ;;  %v17171_v40 = vunpack.i.h.bf16 %v17169_v35  ;;  %v15923_v22 = vld [vmem:[%s20016_s19 + $0x88] sm:$0xff] }
 0xa42   : > { %8472 = vmatprep.mubr.f32.mxu1 %v18678_v4  ;;  %v17170_v49 = vunpack.i.l.bf16 %v17169_v35 }
 0xa43   : > { %v16224_v31 = vpack.c.bf16 %v17166_v27, %v17161_v29  ;;  %v8813_v36 = vsel %vm20021_vm12, %v17165_v30, %v17166_v27  ;;  %vm20023_vm12 = vcmask 932864   ;;  %v15926_v27 = vld [vmem:[%s20016_s19 + $0x90] sm:$0xff] }
 0xa44   : > { %v17174_v32 = vpop.permute.xlu0 %17173  ;;  %v16226_v41 = vpack.c.bf16 %v8813_v36, %v8812_v39  ;;  %v17179_v50 = vpop.permute.xlu1 %17178  ;;  %vm20024_vm3 = vmmov %vm20023_vm12 }
 0xa45   : > { %15900 = vmatmul.mubr.msk.f32.vlgmr.msra.gmra.mrb[6].mxu1 %vm5443_vm1, %v15898_v3  ;;  %v17176_v37 = vunpack.i.h.bf16 %v17174_v32  ;;  %v17175_v42 = vunpack.i.l.bf16 %v17174_v32  ;;  %v8916_v53 = vsel %vm20024_vm3, %v17170_v49, %v17171_v40  ;;  %v17181_v54 = vunpack.i.h.bf16 %v17179_v50  ;;  %v15927_v32 = vld [vmem:[%s20016_s19 + $0x98] sm:$0xff] }
 0xa46   : > { %16215 = vmatpush1.bf16.msra.mxu1 %v16214_v9  ;;  %8478 = vmatprep.mubr.f32.mxu1 %v18678_v4  ;;  %v17180_v60 = vunpack.i.l.bf16 %v17179_v50 }
 0xa47   : > { %16217 = vmatprep.subr.bf16.mxu1 %v16216_v10  ;;  %v16228_v46 = vpack.c.bf16 %v17176_v37, %v17171_v40  ;;  %v8917_v51 = vsel %vm20023_vm12, %v17175_v42, %v17176_v37  ;;  %vm20025_vm12 = vcmask 842752   ;;  %v15930_v37 = vld [vmem:[%s20016_s19 + $0xa0] sm:$0xff] }
 0xa48   : > { %v17184_v47 = vpop.permute.xlu0 %17183  ;;  %v16230_v55 = vpack.c.bf16 %v8917_v51, %v8916_v53  ;;  %v17189_v61 = vpop.permute.xlu1 %17188  ;;  %v9020_v3 = vsel %vm3749_vm4, %v17180_v60, %v17181_v54  ;;  %vm20026_vm3 = vmmov %vm20025_vm12 }
 0xa49   : > { %15901 = vmatmul.mubr.msk.f32.gmra.mrb[8].mxu1 %vm5443_vm1, %v15899_v11  ;;  %v17186_v52 = vunpack.i.h.bf16 %v17184_v47  ;;  %v17185_v56 = vunpack.i.l.bf16 %v17184_v47  ;;  %v17191_v2 = vunpack.i.h.bf16 %v17189_v61  ;;  %v17190_v11 = vunpack.i.l.bf16 %v17189_v61  ;;  %v15931_v47 = vld [vmem:[%s20016_s19 + $0xa8] sm:$0xff] }
 0xa4a   : > { %8576 = vmatprep.mubr.f32.mxu1 %v18678_v4 }
 0xa4b   : > { %v16232_v57 = vpack.c.bf16 %v17186_v52, %v17181_v54  ;;  %v9021_v62 = vsel %vm3749_vm4, %v17185_v56, %v17186_v52  ;;  %v15934_v52 = vld [vmem:[%s20016_s19 + $0xb0] sm:$0xff] }
 0xa4c   : > { %v17194_v58 = vpop.permute.xlu0 %17193  ;;  %v16234_v0 = vpack.c.bf16 %v9021_v62, %v9020_v3  ;;  %v17199_v12 = vpop.permute.xlu1 %17198 }
 0xa4d   : > { %15904 = vmatmul.mubr.msk.f32.vlgmr.msra.gmra.mrb[6].mxu1 %vm5443_vm1, %v15902_v16  ;;  %v17196_v63 = vunpack.i.h.bf16 %v17194_v58  ;;  %v17195_v9 = vunpack.i.l.bf16 %v17194_v58  ;;  %v9124_v16 = vsel %vm3847_vm5, %v17190_v11, %v17191_v2  ;;  %v17201_v17 = vunpack.i.h.bf16 %v17199_v12  ;;  %v15935_v58 = vld [vmem:[%s20016_s19 + $0xb8] sm:$0xff] }
 0xa4e   : > { %16219 = vmatpush1.bf16.msra.mxu1 %v16218_v19  ;;  %8582 = vmatprep.mubr.f32.mxu1 %v18678_v4 }
 0xa4f   : > { %16221 = vmatprep.subr.bf16.mxu1 %v16220_v21  ;;  %v16236_v5 = vpack.c.bf16 %v17196_v63, %v17191_v2  ;;  %v9125_v13 = vsel %vm3847_vm5, %v17195_v9, %v17196_v63  ;;  %v15938_v63 = vld [vmem:[%s20016_s19 + $0xc0] sm:$0xff] }
 0xa50   : > { %v17204_v10 = vpop.permute.xlu0 %17203  ;;  %v16238_v18 = vpack.c.bf16 %v9125_v13, %v9124_v16  ;;  %v17209_v24 = vpop.permute.xlu1 %17208 }
 0xa51   : > { %15905 = vmatmul.mubr.msk.f32.gmra.mrb[8].mxu1 %vm5443_vm1, %v15903_v23  ;;  %v17206_v14 = vunpack.i.h.bf16 %v17204_v10  ;;  %v17205_v19 = vunpack.i.l.bf16 %v17204_v10  ;;  %v17200_v23 = vunpack.i.l.bf16 %v17199_v12  ;;  %v17211_v7 = vunpack.i.h.bf16 %v17209_v24  ;;  %v15939_v10 = vld [vmem:[%s20016_s19 + $0xc8] sm:$0xff] }
 0xa52   : > { %8680 = vmatprep.mubr.f32.mxu1 %v18678_v4 }
 0xa53   : > { %v16240_v20 = vpack.c.bf16 %v17206_v14, %v17201_v17  ;;  %v9229_v25 = vsel %vm1249_vm6, %v17205_v19, %v17206_v14  ;;  %v15942_v14 = vld [vmem:[%s20016_s19 + $0xd0] sm:$0xff] }
 0xa54   : > { %v17214_v21 = vpop.permute.xlu0 %17213  ;;  %v17219_v34 = vpop.permute.xlu1 %17218 }
 0xa55   : > { %15908 = vmatmul.mubr.msk.f32.vlgmr.msra.gmra.mrb[6].mxu1 %vm5443_vm1, %v15906_v28  ;;  %v17216_v26 = vunpack.i.h.bf16 %v17214_v21  ;;  %v9228_v28 = vsel %vm1249_vm6, %v17200_v23, %v17201_v17  ;;  %v17221_v39 = vunpack.i.h.bf16 %v17219_v34 }
 0xa56   : > { %16223 = vmatpush1.bf16.msra.mxu1 %v16222_v8  ;;  %8686 = vmatprep.mubr.f32.mxu1 %v18678_v4  ;;  %v16242_v29 = vpack.c.bf16 %v9229_v25, %v9228_v28  ;;  %v17215_v8 = vunpack.i.l.bf16 %v17214_v21  ;;  %v15943_v21 = vld [vmem:[%s20016_s19 + $0xd8] sm:$0xff] }
 0xa57   : > { %16225 = vmatprep.subr.bf16.mxu1 %v16224_v31  ;;  %v16244_v30 = vpack.c.bf16 %v17216_v26, %v17211_v7 }
 0xa58   : > { %v17224_v31 = vpop.permute.xlu0 %17223  ;;  %v9333_v35 = vsel %vm20025_vm12, %v17215_v8, %v17216_v26  ;;  %v17229_v49 = vpop.permute.xlu1 %17228  ;;  %vm20027_vm12 = vcmask 834560   ;;  %v15946_v26 = vld [vmem:[%s20016_s19 + $0xe0] sm:$0xff] }
 0xa59   : > { %15909 = vmatmul.mubr.msk.f32.gmra.mrb[8].mxu1 %vm5443_vm1, %v15907_v33  ;;  %v17210_v33 = vunpack.i.l.bf16 %v17209_v24  ;;  %v17226_v36 = vunpack.i.h.bf16 %v17224_v31  ;;  %v17231_v53 = vunpack.i.h.bf16 %v17229_v49 }
 0xa5a   : > { %8784 = vmatprep.mubr.f32.mxu1 %v18678_v4 }
 0xa5b   : > { %v16248_v42 = vpack.c.bf16 %v17226_v36, %v17221_v39 }
 0xa5c   : > { %v17239_v60 = vpop.permute.xlu1 %17238 }
 0xa5d   : > { %15912 = vmatmul.mubr.msk.f32.vlgmr.msra.gmra.mrb[6].mxu1 %vm5443_vm1, %v15910_v38  ;;  %v9332_v38 = vsel %vm20026_vm3, %v17210_v33, %v17211_v7  ;;  %vm20028_vm3 = vmmov %vm20027_vm12  ;;  %v17241_v3 = vunpack.i.h.bf16 %v17239_v60 }
 0xa5e   : > { %16227 = vmatpush1.bf16.msra.mxu1 %v16226_v41  ;;  %8790 = vmatprep.mubr.f32.mxu1 %v18678_v4  ;;  %v16246_v40 = vpack.c.bf16 %v9333_v35, %v9332_v38  ;;  %v17225_v41 = vunpack.i.l.bf16 %v17224_v31  ;;  %v15947_v31 = vld [vmem:[%s20016_s19 + $0xe8] sm:$0xff] }
 0xa5f   : > { %16229 = vmatprep.subr.bf16.mxu1 %v16228_v46  ;;  %v17234_v46 = vpop.permute.xlu0 %17233 }
 0xa60   : > { %v9437_v50 = vsel %vm20027_vm12, %v17225_v41, %v17226_v36  ;;  %v17236_v51 = vunpack.i.h.bf16 %v17234_v46  ;;  %vm20029_vm12 = vcmask 826368   ;;  %v17249_v11 = vpop.permute.xlu1 %17248  ;;  %v15950_v36 = vld [vmem:[%s20016_s19 + $0xf0] sm:$0xff] }
 0xa61   : > { %15913 = vmatmul.mubr.msk.f32.gmra.mrb[8].mxu1 %vm5443_vm1, %v15911_v48  ;;  %v17220_v48 = vunpack.i.l.bf16 %v17219_v34  ;;  %v17251_v16 = vunpack.i.h.bf16 %v17249_v11 }
 0xa62   : > { %8888 = vmatprep.mubr.f32.mxu1 %v18678_v4  ;;  %v16252_v56 = vpack.c.bf16 %v17236_v51, %v17231_v53 }
 0xa64   : > { %v17259_v23 = vpop.permute.xlu1 %17258 }
 0xa65   : > { %15916 = vmatmul.mubr.msk.f32.vlgmr.msra.gmra.mrb[6].mxu1 %vm5443_vm1, %v15914_v44  ;;  %v9436_v44 = vsel %vm20028_vm3, %v17220_v48, %v17221_v39  ;;  %vm20030_vm3 = vmmov %vm20029_vm12  ;;  %v17261_v28 = vunpack.i.h.bf16 %v17259_v23 }
 0xa66   : > { %16231 = vmatpush1.bf16.msra.mxu1 %v16230_v55  ;;  %8894 = vmatprep.mubr.f32.mxu1 %v18678_v4  ;;  %v16250_v54 = vpack.c.bf16 %v9437_v50, %v9436_v44  ;;  %v17235_v55 = vunpack.i.l.bf16 %v17234_v46  ;;  %v15951_v46 = vld [vmem:[%s20016_s19 + $0xf8] sm:$0xff] }
 0xa67   : > { %16233 = vmatprep.subr.bf16.mxu1 %v16232_v57  ;;  %v17244_v57 = vpop.permute.xlu0 %17243 }
 0xa68   : > { %v9541_v61 = vsel %vm20029_vm12, %v17235_v55, %v17236_v51  ;;  %v17246_v62 = vunpack.i.h.bf16 %v17244_v57  ;;  %vm20031_vm12 = vcmask 818176   ;;  %v17269_v33 = vpop.permute.xlu1 %17268  ;;  %v15954_v51 = vld [vmem:[%s20016_s19 + $0x100] sm:$0xff] }
 0xa69   : > { %15917 = vmatmul.mubr.msk.f32.gmra.mrb[8].mxu1 %vm5443_vm1, %v15915_v59  ;;  %v17230_v59 = vunpack.i.l.bf16 %v17229_v49  ;;  %v17271_v38 = vunpack.i.h.bf16 %v17269_v33 }
 0xa6a   : > { %8992 = vmatprep.mubr.f32.mxu1 %v18678_v4  ;;  %v16256_v9 = vpack.c.bf16 %v17246_v62, %v17241_v3 }
 0xa6c   : > { %v17279_v48 = vpop.permute.xlu1 %17278 }
 0xa6d   : > { %15920 = vmatmul.mubr.msk.f32.vlgmr.msra.gmra.mrb[6].mxu1 %vm5443_vm1, %v15918_v1  ;;  %v9540_v1 = vsel %vm20030_vm3, %v17230_v59, %v17231_v53  ;;  %vm20032_vm3 = vmmov %vm20031_vm12  ;;  %v17281_v44 = vunpack.i.h.bf16 %v17279_v48 }
 0xa6e   : > { %16235 = vmatpush1.bf16.msra.mxu1 %v16234_v0  ;;  %8998 = vmatprep.mubr.f32.mxu1 %v18678_v4  ;;  %v16254_v2 = vpack.c.bf16 %v9541_v61, %v9540_v1  ;;  %v17245_v0 = vunpack.i.l.bf16 %v17244_v57  ;;  %v15955_v57 = vld [vmem:[%s20016_s19 + $0x108] sm:$0xff] }
 0xa6f   : > { %16237 = vmatprep.subr.bf16.mxu1 %v16236_v5  ;;  %v17254_v5 = vpop.permute.xlu0 %17253 }
 0xa70   : > { %v9645_v12 = vsel %vm20031_vm12, %v17245_v0, %v17246_v62  ;;  %v17256_v13 = vunpack.i.h.bf16 %v17254_v5  ;;  %vm20033_vm12 = vcmask 752640   ;;  %v17289_v59 = vpop.permute.xlu1 %17288  ;;  %v15958_v62 = vld [vmem:[%s20016_s19 + $0x110] sm:$0xff] }
 0xa71   : > { %15921 = vmatmul.mubr.msk.f32.gmra.mrb[8].mxu1 %vm5443_vm1, %v15919_v6  ;;  %v17240_v6 = vunpack.i.l.bf16 %v17239_v60  ;;  %v17291_v1 = vunpack.i.h.bf16 %v17289_v59 }
 0xa72   : > { %9096 = vmatprep.mubr.f32.mxu1 %v18678_v4  ;;  %v16260_v19 = vpack.c.bf16 %v17256_v13, %v17251_v16 }
 0xa75   : > { %15924 = vmatmul.mubr.msk.f32.vlgmr.msra.gmra.mrb[6].mxu1 %vm5443_vm1, %v15922_v15  ;;  %v9644_v15 = vsel %vm20032_vm3, %v17240_v6, %v17241_v3  ;;  %vm20034_vm3 = vmmov %vm20033_vm12  ;;  %v17299_v6 = vpop.permute.xlu1 %17298 }
 0xa76   : > { %16239 = vmatpush1.bf16.msra.mxu1 %v16238_v18  ;;  %9102 = vmatprep.mubr.f32.mxu1 %v18678_v4  ;;  %v16258_v17 = vpack.c.bf16 %v9645_v12, %v9644_v15  ;;  %v17255_v18 = vunpack.i.l.bf16 %v17254_v5  ;;  %v15959_v5 = vld [vmem:[%s20016_s19 + $0x118] sm:$0xff]  ;;  %v17301_v15 = vunpack.i.h.bf16 %v17299_v6 }
 0xa77   : > { %16241 = vmatprep.subr.bf16.mxu1 %v16240_v20  ;;  %v17264_v20 = vpop.permute.xlu0 %17263 }
 0xa78   : > { %v9749_v24 = vsel %vm20033_vm12, %v17255_v18, %v17256_v13  ;;  %v17266_v25 = vunpack.i.h.bf16 %v17264_v20  ;;  %vm20035_vm12 = vcmask 744448   ;;  %v15962_v13 = vld [vmem:[%s20016_s19 + $0x120] sm:$0xff] }
 0xa79   : > { %15925 = vmatmul.mubr.msk.f32.gmra.mrb[8].mxu1 %vm5443_vm1, %v15923_v22  ;;  %v17250_v22 = vunpack.i.l.bf16 %v17249_v11 }
 0xa7a   : > { %9200 = vmatprep.mubr.f32.mxu1 %v18678_v4  ;;  %v16264_v8 = vpack.c.bf16 %v17266_v25, %v17261_v28 }
 0xa7d   : > { %15928 = vmatmul.mubr.msk.f32.vlgmr.msra.gmra.mrb[6].mxu1 %vm5443_vm1, %v15926_v27  ;;  %v9748_v27 = vsel %vm20034_vm3, %v17250_v22, %v17251_v16  ;;  %vm20036_vm3 = vmmov %vm20035_vm12  ;;  %v17309_v22 = vpop.permute.xlu1 %17308 }
 0xa7e   : > { %16243 = vmatpush1.bf16.msra.mxu1 %v16242_v29  ;;  %9206 = vmatprep.mubr.f32.mxu1 %v18678_v4  ;;  %v16262_v7 = vpack.c.bf16 %v9749_v24, %v9748_v27  ;;  %v17265_v29 = vunpack.i.l.bf16 %v17264_v20  ;;  %v15963_v20 = vld [vmem:[%s20016_s19 + $0x128] sm:$0xff]  ;;  %v17311_v27 = vunpack.i.h.bf16 %v17309_v22 }
 0xa7f   : > { %16245 = vmatprep.subr.bf16.mxu1 %v16244_v30  ;;  %v17274_v30 = vpop.permute.xlu0 %17273 }
 0xa80   : > { %v9853_v34 = vsel %vm20035_vm12, %v17265_v29, %v17266_v25  ;;  %v17276_v35 = vunpack.i.h.bf16 %v17274_v30  ;;  %vm20037_vm12 = vcmask 736256   ;;  %v15966_v25 = vld [vmem:[%s20016_s19 + $0x130] sm:$0xff] }
 0xa81   : > { %15929 = vmatmul.mubr.msk.f32.gmra.mrb[8].mxu1 %vm5443_vm1, %v15927_v32  ;;  %v17260_v32 = vunpack.i.l.bf16 %v17259_v23 }
 0xa82   : > { %9304 = vmatprep.mubr.f32.mxu1 %v18678_v4  ;;  %v16268_v41 = vpack.c.bf16 %v17276_v35, %v17271_v38 }
 0xa85   : > { %15932 = vmatmul.mubr.msk.f32.vlgmr.msra.gmra.mrb[6].mxu1 %vm5443_vm1, %v15930_v37  ;;  %v9852_v37 = vsel %vm20036_vm3, %v17260_v32, %v17261_v28  ;;  %vm20038_vm3 = vmmov %vm20037_vm12  ;;  %v17319_v32 = vpop.permute.xlu1 %17318 }
 0xa86   : > { %16247 = vmatpush1.bf16.msra.mxu1 %v16246_v40  ;;  %9310 = vmatprep.mubr.f32.mxu1 %v18678_v4  ;;  %v16266_v39 = vpack.c.bf16 %v9853_v34, %v9852_v37  ;;  %v17275_v40 = vunpack.i.l.bf16 %v17274_v30  ;;  %v15967_v30 = vld [vmem:[%s20016_s19 + $0x138] sm:$0xff]  ;;  %v17321_v37 = vunpack.i.h.bf16 %v17319_v32 }
 0xa87   : > { %16249 = vmatprep.subr.bf16.mxu1 %v16248_v42  ;;  %v17284_v42 = vpop.permute.xlu0 %17283 }
 0xa88   : > { %v9957_v49 = vsel %vm20037_vm12, %v17275_v40, %v17276_v35  ;;  %v17286_v50 = vunpack.i.h.bf16 %v17284_v42  ;;  %vm20039_vm12 = vcmask 728064   ;;  %v15970_v35 = vld [vmem:[%s20016_s19 + $0x140] sm:$0xff] }
 0xa89   : > { %15933 = vmatmul.mubr.msk.f32.gmra.mrb[8].mxu1 %vm5443_vm1, %v15931_v47  ;;  %v17270_v47 = vunpack.i.l.bf16 %v17269_v33 }
 0xa8a   : > { %9408 = vmatprep.mubr.f32.mxu1 %v18678_v4  ;;  %v16272_v55 = vpack.c.bf16 %v17286_v50, %v17281_v44 }
 0xa8d   : > { %15936 = vmatmul.mubr.msk.f32.vlgmr.msra.gmra.mrb[6].mxu1 %vm5443_vm1, %v15934_v52  ;;  %v9956_v52 = vsel %vm20038_vm3, %v17270_v47, %v17271_v38  ;;  %vm20040_vm3 = vmmov %vm20039_vm12  ;;  %v17329_v47 = vpop.permute.xlu1 %17328 }
 0xa8e   : > { %16251 = vmatpush1.bf16.msra.mxu1 %v16250_v54  ;;  %9414 = vmatprep.mubr.f32.mxu1 %v18678_v4  ;;  %v16270_v53 = vpack.c.bf16 %v9957_v49, %v9956_v52  ;;  %v17285_v54 = vunpack.i.l.bf16 %v17284_v42  ;;  %v15971_v42 = vld [vmem:[%s20016_s19 + $0x148] sm:$0xff]  ;;  %v17331_v52 = vunpack.i.h.bf16 %v17329_v47 }
 0xa8f   : > { %16253 = vmatprep.subr.bf16.mxu1 %v16252_v56  ;;  %v17294_v56 = vpop.permute.xlu0 %17293 }
 0xa90   : > { %v10061_v60 = vsel %vm20039_vm12, %v17285_v54, %v17286_v50  ;;  %v17296_v61 = vunpack.i.h.bf16 %v17294_v56  ;;  %vm20041_vm12 = vcmask 719872   ;;  %v15974_v50 = vld [vmem:[%s20016_s19 + $0x150] sm:$0xff] }
 0xa91   : > { %15937 = vmatmul.mubr.msk.f32.gmra.mrb[8].mxu1 %vm5443_vm1, %v15935_v58  ;;  %v17280_v58 = vunpack.i.l.bf16 %v17279_v48 }
 0xa92   : > { %9512 = vmatprep.mubr.f32.mxu1 %v18678_v4  ;;  %v16276_v0 = vpack.c.bf16 %v17296_v61, %v17291_v1 }
 0xa95   : > { %15940 = vmatmul.mubr.msk.f32.vlgmr.msra.gmra.mrb[6].mxu1 %vm5443_vm1, %v15938_v63  ;;  %v10060_v63 = vsel %vm20040_vm3, %v17280_v58, %v17281_v44  ;;  %vm20042_vm3 = vmmov %vm20041_vm12  ;;  %v17339_v58 = vpop.permute.xlu1 %17338 }
 0xa96   : > { %16255 = vmatpush1.bf16.msra.mxu1 %v16254_v2  ;;  %9518 = vmatprep.mubr.f32.mxu1 %v18678_v4  ;;  %v16274_v3 = vpack.c.bf16 %v10061_v60, %v10060_v63  ;;  %v17295_v2 = vunpack.i.l.bf16 %v17294_v56  ;;  %v15975_v56 = vld [vmem:[%s20016_s19 + $0x158] sm:$0xff]  ;;  %v17341_v63 = vunpack.i.h.bf16 %v17339_v58 }
 0xa97   : > { %16257 = vmatprep.subr.bf16.mxu1 %v16256_v9  ;;  %v17304_v9 = vpop.permute.xlu0 %17303 }
 0xa98   : > { %v10165_v11 = vsel %vm20041_vm12, %v17295_v2, %v17296_v61  ;;  %v17306_v12 = vunpack.i.h.bf16 %v17304_v9  ;;  %vm20043_vm12 = vcmask 654336   ;;  %v15978_v61 = vld [vmem:[%s20016_s19 + $0x160] sm:$0xff] }
 0xa99   : > { %15941 = vmatmul.mubr.msk.f32.gmra.mrb[8].mxu1 %vm5443_vm1, %v15939_v10  ;;  %v17290_v10 = vunpack.i.l.bf16 %v17289_v59 }
 0xa9a   : > { %9616 = vmatprep.mubr.f32.mxu1 %v18678_v4  ;;  %v16280_v18 = vpack.c.bf16 %v17306_v12, %v17301_v15 }
 0xa9d   : > { %15944 = vmatmul.mubr.msk.f32.vlgmr.msra.gmra.mrb[6].mxu1 %vm5443_vm1, %v15942_v14  ;;  %v10164_v14 = vsel %vm20042_vm3, %v17290_v10, %v17291_v1  ;;  %vm20044_vm3 = vmmov %vm20043_vm12  ;;  %v15982_v10 = vld [vmem:[%s20016_s19 + $0x170] sm:$0xff] }
 0xa9e   : > { %16259 = vmatpush1.bf16.msra.mxu1 %v16258_v17  ;;  %9622 = vmatprep.mubr.f32.mxu1 %v18678_v4  ;;  %v16278_v16 = vpack.c.bf16 %v10165_v11, %v10164_v14  ;;  %v17305_v17 = vunpack.i.l.bf16 %v17304_v9  ;;  %v17340_v9 = vunpack.i.l.bf16 %v17339_v58  ;;  %v15987_v14 = vld [vmem:[%s20016_s19 + $0x188] sm:$0xff] }
 0xa9f   : > { %16261 = vmatprep.subr.bf16.mxu1 %v16260_v19  ;;  %v17314_v19 = vpop.permute.xlu0 %17313 }
 0xaa0   : > { %v10269_v23 = vsel %vm20043_vm12, %v17305_v17, %v17306_v12  ;;  %v17316_v24 = vunpack.i.h.bf16 %v17314_v19  ;;  %vm20045_vm12 = vcmask 646144   ;;  %v15983_v12 = vld [vmem:[%s20016_s19 + $0x178] sm:$0xff] }
 0xaa1   : > { %15945 = vmatmul.mubr.msk.f32.gmra.mrb[8].mxu1 %vm5443_vm1, %v15943_v21  ;;  %v17300_v21 = vunpack.i.l.bf16 %v17299_v6  ;;  %v10684_v6 = vsel %vm19916_vm8, %v17340_v9, %v17341_v63 }
 0xaa2   : > { %9720 = vmatprep.mubr.f32.mxu1 %v18678_v4  ;;  %v16284_v29 = vpack.c.bf16 %v17316_v24, %v17311_v27 }
 0xaa5   : > { %15948 = vmatmul.mubr.msk.f32.vlgmr.msra.gmra.mrb[6].mxu1 %vm5443_vm1, %v15946_v26  ;;  %v10268_v26 = vsel %vm20044_vm3, %v17300_v21, %v17301_v15  ;;  %vm20046_vm3 = vmmov %vm20045_vm12 }
 0xaa6   : > { %16263 = vmatpush1.bf16.msra.mxu1 %v16262_v7  ;;  %9726 = vmatprep.mubr.f32.mxu1 %v18678_v4  ;;  %v16282_v28 = vpack.c.bf16 %v10269_v23, %v10268_v26  ;;  %v17315_v7 = vunpack.i.l.bf16 %v17314_v19 }
 0xaa7   : > { %16265 = vmatprep.subr.bf16.mxu1 %v16264_v8  ;;  %v17324_v8 = vpop.permute.xlu0 %17323 }
 0xaa8   : > { %v10373_v33 = vsel %vm20045_vm12, %v17315_v7, %v17316_v24  ;;  %v17326_v34 = vunpack.i.h.bf16 %v17324_v8  ;;  %vm20047_vm12 = vcmask 637952  }
 0xaa9   : > { %15949 = vmatmul.mubr.msk.f32.gmra.mrb[8].mxu1 %vm5443_vm1, %v15947_v31  ;;  %v17310_v31 = vunpack.i.l.bf16 %v17309_v22 }
 0xaaa   : > { %9824 = vmatprep.mubr.f32.mxu1 %v18678_v4  ;;  %v16288_v40 = vpack.c.bf16 %v17326_v34, %v17321_v37 }
 0xaad   : > { %15952 = vmatmul.mubr.msk.f32.vlgmr.msra.gmra.mrb[6].mxu1 %vm5443_vm1, %v15950_v36  ;;  %v10372_v36 = vsel %vm20046_vm3, %v17310_v31, %v17311_v27  ;;  %vm20048_vm3 = vmmov %vm20047_vm12 }
 0xaae   : > { %16267 = vmatpush1.bf16.msra.mxu1 %v16266_v39  ;;  %9830 = vmatprep.mubr.f32.mxu1 %v18678_v4  ;;  %v16286_v38 = vpack.c.bf16 %v10373_v33, %v10372_v36  ;;  %v17325_v39 = vunpack.i.l.bf16 %v17324_v8  ;;  %v10797_v33 = vld [vmem:[%s20049_s12] sm:$0xff] }
 0xaaf   : > { %16269 = vmatprep.subr.bf16.mxu1 %v16268_v41  ;;  %v17334_v41 = vpop.permute.xlu0 %17333 }
 0xab0   : > { %v10477_v48 = vsel %vm20047_vm12, %v17325_v39, %v17326_v34  ;;  %v17336_v49 = vunpack.i.h.bf16 %v17334_v41  ;;  %v10798_v34 = vld [vmem:[%s20049_s12 + $0x8] sm:$0xff] }
 0xab1   : > { %15953 = vmatmul.mubr.msk.f32.gmra.mrb[8].mxu1 %vm5443_vm1, %v15951_v46  ;;  %v17320_v46 = vunpack.i.l.bf16 %v17319_v32 }
 0xab2   : > { %9928 = vmatprep.mubr.f32.mxu1 %v18678_v4  ;;  %v16292_v54 = vpack.c.bf16 %v17336_v49, %v17331_v52 }
 0xab5   : > { %15956 = vmatmul.mubr.msk.f32.vlgmr.msra.gmra.mrb[6].mxu1 %vm5443_vm1, %v15954_v51  ;;  %v10476_v51 = vsel %vm20048_vm3, %v17320_v46, %v17321_v37 }
 0xab6   : > { %16271 = vmatpush1.bf16.msra.mxu1 %v16270_v53  ;;  %9934 = vmatprep.mubr.f32.mxu1 %v18678_v4  ;;  %v16290_v44 = vpack.c.bf16 %v10477_v48, %v10476_v51  ;;  %v17335_v53 = vunpack.i.l.bf16 %v17334_v41 }
 0xab7   : > { %16273 = vmatprep.subr.bf16.mxu1 %v16272_v55  ;;  %v17344_v55 = vpop.permute.xlu0 %17343 }
 0xab8   : > { %v10581_v59 = vsel %vm19917_vm7, %v17335_v53, %v17336_v49  ;;  %v17346_v60 = vunpack.i.h.bf16 %v17344_v55 }
 0xab9   : > { %15957 = vmatmul.mubr.msk.f32.gmra.mrb[8].mxu1 %vm5443_vm1, %v15955_v57  ;;  %v17330_v57 = vunpack.i.l.bf16 %v17329_v47 }
 0xaba   : > { %10032 = vmatprep.mubr.f32.mxu1 %v18678_v4  ;;  %v16296_v2 = vpack.c.bf16 %v17346_v60, %v17341_v63 }
 0xabd   : > { %15960 = vmatmul.mubr.msk.f32.vlgmr.msra.gmra.mrb[6].mxu1 %vm5443_vm1, %v15958_v62  ;;  %v10580_v62 = vsel %vm19917_vm7, %v17330_v57, %v17331_v52 }
 0xabe   : > { %16275 = vmatpush1.bf16.msra.mxu1 %v16274_v3  ;;  %10038 = vmatprep.mubr.f32.mxu1 %v18678_v4  ;;  %v16294_v1 = vpack.c.bf16 %v10581_v59, %v10580_v62  ;;  %v17345_v3 = vunpack.i.l.bf16 %v17344_v55 }
 0xabf   : > { %16277 = vmatprep.subr.bf16.mxu1 %v16276_v0  ;;  %v15979_v0 = vld [vmem:[%s20016_s19 + $0x168] sm:$0xff] }
 0xac1   : > { %15961 = vmatmul.mubr.msk.f32.gmra.mrb[8].mxu1 %vm5443_vm1, %v15959_v5  ;;  %v10685_v5 = vsel %vm19916_vm8, %v17345_v3, %v17346_v60 }
 0xac2   : > { %10136 = vmatprep.mubr.f32.mxu1 %v18678_v4  ;;  %v16298_v11 = vpack.c.bf16 %v10685_v5, %v10684_v6 }
 0xac5   : > { %15964 = vmatmul.mubr.msk.f32.vlgmr.msra.gmra.mrb[6].mxu1 %vm5443_vm1, %v15962_v13  ;;  %v15986_v13 = vld [vmem:[%s20016_s19 + $0x180] sm:$0xff] }
 0xac6   : > { %16279 = vmatpush1.bf16.msra.mxu1 %v16278_v16  ;;  %10142 = vmatprep.mubr.f32.mxu1 %v18678_v4  ;;  %v10782_v16 = vpop.permute.xlu1 %10781 }
 0xac7   : > { %16281 = vmatprep.subr.bf16.mxu1 %v16280_v18 }
 0xac9   : > { %15965 = vmatmul.mubr.msk.f32.gmra.mrb[8].mxu1 %vm5443_vm1, %v15963_v20  ;;  %v10787_v20 = vpop.permute.xlu0 %10786 }
 0xaca   : > { %10240 = vmatprep.mubr.f32.mxu1 %v18678_v4 }
 0xacd   : > { %15968 = vmatmul.mubr.msk.f32.vlgmr.msra.gmra.mrb[6].mxu1 %vm5443_vm1, %v15966_v25  ;;  %v10813_v41 = vpop.permute.xlu0 %10812 }
 0xace   : > { %16283 = vmatpush1.bf16.msra.mxu1 %v16282_v28  ;;  %10246 = vmatprep.mubr.f32.mxu1 %v18678_v4 }
 0xacf   : > { %16285 = vmatprep.subr.bf16.mxu1 %v16284_v29 }
 0xad1   : > { %15969 = vmatmul.mubr.msk.f32.gmra.mrb[8].mxu1 %vm5443_vm1, %v15967_v30 }
 0xad2   : > { %10344 = vmatprep.mubr.f32.mxu1 %v18678_v4 }
 0xad5   : > { %15972 = vmatmul.mubr.msk.f32.vlgmr.msra.gmra.mrb[6].mxu1 %vm5443_vm1, %v15970_v35  ;;  %v10808_v35 = vpop.permute.xlu1 %10807 }
 0xad6   : > { %16287 = vmatpush1.bf16.msra.mxu1 %v16286_v38  ;;  %10350 = vmatprep.mubr.f32.mxu1 %v18678_v4 }
 0xad7   : > { %16289 = vmatprep.subr.bf16.mxu1 %v16288_v40 }
 0xad9   : > { %15973 = vmatmul.mubr.msk.f32.gmra.mrb[8].mxu1 %vm5443_vm1, %v15971_v42 }
 0xada   : > { %10448 = vmatprep.mubr.f32.mxu1 %v18678_v4 }
 0xadd   : > { %15976 = vmatmul.mubr.msk.f32.vlgmr.msra.gmra.mrb[6].mxu1 %vm5443_vm1, %v15974_v50 }
 0xade   : > { %16291 = vmatpush1.bf16.msra.mxu1 %v16290_v44  ;;  %10454 = vmatprep.mubr.f32.mxu1 %v18678_v4 }
 0xadf   : > { %16293 = vmatprep.subr.bf16.mxu1 %v16292_v54 }
 0xae1   : > { %15977 = vmatmul.mubr.msk.f32.gmra.mrb[8].mxu1 %vm5443_vm1, %v15975_v56 }
 0xae2   : > { %10552 = vmatprep.mubr.f32.mxu1 %v18678_v4 }
 0xae5   : > { %15980 = vmatmul.mubr.msk.f32.vlgmr.msra.gmra.mrb[6].mxu1 %vm5443_vm1, %v15978_v61 }
 0xae6   : > { %16295 = vmatpush1.bf16.msra.mxu1 %v16294_v1  ;;  %10558 = vmatprep.mubr.f32.mxu1 %v18678_v4 }
 0xae7   : > { %16297 = vmatprep.subr.bf16.mxu1 %v16296_v2 }
 0xae9   : > { %15981 = vmatmul.mubr.msk.f32.gmra.mrb[8].mxu1 %vm5443_vm1, %v15979_v0 }
 0xaea   : > { %10656 = vmatprep.mubr.f32.mxu1 %v18678_v4 }
 0xaed   : > { %15984 = vmatmul.mubr.msk.f32.vlgmr.msra.gmra.mrb[6].mxu1 %vm5443_vm1, %v15982_v10 }
 0xaee   : > { %16299 = vmatpush1.bf16.msra.mxu1 %v16298_v11  ;;  %10662 = vmatprep.mubr.f32.mxu1 %v18678_v4 }
 0xaf1   : > { %15985 = vmatmul.mubr.msk.f32.gmra.mrb[8].mxu1 %vm5443_vm1, %v15983_v12 }
 0xaf2   : > { %10760 = vmatprep.mubr.f32.mxu1 %v18678_v4 }
 0xaf5   : > { %15988 = vmatmul.mubr.msk.f32.vlgmr.msra.gmra.mrb[6].mxu1 %vm5443_vm1, %v15986_v13 }
 0xaf6   : > { %10766 = vmatprep.mubr.f32.mxu1 %v18678_v4 }
 0xaf9   : > { %15989 = vmatmul.mubr.msk.f32.gmra.mrb[8].mxu1 %vm5443_vm1, %v15987_v14 }
 0xafa   : > { %13331 = vmatprep.mubr.f32.mxu1 %v18678_v4 }
 0xbc8   : > { %v10762_v15 = vpop.f32.mrb[6].mxu1 }
 0xbc9   : > { %v10764_v17 = vpop.f32.mrb[7].mxu1  ;;  %v10789_v19 = vadd.f32 %v10782_v16, %v10762_v15 }
 0xbca   : > { %v10790_v18 = vadd.f32 %v10782_v16, %v10764_v17 }
 0xbcb   : > { %v10793_v26 = vsel %vm19915_vm10, %v10789_v19, 0.0 }
 0xbcc   : > { %v10768_v21 = vpop.f32.mrb[8].mxu1  ;;  %v10794_v24 = vsel %vm19914_vm11, %v10790_v18, 0.0  ;;  %v10799_v30 = vmul.f32 %v10793_v26, %v10793_v26 }
 0xbcd   : > { %v10791_v22 = vadd.f32 %v10787_v20, %v10768_v21  ;;  %v10770_v23 = vpop.f32.mrb[9].mxu1  ;;  %v10800_v29 = vmul.f32 %v10794_v24, %v10794_v24 }
 0xbce   : > { %v10792_v25 = vadd.f32 %v10787_v20, %v10770_v23 }
 0xbcf   : > { %v19282_v27 = vsel %vm19915_vm10, %v10791_v22, 0.0 }
 0xbd0   : > { %v10801_v28 = vmul.f32 %v19282_v27, %v19282_v27  ;;  %v19288_v7 = vsel %vm19914_vm11, %v10792_v25, 0.0 }
 0xbd1   : > { %v10802_v8 = vmul.f32 %v19288_v7, %v19288_v7 }
 0xbd2   : > { %v16302_v32 = vpack.c.bf16 %v10801_v28, %v10799_v30 }
 0xbd3   : > { %v16300_v31 = vpack.c.bf16 %v10802_v8, %v10800_v29 }
 0xbd5   : > { %16301 = vmatprep.subr.bf16.mxu0 %v16300_v31 }
 0xbd6   : > { %16303 = vmatpush1.bf16.msra.mxu0 %v16302_v32 }
 0xbd9   : > { %15990 = vmatmul.mubr.msk.f32.vlgmr.msra.gmra.mrb[10].mxu0 %vm5443_vm1, %v10797_v33 }
 0xbda   : > { %10891 = vmatprep.mubr.f32.mxu0 %v18678_v4 }
 0xbdd   : > { %15991 = vmatmul.mubr.msk.f32.gmra.mrb[12].mxu0 %vm5443_vm1, %v10798_v34 }
 0xbde   : > { %11048 = vmatprep.mubr.f32.mxu0 %v18678_v4 }
 0xcac   : > { %v10887_v36 = vpop.f32.mrb[10].mxu0 }
 0xcad   : > { %v10888_v37 = vadd.f32 %v10887_v36, %v10808_v35  ;;  %v10889_v38 = vpop.f32.mrb[11].mxu0 }
 0xcae   : > { %v10890_v39 = vadd.f32 %v10889_v38, %v10808_v35 }
 0xcaf   : > { %v10898_v40 = vmax.f32 %v10888_v37, 1e-09 }
 0xcb0   : > { %v10899_v42 = vmax.f32 %v10890_v39, 1e-09  ;;  %v10893_v46 = vpop.f32.mrb[12].mxu0 }
 0xcb1   : > { %17599 = vrsqrt.f32 %v10898_v40  ;;  %v10894_v47 = vadd.f32 %v10893_v46, %v10813_v41  ;;  %v10895_v48 = vpop.f32.mrb[13].mxu0  ;;  %vm10904_vm12 = vcmp.eq.f32.partialorder %v10898_v40, inf  ;;  %v10907_v54 = vand.u32 2147483648, %v10898_v40 }
 0xcb2   : > { %17601 = vrsqrt.f32 %v10899_v42  ;;  %v10896_v49 = vadd.f32 %v10895_v48, %v10813_v41  ;;  %vm10906_vm3 = vcmp.eq.f32.partialorder %v10898_v40, 0.0  ;;  %vm10911_vm11 = vcmp.eq.f32.partialorder %v10899_v42, inf  ;;  %v15992_v41 = vld [vmem:[%s20056_s17 + $0x8] sm:$0xff] }
 0xcb3   : > { %v10900_v50 = vmax.f32 %v10894_v47, 1e-09  ;;  %v10914_v57 = vand.u32 2147483648, %v10899_v42  ;;  %vm10913_vm10 = vcmp.eq.f32.partialorder %v10899_v42, 0.0 }
 0xcb4   : > { %v10901_v51 = vmax.f32 %v10896_v49, 1e-09 }
 0xcb5   : > { %17603 = vrsqrt.f32 %v10900_v50  ;;  %vm10918_vm8 = vcmp.eq.f32.partialorder %v10900_v50, inf  ;;  %v10921_v2 = vand.u32 2147483648, %v10900_v50  ;;  %vm10920_vm7 = vcmp.eq.f32.partialorder %v10900_v50, 0.0 }
 0xcb6   : > { %17605 = vrsqrt.f32 %v10901_v51  ;;  %v10928_v5 = vand.u32 2147483648, %v10901_v51 }
 0xcbb   : > { %v17600_v52 = vpop.eup %17599 }
 0xcbc   : > { %v17602_v44 = vpop.eup %17601  ;;  %v10903_v53 = vmul.f32 %v17600_v52, %v10898_v40 }
 0xcbd   : > { %v10910_v55 = vmul.f32 %v17602_v44, %v10899_v42  ;;  %v10960_v44 = vld [vmem:[%s20056_s17] sm:$0xff] }
 0xcbe   : > { %v10905_v56 = vsel %vm10904_vm12, %v10898_v40, %v10903_v53  ;;  %vm10925_vm12 = vcmp.eq.f32.partialorder %v10901_v51, inf }
 0xcbf   : > { %v17604_v58 = vpop.eup %17603  ;;  %v10908_v59 = vsel %vm10906_vm3, %v10907_v54, %v10905_v56  ;;  %v10912_v60 = vsel %vm10911_vm11, %v10899_v42, %v10910_v55  ;;  %vm10927_vm11 = vcmp.eq.f32.partialorder %v10901_v51, 0.0  ;;  %vm20063_vm3 = vcmask 932864  }
 0xcc0   : > { %v17606_v61 = vpop.eup %17605  ;;  %v10930_v62 = vmul.f32 %v10908_v59, %v10793_v26  ;;  %v10915_v63 = vsel %vm10913_vm10, %v10914_v57, %v10912_v60  ;;  %v10917_v1 = vmul.f32 %v17604_v58, %v10900_v50  ;;  %vm20061_vm10 = vcmask 941056  }
 0xcc1   : > { %v10931_v3 = vmul.f32 %v10915_v63, %v10794_v24  ;;  %v10924_v0 = vmul.f32 %v17606_v61, %v10901_v51  ;;  %v15995_v63 = vld [vmem:[%s20056_s17 + $0x10] sm:$0xff] }
 0xcc2   : > { %10938 = vrot.lane.b32.xlu1 %v10930_v62, %s19958_s7  ;;  %v10919_v9 = vsel %vm10918_vm8, %v10900_v50, %v10917_v1 }
 0xcc3   : > { %10940 = vrot.lane.b32.xlu0 %v10931_v3, %s19958_s7  ;;  %v10922_v10 = vsel %vm10920_vm7, %v10921_v2, %v10919_v9  ;;  %v10926_v6 = vsel %vm10925_vm12, %v10901_v51, %v10924_v0  ;;  %vm20059_vm7 = vcmask 949248   ;;  %vm20064_vm12 = vmmov %vm20063_vm3 }
 0xcc4   : > { %v10932_v11 = vmul.f32 %v10922_v10, %v19282_v27  ;;  %v10929_v12 = vsel %vm10927_vm11, %v10928_v5, %v10926_v6  ;;  %vm20060_vm8 = vmmov %vm20059_vm7  ;;  %vm20067_vm11 = vcmask 834560  }
 0xcc5   : > { %v10933_v13 = vmul.f32 %v10929_v12, %v19288_v7  ;;  %v13258_v7 = vld [vmem:[%s20055_s10] sm:$0xff] }
 0xcc6   : > { %10942 = vrot.lane.b32.xlu1 %v10932_v11, %s19958_s7 }
 0xcc7   : > { %10944 = vrot.lane.b32.xlu0 %v10933_v13, %s19958_s7  ;;  %v15997_v13 = vld [vmem:[%s20056_s17 + $0x18] sm:$0xff] }
 0xd34   : > { %v10939_v14 = vpop.permute.xlu1 %10938 }
 0xd35   : > { %10952 = vst.msk [vmem:[#allocation3] sm:$0xff] %vm2972_vm13, %v10939_v14  ;;  %v10941_v15 = vpop.permute.xlu0 %10940 }
 0xd36   : > { %v10946_v16 = vsel %vm2968_vm14, %v10939_v14, %v10941_v15 }
 0xd37   : > { %10953 = vst.msk [vmem:[#allocation3 + $0x8] sm:$0xff] %vm2974_vm15, %v10946_v16 }
 0xd38   : > { %v10943_v17 = vpop.permute.xlu1 %10942 }
 0xd39   : > { %10954 = vst.msk [vmem:[#allocation3 + $0x10] sm:$0xff] %vm2972_vm13, %v10943_v17  ;;  %v10945_v18 = vpop.permute.xlu0 %10944 }
 0xd3a   : > { %v10947_v19 = vsel %vm2968_vm14, %v10943_v17, %v10945_v18 }
 0xd3b   : > { %10955 = vst.msk [vmem:[#allocation3 + $0x18] sm:$0xff] %vm2974_vm15, %v10947_v19 }
 0xd3c   : > { %v19314_v20 = vld [vmem:[#allocation3] sm:$0xff] }
 0xd3e   : > { %v19316_v21 = vld [vmem:[#allocation3 + $0x8] sm:$0xff] }
 0xd3f   : > { %v17347_v22 = vpack.i.bf16 %v19316_v21, %v19314_v20 }
 0xd40   : > { %v19321_v23 = vld [vmem:[#allocation3 + $0x10] sm:$0xff] }
 0xd41   : > { %17348 = vrot.lane.b32.xlu1 %v17347_v22, %s19959_s3  ;;  %v16310_v27 = vpack.c.bf16 %v19321_v23, %v19314_v20 }
 0xd42   : > { %v19323_v24 = vld [vmem:[#allocation3 + $0x18] sm:$0xff] }
 0xd43   : > { %v17352_v25 = vpack.i.bf16 %v19323_v24, %v19321_v23  ;;  %v16308_v26 = vpack.c.bf16 %v19323_v24, %v19316_v21  ;;  %v15999_v24 = vld [vmem:[%s20056_s17 + $0x20] sm:$0xff] }
 0xd45   : > { %17358 = vrot.lane.b32.xlu1 %v17347_v22, %s19960_s4  ;;  %17353 = vrot.lane.b32.xlu0 %v17352_v25, %s19959_s3 }
 0xd49   : > { %17368 = vrot.lane.b32.xlu1 %v17347_v22, %s19961_s2  ;;  %17363 = vrot.lane.b32.xlu0 %v17352_v25, %s19960_s4  ;;  %s20148_s4 = sld [smem:[#allocation29_spill]] }
 0xd4d   : > { %17378 = vrot.lane.b32.xlu1 %v17347_v22, %s19962_s27  ;;  %17373 = vrot.lane.b32.xlu0 %v17352_v25, %s19961_s2  ;;  %s20054_s2 = sld [smem:[#allocation23_spill]] }
 0xd51   : > { %17388 = vrot.lane.b32.xlu1 %v17347_v22, %s19963_s5  ;;  %17383 = vrot.lane.b32.xlu0 %v17352_v25, %s19962_s27 }
 0xd53   : > { %v13245_v28 = vld [vmem:[%s20054_s2] sm:$0xff] }
 0xd55   : > { %17398 = vrot.lane.b32.xlu1 %v17347_v22, %s19964_s24  ;;  %17393 = vrot.lane.b32.xlu0 %v17352_v25, %s19963_s5 }
 0xd59   : > { %17408 = vrot.lane.b32.xlu1 %v17347_v22, %s19950_s25  ;;  %17403 = vrot.lane.b32.xlu0 %v17352_v25, %s19964_s24 }
 0xd5d   : > { %17418 = vrot.lane.b32.xlu1 %v17347_v22, %s19965_s28  ;;  %17413 = vrot.lane.b32.xlu0 %v17352_v25, %s19950_s25 }
 0xd61   : > { %17428 = vrot.lane.b32.xlu1 %v17347_v22, %s19966_s0  ;;  %17423 = vrot.lane.b32.xlu0 %v17352_v25, %s19965_s28 }
 0xd65   : > { %17438 = vrot.lane.b32.xlu1 %v17347_v22, %s19951_s29  ;;  %17433 = vrot.lane.b32.xlu0 %v17352_v25, %s19966_s0  ;;  %s20050_s0 = smov 88  }
 0xd69   : > { %17448 = vrot.lane.b32.xlu1 %v17347_v22, %s19952_s26  ;;  %17443 = vrot.lane.b32.xlu0 %v17352_v25, %s19951_s29  ;;  %s20051_s29 = smov 80  }
 0xd6d   : > { %17458 = vrot.lane.b32.xlu1 %v17347_v22, %s19953_s1  ;;  %17453 = vrot.lane.b32.xlu0 %v17352_v25, %s19952_s26 }
 0xd71   : > { %17468 = vrot.lane.b32.xlu1 %v17347_v22, %s19967_s6  ;;  %17463 = vrot.lane.b32.xlu0 %v17352_v25, %s19953_s1 }
 0xd75   : > { %17478 = vrot.lane.b32.xlu1 %v17347_v22, %s19968_s8  ;;  %17473 = vrot.lane.b32.xlu0 %v17352_v25, %s19967_s6 }
 0xd79   : > { %17488 = vrot.lane.b32.xlu1 %v17347_v22, %s19969_s9  ;;  %17483 = vrot.lane.b32.xlu0 %v17352_v25, %s19968_s8  ;;  %s20052_s8 = smov 79  }
 0xd7d   : > { %17498 = vrot.lane.b32.xlu1 %v17347_v22, %s19970_s23  ;;  %17493 = vrot.lane.b32.xlu0 %v17352_v25, %s19969_s9  ;;  %s20053_s9 = smov 78  }
 0xd81   : > { %17508 = vrot.lane.b32.xlu1 %v17347_v22, %s19971_s20  ;;  %17503 = vrot.lane.b32.xlu0 %v17352_v25, %s19970_s23 }
 0xd85   : > { %17518 = vrot.lane.b32.xlu1 %v17347_v22, %s19972_s21  ;;  %17513 = vrot.lane.b32.xlu0 %v17352_v25, %s19971_s20 }
 0xd89   : > { %17528 = vrot.lane.b32.xlu1 %v17347_v22, %s20050_s0  ;;  %17523 = vrot.lane.b32.xlu0 %v17352_v25, %s19972_s21 }
 0xd8d   : > { %17538 = vrot.lane.b32.xlu1 %v17347_v22, %s20051_s29  ;;  %17533 = vrot.lane.b32.xlu0 %v17352_v25, %s20050_s0  ;;  %s20098_s0 = sld [smem:[#allocation26_spill]] }
 0xd91   : > { %17548 = vrot.lane.b32.xlu1 %v17347_v22, %s20052_s8  ;;  %17543 = vrot.lane.b32.xlu0 %v17352_v25, %s20051_s29 }
 0xd95   : > { %17558 = vrot.lane.b32.xlu1 %v17347_v22, %s20053_s9  ;;  %17553 = vrot.lane.b32.xlu0 %v17352_v25, %s20052_s8  ;;  %s20147_s8 = sshll.u32 %s20143_s13, 5 }
 0xd96   : > { %s723_s2 = scalar_lea.vmem %s20148_s4, %s20147_s8 }
 0xd99   : > { %17568 = vrot.lane.b32.xlu1 %v17347_v22, %s20012_s14  ;;  %17563 = vrot.lane.b32.xlu0 %v17352_v25, %s20053_s9 }
 0xd9d   : > { %17578 = vrot.lane.b32.xlu1 %v17347_v22, %s20013_s15  ;;  %17573 = vrot.lane.b32.xlu0 %v17352_v25, %s20012_s14 }
 0xda1   : > { %13248 = vperm.xlu1 %16866, %v13245_v28   ;;  %17583 = vrot.lane.b32.xlu0 %v17352_v25, %s20013_s15 }
 0xda5   : > { %13261 = vperm.xlu0 %16865, %v13258_v7  }
 0xdb3   : > { %v17349_v29 = vpop.permute.xlu1 %17348 }
 0xdb4   : > { %v17351_v8 = vunpack.i.h.bf16 %v17349_v29  ;;  %v17350_v30 = vunpack.i.l.bf16 %v17349_v29 }
 0xdb6   : > { %v10975_v34 = vsel %vm746_vm0, %v17350_v30, %v17351_v8 }
 0xdb7   : > { %v17354_v31 = vpop.permute.xlu0 %17353  ;;  %v17359_v37 = vpop.permute.xlu1 %17358 }
 0xdb8   : > { %v17356_v32 = vunpack.i.h.bf16 %v17354_v31  ;;  %v17355_v33 = vunpack.i.l.bf16 %v17354_v31  ;;  %v17361_v42 = vunpack.i.h.bf16 %v17359_v37  ;;  %v17360_v49 = vunpack.i.l.bf16 %v17359_v37 }
 0xdba   : > { %v10976_v35 = vsel %vm746_vm0, %v17355_v33, %v17356_v32  ;;  %v16304_v36 = vpack.c.bf16 %v17356_v32, %v17351_v8  ;;  %v11139_v53 = vsel %vm905_vm2, %v17360_v49, %v17361_v42  ;;  %vm20057_vm0 = vcmask 1014784   ;;  %v16001_v33 = vld [vmem:[%s20056_s17 + $0x28] sm:$0xff] }
 0xdbb   : > { %v17364_v38 = vpop.permute.xlu0 %17363  ;;  %v16306_v39 = vpack.c.bf16 %v10976_v35, %v10975_v34  ;;  %v17369_v50 = vpop.permute.xlu1 %17368 }
 0xdbc   : > { %v17366_v40 = vunpack.i.h.bf16 %v17364_v38  ;;  %16305 = vmatprep.subr.bf16.mxu0 %v16304_v36  ;;  %v17365_v46 = vunpack.i.l.bf16 %v17364_v38  ;;  %v17371_v54 = vunpack.i.h.bf16 %v17369_v50  ;;  %v17370_v59 = vunpack.i.l.bf16 %v17369_v50 }
 0xdbd   : > { %16307 = vmatpush1.bf16.msra.mxu0 %v16306_v39 }
 0xdbe   : > { %16309 = vmatprep.subr.bf16.mxu0 %v16308_v26  ;;  %v16312_v47 = vpack.c.bf16 %v17366_v40, %v17361_v42  ;;  %v11140_v51 = vsel %vm905_vm2, %v17365_v46, %v17366_v40  ;;  %v11231_v1 = vsel %vm3262_vm9, %v17370_v59, %v17371_v54  ;;  %vm20058_vm2 = vmmov %vm20057_vm0 }
 0xdbf   : > { %v17374_v48 = vpop.permute.xlu0 %17373  ;;  %v16314_v55 = vpack.c.bf16 %v11140_v51, %v11139_v53  ;;  %v17379_v60 = vpop.permute.xlu1 %17378 }
 0xdc0   : > { %15993 = vmatmul.mubr.msk.f32.vlgmr.msra.gmra.mrb[14].mxu0 %vm5443_vm1, %v15992_v41  ;;  %v17376_v52 = vunpack.i.h.bf16 %v17374_v48  ;;  %v17375_v56 = vunpack.i.l.bf16 %v17374_v48  ;;  %v17381_v3 = vunpack.i.h.bf16 %v17379_v60  ;;  %v17380_v10 = vunpack.i.l.bf16 %v17379_v60 }
 0xdc1   : > { %16311 = vmatpush1.bf16.msra.mxu0 %v16310_v27  ;;  %11122 = vmatprep.mubr.f32.mxu0 %v18678_v4 }
 0xdc2   : > { %16313 = vmatprep.subr.bf16.mxu0 %v16312_v47  ;;  %v16316_v57 = vpack.c.bf16 %v17376_v52, %v17371_v54  ;;  %v11232_v61 = vsel %vm3262_vm9, %v17375_v56, %v17376_v52  ;;  %v11323_v14 = vsel %vm20058_vm2, %v17380_v10, %v17381_v3  ;;  %vm20062_vm9 = vmmov %vm20061_vm10  ;;  %v16003_v47 = vld [vmem:[%s20056_s17 + $0x30] sm:$0xff]  ;;  %vm20069_vm2 = vcmask 826368  }
 0xdc3   : > { %v17384_v58 = vpop.permute.xlu0 %17383  ;;  %v16318_v2 = vpack.c.bf16 %v11232_v61, %v11231_v1  ;;  %v17389_v6 = vpop.permute.xlu1 %17388 }
 0xdc4   : > { %v17386_v62 = vunpack.i.h.bf16 %v17384_v58  ;;  %v17385_v0 = vunpack.i.l.bf16 %v17384_v58  ;;  %v17391_v15 = vunpack.i.h.bf16 %v17389_v6  ;;  %v17390_v20 = vunpack.i.l.bf16 %v17389_v6 }
 0xdc6   : > { %v16320_v9 = vpack.c.bf16 %v17386_v62, %v17381_v3  ;;  %v11324_v11 = vsel %vm20057_vm0, %v17385_v0, %v17386_v62  ;;  %v11415_v25 = vsel %vm20060_vm8, %v17390_v20, %v17391_v15  ;;  %vm20068_vm0 = vmmov %vm20067_vm11  ;;  %vm20071_vm8 = vcmask 818176  }
 0xdc7   : > { %v17394_v5 = vpop.permute.xlu0 %17393  ;;  %v16322_v16 = vpack.c.bf16 %v11324_v11, %v11323_v14  ;;  %v17399_v21 = vpop.permute.xlu1 %17398 }
 0xdc8   : > { %15994 = vmatmul.mubr.msk.f32.vlgmr.msra.gmra.mrb[14].mxu0 %vm5443_vm1, %v10960_v44  ;;  %v17396_v12 = vunpack.i.h.bf16 %v17394_v5  ;;  %v17395_v17 = vunpack.i.l.bf16 %v17394_v5  ;;  %v17401_v26 = vunpack.i.h.bf16 %v17399_v21  ;;  %v17400_v8 = vunpack.i.l.bf16 %v17399_v21 }
 0xdc9   : > { %16315 = vmatpush1.bf16.msra.mxu0 %v16314_v55  ;;  %11212 = vmatprep.mubr.f32.mxu0 %v18678_v4 }
 0xdca   : > { %16317 = vmatprep.subr.bf16.mxu0 %v16316_v57  ;;  %v16324_v18 = vpack.c.bf16 %v17396_v12, %v17391_v15  ;;  %v11416_v22 = vsel %vm20059_vm7, %v17395_v17, %v17396_v12  ;;  %v11507_v34 = vsel %vm20062_vm9, %v17400_v8, %v17401_v26  ;;  %v16005_v57 = vld [vmem:[%s20056_s17 + $0x38] sm:$0xff]  ;;  %vm20070_vm7 = vmmov %vm20069_vm2  ;;  %vm20073_vm9 = vcmask 752640  }
 0xdcb   : > { %v17404_v19 = vpop.permute.xlu0 %17403  ;;  %v16326_v27 = vpack.c.bf16 %v11416_v22, %v11415_v25  ;;  %v17409_v30 = vpop.permute.xlu1 %17408 }
 0xdcc   : > { %v17406_v23 = vunpack.i.h.bf16 %v17404_v19  ;;  %v17405_v28 = vunpack.i.l.bf16 %v17404_v19  ;;  %v17411_v35 = vunpack.i.h.bf16 %v17409_v30  ;;  %v17410_v40 = vunpack.i.l.bf16 %v17409_v30 }
 0xdce   : > { %v16328_v7 = vpack.c.bf16 %v17406_v23, %v17401_v26  ;;  %v11508_v31 = vsel %vm20061_vm10, %v17405_v28, %v17406_v23  ;;  %v11599_v48 = vsel %vm20064_vm12, %v17410_v40, %v17411_v35  ;;  %vm20072_vm10 = vmmov %vm20071_vm8  ;;  %vm20075_vm12 = vcmask 744448  }
 0xdcf   : > { %v17414_v29 = vpop.permute.xlu0 %17413  ;;  %v16330_v36 = vpack.c.bf16 %v11508_v31, %v11507_v34  ;;  %v17419_v41 = vpop.permute.xlu1 %17418 }
 0xdd0   : > { %15996 = vmatmul.mubr.msk.f32.vlgmr.msra.gmra.mrb[14].mxu0 %vm5443_vm1, %v15995_v63  ;;  %v17416_v32 = vunpack.i.h.bf16 %v17414_v29  ;;  %v17415_v37 = vunpack.i.l.bf16 %v17414_v29  ;;  %v17421_v49 = vunpack.i.h.bf16 %v17419_v41  ;;  %v17420_v53 = vunpack.i.l.bf16 %v17419_v41 }
 0xdd1   : > { %16319 = vmatpush1.bf16.msra.mxu0 %v16318_v2  ;;  %11304 = vmatprep.mubr.f32.mxu0 %v18678_v4 }
 0xdd2   : > { %16321 = vmatprep.subr.bf16.mxu0 %v16320_v9  ;;  %v16332_v38 = vpack.c.bf16 %v17416_v32, %v17411_v35  ;;  %v11600_v42 = vsel %vm20063_vm3, %v17415_v37, %v17416_v32  ;;  %v11691_v58 = vsel %vm3749_vm4, %v17420_v53, %v17421_v49  ;;  %v16007_v9 = vld [vmem:[%s20056_s17 + $0x40] sm:$0xff]  ;;  %vm20074_vm3 = vmmov %vm20073_vm9 }
 0xdd3   : > { %v17424_v39 = vpop.permute.xlu0 %17423  ;;  %v16334_v50 = vpack.c.bf16 %v11600_v42, %v11599_v48  ;;  %v17429_v54 = vpop.permute.xlu1 %17428 }
 0xdd4   : > { %v17426_v46 = vunpack.i.h.bf16 %v17424_v39  ;;  %v17425_v51 = vunpack.i.l.bf16 %v17424_v39  ;;  %v17431_v59 = vunpack.i.h.bf16 %v17429_v54  ;;  %v17430_v1 = vunpack.i.l.bf16 %v17429_v54 }
 0xdd6   : > { %v16336_v52 = vpack.c.bf16 %v17426_v46, %v17421_v49  ;;  %v11692_v55 = vsel %vm3749_vm4, %v17425_v51, %v17426_v46  ;;  %v11783_v5 = vsel %vm3847_vm5, %v17430_v1, %v17431_v59 }
 0xdd7   : > { %v17434_v44 = vpop.permute.xlu0 %17433  ;;  %v16338_v60 = vpack.c.bf16 %v11692_v55, %v11691_v58  ;;  %v17439_v3 = vpop.permute.xlu1 %17438 }
 0xdd8   : > { %15998 = vmatmul.mubr.msk.f32.vlgmr.msra.gmra.mrb[14].mxu0 %vm5443_vm1, %v15997_v13  ;;  %v17436_v56 = vunpack.i.h.bf16 %v17434_v44  ;;  %v17435_v61 = vunpack.i.l.bf16 %v17434_v44  ;;  %v17441_v10 = vunpack.i.h.bf16 %v17439_v3  ;;  %v17440_v14 = vunpack.i.l.bf16 %v17439_v3 }
 0xdd9   : > { %16323 = vmatpush1.bf16.msra.mxu0 %v16322_v16  ;;  %11396 = vmatprep.mubr.f32.mxu0 %v18678_v4 }
 0xdda   : > { %16325 = vmatprep.subr.bf16.mxu0 %v16324_v18  ;;  %v16340_v62 = vpack.c.bf16 %v17436_v56, %v17431_v59  ;;  %v11784_v2 = vsel %vm3847_vm5, %v17435_v61, %v17436_v56  ;;  %v16009_v18 = vld [vmem:[%s20056_s17 + $0x48] sm:$0xff]  ;;  %v11875_v19 = vsel %vm1249_vm6, %v17440_v14, %v17441_v10  ;;  %vm20065_vm5 = vcmask 842752  }
 0xddb   : > { %v17444_v63 = vpop.permute.xlu0 %17443  ;;  %v16342_v6 = vpack.c.bf16 %v11784_v2, %v11783_v5  ;;  %v17449_v15 = vpop.permute.xlu1 %17448 }
 0xddc   : > { %v17446_v0 = vunpack.i.h.bf16 %v17444_v63  ;;  %v17445_v11 = vunpack.i.l.bf16 %v17444_v63  ;;  %v17451_v20 = vunpack.i.h.bf16 %v17449_v15  ;;  %v17450_v25 = vunpack.i.l.bf16 %v17449_v15 }
 0xdde   : > { %v16344_v12 = vpack.c.bf16 %v17446_v0, %v17441_v10  ;;  %v11876_v16 = vsel %vm1249_vm6, %v17445_v11, %v17446_v0  ;;  %vm20066_vm6 = vmmov %vm20065_vm5 }
 0xddf   : > { %v17454_v13 = vpop.permute.xlu0 %17453  ;;  %v16346_v21 = vpack.c.bf16 %v11876_v16, %v11875_v19  ;;  %v17459_v26 = vpop.permute.xlu1 %17458  ;;  %v11967_v29 = vsel %vm20066_vm6, %v17450_v25, %v17451_v20  ;;  %vm20077_vm6 = vcmask 736256  }
 0xde0   : > { %16000 = vmatmul.mubr.msk.f32.vlgmr.msra.gmra.mrb[14].mxu0 %vm5443_vm1, %v15999_v24  ;;  %v17456_v17 = vunpack.i.h.bf16 %v17454_v13  ;;  %v17455_v22 = vunpack.i.l.bf16 %v17454_v13  ;;  %v17461_v8 = vunpack.i.h.bf16 %v17459_v26  ;;  %v17460_v34 = vunpack.i.l.bf16 %v17459_v26 }
 0xde1   : > { %16327 = vmatpush1.bf16.msra.mxu0 %v16326_v27  ;;  %11488 = vmatprep.mubr.f32.mxu0 %v18678_v4 }
 0xde2   : > { %16329 = vmatprep.subr.bf16.mxu0 %v16328_v7  ;;  %v16348_v23 = vpack.c.bf16 %v17456_v17, %v17451_v20  ;;  %v11968_v27 = vsel %vm20065_vm5, %v17455_v22, %v17456_v17  ;;  %v16011_v7 = vld [vmem:[%s20056_s17 + $0x50] sm:$0xff]  ;;  %v12059_v39 = vsel %vm20068_vm0, %v17460_v34, %v17461_v8  ;;  %vm20076_vm5 = vmmov %vm20075_vm12  ;;  %vm20079_vm0 = vcmask 728064  }
 0xde3   : > { %v17464_v24 = vpop.permute.xlu0 %17463  ;;  %v16350_v30 = vpack.c.bf16 %v11968_v27, %v11967_v29  ;;  %v17469_v35 = vpop.permute.xlu1 %17468 }
 0xde4   : > { %v17466_v28 = vunpack.i.h.bf16 %v17464_v24  ;;  %v17465_v31 = vunpack.i.l.bf16 %v17464_v24  ;;  %v17471_v40 = vunpack.i.h.bf16 %v17469_v35  ;;  %v17470_v48 = vunpack.i.l.bf16 %v17469_v35 }
 0xde6   : > { %v16352_v32 = vpack.c.bf16 %v17466_v28, %v17461_v8  ;;  %v12151_v44 = vsel %vm20070_vm7, %v17470_v48, %v17471_v40  ;;  %vm20081_vm7 = vcmask 719872  }
 0xde7   : > { %v17479_v49 = vpop.permute.xlu1 %17478 }
 0xde8   : > { %16002 = vmatmul.mubr.msk.f32.vlgmr.msra.gmra.mrb[14].mxu0 %vm5443_vm1, %v16001_v33  ;;  %v17474_v33 = vpop.permute.xlu0 %17473  ;;  %v17481_v53 = vunpack.i.h.bf16 %v17479_v49  ;;  %v17480_v58 = vunpack.i.l.bf16 %v17479_v49 }
 0xde9   : > { %16331 = vmatpush1.bf16.msra.mxu0 %v16330_v36  ;;  %11580 = vmatprep.mubr.f32.mxu0 %v18678_v4  ;;  %v12060_v36 = vsel %vm20067_vm11, %v17465_v31, %v17466_v28  ;;  %v17476_v37 = vunpack.i.h.bf16 %v17474_v33  ;;  %v17475_v42 = vunpack.i.l.bf16 %v17474_v33  ;;  %vm20078_vm11 = vmmov %vm20077_vm6 }
 0xdea   : > { %16333 = vmatprep.subr.bf16.mxu0 %v16332_v38  ;;  %v16013_v38 = vld [vmem:[%s20056_s17 + $0x58] sm:$0xff]  ;;  %v16354_v41 = vpack.c.bf16 %v12060_v36, %v12059_v39  ;;  %v12243_v63 = vsel %vm20072_vm10, %v17480_v58, %v17481_v53  ;;  %vm20083_vm10 = vcmask 654336  }
 0xdeb   : > { %v16356_v46 = vpack.c.bf16 %v17476_v37, %v17471_v40  ;;  %v17489_v59 = vpop.permute.xlu1 %17488 }
 0xdec   : > { %v17491_v1 = vunpack.i.h.bf16 %v17489_v59  ;;  %v17490_v5 = vunpack.i.l.bf16 %v17489_v59 }
 0xdee   : > { %v12335_v13 = vsel %vm20074_vm3, %v17490_v5, %v17491_v1  ;;  %vm20085_vm3 = vcmask 646144  }
 0xdef   : > { %v17499_v10 = vpop.permute.xlu1 %17498 }
 0xdf0   : > { %16004 = vmatmul.mubr.msk.f32.vlgmr.msra.gmra.mrb[14].mxu0 %vm5443_vm1, %v16003_v47  ;;  %v17484_v47 = vpop.permute.xlu0 %17483  ;;  %v17501_v14 = vunpack.i.h.bf16 %v17499_v10  ;;  %v17500_v19 = vunpack.i.l.bf16 %v17499_v10 }
 0xdf1   : > { %16335 = vmatpush1.bf16.msra.mxu0 %v16334_v50  ;;  %11672 = vmatprep.mubr.f32.mxu0 %v18678_v4  ;;  %v12152_v50 = vsel %vm20069_vm2, %v17475_v42, %v17476_v37  ;;  %v17486_v51 = vunpack.i.h.bf16 %v17484_v47  ;;  %v17485_v55 = vunpack.i.l.bf16 %v17484_v47  ;;  %vm20080_vm2 = vmmov %vm20079_vm0 }
 0xdf2   : > { %16337 = vmatprep.subr.bf16.mxu0 %v16336_v52  ;;  %v16015_v52 = vld [vmem:[%s20056_s17 + $0x60] sm:$0xff]  ;;  %v16358_v54 = vpack.c.bf16 %v12152_v50, %v12151_v44  ;;  %v12427_v24 = vsel %vm20076_vm5, %v17500_v19, %v17501_v14  ;;  %vm20087_vm5 = vcmask 637952  }
 0xdf3   : > { %v16360_v56 = vpack.c.bf16 %v17486_v51, %v17481_v53  ;;  %v17509_v20 = vpop.permute.xlu1 %17508 }
 0xdf4   : > { %v17511_v25 = vunpack.i.h.bf16 %v17509_v20  ;;  %v17510_v29 = vunpack.i.l.bf16 %v17509_v20 }
 0xdf6   : > { %v12519_v33 = vsel %vm20078_vm11, %v17510_v29, %v17511_v25  ;;  %vm20089_vm11 = vcmask 629760  }
 0xdf7   : > { %v17519_v8 = vpop.permute.xlu1 %17518 }
 0xdf8   : > { %16006 = vmatmul.mubr.msk.f32.vlgmr.msra.gmra.mrb[14].mxu0 %vm5443_vm1, %v16005_v57  ;;  %v17494_v57 = vpop.permute.xlu0 %17493  ;;  %v17521_v34 = vunpack.i.h.bf16 %v17519_v8  ;;  %v17520_v39 = vunpack.i.l.bf16 %v17519_v8 }
 0xdf9   : > { %16339 = vmatpush1.bf16.msra.mxu0 %v16338_v60  ;;  %11764 = vmatprep.mubr.f32.mxu0 %v18678_v4  ;;  %v12244_v60 = vsel %vm20071_vm8, %v17485_v55, %v17486_v51  ;;  %v17496_v61 = vunpack.i.h.bf16 %v17494_v57  ;;  %v17495_v2 = vunpack.i.l.bf16 %v17494_v57  ;;  %vm20082_vm8 = vmmov %vm20081_vm7 }
 0xdfa   : > { %16341 = vmatprep.subr.bf16.mxu0 %v16340_v62  ;;  %v16017_v62 = vld [vmem:[%s20056_s17 + $0x68] sm:$0xff]  ;;  %v16362_v3 = vpack.c.bf16 %v12244_v60, %v12243_v63  ;;  %v12611_v47 = vsel %vm20080_vm2, %v17520_v39, %v17521_v34  ;;  %vm20091_vm2 = vcmask 621568  }
 0xdfb   : > { %v16364_v0 = vpack.c.bf16 %v17496_v61, %v17491_v1  ;;  %v17529_v40 = vpop.permute.xlu1 %17528 }
 0xdfc   : > { %v17531_v48 = vunpack.i.h.bf16 %v17529_v40  ;;  %v17530_v44 = vunpack.i.l.bf16 %v17529_v40 }
 0xdfe   : > { %v12703_v57 = vsel %vm20082_vm8, %v17530_v44, %v17531_v48  ;;  %vm20093_vm8 = vcmp.eq.s32.totalorder %v18064_v43, 1 }
 0xdff   : > { %v17539_v53 = vpop.permute.xlu1 %17538 }
 0xe00   : > { %16008 = vmatmul.mubr.msk.f32.vlgmr.msra.gmra.mrb[14].mxu0 %vm5443_vm1, %v16007_v9  ;;  %v17504_v9 = vpop.permute.xlu0 %17503  ;;  %v17541_v58 = vunpack.i.h.bf16 %v17539_v53  ;;  %v17540_v63 = vunpack.i.l.bf16 %v17539_v53 }
 0xe01   : > { %16343 = vmatpush1.bf16.msra.mxu0 %v16342_v6  ;;  %11856 = vmatprep.mubr.f32.mxu0 %v18678_v4  ;;  %v12336_v6 = vsel %vm20073_vm9, %v17495_v2, %v17496_v61  ;;  %v17506_v11 = vunpack.i.h.bf16 %v17504_v9  ;;  %v17505_v16 = vunpack.i.l.bf16 %v17504_v9  ;;  %vm20084_vm9 = vmmov %vm20083_vm10 }
 0xe02   : > { %16345 = vmatprep.subr.bf16.mxu0 %v16344_v12  ;;  %v16019_v12 = vld [vmem:[%s20056_s17 + $0x70] sm:$0xff]  ;;  %v16366_v15 = vpack.c.bf16 %v12336_v6, %v12335_v13  ;;  %v12795_v9 = vsel %vm20084_vm9, %v17540_v63, %v17541_v58 }
 0xe03   : > { %v16368_v17 = vpack.c.bf16 %v17506_v11, %v17501_v14  ;;  %v17549_v1 = vpop.permute.xlu1 %17548 }
 0xe04   : > { %v17551_v5 = vunpack.i.h.bf16 %v17549_v1  ;;  %v17550_v13 = vunpack.i.l.bf16 %v17549_v1 }
 0xe07   : > { %v17559_v14 = vpop.permute.xlu1 %17558 }
 0xe08   : > { %16010 = vmatmul.mubr.msk.f32.vlgmr.msra.gmra.mrb[14].mxu0 %vm5443_vm1, %v16009_v18  ;;  %v17514_v18 = vpop.permute.xlu0 %17513  ;;  %v17561_v19 = vunpack.i.h.bf16 %v17559_v14 }
 0xe09   : > { %16347 = vmatpush1.bf16.msra.mxu0 %v16346_v21  ;;  %11948 = vmatprep.mubr.f32.mxu0 %v18678_v4  ;;  %v12428_v21 = vsel %vm20075_vm12, %v17505_v16, %v17506_v11  ;;  %v17516_v22 = vunpack.i.h.bf16 %v17514_v18  ;;  %v17515_v27 = vunpack.i.l.bf16 %v17514_v18  ;;  %vm20086_vm12 = vmmov %vm20085_vm3 }
 0xe0a   : > { %16349 = vmatprep.subr.bf16.mxu0 %v16348_v23  ;;  %v16021_v23 = vld [vmem:[%s20056_s17 + $0x78] sm:$0xff]  ;;  %v16370_v26 = vpack.c.bf16 %v12428_v21, %v12427_v24  ;;  %v12887_v18 = vsel %vm20086_vm12, %v17550_v13, %v17551_v5  ;;  %v17560_v24 = vunpack.i.l.bf16 %v17559_v14 }
 0xe0b   : > { %v16372_v28 = vpack.c.bf16 %v17516_v22, %v17511_v25  ;;  %v17569_v25 = vpop.permute.xlu1 %17568 }
 0xe0c   : > { %v17571_v29 = vunpack.i.h.bf16 %v17569_v25 }
 0xe10   : > { %16012 = vmatmul.mubr.msk.f32.vlgmr.msra.gmra.mrb[14].mxu0 %vm5443_vm1, %v16011_v7  ;;  %v17524_v7 = vpop.permute.xlu0 %17523 }
 0xe11   : > { %16351 = vmatpush1.bf16.msra.mxu0 %v16350_v30  ;;  %12040 = vmatprep.mubr.f32.mxu0 %v18678_v4  ;;  %v12520_v30 = vsel %vm20077_vm6, %v17515_v27, %v17516_v22  ;;  %v17526_v31 = vunpack.i.h.bf16 %v17524_v7  ;;  %v17525_v36 = vunpack.i.l.bf16 %v17524_v7  ;;  %vm20088_vm6 = vmmov %vm20087_vm5 }
 0xe12   : > { %16353 = vmatprep.subr.bf16.mxu0 %v16352_v32  ;;  %v16023_v32 = vld [vmem:[%s20056_s17 + $0x80] sm:$0xff]  ;;  %v16374_v35 = vpack.c.bf16 %v12520_v30, %v12519_v33  ;;  %v12979_v7 = vsel %vm20088_vm6, %v17560_v24, %v17561_v19  ;;  %v17570_v33 = vunpack.i.l.bf16 %v17569_v25 }
 0xe13   : > { %v16376_v37 = vpack.c.bf16 %v17526_v31, %v17521_v34  ;;  %v17579_v34 = vpop.permute.xlu1 %17578 }
 0xe14   : > { %v17581_v39 = vunpack.i.h.bf16 %v17579_v34 }
 0xe18   : > { %16014 = vmatmul.mubr.msk.f32.vlgmr.msra.gmra.mrb[14].mxu0 %vm5443_vm1, %v16013_v38  ;;  %v17534_v38 = vpop.permute.xlu0 %17533 }
 0xe19   : > { %16355 = vmatpush1.bf16.msra.mxu0 %v16354_v41  ;;  %12132 = vmatprep.mubr.f32.mxu0 %v18678_v4  ;;  %v12612_v41 = vsel %vm20079_vm0, %v17525_v36, %v17526_v31  ;;  %v17536_v42 = vunpack.i.h.bf16 %v17534_v38  ;;  %v17535_v50 = vunpack.i.l.bf16 %v17534_v38  ;;  %vm20090_vm0 = vmmov %vm20089_vm11 }
 0xe1a   : > { %16357 = vmatprep.subr.bf16.mxu0 %v16356_v46  ;;  %v16025_v46 = vld [vmem:[%s20056_s17 + $0x88] sm:$0xff]  ;;  %v16378_v49 = vpack.c.bf16 %v12612_v41, %v12611_v47  ;;  %v13071_v38 = vsel %vm20090_vm0, %v17570_v33, %v17571_v29  ;;  %v13369_v33 = vld [vmem:[%s20098_s0] sm:$0xf] }
 0xe1b   : > { %v16380_v51 = vpack.c.bf16 %v17536_v42, %v17531_v48  ;;  %v16037_v48 = vld [vmem:[%s20056_s17 + $0xb8] sm:$0xff] }
 0xe20   : > { %16016 = vmatmul.mubr.msk.f32.vlgmr.msra.gmra.mrb[14].mxu0 %vm5443_vm1, %v16015_v52  ;;  %v17544_v52 = vpop.permute.xlu0 %17543 }
 0xe21   : > { %16359 = vmatpush1.bf16.msra.mxu0 %v16358_v54  ;;  %12224 = vmatprep.mubr.f32.mxu0 %v18678_v4  ;;  %v12704_v54 = vsel %vm20081_vm7, %v17535_v50, %v17536_v42  ;;  %v17546_v55 = vunpack.i.h.bf16 %v17544_v52  ;;  %v17545_v60 = vunpack.i.l.bf16 %v17544_v52  ;;  %vm20092_vm7 = vmmov %vm20091_vm2  ;;  %v13249_v52 = vpop.permute.xlu1 %13248 }
 0xe22   : > { %16361 = vmatprep.subr.bf16.mxu0 %v16360_v56  ;;  %v16027_v56 = vld [vmem:[%s20056_s17 + $0x90] sm:$0xff]  ;;  %v16382_v59 = vpack.c.bf16 %v12704_v54, %v12703_v57 }
 0xe23   : > { %v16384_v61 = vpack.c.bf16 %v17546_v55, %v17541_v58 }
 0xe28   : > { %16018 = vmatmul.mubr.msk.f32.vlgmr.msra.gmra.mrb[14].mxu0 %vm5443_vm1, %v16017_v62  ;;  %v17554_v62 = vpop.permute.xlu0 %17553 }
 0xe29   : > { %16363 = vmatpush1.bf16.msra.mxu0 %v16362_v3  ;;  %12316 = vmatprep.mubr.f32.mxu0 %v18678_v4  ;;  %v12796_v3 = vsel %vm20083_vm10, %v17545_v60, %v17546_v55  ;;  %v17556_v2 = vunpack.i.h.bf16 %v17554_v62  ;;  %v17555_v6 = vunpack.i.l.bf16 %v17554_v62  ;;  %vm20094_vm10 = vcmp.eq.s32.totalorder %v18066_v45, 1  ;;  %v13255_v60 = vld [vmem:[%s20095_s18] sm:$0xff] }
 0xe2a   : > { %16365 = vmatprep.subr.bf16.mxu0 %v16364_v0  ;;  %v16029_v0 = vld [vmem:[%s20056_s17 + $0x98] sm:$0xff]  ;;  %v16386_v10 = vpack.c.bf16 %v12796_v3, %v12795_v9 }
 0xe2b   : > { %v16388_v11 = vpack.c.bf16 %v17556_v2, %v17551_v5 }
 0xe30   : > { %16020 = vmatmul.mubr.msk.f32.vlgmr.msra.gmra.mrb[14].mxu0 %vm5443_vm1, %v16019_v12  ;;  %v17564_v12 = vpop.permute.xlu0 %17563 }
 0xe31   : > { %16367 = vmatpush1.bf16.msra.mxu0 %v16366_v15  ;;  %12408 = vmatprep.mubr.f32.mxu0 %v18678_v4  ;;  %v12888_v15 = vsel %vm20085_vm3, %v17555_v6, %v17556_v2  ;;  %v17566_v16 = vunpack.i.h.bf16 %v17564_v12  ;;  %v17565_v21 = vunpack.i.l.bf16 %v17564_v12 }
 0xe32   : > { %16369 = vmatprep.subr.bf16.mxu0 %v16368_v17  ;;  %v16031_v17 = vld [vmem:[%s20056_s17 + $0xa0] sm:$0xff]  ;;  %v16390_v20 = vpack.c.bf16 %v12888_v15, %v12887_v18 }
 0xe33   : > { %v16392_v22 = vpack.c.bf16 %v17566_v16, %v17561_v19 }
 0xe38   : > { %16022 = vmatmul.mubr.msk.f32.vlgmr.msra.gmra.mrb[14].mxu0 %vm5443_vm1, %v16021_v23  ;;  %v17574_v23 = vpop.permute.xlu0 %17573 }
 0xe39   : > { %16371 = vmatpush1.bf16.msra.mxu0 %v16370_v26  ;;  %12500 = vmatprep.mubr.f32.mxu0 %v18678_v4  ;;  %v12980_v26 = vsel %vm20087_vm5, %v17565_v21, %v17566_v16  ;;  %v17576_v27 = vunpack.i.h.bf16 %v17574_v23  ;;  %v17575_v30 = vunpack.i.l.bf16 %v17574_v23 }
 0xe3a   : > { %16373 = vmatprep.subr.bf16.mxu0 %v16372_v28  ;;  %v16033_v28 = vld [vmem:[%s20056_s17 + $0xa8] sm:$0xff]  ;;  %v16394_v8 = vpack.c.bf16 %v12980_v26, %v12979_v7 }
 0xe3b   : > { %v16396_v31 = vpack.c.bf16 %v17576_v27, %v17571_v29 }
 0xe40   : > { %16024 = vmatmul.mubr.msk.f32.vlgmr.msra.gmra.mrb[14].mxu0 %vm5443_vm1, %v16023_v32  ;;  %v17584_v32 = vpop.permute.xlu0 %17583 }
 0xe41   : > { %16375 = vmatpush1.bf16.msra.mxu0 %v16374_v35  ;;  %12592 = vmatprep.mubr.f32.mxu0 %v18678_v4  ;;  %v13072_v35 = vsel %vm20089_vm11, %v17575_v30, %v17576_v27  ;;  %v17586_v36 = vunpack.i.h.bf16 %v17584_v32  ;;  %v17585_v41 = vunpack.i.l.bf16 %v17584_v32 }
 0xe42   : > { %16377 = vmatprep.subr.bf16.mxu0 %v16376_v37  ;;  %v16035_v37 = vld [vmem:[%s20056_s17 + $0xb0] sm:$0xff]  ;;  %v16398_v40 = vpack.c.bf16 %v13072_v35, %v13071_v38 }
 0xe43   : > { %v16400_v42 = vpack.c.bf16 %v17586_v36, %v17581_v39  ;;  %v13164_v47 = vsel %vm20091_vm2, %v17585_v41, %v17586_v36  ;;  %vm20105_vm2 = vcmask 744448   ;;  %v16045_v41 = vld [vmem:[%s20098_s0 + $0x8] sm:$0xf] }
 0xe48   : > { %16026 = vmatmul.mubr.msk.f32.vlgmr.msra.gmra.mrb[14].mxu0 %vm5443_vm1, %v16025_v46  ;;  %v17580_v46 = vunpack.i.l.bf16 %v17579_v34  ;;  %v16060_v34 = vld [vmem:[%s20098_s0 + $0x28] sm:$0xf] }
 0xe49   : > { %16379 = vmatpush1.bf16.msra.mxu0 %v16378_v49  ;;  %12684 = vmatprep.mubr.f32.mxu0 %v18678_v4 }
 0xe4a   : > { %16381 = vmatprep.subr.bf16.mxu0 %v16380_v51  ;;  %v13163_v49 = vsel %vm20092_vm7, %v17580_v46, %v17581_v39  ;;  %v16039_v51 = vld [vmem:[%s20056_s17 + $0xc0] sm:$0xff] }
 0xe4b   : > { %v16402_v50 = vpack.c.bf16 %v13164_v47, %v13163_v49 }
 0xe50   : > { %16028 = vmatmul.mubr.msk.f32.vlgmr.msra.gmra.mrb[14].mxu0 %vm5443_vm1, %v16027_v56 }
 0xe51   : > { %16383 = vmatpush1.bf16.msra.mxu0 %v16382_v59  ;;  %12776 = vmatprep.mubr.f32.mxu0 %v18678_v4 }
 0xe52   : > { %16385 = vmatprep.subr.bf16.mxu0 %v16384_v61  ;;  %v13262_v61 = vpop.permute.xlu0 %13261 }
 0xe58   : > { %16030 = vmatmul.mubr.msk.f32.vlgmr.msra.gmra.mrb[14].mxu0 %vm5443_vm1, %v16029_v0 }
 0xe59   : > { %16387 = vmatpush1.bf16.msra.mxu0 %v16386_v10  ;;  %12868 = vmatprep.mubr.f32.mxu0 %v18678_v4 }
 0xe5a   : > { %16389 = vmatprep.subr.bf16.mxu0 %v16388_v11 }
 0xe60   : > { %16032 = vmatmul.mubr.msk.f32.vlgmr.msra.gmra.mrb[14].mxu0 %vm5443_vm1, %v16031_v17 }
 0xe61   : > { %16391 = vmatpush1.bf16.msra.mxu0 %v16390_v20  ;;  %12960 = vmatprep.mubr.f32.mxu0 %v18678_v4 }
 0xe62   : > { %16393 = vmatprep.subr.bf16.mxu0 %v16392_v22 }
 0xe68   : > { %16034 = vmatmul.mubr.msk.f32.vlgmr.msra.gmra.mrb[14].mxu0 %vm5443_vm1, %v16033_v28  ;;  %v16042_v28 = vld [vmem:[%s20098_s0 + $0x4] sm:$0xf] }
 0xe69   : > { %16395 = vmatpush1.bf16.msra.mxu0 %v16394_v8  ;;  %13052 = vmatprep.mubr.f32.mxu0 %v18678_v4 }
 0xe6a   : > { %16397 = vmatprep.subr.bf16.mxu0 %v16396_v31 }
 0xe70   : > { %16036 = vmatmul.mubr.msk.f32.vlgmr.msra.gmra.mrb[14].mxu0 %vm5443_vm1, %v16035_v37 }
 0xe71   : > { %16399 = vmatpush1.bf16.msra.mxu0 %v16398_v40  ;;  %13144 = vmatprep.mubr.f32.mxu0 %v18678_v4 }
 0xe72   : > { %16401 = vmatprep.subr.bf16.mxu0 %v16400_v42  ;;  %v16059_v42 = vld [vmem:[%s20098_s0 + $0x24] sm:$0xf] }
 0xe78   : > { %16038 = vmatmul.mubr.msk.f32.vlgmr.msra.gmra.mrb[14].mxu0 %vm5443_vm1, %v16037_v48 }
 0xe79   : > { %16403 = vmatpush1.bf16.msra.mxu0 %v16402_v50  ;;  %13236 = vmatprep.mubr.f32.mxu0 %v18678_v4 }
 0xe80   : > { %16040 = vmatmul.mubr.msk.f32.vlgmr.msra.gmra.mrb[14].mxu0 %vm5443_vm1, %v16039_v51  ;;  %vm20096_vm1 = vcmask 64512  }
 0xe81   : > { %14224 = vmatprep.mubr.f32.mxu0 %v18678_v4  ;;  %vm20103_vm11 = vmmov %vm20096_vm1 }
 0xe82   : > { %vm20104_vm0 = vmmov %vm20096_vm1 }
 0xf53   : > { %v13238_v44 = vpop.f32.mrb[14].mxu0 }
 0xf54   : > { %v13251_v53 = vadd.f32 %v13249_v52, %v13238_v44  ;;  %v13240_v54 = vpop.f32.mrb[15].mxu0  ;;  %v16063_v44 = vld [vmem:[%s20098_s0 + $0x30] sm:$0xf] }
 0xf55   : > { %v13252_v55 = vadd.f32 %v13249_v52, %v13240_v54  ;;  %v16047_v52 = vld [vmem:[%s20098_s0 + $0xc] sm:$0xf] }
 0xf56   : > { %v13253_v56 = vsel %vm20093_vm8, %v13251_v53, 0.0  ;;  %vm20107_vm8 = vmmov %vm20104_vm0 }
 0xf57   : > { %v13254_v57 = vsel %vm20094_vm10, %v13252_v55, 0.0  ;;  %v13256_v59 = vmul.f32 %v13253_v56, %v13253_v56  ;;  %vm20108_vm10 = vmmov %vm20104_vm0 }
 0xf58   : > { %v13257_v58 = vmul.f32 %v13254_v57, %v13254_v57 }
 0xf5a   : > { %13267 = vmatprep.subr.mxu1 %v13257_v58 }
 0xf5b   : > { %13268 = vmatpush1.msra.mxu1 %v13256_v59  ;;  %v16049_v59 = vld [vmem:[%s20098_s0 + $0x10] sm:$0xf] }
 0xf5c   : > { %16041 = vmatmul.mubr.msk.f32.vlgmr.msra.gmra.mrb[10].mxu1 %vm20096_vm1, %v13255_v60  ;;  %v16065_v60 = vld [vmem:[%s20098_s0 + $0x34] sm:$0xf] }
 0xf5d   : > { %13448 = vmatprep.mubr.f32.mxu1 %v18678_v4 }
0x102f   : > { %v13333_v62 = vpop.f32.mrb[10].mxu1 }
0x1030   : > { %v13334_v63 = vadd.f32 %v13333_v62, %v13262_v61  ;;  %v13335_v43 = vpop.f32.mrb[11].mxu1 }
0x1031   : > { %v13336_v1 = vadd.f32 %v13335_v43, %v13262_v61 }
0x1032   : > { %v13338_v3 = vmax.f32 %v13334_v63, 1e-09 }
0x1033   : > { %v13339_v45 = vmax.f32 %v13336_v1, 1e-09 }
0x1034   : > { %17607 = vrsqrt.f32 %v13338_v3  ;;  %vm13342_vm9 = vcmp.eq.f32.partialorder %v13338_v3, inf  ;;  %v13345_v5 = vand.u32 2147483648, %v13338_v3  ;;  %vm13344_vm3 = vcmp.eq.f32.partialorder %v13338_v3, 0.0 }
0x1035   : > { %17609 = vrsqrt.f32 %v13339_v45  ;;  %vm13349_vm12 = vcmp.eq.f32.partialorder %v13339_v45, inf  ;;  %v13352_v11 = vand.u32 2147483648, %v13339_v45  ;;  %vm13351_vm5 = vcmp.eq.f32.partialorder %v13339_v45, 0.0 }
0x103e   : > { %v17608_v2 = vpop.eup %17607 }
0x103f   : > { %v17610_v0 = vpop.eup %17609  ;;  %v13341_v9 = vmul.f32 %v17608_v2, %v13338_v3  ;;  %v16067_v2 = vld [vmem:[%s20098_s0 + $0x3c] sm:$0xf] }
0x1040   : > { %v13348_v10 = vmul.f32 %v17610_v0, %v13339_v45 }
0x1041   : > { %v13343_v6 = vsel %vm13342_vm9, %v13338_v3, %v13341_v9 }
0x1042   : > { %v13346_v12 = vsel %vm13344_vm3, %v13345_v5, %v13343_v6  ;;  %v13350_v13 = vsel %vm13349_vm12, %v13339_v45, %v13348_v10  ;;  %vm20111_vm3 = vmmov %vm20104_vm0  ;;  %v16051_v45 = vld [vmem:[%s20098_s0 + $0x14] sm:$0xf] }
0x1043   : > { %v13354_v14 = vmul.f32 %v13346_v12, %v13253_v56  ;;  %v13353_v15 = vsel %vm13351_vm5, %v13352_v11, %v13350_v13  ;;  %vm20112_vm12 = vmmov %vm20104_vm0  ;;  %vm20113_vm5 = vcmask 834560   ;;  %v16053_v12 = vld [vmem:[%s20098_s0 + $0x18] sm:$0xf]  ;;  %v16069_v13 = vld [vmem:[%s20098_s0 + $0x40] sm:$0xf] }
0x1044   : > { %v13355_v16 = vmul.f32 %v13353_v15, %v13254_v57 }
0x1045   : > { %13358 = vrot.lane.b32.xlu1 %v13354_v14, %s19958_s7 }
0x1046   : > { %13360 = vrot.lane.b32.xlu0 %v13355_v16, %s19958_s7 }
0x10b7   : > { %v13359_v17 = vpop.permute.xlu1 %13358 }
0x10b8   : > { %13365 = vst.msk [vmem:[#allocation2] sm:$0xff] %vm2972_vm13, %v13359_v17  ;;  %v13361_v18 = vpop.permute.xlu0 %13360  ;;  %vm20099_vm13 = vcmask 736256  }
0x10b9   : > { %v13362_v19 = vsel %vm2968_vm14, %v13359_v17, %v13361_v18  ;;  %vm20100_vm14 = vmmov %vm20096_vm1  ;;  %vm20109_vm1 = vcmask 826368   ;;  %v16072_v17 = vld [vmem:[%s20098_s0 + $0x4c] sm:$0xf] }
0x10ba   : > { %13366 = vst.msk [vmem:[#allocation2 + $0x8] sm:$0xff] %vm2974_vm15, %v13362_v19  ;;  %vm20101_vm15 = vcmask 728064   ;;  %vm20102_vm6 = vmmov %vm20099_vm13 }
0x10bb   : > { %vm20106_vm7 = vmmov %vm20101_vm15 }
0x10bc   : > { %vm20110_vm9 = vmmov %vm20109_vm1 }
0x10bf   : > { %v13367_v20 = vld [vmem:[#allocation2] sm:$0xff] }
0x10c0   : > { %13374 = vrot.lane.b32.xlu1 %v13367_v20, %s19971_s20 }
0x10c1   : > { %v13368_v21 = vld [vmem:[#allocation2 + $0x8] sm:$0xff] }
0x10c2   : > { %13376 = vrot.lane.b32.xlu0 %v13368_v21, %s19971_s20 }
0x10c4   : > { %13455 = vrot.lane.b32.xlu1 %v13367_v20, %s19972_s21 }
0x10c6   : > { %13457 = vrot.lane.b32.xlu0 %v13368_v21, %s19972_s21 }
0x10c8   : > { %14150 = vrot.lane.b32.xlu1 %v13367_v20, %s19971_s20 }
0x10ca   : > { %14152 = vrot.lane.b32.xlu0 %v13368_v21, %s19971_s20 }
0x10cc   : > { %13538 = vrot.lane.b32.xlu1 %v13367_v20, %s19970_s23 }
0x10ce   : > { %13540 = vrot.lane.b32.xlu0 %v13368_v21, %s19970_s23 }
0x10d0   : > { %14231 = vrot.lane.b32.xlu1 %v13367_v20, %s19972_s21 }
0x10d2   : > { %14233 = vrot.lane.b32.xlu0 %v13368_v21, %s19972_s21 }
0x10d4   : > { %13623 = vrot.lane.b32.xlu1 %v13367_v20, %s19967_s6 }
0x10d6   : > { %13625 = vrot.lane.b32.xlu0 %v13368_v21, %s19967_s6 }
0x10d8   : > { %14314 = vrot.lane.b32.xlu1 %v13367_v20, %s19967_s6 }
0x10da   : > { %14316 = vrot.lane.b32.xlu0 %v13368_v21, %s19967_s6 }
0x10dc   : > { %13708 = vrot.lane.b32.xlu1 %v13367_v20, %s19953_s1 }
0x10de   : > { %13710 = vrot.lane.b32.xlu0 %v13368_v21, %s19953_s1 }
0x10e0   : > { %14399 = vrot.lane.b32.xlu1 %v13367_v20, %s19953_s1 }
0x10e2   : > { %14401 = vrot.lane.b32.xlu0 %v13368_v21, %s19953_s1 }
0x10e4   : > { %13793 = vrot.lane.b32.xlu1 %v13367_v20, %s19952_s26 }
0x10e6   : > { %13795 = vrot.lane.b32.xlu0 %v13368_v21, %s19952_s26 }
0x10e8   : > { %14484 = vrot.lane.b32.xlu1 %v13367_v20, %s19965_s28 }
0x10ea   : > { %14486 = vrot.lane.b32.xlu0 %v13368_v21, %s19965_s28 }
0x10ec   : > { %13878 = vrot.lane.b32.xlu1 %v13367_v20, %s19965_s28 }
0x10ee   : > { %13880 = vrot.lane.b32.xlu0 %v13368_v21, %s19965_s28 }
0x10f0   : > { %14569 = vrot.lane.b32.xlu1 %v13367_v20, %s19950_s25 }
0x10f2   : > { %14571 = vrot.lane.b32.xlu0 %v13368_v21, %s19950_s25 }
0x10f4   : > { %14677 = vrot.lane.b32.xlu1 %v13367_v20, %s19971_s20 }
0x10f6   : > { %14679 = vrot.lane.b32.xlu0 %v13368_v21, %s19971_s20 }
0x10f8   : > { %13963 = vrot.lane.b32.xlu1 %v13367_v20, %s19950_s25 }
0x10fa   : > { %13965 = vrot.lane.b32.xlu0 %v13368_v21, %s19950_s25 }
0x10fc   : > { %14758 = vrot.lane.b32.xlu1 %v13367_v20, %s19972_s21 }
0x10fe   : > { %14760 = vrot.lane.b32.xlu0 %v13368_v21, %s19972_s21 }
0x1100   : > { %14048 = vrot.lane.b32.xlu1 %v13367_v20, %s19964_s24 }
0x1102   : > { %14050 = vrot.lane.b32.xlu0 %v13368_v21, %s19964_s24 }
0x1104   : > { %15197 = vrot.lane.b32.xlu1 %v13367_v20, %s19971_s20 }
0x1106   : > { %15199 = vrot.lane.b32.xlu0 %v13368_v21, %s19971_s20 }
0x1108   : > { %14841 = vrot.lane.b32.xlu1 %v13367_v20, %s19970_s23 }
0x110a   : > { %14843 = vrot.lane.b32.xlu0 %v13368_v21, %s19970_s23  ;;  %s20097_s23 = sld [smem:[#allocation27_spill]] }
0x110c   : > { %15278 = vrot.lane.b32.xlu1 %v13367_v20, %s19972_s21 }
0x110e   : > { %15280 = vrot.lane.b32.xlu0 %v13368_v21, %s19972_s21 }
0x1110   : > { %14926 = vrot.lane.b32.xlu1 %v13367_v20, %s19967_s6  ;;  %v14652_v22 = vld [vmem:[%s20097_s23] sm:$0xf] }
0x1111   : > { %v15529_v23 = vld [vmem:[%s20097_s23] sm:$0xf] }
0x1112   : > { %14928 = vrot.lane.b32.xlu0 %v13368_v21, %s19967_s6  ;;  %v14131_v24 = vld [vmem:[%s20097_s23] sm:$0xf] }
0x1113   : > { %v15179_v25 = vld [vmem:[%s20097_s23] sm:$0xf] }
0x1114   : > { %15361 = vrot.lane.b32.xlu1 %v13367_v20, %s19967_s6 }
0x1116   : > { %15363 = vrot.lane.b32.xlu0 %v13368_v21, %s19967_s6 }
0x1118   : > { %15011 = vrot.lane.b32.xlu1 %v13367_v20, %s19953_s1 }
0x111a   : > { %15013 = vrot.lane.b32.xlu0 %v13368_v21, %s19953_s1 }
0x111c   : > { %15446 = vrot.lane.b32.xlu1 %v13367_v20, %s19953_s1 }
0x111e   : > { %15448 = vrot.lane.b32.xlu0 %v13368_v21, %s19953_s1 }
0x1120   : > { %15096 = vrot.lane.b32.xlu1 %v13367_v20, %s19952_s26 }
0x1122   : > { %15098 = vrot.lane.b32.xlu0 %v13368_v21, %s19952_s26  ;;  %v16055_v21 = vld [vmem:[%s20098_s0 + $0x1c] sm:$0xf] }
0x1124   : > { %14655 = vperm.xlu1 %16866, %v14652_v22  }
0x1126   : > { %15532 = vperm.xlu0 %16865, %v15529_v23  }
0x1128   : > { %14134 = vperm.xlu1 %16866, %v14131_v24  }
0x112a   : > { %15182 = vperm.xlu0 %16865, %v15179_v25   ;;  %v16071_v25 = vld [vmem:[%s20098_s0 + $0x48] sm:$0xf] }
0x1132   : > { %v13375_v26 = vpop.permute.xlu1 %13374 }
0x1134   : > { %v13377_v27 = vpop.permute.xlu0 %13376 }
0x1135   : > { %v13378_v7 = vsel %vm20099_vm13, %v13375_v26, %v13377_v27  ;;  %13384 = vmatprep.subr.mxu1 %v13377_v27  ;;  %vm20114_vm13 = vmmov %vm20113_vm5 }
0x1136   : > { %v13456_v29 = vpop.permute.xlu1 %13455  ;;  %13385 = vmatpush1.msra.mxu1 %v13378_v7  ;;  %v16057_v7 = vld [vmem:[%s20098_s0 + $0x20] sm:$0xf] }
0x1137   : > { %16043 = vmatmul.mubr.msk.f32.vlgmr.msra.gmra.mrb[12].mxu1 %vm20100_vm14, %v16042_v28  ;;  %vm20115_vm14 = vmmov %vm20104_vm0 }
0x1138   : > { %v13458_v8 = vpop.permute.xlu0 %13457  ;;  %13529 = vmatprep.mubr.f32.mxu1 %v18678_v4 }
0x1139   : > { %v13459_v30 = vsel %vm20101_vm15, %v13456_v29, %v13458_v8  ;;  %13465 = vmatprep.subr.mxu1 %v13458_v8  ;;  %vm20116_vm15 = vmmov %vm20104_vm0 }
0x113a   : > { %v14151_v31 = vpop.permute.xlu1 %14150  ;;  %13466 = vmatpush1.msra.mxu1 %v13459_v30 }
0x113c   : > { %v14153_v32 = vpop.permute.xlu0 %14152 }
0x113d   : > { %v14154_v35 = vsel %vm20102_vm6, %v14151_v31, %v14153_v32  ;;  %14160 = vmatprep.subr.mxu0 %v14153_v32  ;;  %vm20117_vm6 = vcmask 842752   ;;  %v16084_v31 = vld [vmem:[%s20098_s0 + $0x70] sm:$0xf] }
0x113e   : > { %v13539_v36 = vpop.permute.xlu1 %13538  ;;  %14161 = vmatpush1.msra.mxu0 %v14154_v35  ;;  %v16075_v35 = vld [vmem:[%s20098_s0 + $0x50] sm:$0xf] }
0x113f   : > { %16044 = vmatmul.mubr.msk.f32.vlgmr.msra.gmra.mrb[12].mxu1 %vm20103_vm11, %v13369_v33  ;;  %16061 = vmatmul.mubr.msk.f32.vlgmr.msra.gmra.mrb[16].mxu0 %vm20104_vm0, %v16060_v34  ;;  %vm20118_vm11 = vmmov %vm20104_vm0 }
0x1140   : > { %v13541_v37 = vpop.permute.xlu0 %13540  ;;  %13612 = vmatprep.mubr.f32.mxu1 %v18678_v4  ;;  %14305 = vmatprep.mubr.f32.mxu0 %v18678_v4 }
0x1141   : > { %v13542_v38 = vsel %vm20105_vm2, %v13539_v36, %v13541_v37  ;;  %13548 = vmatprep.subr.mxu1 %v13541_v37  ;;  %vm20119_vm2 = vcmask 932864  }
0x1142   : > { %v14232_v39 = vpop.permute.xlu1 %14231  ;;  %13549 = vmatpush1.msra.mxu1 %v13542_v38 }
0x1144   : > { %v14234_v40 = vpop.permute.xlu0 %14233 }
0x1145   : > { %v14235_v46 = vsel %vm20106_vm7, %v14232_v39, %v14234_v40  ;;  %14241 = vmatprep.subr.mxu0 %v14234_v40  ;;  %vm20120_vm7 = vmmov %vm20104_vm0  ;;  %v16083_v39 = vld [vmem:[%s20098_s0 + $0x6c] sm:$0xf] }
0x1146   : > { %v13624_v47 = vpop.permute.xlu1 %13623  ;;  %14242 = vmatpush1.msra.mxu0 %v14235_v46  ;;  %v16077_v46 = vld [vmem:[%s20098_s0 + $0x54] sm:$0xf] }
0x1147   : > { %16046 = vmatmul.mubr.msk.f32.vlgmr.msra.gmra.mrb[12].mxu1 %vm20107_vm8, %v16045_v41  ;;  %16062 = vmatmul.mubr.msk.f32.vlgmr.msra.gmra.mrb[16].mxu0 %vm20108_vm10, %v16059_v42  ;;  %vm20122_vm8 = vcmask 736256   ;;  %vm20123_vm10 = vmmov %vm20104_vm0 }
0x1148   : > { %v13626_v48 = vpop.permute.xlu0 %13625  ;;  %13697 = vmatprep.mubr.f32.mxu1 %v18678_v4  ;;  %14388 = vmatprep.mubr.f32.mxu0 %v18678_v4 }
0x1149   : > { %v13627_v49 = vsel %vm20109_vm1, %v13624_v47, %v13626_v48  ;;  %13633 = vmatprep.subr.mxu1 %v13626_v48  ;;  %vm20124_vm1 = vmmov %vm20119_vm2 }
0x114a   : > { %v14315_v50 = vpop.permute.xlu1 %14314  ;;  %13634 = vmatpush1.msra.mxu1 %v13627_v49 }
0x114c   : > { %v14317_v51 = vpop.permute.xlu0 %14316 }
0x114d   : > { %v14318_v53 = vsel %vm20110_vm9, %v14315_v50, %v14317_v51  ;;  %14324 = vmatprep.subr.mxu0 %v14317_v51  ;;  %vm20125_vm9 = vmmov %vm20104_vm0  ;;  %v16087_v50 = vld [vmem:[%s20098_s0 + $0x78] sm:$0xf] }
0x114e   : > { %v13709_v54 = vpop.permute.xlu1 %13708  ;;  %14325 = vmatpush1.msra.mxu0 %v14318_v53  ;;  %v16079_v53 = vld [vmem:[%s20098_s0 + $0x58] sm:$0xf] }
0x114f   : > { %16048 = vmatmul.mubr.msk.f32.vlgmr.msra.gmra.mrb[12].mxu1 %vm20111_vm3, %v16047_v52  ;;  %16064 = vmatmul.mubr.msk.f32.vlgmr.msra.gmra.mrb[16].mxu0 %vm20112_vm12, %v16063_v44  ;;  %vm20126_vm3 = vcmask 728064   ;;  %vm20127_vm12 = vmmov %vm20104_vm0 }
0x1150   : > { %v13711_v55 = vpop.permute.xlu0 %13710  ;;  %13782 = vmatprep.mubr.f32.mxu1 %v18678_v4  ;;  %14473 = vmatprep.mubr.f32.mxu0 %v18678_v4 }
0x1151   : > { %v13712_v56 = vsel %vm20113_vm5, %v13709_v54, %v13711_v55  ;;  %13718 = vmatprep.subr.mxu1 %v13711_v55  ;;  %vm20128_vm5 = vcmask 941056  }
0x1152   : > { %v14400_v57 = vpop.permute.xlu1 %14399  ;;  %13719 = vmatpush1.msra.mxu1 %v13712_v56 }
0x1154   : > { %v14402_v58 = vpop.permute.xlu0 %14401 }
0x1155   : > { %v14403_v61 = vsel %vm20114_vm13, %v14400_v57, %v14402_v58  ;;  %14409 = vmatprep.subr.mxu0 %v14402_v58  ;;  %vm20129_vm13 = vmmov %vm20104_vm0  ;;  %v16089_v57 = vld [vmem:[%s20098_s0 + $0x7c] sm:$0xf] }
0x1156   : > { %v13794_v62 = vpop.permute.xlu1 %13793  ;;  %14410 = vmatpush1.msra.mxu0 %v14403_v61  ;;  %v16081_v61 = vld [vmem:[%s20098_s0 + $0x5c] sm:$0xf] }
0x1157   : > { %16050 = vmatmul.mubr.msk.f32.vlgmr.msra.gmra.mrb[12].mxu1 %vm20115_vm14, %v16049_v59  ;;  %16066 = vmatmul.mubr.msk.f32.vlgmr.msra.gmra.mrb[16].mxu0 %vm20116_vm15, %v16065_v60  ;;  %vm20130_vm14 = vmmov %vm20122_vm8 }
0x1158   : > { %v13796_v63 = vpop.permute.xlu0 %13795  ;;  %13867 = vmatprep.mubr.f32.mxu1 %v18678_v4  ;;  %14558 = vmatprep.mubr.f32.mxu0 %v18678_v4  ;;  %vm20131_vm15 = vmmov %vm20104_vm0 }
0x1159   : > { %v13797_v43 = vsel %vm20117_vm6, %v13794_v62, %v13796_v63  ;;  %13803 = vmatprep.subr.mxu1 %v13796_v63  ;;  %vm20132_vm6 = vcmask 744448  }
0x115a   : > { %v14485_v1 = vpop.permute.xlu1 %14484  ;;  %13804 = vmatpush1.msra.mxu1 %v13797_v43 }
0x115c   : > { %v14487_v3 = vpop.permute.xlu0 %14486 }
0x115d   : > { %v14488_v0 = vsel %vm3749_vm4, %v14485_v1, %v14487_v3  ;;  %14494 = vmatprep.subr.mxu0 %v14487_v3 }
0x115e   : > { %v13879_v9 = vpop.permute.xlu1 %13878  ;;  %14495 = vmatpush1.msra.mxu0 %v14488_v0 }
0x115f   : > { %16052 = vmatmul.mubr.msk.f32.vlgmr.msra.gmra.mrb[12].mxu1 %vm20118_vm11, %v16051_v45  ;;  %16068 = vmatmul.mubr.msk.f32.vlgmr.msra.gmra.mrb[16].mxu0 %vm20104_vm0, %v16067_v2  ;;  %vm20133_vm11 = vmmov %vm20104_vm0 }
0x1160   : > { %v13881_v5 = vpop.permute.xlu0 %13880  ;;  %13952 = vmatprep.mubr.f32.mxu1 %v18678_v4  ;;  %14643 = vmatprep.mubr.f32.mxu0 %v18678_v4 }
0x1161   : > { %v13882_v10 = vsel %vm3749_vm4, %v13879_v9, %v13881_v5  ;;  %13888 = vmatprep.subr.mxu1 %v13881_v5  ;;  %vm20121_vm4 = vmmov %vm20104_vm0 }
0x1162   : > { %v14570_v6 = vpop.permute.xlu1 %14569  ;;  %13889 = vmatpush1.msra.mxu1 %v13882_v10  ;;  %vm20134_vm0 = vmmov %vm20126_vm3 }
0x1164   : > { %v14572_v11 = vpop.permute.xlu0 %14571 }
0x1165   : > { %v14573_v14 = vsel %vm20119_vm2, %v14570_v6, %v14572_v11  ;;  %14579 = vmatprep.subr.mxu0 %v14572_v11  ;;  %vm20135_vm2 = vmmov %vm20121_vm4 }
0x1166   : > { %v14678_v15 = vpop.permute.xlu1 %14677  ;;  %14580 = vmatpush1.msra.mxu0 %v14573_v14 }
0x1167   : > { %16054 = vmatmul.mubr.msk.f32.vlgmr.msra.gmra.mrb[12].mxu1 %vm20120_vm7, %v16053_v12  ;;  %16070 = vmatmul.mubr.msk.f32.vlgmr.msra.gmra.mrb[16].mxu0 %vm20121_vm4, %v16069_v13  ;;  %vm20136_vm7 = vcmask 826368   ;;  %vm20137_vm4 = vmmov %vm20135_vm2 }
0x1168   : > { %v14680_v16 = vpop.permute.xlu0 %14679  ;;  %14037 = vmatprep.mubr.f32.mxu1 %v18678_v4  ;;  %14751 = vmatprep.mubr.f32.mxu0 %v18678_v4 }
0x1169   : > { %v14681_v18 = vsel %vm20122_vm8, %v14678_v15, %v14680_v16  ;;  %14687 = vmatprep.subr.mxu0 %v14680_v16  ;;  %vm20138_vm8 = vmmov %vm20136_vm7 }
0x116a   : > { %v13964_v19 = vpop.permute.xlu1 %13963  ;;  %14688 = vmatpush1.msra.mxu0 %v14681_v18 }
0x116b   : > { %16073 = vmatmul.mubr.msk.f32.vlgmr.msra.gmra.mrb[18].mxu0 %vm20123_vm10, %v16072_v17  ;;  %vm20139_vm10 = vmmov %vm20135_vm2 }
0x116c   : > { %v13966_v20 = vpop.permute.xlu0 %13965  ;;  %14832 = vmatprep.mubr.f32.mxu0 %v18678_v4 }
0x116d   : > { %v13967_v22 = vsel %vm20124_vm1, %v13964_v19, %v13966_v20  ;;  %13973 = vmatprep.subr.mxu1 %v13966_v20  ;;  %vm20140_vm1 = vcmask 834560  }
0x116e   : > { %v14759_v23 = vpop.permute.xlu1 %14758  ;;  %13974 = vmatpush1.msra.mxu1 %v13967_v22 }
0x116f   : > { %16056 = vmatmul.mubr.msk.f32.vlgmr.msra.gmra.mrb[12].mxu1 %vm20125_vm9, %v16055_v21  ;;  %vm20141_vm9 = vmmov %vm20135_vm2 }
0x1170   : > { %v14761_v24 = vpop.permute.xlu0 %14760  ;;  %14122 = vmatprep.mubr.f32.mxu1 %v18678_v4 }
0x1171   : > { %v14762_v26 = vsel %vm20126_vm3, %v14759_v23, %v14761_v24  ;;  %14768 = vmatprep.subr.mxu0 %v14761_v24  ;;  %vm20142_vm3 = vmmov %vm20140_vm1 }
0x1172   : > { %v14049_v27 = vpop.permute.xlu1 %14048  ;;  %14769 = vmatpush1.msra.mxu0 %v14762_v26 }
0x1173   : > { %16074 = vmatmul.mubr.msk.f32.vlgmr.msra.gmra.mrb[18].mxu0 %vm20127_vm12, %v16071_v25  ;;  %vm20144_vm12 = vmmov %vm20135_vm2 }
0x1174   : > { %v14051_v28 = vpop.permute.xlu0 %14050  ;;  %14915 = vmatprep.mubr.f32.mxu0 %v18678_v4 }
0x1175   : > { %v14052_v29 = vsel %vm20128_vm5, %v14049_v27, %v14051_v28  ;;  %14058 = vmatprep.subr.mxu1 %v14051_v28  ;;  %vm20145_vm5 = vcmask 842752  }
0x1176   : > { %v15198_v8 = vpop.permute.xlu1 %15197  ;;  %14059 = vmatpush1.msra.mxu1 %v14052_v29 }
0x1177   : > { %16058 = vmatmul.mubr.msk.f32.vlgmr.msra.gmra.mrb[12].mxu1 %vm20129_vm13, %v16057_v7  ;;  %vm20146_vm13 = vmmov %vm20135_vm2 }
0x1178   : > { %v15200_v30 = vpop.permute.xlu0 %15199  ;;  %15271 = vmatprep.mubr.f32.mxu1 %v18678_v4 }
0x1179   : > { %v15201_v32 = vsel %vm20130_vm14, %v15198_v8, %v15200_v30  ;;  %15207 = vmatprep.subr.mxu1 %v15200_v30  ;;  %vm14667_vm14 = vcmask 130052  }
0x117a   : > { %v14842_v33 = vpop.permute.xlu1 %14841  ;;  %15208 = vmatpush1.msra.mxu1 %v15201_v32 }
0x117b   : > { %16085 = vmatmul.mubr.msk.f32.vlgmr.msra.gmra.mrb[14].mxu1 %vm20131_vm15, %v16084_v31  ;;  %vm14140_vm15 = vcmask 125952  }
0x117c   : > { %v14844_v34 = vpop.permute.xlu0 %14843  ;;  %15352 = vmatprep.mubr.f32.mxu1 %v18678_v4 }
0x117d   : > { %v14845_v36 = vsel %vm20132_vm6, %v14842_v33, %v14844_v34  ;;  %14851 = vmatprep.subr.mxu0 %v14844_v34 }
0x117e   : > { %v15279_v37 = vpop.permute.xlu1 %15278  ;;  %14852 = vmatpush1.msra.mxu0 %v14845_v36 }
0x117f   : > { %16076 = vmatmul.mubr.msk.f32.vlgmr.msra.gmra.mrb[18].mxu0 %vm20133_vm11, %v16075_v35 }
0x1180   : > { %v15281_v38 = vpop.permute.xlu0 %15280  ;;  %15000 = vmatprep.mubr.f32.mxu0 %v18678_v4 }
0x1181   : > { %v15282_v40 = vsel %vm20134_vm0, %v15279_v37, %v15281_v38  ;;  %15288 = vmatprep.subr.mxu1 %v15281_v38 }
0x1182   : > { %v14927_v41 = vpop.permute.xlu1 %14926  ;;  %15289 = vmatpush1.msra.mxu1 %v15282_v40 }
0x1183   : > { %16086 = vmatmul.mubr.msk.f32.vlgmr.msra.gmra.mrb[14].mxu1 %vm20135_vm2, %v16083_v39 }
0x1184   : > { %v14929_v42 = vpop.permute.xlu0 %14928  ;;  %15435 = vmatprep.mubr.f32.mxu1 %v18678_v4 }
0x1185   : > { %v14930_v47 = vsel %vm20136_vm7, %v14927_v41, %v14929_v42  ;;  %14936 = vmatprep.subr.mxu0 %v14929_v42 }
0x1186   : > { %v15362_v48 = vpop.permute.xlu1 %15361  ;;  %14937 = vmatpush1.msra.mxu0 %v14930_v47 }
0x1187   : > { %16078 = vmatmul.mubr.msk.f32.vlgmr.msra.gmra.mrb[18].mxu0 %vm20137_vm4, %v16077_v46 }
0x1188   : > { %v15364_v49 = vpop.permute.xlu0 %15363  ;;  %15085 = vmatprep.mubr.f32.mxu0 %v18678_v4 }
0x1189   : > { %v15365_v51 = vsel %vm20138_vm8, %v15362_v48, %v15364_v49  ;;  %15371 = vmatprep.subr.mxu1 %v15364_v49 }
0x118a   : > { %v15012_v52 = vpop.permute.xlu1 %15011  ;;  %15372 = vmatpush1.msra.mxu1 %v15365_v51 }
0x118b   : > { %16088 = vmatmul.mubr.msk.f32.vlgmr.msra.gmra.mrb[14].mxu1 %vm20139_vm10, %v16087_v50 }
0x118c   : > { %v15014_v44 = vpop.permute.xlu0 %15013  ;;  %15520 = vmatprep.mubr.f32.mxu1 %v18678_v4 }
0x118d   : > { %v15015_v54 = vsel %vm20140_vm1, %v15012_v52, %v15014_v44  ;;  %15021 = vmatprep.subr.mxu0 %v15014_v44 }
0x118e   : > { %v15447_v55 = vpop.permute.xlu1 %15446  ;;  %15022 = vmatpush1.msra.mxu0 %v15015_v54 }
0x118f   : > { %16080 = vmatmul.mubr.msk.f32.vlgmr.msra.gmra.mrb[18].mxu0 %vm20141_vm9, %v16079_v53 }
0x1190   : > { %v15449_v56 = vpop.permute.xlu0 %15448  ;;  %15170 = vmatprep.mubr.f32.mxu0 %v18678_v4 }
0x1191   : > { %v15450_v58 = vsel %vm20142_vm3, %v15447_v55, %v15449_v56  ;;  %15456 = vmatprep.subr.mxu1 %v15449_v56 }
0x1192   : > { %15457 = vmatpush1.msra.mxu1 %v15450_v58  ;;  %v15097_v59 = vpop.permute.xlu1 %15096 }
0x1193   : > { %16090 = vmatmul.mubr.msk.f32.vlgmr.msra.gmra.mrb[14].mxu1 %vm20144_vm12, %v16089_v57 }
0x1194   : > { %v15099_v60 = vpop.permute.xlu0 %15098 }
0x1195   : > { %v15100_v62 = vsel %vm20145_vm5, %v15097_v59, %v15099_v60  ;;  %15106 = vmatprep.subr.mxu0 %v15099_v60 }
0x1196   : > { %15107 = vmatpush1.msra.mxu0 %v15100_v62 }
0x1197   : > { %16082 = vmatmul.mubr.msk.f32.vlgmr.msra.gmra.mrb[18].mxu0 %vm20146_vm13, %v16081_v61 }
0x11a3   : > { %v14656_v4 = vpop.permute.xlu1 %14655 }
0x11a5   : > { %v15533_v11 = vpop.permute.xlu0 %15532 }
0x11a7   : > { %v14135_v0 = vpop.permute.xlu1 %14134 }
0x11a9   : > { %v15183_v17 = vpop.permute.xlu0 %15182 }
0x123a   : > { %v14645_v63 = vpop.f32.mrb[16].mxu0 }
0x123b   : > { %v14658_v43 = vadd.f32 %v14656_v4, %v14645_v63  ;;  %v14647_v1 = vpop.f32.mrb[17].mxu0 }
0x123c   : > { %v14659_v3 = vadd.f32 %v14656_v4, %v14647_v1 }
0x123d   : > { %v14662_v45 = vrot.slane %v14658_v43, 4 }
0x123e   : > { %v14663_v2 = vrot.slane %v14659_v3, 4 }
0x123f   : > { %14666 = vst [vmem:[%s723_s2] sm:$0xf0] %v14662_v45 }
0x1240   : > { %14668 = vst.msk [vmem:[%s723_s2 + $0x8] sm:$0xf0] %vm14667_vm14, %v14663_v2 }
0x124a   : > { %v14124_v9 = vpop.f32.mrb[12].mxu1 }
0x124b   : > { %v14137_v5 = vadd.f32 %v14135_v0, %v14124_v9  ;;  %v14126_v10 = vpop.f32.mrb[13].mxu1 }
0x124c   : > { %v14138_v6 = vadd.f32 %v14135_v0, %v14126_v10 }
0x124d   : > { %14139 = vst [vmem:[%s723_s2] sm:$0xf] %v14137_v5 }
0x124e   : > { %14141 = vst.msk [vmem:[%s723_s2 + $0x8] sm:$0xf] %vm14140_vm15, %v14138_v6 }
0x1266   : > { %v15522_v12 = vpop.f32.mrb[14].mxu1 }
0x1267   : > { %v15535_v13 = vadd.f32 %v15533_v11, %v15522_v12  ;;  %v15524_v14 = vpop.f32.mrb[15].mxu1 }
0x1268   : > { %v15536_v15 = vadd.f32 %v15533_v11, %v15524_v14 }
0x1269   : > { %v15539_v16 = vrot.slane %v15535_v13, 4 }
0x126a   : > { %v15540_v18 = vrot.slane %v15536_v15, 4  ;;  %v15172_v19 = vpop.f32.mrb[18].mxu0 }
0x126b   : > { %15543 = vst [vmem:[%s723_s2 + $0x10] sm:$0xf0] %v15539_v16  ;;  %v15185_v20 = vadd.f32 %v15183_v17, %v15172_v19  ;;  %v15174_v21 = vpop.f32.mrb[19].mxu0 }
0x126c   : > { %15544 = vst.msk [vmem:[%s723_s2 + $0x18] sm:$0xf0] %vm14667_vm14, %v15540_v18  ;;  %v15186_v22 = vadd.f32 %v15183_v17, %v15174_v21 }
0x126d   : > { %15187 = vst [vmem:[%s723_s2 + $0x10] sm:$0xf] %v15185_v20 }
0x126e   : > { %15188 = vst.msk [vmem:[%s723_s2 + $0x18] sm:$0xf] %vm14140_vm15, %v15186_v22 }
0x126f PF: > { %s20149_s27 = sld [smem:[#allocation4_spill]] }
0x1275   : > { %s34_s4 = sadd.s32 1, %s20149_s27  }
0x1276   : > { %p31_p4 = scmp.ge.s32.totalorder %s34_s4, 4  }
0x1278   :  { %33 = sbr.rel (!%p31_p4) target bundleno = 25 (0x19), region = 294 }

</bundles_post_ra>
